<compile_context>
chip_gen: v5e
topology: v5e:2x2
jax: 0.10.0
libtpu: 0.0.40
codegen_flags: <defaults>
</compile_context>

<pallas_src>
import functools

import jax
import jax.numpy as jnp
from jax import lax
from jax.experimental import pallas as pl
from jax.experimental.pallas import tpu as pltpu

EPS = 1e-5
LANE = 128
# 48 MiB: safe on v7x (64 MiB physical per TC), more headroom than the 32 MiB
# scoped default on v5e/v6e (128 MiB physical).
VMEM_LIMIT = 48 * 1024 * 1024


def _round_up(x, m):
  return (x + m - 1) // m * m


def _pick_batch_block(n, per_image_bytes, budget_bytes=12 << 20):
  """Largest divisor of n whose per-step footprint fits the budget, capped so
  the grid keeps >= 2 steps (v7x megacore) whenever n allows it."""
  b = max(1, min(n, int(budget_bytes // max(per_image_bytes, 1))))
  if n >= 2:
    b = min(b, max(1, n // 2))
  while n % b:
    b -= 1
  return b


# ---------------------------------------------------------------------------
# Kernel 1/2: [optional fused input BN+ReLU] -> 3x3 conv via nine
#             shifted-accumulate MXU matmuls -> per-step partial BN stats.
# ---------------------------------------------------------------------------
def _conv3x3_bn_stats_kernel(*refs, fuse_input_bn_relu):
  if fuse_input_bn_relu:
    (x_ref, scale_ref, shift_ref, w_ref,
     y_ref, sum_ref, sq_ref, xpad_ref) = refs
  else:
    x_ref, w_ref, y_ref, sum_ref, sq_ref, xpad_ref = refs

  b_blk, hp, wp, cin = xpad_ref.shape
  H, W = hp - 2, wp - 2
  cout = w_ref.shape[1]
  m = b_blk * H * W

  x = x_ref[...]                                   # (b_blk, H, W, cin)
  if fuse_input_bn_relu:
    # Training-mode BN of the previous conv (scale/shift precomputed in the
    # wrapper from exact f32 batch stats) + ReLU, in f32.
    x = jnp.maximum(
        x.astype(jnp.float32) * scale_ref[...].reshape(1, 1, 1, cin)
        + shift_ref[...].reshape(1, 1, 1, cin), 0.0)
  x = x.astype(xpad_ref.dtype)

  # Zero the 1-pixel halo border every step (the batch grid axis is 'parallel'
  # so per-core scratch cannot rely on a one-time pl.when(b == 0) init), then
  # stage the interior.  Border writes are tiny (perimeter * cin).
  zr = jnp.zeros((b_blk, 1, wp, cin), xpad_ref.dtype)
  zc = jnp.zeros((b_blk, hp, 1, cin), xpad_ref.dtype)
  xpad_ref[:, 0:1, :, :] = zr
  xpad_ref[:, hp - 1:hp, :, :] = zr
  xpad_ref[:, :, 0:1, :] = zc
  xpad_ref[:, :, wp - 1:wp, :] = zc
  xpad_ref[:, 1:H + 1, 1:W + 1, :] = x

  # Shifted-accumulate 3x3 conv: nine lane-dense MXU matmuls accumulated in
  # f32 -- no materialized (M, 9*cin) im2col buffer.  The conv bias is dropped:
  # it cancels exactly under training-mode BatchNorm.
  acc = jnp.zeros((m, cout), jnp.float32)
  for k in range(9):
    dy, dx = divmod(k, 3)
    lhs = xpad_ref[:, dy:dy + H, dx:dx + W, :].reshape(m, cin)
    acc = acc + jnp.dot(lhs, w_ref[k * cin:(k + 1) * cin, :],
                        preferred_element_type=jnp.float32)

  # bf16 activation writeback (largest HBM round trip of the block).
  y_ref[...] = acc.reshape(b_blk, H, W, cout).astype(y_ref.dtype)
  # Per-step partial raw BN statistics in exact f32; reduced across grid steps
  # in the wrapper (keeps the batch axis 'parallel' for the v7x megacore).
  sum_ref[...] = jnp.sum(acc, axis=0, keepdims=True).reshape(1, 1, cout)
  sq_ref[...] = jnp.sum(acc * acc, axis=0, keepdims=True).reshape(1, 1, cout)


# ---------------------------------------------------------------------------
# Kernel 3: apply BN2 scale/shift, lane-dense 2-D streaming.
# ---------------------------------------------------------------------------
def _bn_affine_kernel(y_ref, scale_ref, shift_ref, o_ref):
  c = y_ref.shape[-1]
  o_ref[...] = (y_ref[...].astype(jnp.float32) * scale_ref[...].reshape(1, c)
                + shift_ref[...].reshape(1, c))


# ---------------------------------------------------------------------------
# Wrapper
# ---------------------------------------------------------------------------
@jax.jit
def basic_block_forward(x_nchw, params):
  """Forward of BasicBlock. Returns (out, residual), both NCHW."""
  w1, b1, g1, be1, w2, b2, g2, be2 = params
  del b1, b2  # conv biases cancel exactly under training-mode BatchNorm
  N, Cin, H, W = x_nchw.shape
  Cmid = w1.shape[-1]
  Cout = w2.shape[-1]
  Cin_p = _round_up(Cin, LANE)
  Cmid_p = _round_up(Cmid, LANE)
  Cout_p = _round_up(Cout, LANE)
  inv_count = 1.0 / (N * H * W)

  # NCHW -> NHWC, pad channels to the 128-lane width, bf16 MXU operands.
  x = jnp.transpose(x_nchw, (0, 2, 3, 1)).astype(jnp.float32)
  x = jnp.pad(x, ((0, 0), (0, 0), (0, 0), (0, Cin_p - Cin))).astype(jnp.bfloat16)

  def pad_w(w, cip, cop):
    kh, kw, ci, co = w.shape
    w = jnp.pad(w.astype(jnp.float32),
                ((0, 0), (0, 0), (0, cip - ci), (0, cop - co)))
    return w.reshape(kh * kw * cip, cop).astype(jnp.bfloat16)   # im2col layout

  def pad_vec(v, cp):
    return jnp.pad(v.astype(jnp.float32), (0, cp - v.shape[0]))

  w1m = pad_w(w1, Cin_p, Cmid_p)
  w2m = pad_w(w2, Cmid_p, Cout_p)

  cparams = pltpu.CompilerParams(
      dimension_semantics=("parallel",),            # megacore-friendly (v7x)
      vmem_limit_bytes=VMEM_LIMIT)

  def conv_call(cin_p, cout_p, fuse):
    # Per-step VMEM estimate: double-buffered in/out blocks + halo scratch +
    # f32 accumulator -> batch block size.
    per_img = (H * W * cin_p * 2 * 2 + H * W * cout_p * 2 * 2
               + (H + 2) * (W + 2) * cin_p * 2 + H * W * cout_p * 4)
    b_blk = _pick_batch_block(N, per_img)
    g = N // b_blk
    in_specs = [pl.BlockSpec((b_blk, H, W, cin_p), lambda b: (b, 0, 0, 0))]
    if fuse:
      in_specs += [pl.BlockSpec((1, cin_p), lambda b: (0, 0))] * 2
    in_specs += [pl.BlockSpec((9 * cin_p, cout_p), lambda b: (0, 0))]
    return pl.pallas_call(
        functools.partial(_conv3x3_bn_stats_kernel, fuse_input_bn_relu=fuse),
        grid=(g,),
        in_specs=in_specs,
        out_specs=(
            pl.BlockSpec((b_blk, H, W, cout_p), lambda b: (b, 0, 0, 0)),
            pl.BlockSpec((1, 1, cout_p), lambda b: (b, 0, 0)),
            pl.BlockSpec((1, 1, cout_p), lambda b: (b, 0, 0)),
        ),
        out_shape=(
            jax.ShapeDtypeStruct((N, H, W, cout_p), jnp.bfloat16),
            jax.ShapeDtypeStruct((g, 1, cout_p), jnp.float32),
            jax.ShapeDtypeStruct((g, 1, cout_p), jnp.float32),
        ),
        scratch_shapes=[
            pltpu.VMEM((b_blk, H + 2, W + 2, cin_p), jnp.bfloat16),  # halo
        ],
        compiler_params=cparams,
    )

  def bn_scale_shift(s_part, q_part, gamma, beta, cp):
    s = jnp.sum(s_part, axis=(0, 1))                 # reduce per-step partials
    q = jnp.sum(q_part, axis=(0, 1))
    mean = s * inv_count
    var = q * inv_count - mean * mean
    scale = pad_vec(gamma, cp) * lax.rsqrt(var + EPS)
    shift = pad_vec(beta, cp) - mean * scale
    return scale.reshape(1, cp), shift.reshape(1, cp)

  # conv1 -> partial stats for bn1
  y1, s1, q1 = conv_call(Cin_p, Cmid_p, fuse=False)(x, w1m)
  scale1, shift1 = bn_scale_shift(s1, q1, g1, be1, Cmid_p)
  # bn1 + relu fused into conv2's input stage -> partial stats for bn2
  y2, s2, q2 = conv_call(Cmid_p, Cout_p, fuse=True)(y1, scale1, shift1, w2m)
  scale2, shift2 = bn_scale_shift(s2, q2, g2, be2, Cout_p)

  # bn2 apply: lane-dense 2-D streaming over (N*H*W, Cout_p).
  rows = N * H * W
  per_img2 = H * W * Cout_p * (2 + 4) * 2
  b2 = _pick_batch_block(N, per_img2)
  r_blk = b2 * H * W
  out_flat = pl.pallas_call(
      _bn_affine_kernel,
      grid=(rows // r_blk,),
      in_specs=[
          pl.BlockSpec((r_blk, Cout_p), lambda r: (r, 0)),
          pl.BlockSpec((1, Cout_p), lambda r: (0, 0)),
          pl.BlockSpec((1, Cout_p), lambda r: (0, 0)),
      ],
      out_specs=pl.BlockSpec((r_blk, Cout_p), lambda r: (r, 0)),
      out_shape=jax.ShapeDtypeStruct((rows, Cout_p), jnp.float32),
      compiler_params=cparams,
  )(y2.reshape(rows, Cout_p), scale2, shift2)

  out = out_flat.reshape(N, H, W, Cout_p)[..., :Cout]
  out_nchw = jnp.transpose(out, (0, 3, 1, 2))
  residual = x_nchw  # downsample is None for the default stride-1 BasicBlock
  return out_nchw, residual


# ---------------------------------------------------------------------------
# Pure-JAX reference (lax.conv) with the same quantization points as the
# kernels: bf16 MXU operands, bf16 inter-conv activation storage, exact f32
# BN statistics.  Conv biases are omitted (they cancel exactly under
# training-mode BatchNorm, matching the kernel).
# ---------------------------------------------------------------------------
def _reference_forward(x_nchw, params):
  w1, b1, g1, be1, w2, b2, g2, be2 = params
  del b1, b2
  x = jnp.transpose(x_nchw, (0, 2, 3, 1)).astype(jnp.float32)
  xb = x.astype(jnp.bfloat16).astype(jnp.float32)
  w1b = w1.astype(jnp.bfloat16).astype(jnp.float32)
  w2b = w2.astype(jnp.bfloat16).astype(jnp.float32)
  dn = ('NHWC', 'HWIO', 'NHWC')

  def bn_apply(y, g, be):
    # stats from the f32 conv output, applied to its bf16-rounded storage
    m = y.mean(axis=(0, 1, 2))
    v = ((y - m) ** 2).mean(axis=(0, 1, 2))
    yq = y.astype(jnp.bfloat16).astype(jnp.float32)
    return (yq - m) * lax.rsqrt(v + EPS) * g + be

  y1 = lax.conv_general_dilated(xb, w1b, (1, 1), 'SAME', dimension_numbers=dn)
  h = jnp.maximum(bn_apply(y1, g1, be1), 0.0)
  hb = h.astype(jnp.bfloat16).astype(jnp.float32)
  y2 = lax.conv_general_dilated(hb, w2b, (1, 1), 'SAME', dimension_numbers=dn)
  out = bn_apply(y2, g2, be2)
  return jnp.transpose(out, (0, 3, 1, 2)), x_nchw


def make_params(key, inplanes, planes):
  k1, k2, k3, k4 = jax.random.split(key, 4)
  scale1 = 1.0 / jnp.sqrt(9.0 * inplanes)
  scale2 = 1.0 / jnp.sqrt(9.0 * planes)
  w1 = jax.random.normal(k1, (3, 3, inplanes, planes), jnp.float32) * scale1
  b1 = jax.random.normal(k2, (planes,), jnp.float32) * scale1
  w2 = jax.random.normal(k3, (3, 3, planes, planes), jnp.float32) * scale2
  b2 = jax.random.normal(k4, (planes,), jnp.float32) * scale2
  g1 = jnp.ones((planes,), jnp.float32)
  be1 = jnp.zeros((planes,), jnp.float32)
  g2 = jnp.ones((planes,), jnp.float32)
  be2 = jnp.zeros((planes,), jnp.float32)
  return (w1, b1, g1, be1, w2, b2, g2, be2)


if __name__ == "__main__":
  key = jax.random.PRNGKey(0)
  kx, kp = jax.random.split(key)

  N, Cin, H, W = 2, 8, 16, 16   # inplanes=8, planes=8, stride=1
  planes = 8
  x = jax.random.normal(kx, (N, Cin, H, W), jnp.float32)
  params = make_params(kp, Cin, planes)

  out, residual = basic_block_forward(x, params)
  jax.block_until_ready((out, residual))

  out_ref, res_ref = _reference_forward(x, params)
  assert out.shape == (N, planes, H, W)
  assert residual.shape == x.shape
  assert jnp.allclose(residual, res_ref)
  max_err = float(jnp.max(jnp.abs(out - out_ref)))
  assert jnp.allclose(out, out_ref, atol=2e-3, rtol=2e-3), max_err

  print("KERNEL_OK")
</pallas_src>

<mosaic_0001>
module attributes {stable_mosaic.version = 11 : i64} {
  func.func @_conv3x3_bn_stats_kernel(%arg0: i32, %arg1: memref<1x16x16x128xbf16, #tpu.memory_space<vmem>>, %arg2: memref<1152x128xbf16, #tpu.memory_space<vmem>>, %arg3: memref<1x16x16x128xbf16, #tpu.memory_space<vmem>>, %arg4: memref<1x1x128xf32, #tpu.memory_space<vmem>>, %arg5: memref<1x1x128xf32, #tpu.memory_space<vmem>>, %arg6: memref<1x18x18x128xbf16, #tpu.memory_space<vmem>>) attributes {dimension_semantics = [#tpu.dimension_semantics<parallel>], iteration_bounds = array<i64: 2>, scalar_prefetch = 0 : i64, scratch_operands = 1 : i64, tpu.core_type = #tpu.core_type<tc>, window_params = [{transform_indices = @transform_0, window_bounds = array<i64: 1, 16, 16, 128>}, {pipeline_mode = #tpu.pipeline_mode<synchronous>, transform_indices = @transform_1, window_bounds = array<i64: 1152, 128>}, {transform_indices = @transform_2, window_bounds = array<i64: 1, 16, 16, 128>}, {transform_indices = @transform_3, window_bounds = array<i64: 1, 1, 128>}, {transform_indices = @transform_4, window_bounds = array<i64: 1, 1, 128>}]} {
    %c0 = arith.constant 0 : index
    %c0_0 = arith.constant 0 : index
    %c0_1 = arith.constant 0 : index
    %c0_2 = arith.constant 0 : index
    %0 = vector.load %arg1[%c0, %c0_0, %c0_1, %c0_2] : memref<1x16x16x128xbf16, #tpu.memory_space<vmem>>, vector<1x16x16x128xbf16>
    %cst = arith.constant 0.000000e+00 : bf16
    %1 = vector.broadcast %cst : bf16 to vector<1x1x18x128xbf16>
    %cst_3 = arith.constant 0.000000e+00 : bf16
    %2 = vector.broadcast %cst_3 : bf16 to vector<1x18x1x128xbf16>
    %c0_4 = arith.constant 0 : index
    %c0_5 = arith.constant 0 : index
    %c0_6 = arith.constant 0 : index
    %c0_7 = arith.constant 0 : index
    %3 = vector.load %arg6[%c0_4, %c0_5, %c0_6, %c0_7] : memref<1x18x18x128xbf16, #tpu.memory_space<vmem>>, vector<1x1x18x128xbf16>
    tpu.vector_store %arg6[%c0_4, %c0_5, %c0_6, %c0_7], %1 {strides = array<i32>} : memref<1x18x18x128xbf16, #tpu.memory_space<vmem>>, vector<1x1x18x128xbf16>,
    %c0_8 = arith.constant 0 : index
    %c17 = arith.constant 17 : index
    %c0_9 = arith.constant 0 : index
    %c0_10 = arith.constant 0 : index
    %4 = vector.load %arg6[%c0_8, %c17, %c0_9, %c0_10] : memref<1x18x18x128xbf16, #tpu.memory_space<vmem>>, vector<1x1x18x128xbf16>
    tpu.vector_store %arg6[%c0_8, %c17, %c0_9, %c0_10], %1 {strides = array<i32>} : memref<1x18x18x128xbf16, #tpu.memory_space<vmem>>, vector<1x1x18x128xbf16>,
    %c0_11 = arith.constant 0 : index
    %c0_12 = arith.constant 0 : index
    %c0_13 = arith.constant 0 : index
    %c0_14 = arith.constant 0 : index
    %5 = vector.load %arg6[%c0_11, %c0_12, %c0_13, %c0_14] : memref<1x18x18x128xbf16, #tpu.memory_space<vmem>>, vector<1x18x1x128xbf16>
    tpu.vector_store %arg6[%c0_11, %c0_12, %c0_13, %c0_14], %2 {strides = array<i32>} : memref<1x18x18x128xbf16, #tpu.memory_space<vmem>>, vector<1x18x1x128xbf16>,
    %c0_15 = arith.constant 0 : index
    %c0_16 = arith.constant 0 : index
    %c17_17 = arith.constant 17 : index
    %c0_18 = arith.constant 0 : index
    %6 = vector.load %arg6[%c0_15, %c0_16, %c17_17, %c0_18] : memref<1x18x18x128xbf16, #tpu.memory_space<vmem>>, vector<1x18x1x128xbf16>
    tpu.vector_store %arg6[%c0_15, %c0_16, %c17_17, %c0_18], %2 {strides = array<i32>} : memref<1x18x18x128xbf16, #tpu.memory_space<vmem>>, vector<1x18x1x128xbf16>,
    %c0_19 = arith.constant 0 : index
    %c1 = arith.constant 1 : index
    %c1_20 = arith.constant 1 : index
    %c0_21 = arith.constant 0 : index
    %7 = vector.load %arg6[%c0_19, %c1, %c1_20, %c0_21] : memref<1x18x18x128xbf16, #tpu.memory_space<vmem>>, vector<1x16x16x128xbf16>
    tpu.vector_store %arg6[%c0_19, %c1, %c1_20, %c0_21], %0 {strides = array<i32>} : memref<1x18x18x128xbf16, #tpu.memory_space<vmem>>, vector<1x16x16x128xbf16>,
    %cst_22 = arith.constant 0.000000e+00 : f32
    %8 = vector.broadcast %cst_22 : f32 to vector<256x128xf32>
    %c0_23 = arith.constant 0 : index
    %c0_24 = arith.constant 0 : index
    %c0_25 = arith.constant 0 : index
    %c0_26 = arith.constant 0 : index
    %9 = vector.load %arg6[%c0_23, %c0_24, %c0_25, %c0_26] : memref<1x18x18x128xbf16, #tpu.memory_space<vmem>>, vector<1x16x16x128xbf16>
    %10 = vector.shape_cast %9 : vector<1x16x16x128xbf16> to vector<256x128xbf16>
    %c0_27 = arith.constant 0 : index
    %c0_28 = arith.constant 0 : index
    %11 = vector.load %arg2[%c0_27, %c0_28] : memref<1152x128xbf16, #tpu.memory_space<vmem>>, vector<128x128xbf16>
    %cst_29 = arith.constant dense<0.000000e+00> : vector<256x128xf32>
    %12 = tpu.matmul %10, %11, %cst_29 {dimension_numbers = #tpu.dot_dimension_numbers<[1], [0], [0], [1], [0, 0, 1, 1], [], []>} : vector<256x128xbf16>, vector<128x128xbf16>, vector<256x128xf32> -> vector<256x128xf32>
    %13 = arith.addf %8, %12 : vector<256x128xf32>
    %c0_30 = arith.constant 0 : index
    %c0_31 = arith.constant 0 : index
    %c1_32 = arith.constant 1 : index
    %c0_33 = arith.constant 0 : index
    %14 = vector.load %arg6[%c0_30, %c0_31, %c1_32, %c0_33] : memref<1x18x18x128xbf16, #tpu.memory_space<vmem>>, vector<1x16x16x128xbf16>
    %15 = vector.shape_cast %14 : vector<1x16x16x128xbf16> to vector<256x128xbf16>
    %c128 = arith.constant 128 : index
    %c0_34 = arith.constant 0 : index
    %16 = vector.load %arg2[%c128, %c0_34] : memref<1152x128xbf16, #tpu.memory_space<vmem>>, vector<128x128xbf16>
    %cst_35 = arith.constant dense<0.000000e+00> : vector<256x128xf32>
    %17 = tpu.matmul %15, %16, %cst_35 {dimension_numbers = #tpu.dot_dimension_numbers<[1], [0], [0], [1], [0, 0, 1, 1], [], []>} : vector<256x128xbf16>, vector<128x128xbf16>, vector<256x128xf32> -> vector<256x128xf32>
    %18 = arith.addf %13, %17 : vector<256x128xf32>
    %c0_36 = arith.constant 0 : index
    %c0_37 = arith.constant 0 : index
    %c2 = arith.constant 2 : index
    %c0_38 = arith.constant 0 : index
    %19 = vector.load %arg6[%c0_36, %c0_37, %c2, %c0_38] : memref<1x18x18x128xbf16, #tpu.memory_space<vmem>>, vector<1x16x16x128xbf16>
    %20 = vector.shape_cast %19 : vector<1x16x16x128xbf16> to vector<256x128xbf16>
    %c256 = arith.constant 256 : index
    %c0_39 = arith.constant 0 : index
    %21 = vector.load %arg2[%c256, %c0_39] : memref<1152x128xbf16, #tpu.memory_space<vmem>>, vector<128x128xbf16>
    %cst_40 = arith.constant dense<0.000000e+00> : vector<256x128xf32>
    %22 = tpu.matmul %20, %21, %cst_40 {dimension_numbers = #tpu.dot_dimension_numbers<[1], [0], [0], [1], [0, 0, 1, 1], [], []>} : vector<256x128xbf16>, vector<128x128xbf16>, vector<256x128xf32> -> vector<256x128xf32>
    %23 = arith.addf %18, %22 : vector<256x128xf32>
    %c0_41 = arith.constant 0 : index
    %c1_42 = arith.constant 1 : index
    %c0_43 = arith.constant 0 : index
    %c0_44 = arith.constant 0 : index
    %24 = vector.load %arg6[%c0_41, %c1_42, %c0_43, %c0_44] : memref<1x18x18x128xbf16, #tpu.memory_space<vmem>>, vector<1x16x16x128xbf16>
    %25 = vector.shape_cast %24 : vector<1x16x16x128xbf16> to vector<256x128xbf16>
    %c384 = arith.constant 384 : index
    %c0_45 = arith.constant 0 : index
    %26 = vector.load %arg2[%c384, %c0_45] : memref<1152x128xbf16, #tpu.memory_space<vmem>>, vector<128x128xbf16>
    %cst_46 = arith.constant dense<0.000000e+00> : vector<256x128xf32>
    %27 = tpu.matmul %25, %26, %cst_46 {dimension_numbers = #tpu.dot_dimension_numbers<[1], [0], [0], [1], [0, 0, 1, 1], [], []>} : vector<256x128xbf16>, vector<128x128xbf16>, vector<256x128xf32> -> vector<256x128xf32>
    %28 = arith.addf %23, %27 : vector<256x128xf32>
    %c0_47 = arith.constant 0 : index
    %c1_48 = arith.constant 1 : index
    %c1_49 = arith.constant 1 : index
    %c0_50 = arith.constant 0 : index
    %29 = vector.load %arg6[%c0_47, %c1_48, %c1_49, %c0_50] : memref<1x18x18x128xbf16, #tpu.memory_space<vmem>>, vector<1x16x16x128xbf16>
    %30 = vector.shape_cast %29 : vector<1x16x16x128xbf16> to vector<256x128xbf16>
    %c512 = arith.constant 512 : index
    %c0_51 = arith.constant 0 : index
    %31 = vector.load %arg2[%c512, %c0_51] : memref<1152x128xbf16, #tpu.memory_space<vmem>>, vector<128x128xbf16>
    %cst_52 = arith.constant dense<0.000000e+00> : vector<256x128xf32>
    %32 = tpu.matmul %30, %31, %cst_52 {dimension_numbers = #tpu.dot_dimension_numbers<[1], [0], [0], [1], [0, 0, 1, 1], [], []>} : vector<256x128xbf16>, vector<128x128xbf16>, vector<256x128xf32> -> vector<256x128xf32>
    %33 = arith.addf %28, %32 : vector<256x128xf32>
    %c0_53 = arith.constant 0 : index
    %c1_54 = arith.constant 1 : index
    %c2_55 = arith.constant 2 : index
    %c0_56 = arith.constant 0 : index
    %34 = vector.load %arg6[%c0_53, %c1_54, %c2_55, %c0_56] : memref<1x18x18x128xbf16, #tpu.memory_space<vmem>>, vector<1x16x16x128xbf16>
    %35 = vector.shape_cast %34 : vector<1x16x16x128xbf16> to vector<256x128xbf16>
    %c640 = arith.constant 640 : index
    %c0_57 = arith.constant 0 : index
    %36 = vector.load %arg2[%c640, %c0_57] : memref<1152x128xbf16, #tpu.memory_space<vmem>>, vector<128x128xbf16>
    %cst_58 = arith.constant dense<0.000000e+00> : vector<256x128xf32>
    %37 = tpu.matmul %35, %36, %cst_58 {dimension_numbers = #tpu.dot_dimension_numbers<[1], [0], [0], [1], [0, 0, 1, 1], [], []>} : vector<256x128xbf16>, vector<128x128xbf16>, vector<256x128xf32> -> vector<256x128xf32>
    %38 = arith.addf %33, %37 : vector<256x128xf32>
    %c0_59 = arith.constant 0 : index
    %c2_60 = arith.constant 2 : index
    %c0_61 = arith.constant 0 : index
    %c0_62 = arith.constant 0 : index
    %39 = vector.load %arg6[%c0_59, %c2_60, %c0_61, %c0_62] : memref<1x18x18x128xbf16, #tpu.memory_space<vmem>>, vector<1x16x16x128xbf16>
    %40 = vector.shape_cast %39 : vector<1x16x16x128xbf16> to vector<256x128xbf16>
    %c768 = arith.constant 768 : index
    %c0_63 = arith.constant 0 : index
    %41 = vector.load %arg2[%c768, %c0_63] : memref<1152x128xbf16, #tpu.memory_space<vmem>>, vector<128x128xbf16>
    %cst_64 = arith.constant dense<0.000000e+00> : vector<256x128xf32>
    %42 = tpu.matmul %40, %41, %cst_64 {dimension_numbers = #tpu.dot_dimension_numbers<[1], [0], [0], [1], [0, 0, 1, 1], [], []>} : vector<256x128xbf16>, vector<128x128xbf16>, vector<256x128xf32> -> vector<256x128xf32>
    %43 = arith.addf %38, %42 : vector<256x128xf32>
    %c0_65 = arith.constant 0 : index
    %c2_66 = arith.constant 2 : index
    %c1_67 = arith.constant 1 : index
    %c0_68 = arith.constant 0 : index
    %44 = vector.load %arg6[%c0_65, %c2_66, %c1_67, %c0_68] : memref<1x18x18x128xbf16, #tpu.memory_space<vmem>>, vector<1x16x16x128xbf16>
    %45 = vector.shape_cast %44 : vector<1x16x16x128xbf16> to vector<256x128xbf16>
    %c896 = arith.constant 896 : index
    %c0_69 = arith.constant 0 : index
    %46 = vector.load %arg2[%c896, %c0_69] : memref<1152x128xbf16, #tpu.memory_space<vmem>>, vector<128x128xbf16>
    %cst_70 = arith.constant dense<0.000000e+00> : vector<256x128xf32>
    %47 = tpu.matmul %45, %46, %cst_70 {dimension_numbers = #tpu.dot_dimension_numbers<[1], [0], [0], [1], [0, 0, 1, 1], [], []>} : vector<256x128xbf16>, vector<128x128xbf16>, vector<256x128xf32> -> vector<256x128xf32>
    %48 = arith.addf %43, %47 : vector<256x128xf32>
    %c0_71 = arith.constant 0 : index
    %c2_72 = arith.constant 2 : index
    %c2_73 = arith.constant 2 : index
    %c0_74 = arith.constant 0 : index
    %49 = vector.load %arg6[%c0_71, %c2_72, %c2_73, %c0_74] : memref<1x18x18x128xbf16, #tpu.memory_space<vmem>>, vector<1x16x16x128xbf16>
    %50 = vector.shape_cast %49 : vector<1x16x16x128xbf16> to vector<256x128xbf16>
    %c1024 = arith.constant 1024 : index
    %c0_75 = arith.constant 0 : index
    %51 = vector.load %arg2[%c1024, %c0_75] : memref<1152x128xbf16, #tpu.memory_space<vmem>>, vector<128x128xbf16>
    %cst_76 = arith.constant dense<0.000000e+00> : vector<256x128xf32>
    %52 = tpu.matmul %50, %51, %cst_76 {dimension_numbers = #tpu.dot_dimension_numbers<[1], [0], [0], [1], [0, 0, 1, 1], [], []>} : vector<256x128xbf16>, vector<128x128xbf16>, vector<256x128xf32> -> vector<256x128xf32>
    %53 = arith.addf %48, %52 : vector<256x128xf32>
    %54 = vector.shape_cast %53 : vector<256x128xf32> to vector<1x16x16x128xf32>
    %55 = arith.truncf %54 : vector<1x16x16x128xf32> to vector<1x16x16x128xbf16>
    %c0_77 = arith.constant 0 : index
    %c0_78 = arith.constant 0 : index
    %c0_79 = arith.constant 0 : index
    %c0_80 = arith.constant 0 : index
    %56 = vector.load %arg3[%c0_77, %c0_78, %c0_79, %c0_80] : memref<1x16x16x128xbf16, #tpu.memory_space<vmem>>, vector<1x16x16x128xbf16>
    tpu.vector_store %arg3[%c0_77, %c0_78, %c0_79, %c0_80], %55 {strides = array<i32>} : memref<1x16x16x128xbf16, #tpu.memory_space<vmem>>, vector<1x16x16x128xbf16>,
    %cst_81 = arith.constant dense<0.000000e+00> : vector<128xf32>
    %57 = vector.multi_reduction <add>, %53, %cst_81 [0] : vector<256x128xf32> to vector<128xf32>
    %58 = vector.shape_cast %57 : vector<128xf32> to vector<1x128xf32>
    %59 = vector.shape_cast %58 : vector<1x128xf32> to vector<1x1x128xf32>
    %c0_82 = arith.constant 0 : index
    %c0_83 = arith.constant 0 : index
    %c0_84 = arith.constant 0 : index
    %60 = vector.load %arg4[%c0_82, %c0_83, %c0_84] : memref<1x1x128xf32, #tpu.memory_space<vmem>>, vector<1x1x128xf32>
    tpu.vector_store %arg4[%c0_82, %c0_83, %c0_84], %59 {strides = array<i32>} : memref<1x1x128xf32, #tpu.memory_space<vmem>>, vector<1x1x128xf32>,
    %61 = arith.mulf %53, %53 : vector<256x128xf32>
    %cst_85 = arith.constant dense<0.000000e+00> : vector<128xf32>
    %62 = vector.multi_reduction <add>, %61, %cst_85 [0] : vector<256x128xf32> to vector<128xf32>
    %63 = vector.shape_cast %62 : vector<128xf32> to vector<1x128xf32>
    %64 = vector.shape_cast %63 : vector<1x128xf32> to vector<1x1x128xf32>
    %c0_86 = arith.constant 0 : index
    %c0_87 = arith.constant 0 : index
    %c0_88 = arith.constant 0 : index
    %65 = vector.load %arg5[%c0_86, %c0_87, %c0_88] : memref<1x1x128xf32, #tpu.memory_space<vmem>>, vector<1x1x128xf32>
    tpu.vector_store %arg5[%c0_86, %c0_87, %c0_88], %64 {strides = array<i32>} : memref<1x1x128xf32, #tpu.memory_space<vmem>>, vector<1x1x128xf32>,
    return
  }
  func.func @transform_0(%arg0: i32) -> (i32, i32, i32, i32) {
    %c0_i32 = arith.constant 0 : i32
    %c0_i32_0 = arith.constant 0 : i32
    %c0_i32_1 = arith.constant 0 : i32
    %c0_i32_2 = arith.constant 0 : i32
    return %arg0, %c0_i32, %c0_i32_0, %c0_i32_1 : i32, i32, i32, i32
  }
  func.func @transform_1(%arg0: i32) -> (i32, i32) {
    %c0_i32 = arith.constant 0 : i32
    %c0_i32_0 = arith.constant 0 : i32
    %c0_i32_1 = arith.constant 0 : i32
    return %c0_i32, %c0_i32_0 : i32, i32
  }
  func.func @transform_2(%arg0: i32) -> (i32, i32, i32, i32) {
    %c0_i32 = arith.constant 0 : i32
    %c0_i32_0 = arith.constant 0 : i32
    %c0_i32_1 = arith.constant 0 : i32
    %c0_i32_2 = arith.constant 0 : i32
    return %arg0, %c0_i32, %c0_i32_0, %c0_i32_1 : i32, i32, i32, i32
  }
  func.func @transform_3(%arg0: i32) -> (i32, i32, i32) {
    %c0_i32 = arith.constant 0 : i32
    %c0_i32_0 = arith.constant 0 : i32
    %c0_i32_1 = arith.constant 0 : i32
    return %arg0, %c0_i32, %c0_i32_0 : i32, i32, i32
  }
  func.func @transform_4(%arg0: i32) -> (i32, i32, i32) {
    %c0_i32 = arith.constant 0 : i32
    %c0_i32_0 = arith.constant 0 : i32
    %c0_i32_1 = arith.constant 0 : i32
    return %arg0, %c0_i32, %c0_i32_0 : i32, i32, i32
  }
}

module attributes {stable_mosaic.version = 11 : i64} {
  func.func @_bn_affine_kernel(%arg0: i32, %arg1: memref<256x128xbf16, #tpu.memory_space<vmem>>, %arg2: memref<1x128xf32, #tpu.memory_space<vmem>>, %arg3: memref<1x128xf32, #tpu.memory_space<vmem>>, %arg4: memref<256x128xf32, #tpu.memory_space<vmem>>) attributes {dimension_semantics = [#tpu.dimension_semantics<parallel>], iteration_bounds = array<i64: 2>, scalar_prefetch = 0 : i64, scratch_operands = 0 : i64, tpu.core_type = #tpu.core_type<tc>, window_params = [{transform_indices = @transform_0, window_bounds = array<i64: 256, 128>}, {pipeline_mode = #tpu.pipeline_mode<synchronous>, transform_indices = @transform_1, window_bounds = array<i64: 1, 128>}, {pipeline_mode = #tpu.pipeline_mode<synchronous>, transform_indices = @transform_2, window_bounds = array<i64: 1, 128>}, {transform_indices = @transform_3, window_bounds = array<i64: 256, 128>}]} {
    %c0 = arith.constant 0 : index
    %c0_0 = arith.constant 0 : index
    %0 = vector.load %arg1[%c0, %c0_0] : memref<256x128xbf16, #tpu.memory_space<vmem>>, vector<256x128xbf16>
    %1 = arith.extf %0 : vector<256x128xbf16> to vector<256x128xf32>
    %c0_1 = arith.constant 0 : index
    %c0_2 = arith.constant 0 : index
    %2 = vector.load %arg2[%c0_1, %c0_2] : memref<1x128xf32, #tpu.memory_space<vmem>>, vector<1x128xf32>
    %3 = vector.broadcast %2 : vector<1x128xf32> to vector<256x128xf32>
    %4 = arith.mulf %1, %3 : vector<256x128xf32>
    %c0_3 = arith.constant 0 : index
    %c0_4 = arith.constant 0 : index
    %5 = vector.load %arg3[%c0_3, %c0_4] : memref<1x128xf32, #tpu.memory_space<vmem>>, vector<1x128xf32>
    %6 = vector.broadcast %5 : vector<1x128xf32> to vector<256x128xf32>
    %7 = arith.addf %4, %6 : vector<256x128xf32>
    %c0_5 = arith.constant 0 : index
    %c0_6 = arith.constant 0 : index
    %8 = vector.load %arg4[%c0_5, %c0_6] : memref<256x128xf32, #tpu.memory_space<vmem>>, vector<256x128xf32>
    tpu.vector_store %arg4[%c0_5, %c0_6], %7 {strides = array<i32>} : memref<256x128xf32, #tpu.memory_space<vmem>>, vector<256x128xf32>,
    return
  }
  func.func @transform_0(%arg0: i32) -> (i32, i32) {
    %c0_i32 = arith.constant 0 : i32
    %c0_i32_0 = arith.constant 0 : i32
    return %arg0, %c0_i32 : i32, i32
  }
  func.func @transform_1(%arg0: i32) -> (i32, i32) {
    %c0_i32 = arith.constant 0 : i32
    %c0_i32_0 = arith.constant 0 : i32
    %c0_i32_1 = arith.constant 0 : i32
    return %c0_i32, %c0_i32_0 : i32, i32
  }
  func.func @transform_2(%arg0: i32) -> (i32, i32) {
    %c0_i32 = arith.constant 0 : i32
    %c0_i32_0 = arith.constant 0 : i32
    %c0_i32_1 = arith.constant 0 : i32
    return %c0_i32, %c0_i32_0 : i32, i32
  }
  func.func @transform_3(%arg0: i32) -> (i32, i32) {
    %c0_i32 = arith.constant 0 : i32
    %c0_i32_0 = arith.constant 0 : i32
    return %arg0, %c0_i32 : i32, i32
  }
}

module attributes {stable_mosaic.version = 11 : i64} {
  func.func @_conv3x3_bn_stats_kernel(%arg0: i32, %arg1: memref<1x16x16x128xbf16, #tpu.memory_space<vmem>>, %arg2: memref<1x128xf32, #tpu.memory_space<vmem>>, %arg3: memref<1x128xf32, #tpu.memory_space<vmem>>, %arg4: memref<1152x128xbf16, #tpu.memory_space<vmem>>, %arg5: memref<1x16x16x128xbf16, #tpu.memory_space<vmem>>, %arg6: memref<1x1x128xf32, #tpu.memory_space<vmem>>, %arg7: memref<1x1x128xf32, #tpu.memory_space<vmem>>, %arg8: memref<1x18x18x128xbf16, #tpu.memory_space<vmem>>) attributes {dimension_semantics = [#tpu.dimension_semantics<parallel>], iteration_bounds = array<i64: 2>, scalar_prefetch = 0 : i64, scratch_operands = 1 : i64, tpu.core_type = #tpu.core_type<tc>, window_params = [{transform_indices = @transform_0, window_bounds = array<i64: 1, 16, 16, 128>}, {pipeline_mode = #tpu.pipeline_mode<synchronous>, transform_indices = @transform_1, window_bounds = array<i64: 1, 128>}, {pipeline_mode = #tpu.pipeline_mode<synchronous>, transform_indices = @transform_2, window_bounds = array<i64: 1, 128>}, {pipeline_mode = #tpu.pipeline_mode<synchronous>, transform_indices = @transform_3, window_bounds = array<i64: 1152, 128>}, {transform_indices = @transform_4, window_bounds = array<i64: 1, 16, 16, 128>}, {transform_indices = @transform_5, window_bounds = array<i64: 1, 1, 128>}, {transform_indices = @transform_6, window_bounds = array<i64: 1, 1, 128>}]} {
    %c0 = arith.constant 0 : index
    %c0_0 = arith.constant 0 : index
    %c0_1 = arith.constant 0 : index
    %c0_2 = arith.constant 0 : index
    %0 = vector.load %arg1[%c0, %c0_0, %c0_1, %c0_2] : memref<1x16x16x128xbf16, #tpu.memory_space<vmem>>, vector<1x16x16x128xbf16>
    %1 = arith.extf %0 : vector<1x16x16x128xbf16> to vector<1x16x16x128xf32>
    %c0_3 = arith.constant 0 : index
    %c0_4 = arith.constant 0 : index
    %2 = vector.load %arg2[%c0_3, %c0_4] : memref<1x128xf32, #tpu.memory_space<vmem>>, vector<1x128xf32>
    %3 = vector.shape_cast %2 : vector<1x128xf32> to vector<1x1x1x128xf32>
    %4 = vector.broadcast %3 : vector<1x1x1x128xf32> to vector<1x16x16x128xf32>
    %5 = arith.mulf %1, %4 : vector<1x16x16x128xf32>
    %c0_5 = arith.constant 0 : index
    %c0_6 = arith.constant 0 : index
    %6 = vector.load %arg3[%c0_5, %c0_6] : memref<1x128xf32, #tpu.memory_space<vmem>>, vector<1x128xf32>
    %7 = vector.shape_cast %6 : vector<1x128xf32> to vector<1x1x1x128xf32>
    %8 = vector.broadcast %7 : vector<1x1x1x128xf32> to vector<1x16x16x128xf32>
    %9 = arith.addf %5, %8 : vector<1x16x16x128xf32>
    %cst = arith.constant 0.000000e+00 : f32
    %10 = vector.broadcast %cst : f32 to vector<1x16x16x128xf32>
    %11 = arith.maximumf %9, %10 : vector<1x16x16x128xf32>
    %12 = arith.truncf %11 : vector<1x16x16x128xf32> to vector<1x16x16x128xbf16>
    %cst_7 = arith.constant 0.000000e+00 : bf16
    %13 = vector.broadcast %cst_7 : bf16 to vector<1x1x18x128xbf16>
    %cst_8 = arith.constant 0.000000e+00 : bf16
    %14 = vector.broadcast %cst_8 : bf16 to vector<1x18x1x128xbf16>
    %c0_9 = arith.constant 0 : index
    %c0_10 = arith.constant 0 : index
    %c0_11 = arith.constant 0 : index
    %c0_12 = arith.constant 0 : index
    %15 = vector.load %arg8[%c0_9, %c0_10, %c0_11, %c0_12] : memref<1x18x18x128xbf16, #tpu.memory_space<vmem>>, vector<1x1x18x128xbf16>
    tpu.vector_store %arg8[%c0_9, %c0_10, %c0_11, %c0_12], %13 {strides = array<i32>} : memref<1x18x18x128xbf16, #tpu.memory_space<vmem>>, vector<1x1x18x128xbf16>,
    %c0_13 = arith.constant 0 : index
    %c17 = arith.constant 17 : index
    %c0_14 = arith.constant 0 : index
    %c0_15 = arith.constant 0 : index
    %16 = vector.load %arg8[%c0_13, %c17, %c0_14, %c0_15] : memref<1x18x18x128xbf16, #tpu.memory_space<vmem>>, vector<1x1x18x128xbf16>
    tpu.vector_store %arg8[%c0_13, %c17, %c0_14, %c0_15], %13 {strides = array<i32>} : memref<1x18x18x128xbf16, #tpu.memory_space<vmem>>, vector<1x1x18x128xbf16>,
    %c0_16 = arith.constant 0 : index
    %c0_17 = arith.constant 0 : index
    %c0_18 = arith.constant 0 : index
    %c0_19 = arith.constant 0 : index
    %17 = vector.load %arg8[%c0_16, %c0_17, %c0_18, %c0_19] : memref<1x18x18x128xbf16, #tpu.memory_space<vmem>>, vector<1x18x1x128xbf16>
    tpu.vector_store %arg8[%c0_16, %c0_17, %c0_18, %c0_19], %14 {strides = array<i32>} : memref<1x18x18x128xbf16, #tpu.memory_space<vmem>>, vector<1x18x1x128xbf16>,
    %c0_20 = arith.constant 0 : index
    %c0_21 = arith.constant 0 : index
    %c17_22 = arith.constant 17 : index
    %c0_23 = arith.constant 0 : index
    %18 = vector.load %arg8[%c0_20, %c0_21, %c17_22, %c0_23] : memref<1x18x18x128xbf16, #tpu.memory_space<vmem>>, vector<1x18x1x128xbf16>
    tpu.vector_store %arg8[%c0_20, %c0_21, %c17_22, %c0_23], %14 {strides = array<i32>} : memref<1x18x18x128xbf16, #tpu.memory_space<vmem>>, vector<1x18x1x128xbf16>,
    %c0_24 = arith.constant 0 : index
    %c1 = arith.constant 1 : index
    %c1_25 = arith.constant 1 : index
    %c0_26 = arith.constant 0 : index
    %19 = vector.load %arg8[%c0_24, %c1, %c1_25, %c0_26] : memref<1x18x18x128xbf16, #tpu.memory_space<vmem>>, vector<1x16x16x128xbf16>
    tpu.vector_store %arg8[%c0_24, %c1, %c1_25, %c0_26], %12 {strides = array<i32>} : memref<1x18x18x128xbf16, #tpu.memory_space<vmem>>, vector<1x16x16x128xbf16>,
    %cst_27 = arith.constant 0.000000e+00 : f32
    %20 = vector.broadcast %cst_27 : f32 to vector<256x128xf32>
    %c0_28 = arith.constant 0 : index
    %c0_29 = arith.constant 0 : index
    %c0_30 = arith.constant 0 : index
    %c0_31 = arith.constant 0 : index
    %21 = vector.load %arg8[%c0_28, %c0_29, %c0_30, %c0_31] : memref<1x18x18x128xbf16, #tpu.memory_space<vmem>>, vector<1x16x16x128xbf16>
    %22 = vector.shape_cast %21 : vector<1x16x16x128xbf16> to vector<256x128xbf16>
    %c0_32 = arith.constant 0 : index
    %c0_33 = arith.constant 0 : index
    %23 = vector.load %arg4[%c0_32, %c0_33] : memref<1152x128xbf16, #tpu.memory_space<vmem>>, vector<128x128xbf16>
    %cst_34 = arith.constant dense<0.000000e+00> : vector<256x128xf32>
    %24 = tpu.matmul %22, %23, %cst_34 {dimension_numbers = #tpu.dot_dimension_numbers<[1], [0], [0], [1], [0, 0, 1, 1], [], []>} : vector<256x128xbf16>, vector<128x128xbf16>, vector<256x128xf32> -> vector<256x128xf32>
    %25 = arith.addf %20, %24 : vector<256x128xf32>
    %c0_35 = arith.constant 0 : index
    %c0_36 = arith.constant 0 : index
    %c1_37 = arith.constant 1 : index
    %c0_38 = arith.constant 0 : index
    %26 = vector.load %arg8[%c0_35, %c0_36, %c1_37, %c0_38] : memref<1x18x18x128xbf16, #tpu.memory_space<vmem>>, vector<1x16x16x128xbf16>
    %27 = vector.shape_cast %26 : vector<1x16x16x128xbf16> to vector<256x128xbf16>
    %c128 = arith.constant 128 : index
    %c0_39 = arith.constant 0 : index
    %28 = vector.load %arg4[%c128, %c0_39] : memref<1152x128xbf16, #tpu.memory_space<vmem>>, vector<128x128xbf16>
    %cst_40 = arith.constant dense<0.000000e+00> : vector<256x128xf32>
    %29 = tpu.matmul %27, %28, %cst_40 {dimension_numbers = #tpu.dot_dimension_numbers<[1], [0], [0], [1], [0, 0, 1, 1], [], []>} : vector<256x128xbf16>, vector<128x128xbf16>, vector<256x128xf32> -> vector<256x128xf32>
    %30 = arith.addf %25, %29 : vector<256x128xf32>
    %c0_41 = arith.constant 0 : index
    %c0_42 = arith.constant 0 : index
    %c2 = arith.constant 2 : index
    %c0_43 = arith.constant 0 : index
    %31 = vector.load %arg8[%c0_41, %c0_42, %c2, %c0_43] : memref<1x18x18x128xbf16, #tpu.memory_space<vmem>>, vector<1x16x16x128xbf16>
    %32 = vector.shape_cast %31 : vector<1x16x16x128xbf16> to vector<256x128xbf16>
    %c256 = arith.constant 256 : index
    %c0_44 = arith.constant 0 : index
    %33 = vector.load %arg4[%c256, %c0_44] : memref<1152x128xbf16, #tpu.memory_space<vmem>>, vector<128x128xbf16>
    %cst_45 = arith.constant dense<0.000000e+00> : vector<256x128xf32>
    %34 = tpu.matmul %32, %33, %cst_45 {dimension_numbers = #tpu.dot_dimension_numbers<[1], [0], [0], [1], [0, 0, 1, 1], [], []>} : vector<256x128xbf16>, vector<128x128xbf16>, vector<256x128xf32> -> vector<256x128xf32>
    %35 = arith.addf %30, %34 : vector<256x128xf32>
    %c0_46 = arith.constant 0 : index
    %c1_47 = arith.constant 1 : index
    %c0_48 = arith.constant 0 : index
    %c0_49 = arith.constant 0 : index
    %36 = vector.load %arg8[%c0_46, %c1_47, %c0_48, %c0_49] : memref<1x18x18x128xbf16, #tpu.memory_space<vmem>>, vector<1x16x16x128xbf16>
    %37 = vector.shape_cast %36 : vector<1x16x16x128xbf16> to vector<256x128xbf16>
    %c384 = arith.constant 384 : index
    %c0_50 = arith.constant 0 : index
    %38 = vector.load %arg4[%c384, %c0_50] : memref<1152x128xbf16, #tpu.memory_space<vmem>>, vector<128x128xbf16>
    %cst_51 = arith.constant dense<0.000000e+00> : vector<256x128xf32>
    %39 = tpu.matmul %37, %38, %cst_51 {dimension_numbers = #tpu.dot_dimension_numbers<[1], [0], [0], [1], [0, 0, 1, 1], [], []>} : vector<256x128xbf16>, vector<128x128xbf16>, vector<256x128xf32> -> vector<256x128xf32>
    %40 = arith.addf %35, %39 : vector<256x128xf32>
    %c0_52 = arith.constant 0 : index
    %c1_53 = arith.constant 1 : index
    %c1_54 = arith.constant 1 : index
    %c0_55 = arith.constant 0 : index
    %41 = vector.load %arg8[%c0_52, %c1_53, %c1_54, %c0_55] : memref<1x18x18x128xbf16, #tpu.memory_space<vmem>>, vector<1x16x16x128xbf16>
    %42 = vector.shape_cast %41 : vector<1x16x16x128xbf16> to vector<256x128xbf16>
    %c512 = arith.constant 512 : index
    %c0_56 = arith.constant 0 : index
    %43 = vector.load %arg4[%c512, %c0_56] : memref<1152x128xbf16, #tpu.memory_space<vmem>>, vector<128x128xbf16>
    %cst_57 = arith.constant dense<0.000000e+00> : vector<256x128xf32>
    %44 = tpu.matmul %42, %43, %cst_57 {dimension_numbers = #tpu.dot_dimension_numbers<[1], [0], [0], [1], [0, 0, 1, 1], [], []>} : vector<256x128xbf16>, vector<128x128xbf16>, vector<256x128xf32> -> vector<256x128xf32>
    %45 = arith.addf %40, %44 : vector<256x128xf32>
    %c0_58 = arith.constant 0 : index
    %c1_59 = arith.constant 1 : index
    %c2_60 = arith.constant 2 : index
    %c0_61 = arith.constant 0 : index
    %46 = vector.load %arg8[%c0_58, %c1_59, %c2_60, %c0_61] : memref<1x18x18x128xbf16, #tpu.memory_space<vmem>>, vector<1x16x16x128xbf16>
    %47 = vector.shape_cast %46 : vector<1x16x16x128xbf16> to vector<256x128xbf16>
    %c640 = arith.constant 640 : index
    %c0_62 = arith.constant 0 : index
    %48 = vector.load %arg4[%c640, %c0_62] : memref<1152x128xbf16, #tpu.memory_space<vmem>>, vector<128x128xbf16>
    %cst_63 = arith.constant dense<0.000000e+00> : vector<256x128xf32>
    %49 = tpu.matmul %47, %48, %cst_63 {dimension_numbers = #tpu.dot_dimension_numbers<[1], [0], [0], [1], [0, 0, 1, 1], [], []>} : vector<256x128xbf16>, vector<128x128xbf16>, vector<256x128xf32> -> vector<256x128xf32>
    %50 = arith.addf %45, %49 : vector<256x128xf32>
    %c0_64 = arith.constant 0 : index
    %c2_65 = arith.constant 2 : index
    %c0_66 = arith.constant 0 : index
    %c0_67 = arith.constant 0 : index
    %51 = vector.load %arg8[%c0_64, %c2_65, %c0_66, %c0_67] : memref<1x18x18x128xbf16, #tpu.memory_space<vmem>>, vector<1x16x16x128xbf16>
    %52 = vector.shape_cast %51 : vector<1x16x16x128xbf16> to vector<256x128xbf16>
    %c768 = arith.constant 768 : index
    %c0_68 = arith.constant 0 : index
    %53 = vector.load %arg4[%c768, %c0_68] : memref<1152x128xbf16, #tpu.memory_space<vmem>>, vector<128x128xbf16>
    %cst_69 = arith.constant dense<0.000000e+00> : vector<256x128xf32>
    %54 = tpu.matmul %52, %53, %cst_69 {dimension_numbers = #tpu.dot_dimension_numbers<[1], [0], [0], [1], [0, 0, 1, 1], [], []>} : vector<256x128xbf16>, vector<128x128xbf16>, vector<256x128xf32> -> vector<256x128xf32>
    %55 = arith.addf %50, %54 : vector<256x128xf32>
    %c0_70 = arith.constant 0 : index
    %c2_71 = arith.constant 2 : index
    %c1_72 = arith.constant 1 : index
    %c0_73 = arith.constant 0 : index
    %56 = vector.load %arg8[%c0_70, %c2_71, %c1_72, %c0_73] : memref<1x18x18x128xbf16, #tpu.memory_space<vmem>>, vector<1x16x16x128xbf16>
    %57 = vector.shape_cast %56 : vector<1x16x16x128xbf16> to vector<256x128xbf16>
    %c896 = arith.constant 896 : index
    %c0_74 = arith.constant 0 : index
    %58 = vector.load %arg4[%c896, %c0_74] : memref<1152x128xbf16, #tpu.memory_space<vmem>>, vector<128x128xbf16>
    %cst_75 = arith.constant dense<0.000000e+00> : vector<256x128xf32>
    %59 = tpu.matmul %57, %58, %cst_75 {dimension_numbers = #tpu.dot_dimension_numbers<[1], [0], [0], [1], [0, 0, 1, 1], [], []>} : vector<256x128xbf16>, vector<128x128xbf16>, vector<256x128xf32> -> vector<256x128xf32>
    %60 = arith.addf %55, %59 : vector<256x128xf32>
    %c0_76 = arith.constant 0 : index
    %c2_77 = arith.constant 2 : index
    %c2_78 = arith.constant 2 : index
    %c0_79 = arith.constant 0 : index
    %61 = vector.load %arg8[%c0_76, %c2_77, %c2_78, %c0_79] : memref<1x18x18x128xbf16, #tpu.memory_space<vmem>>, vector<1x16x16x128xbf16>
    %62 = vector.shape_cast %61 : vector<1x16x16x128xbf16> to vector<256x128xbf16>
    %c1024 = arith.constant 1024 : index
    %c0_80 = arith.constant 0 : index
    %63 = vector.load %arg4[%c1024, %c0_80] : memref<1152x128xbf16, #tpu.memory_space<vmem>>, vector<128x128xbf16>
    %cst_81 = arith.constant dense<0.000000e+00> : vector<256x128xf32>
    %64 = tpu.matmul %62, %63, %cst_81 {dimension_numbers = #tpu.dot_dimension_numbers<[1], [0], [0], [1], [0, 0, 1, 1], [], []>} : vector<256x128xbf16>, vector<128x128xbf16>, vector<256x128xf32> -> vector<256x128xf32>
    %65 = arith.addf %60, %64 : vector<256x128xf32>
    %66 = vector.shape_cast %65 : vector<256x128xf32> to vector<1x16x16x128xf32>
    %67 = arith.truncf %66 : vector<1x16x16x128xf32> to vector<1x16x16x128xbf16>
    %c0_82 = arith.constant 0 : index
    %c0_83 = arith.constant 0 : index
    %c0_84 = arith.constant 0 : index
    %c0_85 = arith.constant 0 : index
    %68 = vector.load %arg5[%c0_82, %c0_83, %c0_84, %c0_85] : memref<1x16x16x128xbf16, #tpu.memory_space<vmem>>, vector<1x16x16x128xbf16>
    tpu.vector_store %arg5[%c0_82, %c0_83, %c0_84, %c0_85], %67 {strides = array<i32>} : memref<1x16x16x128xbf16, #tpu.memory_space<vmem>>, vector<1x16x16x128xbf16>,
    %cst_86 = arith.constant dense<0.000000e+00> : vector<128xf32>
    %69 = vector.multi_reduction <add>, %65, %cst_86 [0] : vector<256x128xf32> to vector<128xf32>
    %70 = vector.shape_cast %69 : vector<128xf32> to vector<1x128xf32>
    %71 = vector.shape_cast %70 : vector<1x128xf32> to vector<1x1x128xf32>
    %c0_87 = arith.constant 0 : index
    %c0_88 = arith.constant 0 : index
    %c0_89 = arith.constant 0 : index
    %72 = vector.load %arg6[%c0_87, %c0_88, %c0_89] : memref<1x1x128xf32, #tpu.memory_space<vmem>>, vector<1x1x128xf32>
    tpu.vector_store %arg6[%c0_87, %c0_88, %c0_89], %71 {strides = array<i32>} : memref<1x1x128xf32, #tpu.memory_space<vmem>>, vector<1x1x128xf32>,
    %73 = arith.mulf %65, %65 : vector<256x128xf32>
    %cst_90 = arith.constant dense<0.000000e+00> : vector<128xf32>
    %74 = vector.multi_reduction <add>, %73, %cst_90 [0] : vector<256x128xf32> to vector<128xf32>
    %75 = vector.shape_cast %74 : vector<128xf32> to vector<1x128xf32>
    %76 = vector.shape_cast %75 : vector<1x128xf32> to vector<1x1x128xf32>
    %c0_91 = arith.constant 0 : index
    %c0_92 = arith.constant 0 : index
    %c0_93 = arith.constant 0 : index
    %77 = vector.load %arg7[%c0_91, %c0_92, %c0_93] : memref<1x1x128xf32, #tpu.memory_space<vmem>>, vector<1x1x128xf32>
    tpu.vector_store %arg7[%c0_91, %c0_92, %c0_93], %76 {strides = array<i32>} : memref<1x1x128xf32, #tpu.memory_space<vmem>>, vector<1x1x128xf32>,
    return
  }
  func.func @transform_0(%arg0: i32) -> (i32, i32, i32, i32) {
    %c0_i32 = arith.constant 0 : i32
    %c0_i32_0 = arith.constant 0 : i32
    %c0_i32_1 = arith.constant 0 : i32
    %c0_i32_2 = arith.constant 0 : i32
    return %arg0, %c0_i32, %c0_i32_0, %c0_i32_1 : i32, i32, i32, i32
  }
  func.func @transform_1(%arg0: i32) -> (i32, i32) {
    %c0_i32 = arith.constant 0 : i32
    %c0_i32_0 = arith.constant 0 : i32
    %c0_i32_1 = arith.constant 0 : i32
    return %c0_i32, %c0_i32_0 : i32, i32
  }
  func.func @transform_2(%arg0: i32) -> (i32, i32) {
    %c0_i32 = arith.constant 0 : i32
    %c0_i32_0 = arith.constant 0 : i32
    %c0_i32_1 = arith.constant 0 : i32
    return %c0_i32, %c0_i32_0 : i32, i32
  }
  func.func @transform_3(%arg0: i32) -> (i32, i32) {
    %c0_i32 = arith.constant 0 : i32
    %c0_i32_0 = arith.constant 0 : i32
    %c0_i32_1 = arith.constant 0 : i32
    return %c0_i32, %c0_i32_0 : i32, i32
  }
  func.func @transform_4(%arg0: i32) -> (i32, i32, i32, i32) {
    %c0_i32 = arith.constant 0 : i32
    %c0_i32_0 = arith.constant 0 : i32
    %c0_i32_1 = arith.constant 0 : i32
    %c0_i32_2 = arith.constant 0 : i32
    return %arg0, %c0_i32, %c0_i32_0, %c0_i32_1 : i32, i32, i32, i32
  }
  func.func @transform_5(%arg0: i32) -> (i32, i32, i32) {
    %c0_i32 = arith.constant 0 : i32
    %c0_i32_0 = arith.constant 0 : i32
    %c0_i32_1 = arith.constant 0 : i32
    return %arg0, %c0_i32, %c0_i32_0 : i32, i32, i32
  }
  func.func @transform_6(%arg0: i32) -> (i32, i32, i32) {
    %c0_i32 = arith.constant 0 : i32
    %c0_i32_0 = arith.constant 0 : i32
    %c0_i32_1 = arith.constant 0 : i32
    return %arg0, %c0_i32, %c0_i32_0 : i32, i32, i32
  }
}

</mosaic_0001>

<bundles_post_ra>
// kernel: basic_block_forward.5
= control target key start
LH: loop header
LB: loop body
LE: loop exit
PB: predicated region body
PF: predicated region fallthrough
CT: control target
= control target key end

     0   :  { %s526_s12 = smov 0   ;;  %s669_s0 = inlined_call_operand.vmem [shape: bf16[512,128], index: 0, kind: input, shape index: {}]   ;;  %s670_s1 = inlined_call_operand.vmem [shape: f32[1,128], index: 1, kind: input, shape index: {}]   ;;  %s671_s2 = inlined_call_operand.vmem [shape: f32[1,128], index: 2, kind: input, shape index: {}]   ;;  %s672_s3 = inlined_call_operand.vmem [shape: f32[512,128], index: 3, kind: output, shape index: {}]  }
   0x1 LB: > { %s398_s13 = sadd.s32 4294967295, %s504_s12   ;;  %p402_p0 = scmp.ge.s32.totalorder %s504_s12, 1  ;;  %s504_s12 = sphi %s526_s12, %s13_s12  }
   0x2   : > { %p138_p1 = scmp.lt.s32.totalorder %s504_s12, 3 }
   0x4   : > { %p139_p2 = pnand %p402_p0, %p138_p1 }
   0x5   : > { %s403_s14 = sshll.u32 (!%p139_p2), %s398_s13, 5 }
   0x6   : > { %142 = sbr.rel (%p139_p2) target bundleno = 53 (0x35), region = 32  ;;  %p163_p3 = scmp.lt.s32.totalorder (!%p139_p2), %s403_s14, 63 }
   0xb   : > { %s674_s14 = smov (!%p163_p3, %s403_s14), 63  ;;  %v542_v0 = vld [vmem:[%s670_s1] ss:$0 sm:$0xff] }
   0xc   : > { %s404_s15 = sshll.u32 %s674_s14, 2  ;;  %s406_s21 = sshll.u32 %s674_s14, 3  ;;  %v550_v5 = vld [vmem:[%s671_s2] ss:$0 sm:$0xff] }
   0xd   : > { %s537_s18 = scalar_lea.vmem %s669_s0, %s404_s15  ;;  %s560_s26 = scalar_lea.vmem %s672_s3, %s406_s21 }
   0xe   : > { %v410_v1 = vld [vmem:[%s537_s18] sm:$0xff]   ;;  %v473_v2 = vld [vmem:[%s537_s18 + $0x8] sm:$0xff]   ;;  %v474_v3 = vld [vmem:[%s537_s18 + $0x10] sm:$0xff]  }
   0xf   : > { %v411_v4 = vunpack.c.l.bf16 %v410_v1  ;;  %v412_v6 = vunpack.c.h.bf16 %v410_v1  ;;  %v415_v7 = vunpack.c.l.bf16 %v473_v2  ;;  %v416_v8 = vunpack.c.h.bf16 %v473_v2  ;;  %v475_v9 = vld [vmem:[%s537_s18 + $0x18] sm:$0xff]   ;;  %v476_v20 = vld [vmem:[%s537_s18 + $0x20] sm:$0xff]   ;;  %v477_v21 = vld [vmem:[%s537_s18 + $0x28] sm:$0xff]  }
  0x10   : > { %v419_v10 = vunpack.c.l.bf16 %v474_v3  ;;  %v420_v11 = vunpack.c.h.bf16 %v474_v3  ;;  %v423_v12 = vunpack.c.l.bf16 %v475_v9  ;;  %v424_v13 = vunpack.c.h.bf16 %v475_v9  ;;  %v478_v26 = vld [vmem:[%s537_s18 + $0x30] sm:$0xff]   ;;  %v479_v27 = vld [vmem:[%s537_s18 + $0x38] sm:$0xff]   ;;  %v480_v46 = vld [vmem:[%s537_s18 + $0x40] sm:$0xff]  }
  0x11   : > { %v242_v14 = vmul.f32 %v542_v0, %v411_v4  ;;  %v243_v15 = vmul.f32 %v542_v0, %v412_v6  ;;  %v244_v16 = vmul.f32 %v542_v0, %v415_v7  ;;  %v245_v17 = vmul.f32 %v542_v0, %v416_v8  ;;  %v481_v47 = vld [vmem:[%s537_s18 + $0x48] sm:$0xff]   ;;  %v482_v53 = vld [vmem:[%s537_s18 + $0x50] sm:$0xff]   ;;  %v483_v61 = vld [vmem:[%s537_s18 + $0x58] sm:$0xff]  }
  0x12   : > { %v246_v18 = vmul.f32 %v542_v0, %v419_v10  ;;  %v247_v19 = vmul.f32 %v542_v0, %v420_v11  ;;  %v248_v25 = vmul.f32 %v542_v0, %v423_v12  ;;  %v249_v30 = vmul.f32 %v542_v0, %v424_v13  ;;  %v484_v6 = vld [vmem:[%s537_s18 + $0x60] sm:$0xff]   ;;  %v485_v13 = vld [vmem:[%s537_s18 + $0x68] sm:$0xff]  }
  0x13   : > { %v278_v22 = vadd.f32 %v550_v5, %v242_v14  ;;  %v279_v23 = vadd.f32 %v550_v5, %v243_v15  ;;  %v280_v24 = vadd.f32 %v550_v5, %v244_v16  ;;  %v281_v28 = vadd.f32 %v550_v5, %v245_v17 }
  0x14   : > { %v282_v29 = vadd.f32 %v550_v5, %v246_v18  ;;  %v427_v31 = vunpack.c.l.bf16 %v476_v20  ;;  %v428_v32 = vunpack.c.h.bf16 %v476_v20  ;;  %v431_v33 = vunpack.c.l.bf16 %v477_v21  ;;  %v486_v20 = vld [vmem:[%s537_s18 + $0x70] sm:$0xff]  }
  0x15   : > { %310 = vst [vmem:[%s560_s26] sm:$0xff] %v278_v22  ;;  %v432_v34 = vunpack.c.h.bf16 %v477_v21  ;;  %v283_v35 = vadd.f32 %v550_v5, %v247_v19  ;;  %v435_v36 = vunpack.c.l.bf16 %v478_v26  ;;  %v436_v37 = vunpack.c.h.bf16 %v478_v26 }
  0x16   : > { %311 = vst [vmem:[%s560_s26 + $0x8] sm:$0xff] %v279_v23  ;;  %v439_v38 = vunpack.c.l.bf16 %v479_v27  ;;  %v284_v39 = vadd.f32 %v550_v5, %v248_v25  ;;  %v250_v40 = vmul.f32 %v542_v0, %v427_v31  ;;  %v251_v41 = vmul.f32 %v542_v0, %v428_v32 }
  0x17   : > { %312 = vst [vmem:[%s560_s26 + $0x10] sm:$0xff] %v280_v24  ;;  %v252_v42 = vmul.f32 %v542_v0, %v431_v33  ;;  %v285_v43 = vadd.f32 %v550_v5, %v249_v30  ;;  %v253_v44 = vmul.f32 %v542_v0, %v432_v34  ;;  %v440_v45 = vunpack.c.h.bf16 %v479_v27  ;;  %v487_v27 = vld [vmem:[%s537_s18 + $0x78] sm:$0xff]  }
  0x18   : > { %313 = vst [vmem:[%s560_s26 + $0x18] sm:$0xff] %v281_v28  ;;  %v286_v48 = vadd.f32 %v550_v5, %v250_v40  ;;  %v254_v49 = vmul.f32 %v542_v0, %v435_v36  ;;  %v287_v50 = vadd.f32 %v550_v5, %v251_v41  ;;  %v255_v51 = vmul.f32 %v542_v0, %v436_v37 }
  0x19   : > { %314 = vst [vmem:[%s560_s26 + $0x20] sm:$0xff] %v282_v29  ;;  %v256_v52 = vmul.f32 %v542_v0, %v439_v38  ;;  %v288_v54 = vadd.f32 %v550_v5, %v252_v42  ;;  %v443_v55 = vunpack.c.l.bf16 %v480_v46  ;;  %v444_v56 = vunpack.c.h.bf16 %v480_v46 }
  0x1a   : > { %315 = vst [vmem:[%s560_s26 + $0x28] sm:$0xff] %v283_v35  ;;  %v447_v57 = vunpack.c.l.bf16 %v481_v47  ;;  %v289_v58 = vadd.f32 %v550_v5, %v253_v44  ;;  %v257_v59 = vmul.f32 %v542_v0, %v440_v45  ;;  %v448_v60 = vunpack.c.h.bf16 %v481_v47 }
  0x1b   : > { %316 = vst [vmem:[%s560_s26 + $0x30] sm:$0xff] %v284_v39  ;;  %v290_v62 = vadd.f32 %v550_v5, %v254_v49  ;;  %v258_v63 = vmul.f32 %v542_v0, %v443_v55  ;;  %v451_v1 = vunpack.c.l.bf16 %v482_v53  ;;  %v291_v2 = vadd.f32 %v550_v5, %v255_v51 }
  0x1c   : > { %317 = vst [vmem:[%s560_s26 + $0x38] sm:$0xff] %v285_v43  ;;  %v259_v3 = vmul.f32 %v542_v0, %v444_v56  ;;  %v452_v4 = vunpack.c.h.bf16 %v482_v53  ;;  %v292_v7 = vadd.f32 %v550_v5, %v256_v52  ;;  %v260_v8 = vmul.f32 %v542_v0, %v447_v57 }
  0x1d   : > { %318 = vst [vmem:[%s560_s26 + $0x40] sm:$0xff] %v286_v48  ;;  %v455_v9 = vunpack.c.l.bf16 %v483_v61  ;;  %v293_v10 = vadd.f32 %v550_v5, %v257_v59  ;;  %v261_v11 = vmul.f32 %v542_v0, %v448_v60  ;;  %v456_v12 = vunpack.c.h.bf16 %v483_v61 }
  0x1e   : > { %319 = vst [vmem:[%s560_s26 + $0x48] sm:$0xff] %v287_v50  ;;  %v294_v14 = vadd.f32 %v550_v5, %v258_v63  ;;  %v262_v15 = vmul.f32 %v542_v0, %v451_v1  ;;  %v459_v16 = vunpack.c.l.bf16 %v484_v6  ;;  %v295_v17 = vadd.f32 %v550_v5, %v259_v3 }
  0x1f   : > { %320 = vst [vmem:[%s560_s26 + $0x50] sm:$0xff] %v288_v54  ;;  %v263_v18 = vmul.f32 %v542_v0, %v452_v4  ;;  %v460_v19 = vunpack.c.h.bf16 %v484_v6  ;;  %v296_v21 = vadd.f32 %v550_v5, %v260_v8  ;;  %v264_v22 = vmul.f32 %v542_v0, %v455_v9 }
  0x20   : > { %321 = vst [vmem:[%s560_s26 + $0x58] sm:$0xff] %v289_v58  ;;  %v463_v23 = vunpack.c.l.bf16 %v485_v13  ;;  %v297_v24 = vadd.f32 %v550_v5, %v261_v11  ;;  %v265_v25 = vmul.f32 %v542_v0, %v456_v12  ;;  %v464_v26 = vunpack.c.h.bf16 %v485_v13 }
  0x21   : > { %322 = vst [vmem:[%s560_s26 + $0x60] sm:$0xff] %v290_v62  ;;  %v298_v28 = vadd.f32 %v550_v5, %v262_v15  ;;  %v266_v29 = vmul.f32 %v542_v0, %v459_v16  ;;  %v467_v30 = vunpack.c.l.bf16 %v486_v20  ;;  %v299_v31 = vadd.f32 %v550_v5, %v263_v18 }
  0x22   : > { %323 = vst [vmem:[%s560_s26 + $0x68] sm:$0xff] %v291_v2  ;;  %v267_v32 = vmul.f32 %v542_v0, %v460_v19  ;;  %v468_v33 = vunpack.c.h.bf16 %v486_v20  ;;  %v300_v34 = vadd.f32 %v550_v5, %v264_v22  ;;  %v268_v35 = vmul.f32 %v542_v0, %v463_v23 }
  0x23   : > { %324 = vst [vmem:[%s560_s26 + $0x70] sm:$0xff] %v292_v7  ;;  %v471_v36 = vunpack.c.l.bf16 %v487_v27  ;;  %v301_v37 = vadd.f32 %v550_v5, %v265_v25  ;;  %v269_v38 = vmul.f32 %v542_v0, %v464_v26  ;;  %v472_v39 = vunpack.c.h.bf16 %v487_v27 }
  0x24   : > { %325 = vst [vmem:[%s560_s26 + $0x78] sm:$0xff] %v293_v10  ;;  %v302_v40 = vadd.f32 %v550_v5, %v266_v29  ;;  %v270_v41 = vmul.f32 %v542_v0, %v467_v30  ;;  %v303_v42 = vadd.f32 %v550_v5, %v267_v32  ;;  %v271_v43 = vmul.f32 %v542_v0, %v468_v33 }
  0x25   : > { %326 = vst [vmem:[%s560_s26 + $0x80] sm:$0xff] %v294_v14  ;;  %v304_v44 = vadd.f32 %v550_v5, %v268_v35  ;;  %v272_v45 = vmul.f32 %v542_v0, %v471_v36  ;;  %v305_v46 = vadd.f32 %v550_v5, %v269_v38  ;;  %v273_v47 = vmul.f32 %v542_v0, %v472_v39 }
  0x26   : > { %327 = vst [vmem:[%s560_s26 + $0x88] sm:$0xff] %v295_v17  ;;  %v306_v48 = vadd.f32 %v550_v5, %v270_v41  ;;  %v307_v49 = vadd.f32 %v550_v5, %v271_v43 }
  0x27   : > { %328 = vst [vmem:[%s560_s26 + $0x90] sm:$0xff] %v296_v21  ;;  %v308_v50 = vadd.f32 %v550_v5, %v272_v45  ;;  %v309_v51 = vadd.f32 %v550_v5, %v273_v47 }
  0x28   : > { %329 = vst [vmem:[%s560_s26 + $0x98] sm:$0xff] %v297_v24 }
  0x29   : > { %330 = vst [vmem:[%s560_s26 + $0xa0] sm:$0xff] %v298_v28 }
  0x2a   : > { %331 = vst [vmem:[%s560_s26 + $0xa8] sm:$0xff] %v299_v31 }
  0x2b   : > { %332 = vst [vmem:[%s560_s26 + $0xb0] sm:$0xff] %v300_v34 }
  0x2c   : > { %333 = vst [vmem:[%s560_s26 + $0xb8] sm:$0xff] %v301_v37 }
  0x2d   : > { %334 = vst [vmem:[%s560_s26 + $0xc0] sm:$0xff] %v302_v40 }
  0x2e   : > { %335 = vst [vmem:[%s560_s26 + $0xc8] sm:$0xff] %v303_v42 }
  0x2f   : > { %336 = vst [vmem:[%s560_s26 + $0xd0] sm:$0xff] %v304_v44 }
  0x30   : > { %337 = vst [vmem:[%s560_s26 + $0xd8] sm:$0xff] %v305_v46 }
  0x31   : > { %338 = vst [vmem:[%s560_s26 + $0xe0] sm:$0xff] %v306_v48 }
  0x32   : > { %339 = vst [vmem:[%s560_s26 + $0xe8] sm:$0xff] %v307_v49 }
  0x33   : > { %340 = vst [vmem:[%s560_s26 + $0xf0] sm:$0xff] %v308_v50 }
  0x34   : > { %341 = vst [vmem:[%s560_s26 + $0xf8] sm:$0xff] %v309_v51 }
  0x35 PF: > { %s13_s12 = sadd.s32 1, %s504_s12  }
  0x36   : > { %p10_p4 = scmp.ge.s32.totalorder %s13_s12, 4  }
  0x38   :  { %12 = sbr.rel (!%p10_p4) target bundleno = 1 (0x1), region = 62 }

// kernel: basic_block_forward.3
= control target key start
LH: loop header
LB: loop body
LE: loop exit
PB: predicated region body
PF: predicated region fallthrough
CT: control target
= control target key end

     0   :  { %s6113_s15 = smov 0   ;;  %s7596_s0 = inlined_call_operand.vmem [shape: bf16[2,16,16,128], index: 0, kind: input, shape index: {}]   ;;  %s7597_s1 = inlined_call_operand.vmem [shape: bf16[1152,128], index: 1, kind: input, shape index: {}]   ;;  %s7598_s2 = inlined_call_operand.vmem [shape: bf16[2,16,16,128], index: 2, kind: output, shape index: {0}]   ;;  %s7599_s3 = inlined_call_operand.vmem [shape: f32[2,1,128], index: 3, kind: output, shape index: {1}]   ;;  %s7600_s4 = inlined_call_operand.vmem [shape: f32[2,1,128], index: 4, kind: output, shape index: {2}]  }
   0x1 LB: > { %s5234_s16 = sadd.s32 4294967295, %s6085_s15   ;;  %p5238_p0 = scmp.ge.s32.totalorder %s6085_s15, 1  ;;  %s6085_s15 = sphi %s6113_s15, %s15_s15  }
   0x2   : > { %p167_p1 = scmp.lt.s32.totalorder %s6085_s15, 3 }
   0x4   : > { %p168_p2 = pnand %p5238_p0, %p167_p1 }
   0x6   : > { %171 = sbr.rel (%p168_p2) target bundleno = 839 (0x347), region = 28 }
   0xb   : > { %v5806_v0 = vld [vmem:[%s7597_s1 + $0x78] sm:$0xff]  ;;  %p199_p3 = scmp.lt.s32.totalorder %s5234_s16, 1  ;;  %vm255_vm0 = vcmask 1040384   ;;  %vm256_vm1 = vsmask.f32 256  ;;  %v5805_v1 = vld [vmem:[%s7597_s1 + $0x70] sm:$0xff] }
   0xc   : > { %5990 = vmatpush.bf16.msra.mxu1 %v5806_v0  ;;  %5991 = vmatpush.bf16.msra.mxu2 %v5806_v0  ;;  %vm6130_vm2 = vmand %vm255_vm0, %vm256_vm1  ;;  %vm312_vm3 = vsmask.f32 7938  ;;  %v270_v3 = vld [vmem:[#allocation2 + $0x30] sm:$0x1]  ;;  %v326_v5 = vld [vmem:[#allocation2 + $0x38] sm:$0x1] }
   0xd   : > { %s7636_s16 = smov (!%p199_p3, %s5234_s16), 1  ;;  %5992 = vmatpush.bf16.msra.mxu3 %v5806_v0  ;;  %1384 = vmatpush.bf16.msra.mxu0 %v5806_v0  ;;  %vm6135_vm4 = vmand %vm255_vm0, %vm312_vm3  ;;  %v5804_v6 = vld [vmem:[%s7597_s1 + $0x68] sm:$0xff]  ;;  %v271_v7 = vsel %vm6130_vm2, 0, %v270_v3  ;;  %vm691_vm5 = vcmask 1043456   ;;  %vm368_vm6 = vsmask.f32 4368 }
   0xe   : > { %s5773_s23 = sshll.u32 %s7636_s16, 7  ;;  %v327_v8 = vsel %vm6135_vm4, 0, %v326_v5  ;;  %272 = vst [vmem:[#allocation2 + $0x30] sm:$0x1] %v271_v7  ;;  %v282_v9 = vld [vmem:[#allocation2 + $0x60] sm:$0x1]  ;;  %vm6162_vm7 = vmor %vm256_vm1, %vm368_vm6  ;;  %s211_s10 = scalar_lea.vmem %s7599_s3, %s7636_s16 }
   0xf   : > { %s6152_s26 = scalar_lea.vmem %s7596_s0, %s5773_s23  ;;  %328 = vst [vmem:[#allocation2 + $0x38] sm:$0x1] %v327_v8  ;;  %v283_v18 = vsel %vm6130_vm2, 0, %v282_v9  ;;  %v338_v19 = vld [vmem:[#allocation2 + $0x68] sm:$0x1]  ;;  %v5803_v26 = vld [vmem:[%s7597_s1 + $0x60] sm:$0xff]  ;;  %vm6173_vm8 = vmand %vm691_vm5, %vm312_vm3  ;;  %s7375_s8 = scalar_lea.vmem %s7598_s2, %s5773_s23 }
  0x10   : > { %5993 = vmatpush.bf16.msra.mxu1 %v5805_v1  ;;  %5994 = vmatpush.bf16.msra.mxu2 %v5805_v1  ;;  %v222_v10 = vld [vmem:[%s6152_s26 + $0x18] sm:$0xf]  ;;  %v223_v11 = vld [vmem:[%s6152_s26 + $0x1c] sm:$0xf]  ;;  %284 = vst [vmem:[#allocation2 + $0x60] sm:$0x1] %v283_v18  ;;  %s214_s13 = scalar_lea.vmem %s7600_s4, %s7636_s16 }
  0x11   : > { %5995 = vmatpush.bf16.msra.mxu3 %v5805_v1  ;;  %1385 = vmatpush.bf16.msra.mxu0 %v5805_v1  ;;  %v422_v12 = vshrl.u32 %v222_v10, 16  ;;  %v425_v13 = vshll.u32 %v222_v10, 16  ;;  %v430_v14 = vshrl.u32 %v223_v11, 16  ;;  %v433_v15 = vshll.u32 %v223_v11, 16  ;;  %v230_v16 = vld [vmem:[%s6152_s26 + $0x38] sm:$0xf] }
  0x12   : > { %v231_v17 = vld [vmem:[%s6152_s26 + $0x3c] sm:$0xf]  ;;  %v490_v20 = vshrl.u32 %v230_v16, 16  ;;  %v339_v24 = vsel %vm6135_vm4, 0, %v338_v19  ;;  %v493_v25 = vshll.u32 %v230_v16, 16  ;;  %v5801_v56 = vld [vmem:[%s7597_s1 + $0x50] sm:$0xff] }
  0x13   : > { %v424_v22 = vrot.slane %v422_v12, 7  ;;  %v432_v23 = vrot.slane %v430_v14, 7  ;;  %340 = vst [vmem:[#allocation2 + $0x68] sm:$0x1] %v339_v24  ;;  %v498_v29 = vshrl.u32 %v231_v17, 16  ;;  %v501_v30 = vshll.u32 %v231_v17, 16 }
  0x14   : > { %5996 = vmatpush.bf16.msra.mxu1 %v5804_v6  ;;  %5997 = vmatpush.bf16.msra.mxu2 %v5804_v6  ;;  %v492_v28 = vrot.slane %v490_v20, 7  ;;  %v6178_v35 = vld [vmem:[%s6152_s26 + $0x58] sm:$0xf]  ;;  %v239_v36 = vld [vmem:[%s6152_s26 + $0x5c] sm:$0xf]  ;;  %v5800_v9 = vld [vmem:[%s7597_s1 + $0x48] sm:$0xff] }
  0x15   : > { %5998 = vmatpush.bf16.msra.mxu3 %v5804_v6  ;;  %1386 = vmatpush.bf16.msra.mxu0 %v5804_v6  ;;  %v427_v31 = vor.u32 %v425_v13, %v424_v22  ;;  %v428_v32 = vrot.slane %v424_v22, 4  ;;  %v435_v33 = vor.u32 %v433_v15, %v432_v23  ;;  %v437_v34 = vrot.slane %v432_v23, 4  ;;  %v714_v37 = vld [vmem:[#allocation2 + $0x30] sm:$0xf]  ;;  %v350_v45 = vld [vmem:[#allocation2 + $0x98] sm:$0x1] }
  0x16   : > { %v496_v38 = vrot.slane %v492_v28, 4  ;;  %v500_v39 = vrot.slane %v498_v29, 7  ;;  %v294_v40 = vld [vmem:[#allocation2 + $0x90] sm:$0x1]  ;;  %v718_v43 = vld [vmem:[#allocation2 + $0x38] sm:$0x1]  ;;  %v495_v44 = vor.u32 %v493_v25, %v492_v28 }
  0x17   : > { %v436_v41 = vsel %vm6162_vm7, %v428_v32, %v435_v33  ;;  %v715_v42 = vsel %vm6173_vm8, %v427_v31, %v714_v37  ;;  %v558_v46 = vshrl.u32 %v6178_v35, 16  ;;  %v5802_v47 = vld [vmem:[%s7597_s1 + $0x58] sm:$0xff]  ;;  %v719_v48 = vsel %vm6130_vm2, %v437_v34, %v718_v43  ;;  %v6192_v51 = vld [vmem:[%s6152_s26 + $0x20] sm:$0xf]  ;;  %v6202_v59 = vld [vmem:[%s6152_s26 + $0x24] sm:$0xf] }
  0x18   : > { %5999 = vmatpush.bf16.msra.mxu1 %v5803_v26  ;;  %6000 = vmatpush.bf16.msra.mxu2 %v5803_v26  ;;  %716 = vst [vmem:[#allocation2 + $0x30] sm:$0xf] %v715_v42  ;;  %v503_v49 = vor.u32 %v501_v30, %v500_v39  ;;  %v505_v50 = vrot.slane %v500_v39, 4  ;;  %v295_v52 = vsel %vm6130_vm2, 0, %v294_v40  ;;  %v566_v54 = vshrl.u32 %v239_v36, 16  ;;  %v5814_v43 = vld [vmem:[%s7597_s1 + $0xb8] sm:$0xff] }
  0x19   : > { %6001 = vmatpush.bf16.msra.mxu3 %v5803_v26  ;;  %1387 = vmatpush.bf16.msra.mxu0 %v5803_v26  ;;  %717 = vst [vmem:[#allocation2 + $0x34] sm:$0xf] %v436_v41  ;;  %v560_v53 = vrot.slane %v558_v46, 7  ;;  %v569_v55 = vshll.u32 %v239_v36, 16  ;;  %vm869_vm9 = vsmask.f32 3328 }
  0x1a   : > { %720 = vst [vmem:[#allocation2 + $0x38] sm:$0x1] %v719_v48  ;;  %vm870_vm10 = vsmask.f32 7440  ;;  %v504_v57 = vsel %vm6162_vm7, %v496_v38, %v503_v49  ;;  %v742_v58 = vld [vmem:[#allocation2 + $0x60] sm:$0xf] }
  0x1b   : > { %v743_v60 = vsel %vm6173_vm8, %v495_v44, %v742_v58  ;;  %745 = vst [vmem:[#allocation2 + $0x64] sm:$0xf] %v504_v57  ;;  %v746_v61 = vld [vmem:[#allocation2 + $0x68] sm:$0x1]  ;;  %v564_v62 = vrot.slane %v560_v53, 4  ;;  %v6206_v63 = vrot.slane %v566_v54, 7  ;;  %vm6244_vm11 = vmor %vm869_vm9, %vm870_vm10 }
  0x1c   : > { %6002 = vmatpush.bf16.msra.mxu1 %v5802_v47  ;;  %6003 = vmatpush.bf16.msra.mxu2 %v5802_v47  ;;  %744 = vst [vmem:[#allocation2 + $0x60] sm:$0xf] %v743_v60  ;;  %v747_v0 = vsel %vm6130_vm2, %v505_v50, %v746_v61  ;;  %v351_v1 = vsel %vm6135_vm4, 0, %v350_v45  ;;  %v6212_v3 = vld [vmem:[#allocation2 + $0x3c] sm:$0x1]  ;;  %v439_v5 = vshrl.u32 %v6192_v51, 16 }
  0x1d   : > { %6004 = vmatpush.bf16.msra.mxu3 %v5802_v47  ;;  %1388 = vmatpush.bf16.msra.mxu0 %v5802_v47  ;;  %748 = vst [vmem:[#allocation2 + $0x68] sm:$0x1] %v747_v0  ;;  %v561_v6 = vshll.u32 %v6178_v35, 16  ;;  %v571_v7 = vor.u32 %v569_v55, %v6206_v63  ;;  %v6217_v8 = vld [vmem:[#allocation2 + $0x44] sm:$0x1]  ;;  %v573_v10 = vrot.slane %v6206_v63, 4 }
  0x1e   : > { %296 = vst [vmem:[#allocation2 + $0x90] sm:$0x1] %v295_v52  ;;  %v274_v11 = vsel %vm6130_vm2, 0, %v6212_v3  ;;  %v330_v12 = vsel %vm6135_vm4, 0, %v6217_v8  ;;  %v6231_v15 = vrot.slane %v439_v5, 7  ;;  %v447_v16 = vshrl.u32 %v6202_v59, 16 }
  0x1f   : > { %v813_v13 = vld [vmem:[#allocation2 + $0x30] sm:$0xf]  ;;  %352 = vst [vmem:[#allocation2 + $0x98] sm:$0x1] %v351_v1  ;;  %v572_v14 = vsel %vm6162_vm7, %v564_v62, %v571_v7  ;;  %v563_v24 = vor.u32 %v561_v6, %v560_v53  ;;  %v6087_v25 = vmov 0   ;;  %v5799_v26 = vld [vmem:[%s7597_s1 + $0x40] sm:$0xff] }
  0x20   : > { %6005 = vmatpush.bf16.msra.mxu1 %v5801_v56  ;;  %6006 = vmatpush.bf16.msra.mxu2 %v5801_v56  ;;  %v814_v17 = vld [vmem:[#allocation2 + $0x34] sm:$0xf]  ;;  %v969_v18 = vshrl.u32 %v813_v13, 16  ;;  %v972_v19 = vshll.u32 %v813_v13, 16  ;;  %773 = vst [vmem:[#allocation2 + $0x94] sm:$0xf] %v572_v14 }
  0x21   : > { %6007 = vmatpush.bf16.msra.mxu3 %v5801_v56  ;;  %1389 = vmatpush.bf16.msra.mxu0 %v5801_v56  ;;  %v857_v20 = vld [vmem:[#allocation2 + $0x38] sm:$0x1]  ;;  %v978_v22 = vshll.u32 %v814_v17, 16  ;;  %v982_v23 = vshrl.u32 %v814_v17, 16  ;;  %248 = vst [vmem:[#allocation2] sm:$0xf] %v6087_v25 }
  0x22   : > { %v971_v28 = vrot.slane %v969_v18, 4  ;;  %v974_v29 = vrot.slane %v972_v19, 5  ;;  %v988_v30 = vshll.u32 %v857_v20, 16  ;;  %v822_v31 = vld [vmem:[#allocation2 + $0x64] sm:$0xf]  ;;  %v450_v32 = vshll.u32 %v6202_v59, 16 }
  0x23   : > { %v980_v33 = vrot.slane %v978_v22, 5  ;;  %v984_v34 = vrot.slane %v982_v23, 4  ;;  %v821_v35 = vld [vmem:[#allocation2 + $0x60] sm:$0xf]  ;;  %v1074_v36 = vshll.u32 %v822_v31, 16  ;;  %v1078_v37 = vshrl.u32 %v822_v31, 16 }
  0x24   : > { %6008 = vmatpush.bf16.msra.mxu1 %v5800_v9  ;;  %6009 = vmatpush.bf16.msra.mxu2 %v5800_v9  ;;  %v975_v38 = vor.u32 %v974_v29, %v971_v28  ;;  %v990_v39 = vrot.slane %v988_v30, 5  ;;  %v861_v40 = vld [vmem:[#allocation2 + $0x68] sm:$0x1]  ;;  %v1065_v41 = vshrl.u32 %v821_v35, 16  ;;  %v1068_v42 = vshll.u32 %v821_v35, 16  ;;  %v5838_v50 = vld [vmem:[%s7597_s1 + $0xf8] sm:$0xff] }
  0x25   : > { %6010 = vmatpush.bf16.msra.mxu3 %v5800_v9  ;;  %1390 = vmatpush.bf16.msra.mxu0 %v5800_v9  ;;  %v985_v45 = vor.u32 %v984_v34, %v980_v33  ;;  %v1076_v46 = vrot.slane %v1074_v36, 5  ;;  %v1080_v47 = vrot.slane %v1078_v37, 4  ;;  %v1084_v48 = vshll.u32 %v861_v40, 16  ;;  %v770_v49 = vld [vmem:[#allocation2 + $0x90] sm:$0xf]  ;;  %v5798_v57 = vld [vmem:[%s7597_s1 + $0x38] sm:$0xff] }
  0x26   : > { %v976_v52 = vrot.slane %v975_v38, 4  ;;  %v1067_v53 = vrot.slane %v1065_v41, 4  ;;  %v1070_v54 = vrot.slane %v1068_v42, 5  ;;  %v771_v55 = vsel %vm6173_vm8, %v563_v24, %v770_v49  ;;  %v774_v56 = vld [vmem:[#allocation2 + $0x98] sm:$0x1]  ;;  %v5813_v23 = vld [vmem:[%s7597_s1 + $0xb0] sm:$0xff] }
  0x27   : > { %v986_v58 = vrot.slane %v985_v45, 4  ;;  %v1081_v60 = vor.u32 %v1080_v47, %v1076_v46  ;;  %v1086_v61 = vrot.slane %v1084_v48, 5  ;;  %772 = vst [vmem:[#allocation2 + $0x90] sm:$0xf] %v771_v55  ;;  %v775_v62 = vsel %vm6130_vm2, %v573_v10, %v774_v56  ;;  %v830_v63 = vld [vmem:[#allocation2 + $0x94] sm:$0xf] }
  0x28   : > { %6011 = vmatpush.bf16.msra.mxu1 %v5799_v26  ;;  %6012 = vmatpush.bf16.msra.mxu2 %v5799_v26  ;;  %v981_v0 = vsel %vm6244_vm11, %v976_v52, %v980_v33  ;;  %v1071_v1 = vor.u32 %v1070_v54, %v1067_v53  ;;  %776 = vst [vmem:[#allocation2 + $0x98] sm:$0x1] %v775_v62  ;;  %v1170_v5 = vshll.u32 %v830_v63, 16  ;;  %v1174_v6 = vshrl.u32 %v830_v63, 16  ;;  %v258_v7 = vld [vmem:[#allocation2] sm:$0x1] }
  0x29   : > { %6013 = vmatpush.bf16.msra.mxu3 %v5799_v26  ;;  %1391 = vmatpush.bf16.msra.mxu0 %v5799_v26  ;;  %v991_v9 = vsel %vm6244_vm11, %v986_v58, %v990_v39  ;;  %v1280_v13 = vunpack.c.l.b16 %v981_v0  ;;  %v1082_v14 = vrot.slane %v1081_v60, 4  ;;  %249 = vst [vmem:[#allocation2 + $0x4] sm:$0xf] %v6087_v25  ;;  %v259_v10 = vsel %vm6130_vm2, 0, %v258_v7  ;;  %v5846_v17 = vld [vmem:[%s7597_s1 + $0x138] sm:$0xff]  ;;  %v5837_v26 = vld [vmem:[%s7597_s1 + $0xf0] sm:$0xff] }
  0x2a   : > { %v1281_v18 = vunpack.c.l.b16 %v991_v9  ;;  %v1072_v19 = vrot.slane %v1071_v1, 4  ;;  %v6268_v20 = vrot.slane %v1170_v5, 5  ;;  %v1176_v22 = vrot.slane %v1174_v6, 4  ;;  %250 = vst [vmem:[#allocation2 + $0x8] sm:$0x1] %v6087_v25  ;;  %v5797_v28 = vld [vmem:[%s7597_s1 + $0x30] sm:$0xff] }
  0x2b   : > { %v1087_v24 = vsel %vm6244_vm11, %v1082_v14, %v1086_v61  ;;  %260 = vst [vmem:[#allocation2] sm:$0x1] %v259_v10  ;;  %v445_v29 = vrot.slane %v6231_v15, 4  ;;  %v6285_v30 = vrot.slane %v447_v16, 7  ;;  %v6292_v36 = vld [vmem:[%s6152_s26 + $0x40] sm:$0xf] }
  0x2c   : > { %1997 = vmatpush.bf16.msrb.mxu2 %v5814_v43  ;;  %1617 = vmatpush.bf16.msrb.mxu1 %v5798_v57  ;;  %v1308_v31 = vpack.c.b16 %v1281_v18, %v1280_v13  ;;  %v1077_v33 = vsel %vm6244_vm11, %v1072_v19, %v1076_v46  ;;  %v1289_v34 = vunpack.c.l.b16 %v1087_v24  ;;  %v1177_v35 = vor.u32 %v1176_v22, %v6268_v20  ;;  %v285_v37 = vld [vmem:[#allocation2 + $0x6c] sm:$0x1]  ;;  %v341_v41 = vld [vmem:[#allocation2 + $0x74] sm:$0x1]  ;;  %v233_v3 = vld [vmem:[%s6152_s26 + $0x44] sm:$0xf] }
  0x2d   : > { %2310 = vmatpush.bf16.msrb.mxu3 %v5838_v50  ;;  %2991 = vmatpush.bf16.msrb.mxu0 %v5846_v17  ;;  %252 = vst [vmem:[#allocation2 + $0xcc] sm:$0xf] %v6087_v25  ;;  %v1288_v38 = vunpack.c.l.b16 %v1077_v33  ;;  %v442_v39 = vshll.u32 %v6192_v51, 16  ;;  %v452_v16 = vor.u32 %v450_v32, %v6285_v30  ;;  %v286_v40 = vsel %vm6130_vm2, 0, %v285_v37 }
  0x2e   : > { %253 = vst [vmem:[#allocation2 + $0xd0] sm:$0xf] %v6087_v25  ;;  %1412 = vmatmul.bf16.vlgmr.msra.gmra.mxu1 %v1308_v31  ;;  %v829_v42 = vld [vmem:[#allocation2 + $0x90] sm:$0xf]  ;;  %v1178_v43 = vrot.slane %v1177_v35, 4  ;;  %v342_v45 = vsel %vm6135_vm4, 0, %v341_v41 }
  0x2f   : > { %254 = vst [vmem:[#allocation2 + $0xd4] sm:$0x1] %v6087_v25  ;;  %v1312_v46 = vpack.c.b16 %v1289_v34, %v1288_v38  ;;  %v865_v47 = vld [vmem:[#allocation2 + $0x98] sm:$0x1]  ;;  %v1161_v51 = vshrl.u32 %v829_v42, 16  ;;  %v1164_v48 = vshll.u32 %v829_v42, 16  ;;  %v453_v59 = vsel %vm6162_vm7, %v445_v29, %v452_v16 }
  0x30   : > { %1998 = vmatpush.bf16.msrb.mxu2 %v5813_v23  ;;  %1618 = vmatpush.bf16.msrb.mxu1 %v5797_v28  ;;  %275 = vst [vmem:[#allocation2 + $0x3c] sm:$0x1] %v274_v11  ;;  %v1180_v25 = vshll.u32 %v865_v47, 16  ;;  %v806_v32 = vld [vmem:[#allocation2 + $0x4] sm:$0xf]  ;;  %v507_v49 = vshrl.u32 %v6292_v36, 16  ;;  %v444_v58 = vor.u32 %v442_v39, %v6231_v15 }
  0x31   : > { %2311 = vmatpush.bf16.msrb.mxu3 %v5837_v26  ;;  %331 = vst [vmem:[#allocation2 + $0x44] sm:$0x1] %v330_v12  ;;  %1432 = vmatmul.bf16.vlgmr.msra.gmra.mxu2 %v1312_v46  ;;  %v1163_v50 = vrot.slane %v1161_v51, 4  ;;  %v1166_v52 = vrot.slane %v1164_v48, 5  ;;  %v314_v53 = vld [vmem:[#allocation2 + $0x8] sm:$0x1] }
  0x32   : > { %v882_v54 = vshll.u32 %v806_v32, 16  ;;  %v886_v55 = vshrl.u32 %v806_v32, 16  ;;  %v1182_v11 = vrot.slane %v1180_v25, 5  ;;  %v315_v56 = vsel %vm6135_vm4, 0, %v314_v53  ;;  %v805_v57 = vld [vmem:[#allocation2] sm:$0xf] }
  0x33   : > { %724 = vst [vmem:[#allocation2 + $0x40] sm:$0xf] %v453_v59  ;;  %v1167_v60 = vor.u32 %v1166_v52, %v1163_v50  ;;  %v873_v8 = vshrl.u32 %v805_v57, 16  ;;  %v876_v12 = vshll.u32 %v805_v57, 16  ;;  %v454_v0 = vrot.slane %v6285_v30, 4 }
  0x34   : > { %316 = vst [vmem:[#allocation2 + $0x8] sm:$0x1] %v315_v56  ;;  %v884_v61 = vrot.slane %v882_v54, 5  ;;  %v1183_v62 = vsel %vm6244_vm11, %v1178_v43, %v1182_v11  ;;  %v888_v63 = vrot.slane %v886_v55, 4  ;;  %v509_v1 = vrot.slane %v507_v49, 7  ;;  %v5812_v55 = vld [vmem:[%s7597_s1 + $0xa8] sm:$0xff] }
  0x35   : > { %287 = vst [vmem:[#allocation2 + $0x6c] sm:$0x1] %v286_v40  ;;  %v1168_v5 = vrot.slane %v1167_v60, 4  ;;  %v875_v6 = vrot.slane %v873_v8, 4  ;;  %v878_v7 = vrot.slane %v876_v12, 5  ;;  %v510_v15 = vshll.u32 %v6292_v36, 16  ;;  %1999 = vmatpush.bf16.msrb.mxu2 %v5812_v55 }
  0x36   : > { %343 = vst [vmem:[#allocation2 + $0x74] sm:$0x1] %v342_v45  ;;  %v1297_v9 = vunpack.c.l.b16 %v1183_v62  ;;  %v889_v13 = vor.u32 %v888_v63, %v884_v61  ;;  %v513_v10 = vrot.slane %v509_v1, 4  ;;  %v515_v17 = vshrl.u32 %v233_v3, 16  ;;  %v297_v31 = vld [vmem:[#allocation2 + $0x9c] sm:$0x1] }
  0x37   : > { %v721_v14 = vld [vmem:[#allocation2 + $0x3c] sm:$0xf]  ;;  %v1173_v18 = vsel %vm6244_vm11, %v1168_v5, %v6268_v20  ;;  %v879_v19 = vor.u32 %v878_v7, %v875_v6  ;;  %v518_v24 = vshll.u32 %v233_v3, 16  ;;  %v512_v35 = vor.u32 %v510_v15, %v509_v1  ;;  %v240_v20 = vld [vmem:[%s6152_s26 + $0x60] sm:$0xf] }
  0x38   : > { %v722_v22 = vsel %vm6173_vm8, %v444_v58, %v721_v14  ;;  %v725_v23 = vld [vmem:[#allocation2 + $0x44] sm:$0x1]  ;;  %v1296_v26 = vunpack.c.l.b16 %v1173_v18  ;;  %v890_v28 = vrot.slane %v889_v13, 4  ;;  %v517_v30 = vrot.slane %v515_v17, 7  ;;  %v6341_v49 = vld [vmem:[%s6152_s26] sm:$0xf] }
  0x39   : > { %723 = vst [vmem:[#allocation2 + $0x3c] sm:$0xf] %v722_v22  ;;  %v726_v29 = vsel %vm6130_vm2, %v454_v0, %v725_v23  ;;  %v880_v33 = vrot.slane %v879_v19, 4  ;;  %v241_v36 = vld [vmem:[%s6152_s26 + $0x64] sm:$0xf]  ;;  %v298_v37 = vsel %vm6130_vm2, 0, %v297_v31 }
  0x3a   : > { %727 = vst [vmem:[#allocation2 + $0x44] sm:$0x1] %v726_v29  ;;  %v816_v34 = vld [vmem:[#allocation2 + $0x40] sm:$0xf]  ;;  %v1316_v38 = vpack.c.b16 %v1297_v9, %v1296_v26  ;;  %v520_v41 = vor.u32 %v518_v24, %v517_v30  ;;  %v522_v45 = vrot.slane %v517_v30, 4  ;;  %v575_v11 = vshrl.u32 %v240_v20, 16 }
  0x3b   : > { %v853_v39 = vld [vmem:[#allocation2 + $0x8] sm:$0x1]  ;;  %v1002_v16 = vshll.u32 %v816_v34, 16  ;;  %v1006_v40 = vshrl.u32 %v816_v34, 16  ;;  %299 = vst [vmem:[#allocation2 + $0x9c] sm:$0x1] %v298_v37  ;;  %v885_v42 = vsel %vm6244_vm11, %v880_v33, %v884_v61 }
  0x3c   : > { %v892_v43 = vshll.u32 %v853_v39, 16  ;;  %v749_v46 = vld [vmem:[#allocation2 + $0x6c] sm:$0xf]  ;;  %v353_v47 = vld [vmem:[#allocation2 + $0xa4] sm:$0x1]  ;;  %1452 = vmatmul.bf16.vlgmr.msra.gmra.mxu3 %v1316_v38  ;;  %v1272_v51 = vunpack.c.l.b16 %v885_v42  ;;  %v521_v25 = vsel %vm6162_vm7, %v513_v10, %v520_v41  ;;  %v578_v56 = vshll.u32 %v240_v20, 16 }
  0x3d   : > { %v6336_v48 = vrot.slane %v1002_v16, 5  ;;  %v1008_v59 = vrot.slane %v1006_v40, 4  ;;  %v753_v32 = vld [vmem:[#allocation2 + $0x74] sm:$0x1]  ;;  %v750_v52 = vsel %vm6173_vm8, %v512_v35, %v749_v46  ;;  %752 = vst [vmem:[#allocation2 + $0x70] sm:$0xf] %v521_v25 }
  0x3e   : > { %v894_v50 = vrot.slane %v892_v43, 5  ;;  %v754_v53 = vsel %vm6130_vm2, %v522_v45, %v753_v32  ;;  %v354_v54 = vsel %vm6135_vm4, 0, %v353_v47  ;;  %751 = vst [vmem:[#allocation2 + $0x6c] sm:$0xf] %v750_v52  ;;  %v583_v57 = vshrl.u32 %v241_v36, 16  ;;  %v5836_v42 = vld [vmem:[%s7597_s1 + $0xe8] sm:$0xff] }
  0x3f   : > { %v1009_v3 = vor.u32 %v1008_v59, %v6336_v48  ;;  %755 = vst [vmem:[#allocation2 + $0x74] sm:$0x1] %v754_v53  ;;  %v586_v8 = vshll.u32 %v241_v36, 16  ;;  %v371_v12 = vshrl.u32 %v6341_v49, 16  ;;  %v577_v6 = vrot.slane %v575_v11, 7  ;;  %2312 = vmatpush.bf16.msrb.mxu3 %v5836_v42  ;;  %v5835_v11 = vld [vmem:[%s7597_s1 + $0xe0] sm:$0xff] }
  0x40   : > { %v895_v58 = vsel %vm6244_vm11, %v890_v28, %v894_v50  ;;  %v815_v60 = vld [vmem:[#allocation2 + $0x3c] sm:$0xf]  ;;  %355 = vst [vmem:[#allocation2 + $0xa4] sm:$0x1] %v354_v54  ;;  %v585_v7 = vrot.slane %v583_v57, 7  ;;  %v374_v57 = vshll.u32 %v6341_v49, 16 }
  0x41   : > { %v1273_v61 = vunpack.c.l.b16 %v895_v58  ;;  %v858_v62 = vld [vmem:[#allocation2 + $0x44] sm:$0x1]  ;;  %v993_v63 = vshrl.u32 %v815_v60, 16  ;;  %v996_v0 = vshll.u32 %v815_v60, 16  ;;  %v1010_v1 = vrot.slane %v1009_v3, 4  ;;  %v5796_v3 = vld [vmem:[%s7597_s1 + $0x28] sm:$0xff] }
  0x42   : > { %v1012_v5 = vshll.u32 %v858_v62, 16  ;;  %v777_v14 = vld [vmem:[#allocation2 + $0x9c] sm:$0xf]  ;;  %v6356_v10 = vrot.slane %v371_v12, 7  ;;  %v580_v18 = vor.u32 %v578_v56, %v577_v6  ;;  %v581_v19 = vrot.slane %v577_v6, 4  ;;  %v5844_v60 = vld [vmem:[%s7597_s1 + $0x128] sm:$0xff]  ;;  %1619 = vmatpush.bf16.msrb.mxu1 %v5796_v3 }
  0x43   : > { %v1304_v15 = vpack.c.b16 %v1273_v61, %v1272_v51  ;;  %v995_v9 = vrot.slane %v993_v63, 4  ;;  %v998_v13 = vrot.slane %v996_v0, 5  ;;  %v588_v22 = vor.u32 %v586_v8, %v585_v7  ;;  %v261_v23 = vld [vmem:[#allocation2 + $0xc] sm:$0x1]  ;;  %v317_v24 = vld [vmem:[#allocation2 + $0x14] sm:$0x1]  ;;  %2313 = vmatpush.bf16.msrb.mxu3 %v5835_v11 }
  0x44   : > { %v1014_v17 = vrot.slane %v1012_v5, 5  ;;  %v824_v28 = vld [vmem:[#allocation2 + $0x70] sm:$0xf]  ;;  %v590_v29 = vrot.slane %v585_v7, 4  ;;  %v262_v30 = vsel %vm6130_vm2, 0, %v261_v23  ;;  %v318_v31 = vsel %vm6135_vm4, 0, %v317_v24 }
  0x45   : > { %1392 = vmatmul.bf16.vlgmr.msra.gmra.mxu0 %v1304_v15  ;;  %v999_v26 = vor.u32 %v998_v13, %v995_v9  ;;  %v823_v34 = vld [vmem:[#allocation2 + $0x6c] sm:$0xf]  ;;  %v1098_v35 = vshll.u32 %v824_v28, 16  ;;  %v1102_v20 = vshrl.u32 %v824_v28, 16  ;;  %v589_v36 = vsel %vm6162_vm7, %v581_v19, %v588_v22  ;;  %v217_v37 = vld [vmem:[%s6152_s26 + $0x4] sm:$0xf] }
  0x46   : > { %v1015_v33 = vsel %vm6244_vm11, %v1010_v1, %v1014_v17  ;;  %263 = vst [vmem:[#allocation2 + $0xc] sm:$0x1] %v262_v30  ;;  %v862_v16 = vld [vmem:[#allocation2 + $0x74] sm:$0x1]  ;;  %v1089_v40 = vshrl.u32 %v823_v34, 16  ;;  %v1092_v41 = vshll.u32 %v823_v34, 16  ;;  %v778_v47 = vsel %vm6173_vm8, %v580_v18, %v777_v14 }
  0x47   : > { %v1000_v38 = vrot.slane %v999_v26, 4  ;;  %v1283_v39 = vunpack.c.l.b16 %v1015_v33  ;;  %v1100_v43 = vrot.slane %v1098_v35, 5  ;;  %v1104_v45 = vrot.slane %v1102_v20, 4  ;;  %780 = vst [vmem:[#allocation2 + $0xa0] sm:$0xf] %v589_v36  ;;  %v5845_v51 = vld [vmem:[%s7597_s1 + $0x130] sm:$0xff] }
  0x48   : > { %v1108_v46 = vshll.u32 %v862_v16, 16  ;;  %v1091_v25 = vrot.slane %v1089_v40, 4  ;;  %v1094_v32 = vrot.slane %v1092_v41, 5  ;;  %779 = vst [vmem:[#allocation2 + $0x9c] sm:$0xf] %v778_v47  ;;  %2992 = vmatpush.bf16.msrb.mxu0 %v5845_v51  ;;  %v379_v58 = vshrl.u32 %v217_v37, 16 }
  0x49   : > { %v1005_v59 = vsel %vm6244_vm11, %v1000_v38, %v6336_v48  ;;  %v781_v50 = vld [vmem:[#allocation2 + $0xa4] sm:$0x1]  ;;  %v1105_v53 = vor.u32 %v1104_v45, %v1100_v43  ;;  %319 = vst [vmem:[#allocation2 + $0x14] sm:$0x1] %v318_v31  ;;  %v382_v61 = vshll.u32 %v217_v37, 16  ;;  %v376_v1 = vor.u32 %v374_v57, %v6356_v10 }
  0x4a   : > { %v1282_v52 = vunpack.c.l.b16 %v1005_v59  ;;  %v1110_v54 = vrot.slane %v1108_v46, 5  ;;  %v782_v55 = vsel %vm6130_vm2, %v590_v29, %v781_v50  ;;  %v5811_v48 = vld [vmem:[%s7597_s1 + $0xa0] sm:$0xff]  ;;  %v1095_v56 = vor.u32 %v1094_v32, %v1091_v25  ;;  %v226_v63 = vld [vmem:[%s6152_s26 + $0x28] sm:$0xf]  ;;  %v227_v22 = vld [vmem:[%s6152_s26 + $0x2c] sm:$0xf] }
  0x4b   : > { %783 = vst [vmem:[#allocation2 + $0xa4] sm:$0x1] %v782_v55  ;;  %v1106_v12 = vrot.slane %v1105_v53, 4  ;;  %2000 = vmatpush.bf16.msrb.mxu2 %v5811_v48  ;;  %v5795_v62 = vld [vmem:[%s7597_s1 + $0x20] sm:$0xff]  ;;  %v377_v49 = vrot.slane %v6356_v10, 4  ;;  %v381_v5 = vrot.slane %v379_v58, 7 }
  0x4c   : > { %v1309_v8 = vpack.c.b16 %v1283_v39, %v1282_v52  ;;  %v1096_v0 = vrot.slane %v1095_v56, 4  ;;  %2993 = vmatpush.bf16.msrb.mxu0 %v5844_v60  ;;  %v456_v15 = vshrl.u32 %v226_v63, 16  ;;  %v459_v9 = vshll.u32 %v226_v63, 16  ;;  %v276_v23 = vld [vmem:[#allocation2 + $0x48] sm:$0x1]  ;;  %1620 = vmatpush.bf16.msrb.mxu1 %v5795_v62 }
  0x4d   : > { %v693_v6 = vld [vmem:[#allocation2 + $0xc] sm:$0xf]  ;;  %v1111_v7 = vsel %vm6244_vm11, %v1106_v12, %v1110_v54  ;;  %v384_v18 = vor.u32 %v382_v61, %v381_v5  ;;  %v386_v19 = vrot.slane %v381_v5, 4  ;;  %v332_v30 = vld [vmem:[#allocation2 + $0x50] sm:$0x1]  ;;  %v464_v51 = vshrl.u32 %v227_v22, 16 }
  0x4e   : > { %1417 = vmatmul.bf16.gmra.mxu1 %v1309_v8  ;;  %v1101_v13 = vsel %vm6244_vm11, %v1096_v0, %v1100_v43  ;;  %v1291_v14 = vunpack.c.l.b16 %v1111_v7  ;;  %v832_v17 = vld [vmem:[#allocation2 + $0xa0] sm:$0xf]  ;;  %v694_v29 = vsel %vm6173_vm8, %v376_v1, %v693_v6  ;;  %v234_v16 = vld [vmem:[%s6152_s26 + $0x48] sm:$0xf]  ;;  %v277_v43 = vsel %vm6130_vm2, 0, %v276_v23 }
  0x4f   : > { %v1290_v10 = vunpack.c.l.b16 %v1101_v13  ;;  %v831_v24 = vld [vmem:[#allocation2 + $0x9c] sm:$0xf]  ;;  %v1194_v26 = vshll.u32 %v832_v17, 16  ;;  %v1198_v28 = vshrl.u32 %v832_v17, 16  ;;  %v385_v34 = vsel %vm6162_vm7, %v377_v49, %v384_v18  ;;  %695 = vst [vmem:[#allocation2 + $0xc] sm:$0xf] %v694_v29 }
  0x50   : > { %v1185_v31 = vshrl.u32 %v831_v24, 16  ;;  %v1188_v33 = vshll.u32 %v831_v24, 16  ;;  %v697_v35 = vld [vmem:[#allocation2 + $0x14] sm:$0x1]  ;;  %696 = vst [vmem:[#allocation2 + $0x10] sm:$0xf] %v385_v34 }
  0x51   : > { %v1313_v20 = vpack.c.b16 %v1291_v14, %v1290_v10  ;;  %v1196_v37 = vrot.slane %v1194_v26, 5  ;;  %v1200_v38 = vrot.slane %v1198_v28, 4  ;;  %v698_v39 = vsel %vm6130_vm2, %v386_v19, %v697_v35  ;;  %278 = vst [vmem:[#allocation2 + $0x48] sm:$0x1] %v277_v43  ;;  %v288_v50 = vld [vmem:[#allocation2 + $0x78] sm:$0x1] }
  0x52   : > { %v866_v36 = vld [vmem:[#allocation2 + $0xa4] sm:$0x1]  ;;  %v1187_v40 = vrot.slane %v1185_v31, 4  ;;  %v1190_v41 = vrot.slane %v1188_v33, 5  ;;  %699 = vst [vmem:[#allocation2 + $0x14] sm:$0x1] %v698_v39 }
  0x53   : > { %v1204_v42 = vshll.u32 %v866_v36, 16  ;;  %1437 = vmatmul.bf16.gmra.mxu2 %v1313_v20  ;;  %v1201_v45 = vor.u32 %v1200_v38, %v1196_v37  ;;  %v333_v46 = vsel %vm6135_vm4, 0, %v332_v30  ;;  %v458_v47 = vrot.slane %v456_v15, 7  ;;  %v344_v3 = vld [vmem:[#allocation2 + $0x80] sm:$0x1] }
  0x54   : > { %v1191_v59 = vor.u32 %v1190_v41, %v1187_v40  ;;  %334 = vst [vmem:[#allocation2 + $0x50] sm:$0x1] %v333_v46  ;;  %v467_v32 = vshll.u32 %v227_v22, 16  ;;  %v466_v55 = vrot.slane %v464_v51, 7  ;;  %v289_v11 = vsel %vm6130_vm2, 0, %v288_v50  ;;  %v5810_v50 = vld [vmem:[%s7597_s1 + $0x98] sm:$0xff] }
  0x55   : > { %v1206_v25 = vrot.slane %v1204_v42, 5  ;;  %v1202_v52 = vrot.slane %v1201_v45, 4  ;;  %v461_v53 = vor.u32 %v459_v9, %v458_v47  ;;  %v462_v54 = vrot.slane %v458_v47, 4  ;;  %290 = vst [vmem:[#allocation2 + $0x78] sm:$0x1] %v289_v11  ;;  %2001 = vmatpush.bf16.msrb.mxu2 %v5810_v50 }
  0x56   : > { %v1192_v48 = vrot.slane %v1191_v59, 4  ;;  %v345_v56 = vsel %vm6135_vm4, 0, %v344_v3  ;;  %v524_v57 = vshrl.u32 %v234_v16, 16  ;;  %v807_v60 = vld [vmem:[#allocation2 + $0xc] sm:$0xf]  ;;  %v469_v8 = vor.u32 %v467_v32, %v466_v55 }
  0x57   : > { %v1207_v58 = vsel %vm6244_vm11, %v1202_v52, %v1206_v25  ;;  %v471_v12 = vrot.slane %v466_v55, 4  ;;  %v527_v61 = vshll.u32 %v234_v16, 16  ;;  %v6423_v0 = vld [vmem:[#allocation2 + $0x10] sm:$0xf]  ;;  %v897_v1 = vshrl.u32 %v807_v60, 16 }
  0x58   : > { %v1197_v62 = vsel %vm6244_vm11, %v1192_v48, %v1196_v37  ;;  %v1299_v63 = vunpack.c.l.b16 %v1207_v58  ;;  %v900_v49 = vshll.u32 %v807_v60, 16  ;;  %346 = vst [vmem:[#allocation2 + $0x80] sm:$0x1] %v345_v56  ;;  %v906_v7 = vshll.u32 %v6423_v0, 16  ;;  %v235_v13 = vld [vmem:[%s6152_s26 + $0x4c] sm:$0xf] }
  0x59   : > { %v1298_v5 = vunpack.c.l.b16 %v1197_v62  ;;  %v6425_v6 = vld [vmem:[#allocation2 + $0x14] sm:$0x1]  ;;  %v910_v15 = vshrl.u32 %v6423_v0, 16  ;;  %v470_v9 = vsel %vm6162_vm7, %v462_v54, %v469_v8  ;;  %v899_v14 = vrot.slane %v897_v1, 4  ;;  %v728_v19 = vld [vmem:[#allocation2 + $0x48] sm:$0xf] }
  0x5a   : > { %v902_v17 = vrot.slane %v900_v49, 5  ;;  %v916_v18 = vshll.u32 %v6425_v6, 16  ;;  %v526_v22 = vrot.slane %v524_v57, 7  ;;  %v908_v10 = vrot.slane %v906_v7, 5  ;;  %731 = vst [vmem:[#allocation2 + $0x4c] sm:$0xf] %v470_v9 }
  0x5b   : > { %v1317_v23 = vpack.c.b16 %v1299_v63, %v1298_v5  ;;  %v912_v24 = vrot.slane %v910_v15, 4  ;;  %v729_v26 = vsel %vm6173_vm8, %v461_v53, %v728_v19  ;;  %v732_v28 = vld [vmem:[#allocation2 + $0x50] sm:$0x1]  ;;  %v242_v29 = vld [vmem:[%s6152_s26 + $0x68] sm:$0xf]  ;;  %v532_v37 = vshrl.u32 %v235_v13, 16 }
  0x5c   : > { %v903_v30 = vor.u32 %v902_v17, %v899_v14  ;;  %v918_v31 = vrot.slane %v916_v18, 5  ;;  %730 = vst [vmem:[#allocation2 + $0x48] sm:$0xf] %v729_v26  ;;  %v733_v33 = vsel %vm6130_vm2, %v471_v12, %v732_v28  ;;  %v529_v34 = vor.u32 %v527_v61, %v526_v22  ;;  %v300_v35 = vld [vmem:[#allocation2 + $0xa8] sm:$0x1] }
  0x5d   : > { %1457 = vmatmul.bf16.gmra.mxu3 %v1317_v23  ;;  %v913_v20 = vor.u32 %v912_v24, %v908_v10  ;;  %734 = vst [vmem:[#allocation2 + $0x50] sm:$0x1] %v733_v33  ;;  %v530_v36 = vrot.slane %v526_v22, 4  ;;  %v535_v38 = vshll.u32 %v235_v13, 16  ;;  %v243_v39 = vld [vmem:[%s6152_s26 + $0x6c] sm:$0xf] }
  0x5e   : > { %v904_v16 = vrot.slane %v903_v30, 4  ;;  %v756_v40 = vld [vmem:[#allocation2 + $0x78] sm:$0xf]  ;;  %v301_v41 = vsel %vm6130_vm2, 0, %v300_v35  ;;  %v356_v42 = vld [vmem:[#allocation2 + $0xb0] sm:$0x1] }
  0x5f   : > { %v914_v43 = vrot.slane %v913_v20, 4  ;;  %v534_v45 = vrot.slane %v532_v37, 7  ;;  %v757_v46 = vsel %vm6173_vm8, %v529_v34, %v756_v40  ;;  %v760_v47 = vld [vmem:[#allocation2 + $0x80] sm:$0x1]  ;;  %302 = vst [vmem:[#allocation2 + $0xa8] sm:$0x1] %v301_v41 }
  0x60   : > { %v909_v51 = vsel %vm6244_vm11, %v904_v16, %v908_v10  ;;  %758 = vst [vmem:[#allocation2 + $0x78] sm:$0xf] %v757_v46  ;;  %v357_v59 = vsel %vm6135_vm4, 0, %v356_v42  ;;  %v592_v25 = vshrl.u32 %v242_v29, 16  ;;  %v595_v32 = vshll.u32 %v242_v29, 16  ;;  %v5834_v46 = vld [vmem:[%s7597_s1 + $0xd8] sm:$0xff] }
  0x61   : > { %v919_v52 = vsel %vm6244_vm11, %v914_v43, %v918_v31  ;;  %v1274_v53 = vunpack.c.l.b16 %v909_v51  ;;  %v537_v54 = vor.u32 %v535_v38, %v534_v45  ;;  %v539_v55 = vrot.slane %v534_v45, 4  ;;  %358 = vst [vmem:[#allocation2 + $0xb0] sm:$0x1] %v357_v59  ;;  %v818_v48 = vld [vmem:[#allocation2 + $0x4c] sm:$0xf]  ;;  %2314 = vmatpush.bf16.msrb.mxu3 %v5834_v46 }
  0x62   : > { %v1275_v3 = vunpack.c.l.b16 %v919_v52  ;;  %v594_v11 = vrot.slane %v592_v25, 7  ;;  %v600_v56 = vshrl.u32 %v243_v39, 16  ;;  %v603_v57 = vshll.u32 %v243_v39, 16  ;;  %v6457_v62 = vld [vmem:[%s6152_s26 + $0x8] sm:$0xf] }
  0x63   : > { %v817_v58 = vld [vmem:[#allocation2 + $0x48] sm:$0xf]  ;;  %v1026_v60 = vshll.u32 %v818_v48, 16  ;;  %v1030_v8 = vshrl.u32 %v818_v48, 16  ;;  %v538_v12 = vsel %vm6162_vm7, %v530_v36, %v537_v54  ;;  %v761_v61 = vsel %vm6130_vm2, %v539_v55, %v760_v47  ;;  %v264_v29 = vld [vmem:[#allocation2 + $0x18] sm:$0x1] }
  0x64   : > { %v1305_v63 = vpack.c.b16 %v1275_v3, %v1274_v53  ;;  %v859_v1 = vld [vmem:[#allocation2 + $0x50] sm:$0x1]  ;;  %v1017_v49 = vshrl.u32 %v817_v58, 16  ;;  %v1020_v5 = vshll.u32 %v817_v58, 16  ;;  %759 = vst [vmem:[#allocation2 + $0x7c] sm:$0xf] %v538_v12  ;;  %v597_v7 = vor.u32 %v595_v32, %v594_v11 }
  0x65   : > { %v1028_v15 = vrot.slane %v1026_v60, 5  ;;  %v1032_v9 = vrot.slane %v1030_v8, 4  ;;  %v1036_v13 = vshll.u32 %v859_v1, 16  ;;  %762 = vst [vmem:[#allocation2 + $0x80] sm:$0x1] %v761_v61  ;;  %v598_v14 = vrot.slane %v594_v11, 4 }
  0x66   : > { %1397 = vmatmul.bf16.gmra.mxu0 %v1305_v63  ;;  %v1019_v17 = vrot.slane %v1017_v49, 4  ;;  %v1022_v18 = vrot.slane %v1020_v5, 5  ;;  %v602_v19 = vrot.slane %v600_v56, 7  ;;  %v784_v22 = vld [vmem:[#allocation2 + $0xa8] sm:$0xf]  ;;  %v388_v23 = vshrl.u32 %v6457_v62, 16 }
  0x67   : > { %v1033_v10 = vor.u32 %v1032_v9, %v1028_v15  ;;  %v1038_v24 = vrot.slane %v1036_v13, 5  ;;  %v825_v26 = vld [vmem:[#allocation2 + $0x78] sm:$0xf]  ;;  %v785_v28 = vsel %vm6173_vm8, %v597_v7, %v784_v22  ;;  %v391_v30 = vshll.u32 %v6457_v62, 16  ;;  %v219_v38 = vld [vmem:[%s6152_s26 + $0xc] sm:$0xf] }
  0x68   : > { %v1023_v31 = vor.u32 %v1022_v18, %v1019_v17  ;;  %v1113_v33 = vshrl.u32 %v825_v26, 16  ;;  %v1116_v34 = vshll.u32 %v825_v26, 16  ;;  %v605_v35 = vor.u32 %v603_v57, %v602_v19  ;;  %786 = vst [vmem:[#allocation2 + $0xa8] sm:$0xf] %v785_v28  ;;  %v788_v20 = vld [vmem:[#allocation2 + $0xb0] sm:$0x1] }
  0x69   : > { %v1034_v36 = vrot.slane %v1033_v10, 4  ;;  %v607_v37 = vrot.slane %v602_v19, 4  ;;  %v265_v39 = vsel %vm6130_vm2, 0, %v264_v29  ;;  %v320_v16 = vld [vmem:[#allocation2 + $0x20] sm:$0x1]  ;;  %v6466_v40 = vrot.slane %v388_v23, 7 }
  0x6a   : > { %v1024_v41 = vrot.slane %v1023_v31, 4  ;;  %v1115_v42 = vrot.slane %v1113_v33, 4  ;;  %v1118_v43 = vrot.slane %v1116_v34, 5  ;;  %v606_v45 = vsel %vm6162_vm7, %v598_v14, %v605_v35  ;;  %266 = vst [vmem:[#allocation2 + $0x18] sm:$0x1] %v265_v39  ;;  %v5843_v32 = vld [vmem:[%s7597_s1 + $0x120] sm:$0xff] }
  0x6b   : > { %v1039_v47 = vsel %vm6244_vm11, %v1034_v36, %v1038_v24  ;;  %v826_v51 = vld [vmem:[#allocation2 + $0x7c] sm:$0xf]  ;;  %787 = vst [vmem:[#allocation2 + $0xac] sm:$0xf] %v606_v45  ;;  %v789_v59 = vsel %vm6130_vm2, %v607_v37, %v788_v20  ;;  %v321_v25 = vsel %vm6135_vm4, 0, %v320_v16  ;;  %2994 = vmatpush.bf16.msrb.mxu0 %v5843_v32  ;;  %v5809_v57 = vld [vmem:[%s7597_s1 + $0x90] sm:$0xff]  ;;  %v393_v5 = vor.u32 %v391_v30, %v6466_v40 }
  0x6c   : > { %v1029_v50 = vsel %vm6244_vm11, %v1024_v41, %v1028_v15  ;;  %v1285_v52 = vunpack.c.l.b16 %v1039_v47  ;;  %v863_v53 = vld [vmem:[#allocation2 + $0x80] sm:$0x1]  ;;  %v1119_v54 = vor.u32 %v1118_v43, %v1115_v42  ;;  %v1122_v55 = vshll.u32 %v826_v51, 16  ;;  %790 = vst [vmem:[#allocation2 + $0xb0] sm:$0x1] %v789_v59  ;;  %v5794_v3 = vld [vmem:[%s7597_s1 + $0x18] sm:$0xff]  ;;  %2002 = vmatpush.bf16.msrb.mxu2 %v5809_v57 }
  0x6d   : > { %v1284_v48 = vunpack.c.l.b16 %v1029_v50  ;;  %v1126_v11 = vshrl.u32 %v826_v51, 16  ;;  %v1132_v56 = vshll.u32 %v863_v53, 16  ;;  %322 = vst [vmem:[#allocation2 + $0x20] sm:$0x1] %v321_v25  ;;  %v396_v8 = vshrl.u32 %v219_v38, 16  ;;  %1621 = vmatpush.bf16.msrb.mxu1 %v5794_v3  ;;  %v5833_v61 = vld [vmem:[%s7597_s1 + $0xd0] sm:$0xff] }
  0x6e   : > { %v1120_v58 = vrot.slane %v1119_v54, 4  ;;  %v1124_v60 = vrot.slane %v1122_v55, 5  ;;  %v399_v12 = vshll.u32 %v219_v38, 16  ;;  %v5842_v62 = vld [vmem:[%s7597_s1 + $0x118] sm:$0xff]  ;;  %v394_v7 = vrot.slane %v6466_v40, 4  ;;  %v5793_v15 = vld [vmem:[%s7597_s1 + $0x10] sm:$0xff]  ;;  %2315 = vmatpush.bf16.msrb.mxu3 %v5833_v61 }
  0x6f   : > { %v1310_v63 = vpack.c.b16 %v1285_v52, %v1284_v48  ;;  %v1128_v1 = vrot.slane %v1126_v11, 4  ;;  %v833_v49 = vld [vmem:[#allocation2 + $0xa8] sm:$0xf]  ;;  %v398_v17 = vrot.slane %v396_v8, 7  ;;  %v1134_v19 = vrot.slane %v1132_v56, 5  ;;  %2995 = vmatpush.bf16.msrb.mxu0 %v5842_v62 }
  0x70   : > { %v1125_v9 = vsel %vm6244_vm11, %v1120_v58, %v1124_v60  ;;  %v1209_v13 = vshrl.u32 %v833_v49, 16  ;;  %v1212_v14 = vshll.u32 %v833_v49, 16  ;;  %v279_v10 = vld [vmem:[#allocation2 + $0x54] sm:$0x1]  ;;  %v228_v31 = vld [vmem:[%s6152_s26 + $0x30] sm:$0xf] }
  0x71   : > { %1422 = vmatmul.bf16.gmra.mxu1 %v1310_v63  ;;  %v1129_v18 = vor.u32 %v1128_v1, %v1124_v60  ;;  %v1292_v22 = vunpack.c.l.b16 %v1125_v9  ;;  %v700_v23 = vld [vmem:[#allocation2 + $0x18] sm:$0xf]  ;;  %v401_v29 = vor.u32 %v399_v12, %v398_v17  ;;  %v403_v30 = vrot.slane %v398_v17, 4  ;;  %v229_v33 = vld [vmem:[%s6152_s26 + $0x34] sm:$0xf] }
  0x72   : > { %v834_v24 = vld [vmem:[#allocation2 + $0xac] sm:$0xf]  ;;  %v1211_v26 = vrot.slane %v1209_v13, 4  ;;  %v1214_v28 = vrot.slane %v1212_v14, 5  ;;  %1622 = vmatpush.bf16.msrb.mxu1 %v5793_v15  ;;  %v701_v37 = vsel %vm6173_vm8, %v393_v5, %v700_v23  ;;  %v280_v41 = vsel %vm6130_vm2, 0, %v279_v10 }
  0x73   : > { %v1130_v34 = vrot.slane %v1129_v18, 4  ;;  %v867_v35 = vld [vmem:[#allocation2 + $0xb0] sm:$0x1]  ;;  %v1218_v20 = vshll.u32 %v834_v24, 16  ;;  %v1222_v36 = vshrl.u32 %v834_v24, 16  ;;  %v402_v16 = vsel %vm6162_vm7, %v394_v7, %v401_v29 }
  0x74   : > { %v1215_v38 = vor.u32 %v1214_v28, %v1211_v26  ;;  %v1228_v39 = vshll.u32 %v867_v35, 16  ;;  %702 = vst [vmem:[#allocation2 + $0x18] sm:$0xf] %v701_v37  ;;  %v704_v40 = vld [vmem:[#allocation2 + $0x20] sm:$0x1]  ;;  %v473_v52 = vshrl.u32 %v228_v31, 16 }
  0x75   : > { %v1135_v42 = vsel %vm6244_vm11, %v1130_v34, %v1134_v19  ;;  %v1220_v43 = vrot.slane %v1218_v20, 5  ;;  %v1224_v45 = vrot.slane %v1222_v36, 4  ;;  %703 = vst [vmem:[#allocation2 + $0x1c] sm:$0xf] %v402_v16  ;;  %v705_v46 = vsel %vm6130_vm2, %v403_v30, %v704_v40  ;;  %v335_v47 = vld [vmem:[#allocation2 + $0x5c] sm:$0x1] }
  0x76   : > { %v1293_v51 = vunpack.c.l.b16 %v1135_v42  ;;  %v1216_v59 = vrot.slane %v1215_v38, 4  ;;  %v1230_v25 = vrot.slane %v1228_v39, 5  ;;  %706 = vst [vmem:[#allocation2 + $0x20] sm:$0x1] %v705_v46  ;;  %v336_v32 = vsel %vm6135_vm4, 0, %v335_v47 }
  0x77   : > { %v1225_v50 = vor.u32 %v1224_v45, %v1220_v43  ;;  %281 = vst [vmem:[#allocation2 + $0x54] sm:$0x1] %v280_v41  ;;  %v476_v53 = vshll.u32 %v228_v31, 16  ;;  %v481_v54 = vshrl.u32 %v229_v33, 16  ;;  %v484_v48 = vshll.u32 %v229_v33, 16 }
  0x78   : > { %v1314_v55 = vpack.c.b16 %v1293_v51, %v1292_v22  ;;  %v1221_v3 = vsel %vm6244_vm11, %v1216_v59, %v1220_v43  ;;  %337 = vst [vmem:[#allocation2 + $0x5c] sm:$0x1] %v336_v32  ;;  %v6520_v11 = vld [vmem:[%s6152_s26 + $0x50] sm:$0xf]  ;;  %v475_v57 = vrot.slane %v473_v52, 7  ;;  %vm1754_vm12 = vcmask 1042432  }
  0x79   : > { %v1226_v56 = vrot.slane %v1225_v50, 4  ;;  %v483_v58 = vrot.slane %v481_v54, 7  ;;  %v1300_v60 = vunpack.c.l.b16 %v1221_v3  ;;  %v291_v8 = vld [vmem:[#allocation2 + $0x84] sm:$0x1]  ;;  %v541_v12 = vshrl.u32 %v6520_v11, 16 }
  0x7a   : > { %1442 = vmatmul.bf16.gmra.mxu2 %v1314_v55  ;;  %v544_v61 = vshll.u32 %v6520_v11, 16  ;;  %v478_v1 = vor.u32 %v476_v53, %v475_v57  ;;  %v479_v49 = vrot.slane %v475_v57, 4  ;;  %v347_v7 = vld [vmem:[#allocation2 + $0x8c] sm:$0x1]  ;;  %v237_v18 = vld [vmem:[%s6152_s26 + $0x54] sm:$0xf] }
  0x7b   : > { %v1231_v62 = vsel %vm6244_vm11, %v1226_v56, %v1230_v25  ;;  %v809_v63 = vld [vmem:[#allocation2 + $0x18] sm:$0xf]  ;;  %v486_v5 = vor.u32 %v484_v48, %v483_v58  ;;  %v488_v17 = vrot.slane %v483_v58, 4  ;;  %v292_v24 = vsel %vm6130_vm2, 0, %v291_v8  ;;  %v244_v26 = vld [vmem:[%s6152_s26 + $0x70] sm:$0xf] }
  0x7c   : > { %v1301_v15 = vunpack.c.l.b16 %v1231_v62  ;;  %v6526_v9 = vld [vmem:[#allocation2 + $0x1c] sm:$0xf]  ;;  %v921_v13 = vshrl.u32 %v809_v63, 16  ;;  %v924_v14 = vshll.u32 %v809_v63, 16  ;;  %v348_v16 = vsel %vm6135_vm4, 0, %v347_v7  ;;  %v5808_v62 = vld [vmem:[%s7597_s1 + $0x88] sm:$0xff] }
  0x7d   : > { %v6529_v19 = vld [vmem:[#allocation2 + $0x20] sm:$0x1]  ;;  %v930_v22 = vshll.u32 %v6526_v9, 16  ;;  %v934_v23 = vshrl.u32 %v6526_v9, 16  ;;  %v487_v10 = vsel %vm6162_vm7, %v479_v49, %v486_v5  ;;  %v543_v41 = vrot.slane %v541_v12, 7  ;;  %2003 = vmatpush.bf16.msrb.mxu2 %v5808_v62 }
  0x7e   : > { %v1318_v28 = vpack.c.b16 %v1301_v15, %v1300_v60  ;;  %v923_v29 = vrot.slane %v921_v13, 4  ;;  %v926_v30 = vrot.slane %v924_v14, 5  ;;  %v940_v31 = vshll.u32 %v6529_v19, 16  ;;  %v735_v33 = vld [vmem:[#allocation2 + $0x54] sm:$0xf] }
  0x7f   : > { %v932_v34 = vrot.slane %v930_v22, 5  ;;  %v936_v35 = vrot.slane %v934_v23, 4  ;;  %v736_v20 = vsel %vm6173_vm8, %v478_v1, %v735_v33  ;;  %738 = vst [vmem:[#allocation2 + $0x58] sm:$0xf] %v487_v10  ;;  %v739_v36 = vld [vmem:[#allocation2 + $0x5c] sm:$0x1]  ;;  %v546_v48 = vor.u32 %v544_v61, %v543_v41 }
  0x80   : > { %1462 = vmatmul.bf16.gmra.mxu3 %v1318_v28  ;;  %v927_v37 = vor.u32 %v926_v30, %v923_v29  ;;  %v942_v38 = vrot.slane %v940_v31, 5  ;;  %737 = vst [vmem:[#allocation2 + $0x54] sm:$0xf] %v736_v20  ;;  %v740_v39 = vsel %vm6130_vm2, %v488_v17, %v739_v36  ;;  %v549_v42 = vshrl.u32 %v237_v18, 16  ;;  %v303_v46 = vld [vmem:[#allocation2 + $0xb4] sm:$0x1] }
  0x81   : > { %v937_v40 = vor.u32 %v936_v35, %v932_v34  ;;  %741 = vst [vmem:[#allocation2 + $0x5c] sm:$0x1] %v740_v39  ;;  %v552_v43 = vshll.u32 %v237_v18, 16  ;;  %v609_v47 = vshrl.u32 %v244_v26, 16  ;;  %v547_v59 = vrot.slane %v543_v41, 4 }
  0x82   : > { %v928_v45 = vrot.slane %v927_v37, 4  ;;  %293 = vst [vmem:[#allocation2 + $0x84] sm:$0x1] %v292_v24  ;;  %v551_v25 = vrot.slane %v549_v42, 7  ;;  %v304_v50 = vsel %vm6130_vm2, 0, %v303_v46  ;;  %v612_v54 = vshll.u32 %v244_v26, 16 }
  0x83   : > { %v938_v51 = vrot.slane %v937_v40, 4  ;;  %349 = vst [vmem:[#allocation2 + $0x8c] sm:$0x1] %v348_v16  ;;  %v359_v52 = vld [vmem:[#allocation2 + $0xbc] sm:$0x1]  ;;  %v611_v53 = vrot.slane %v609_v47, 7 }
  0x84   : > { %v933_v32 = vsel %vm6244_vm11, %v928_v45, %v932_v34  ;;  %v554_v11 = vor.u32 %v552_v43, %v551_v25  ;;  %v245_v56 = vld [vmem:[%s6152_s26 + $0x74] sm:$0xf]  ;;  %305 = vst [vmem:[#allocation2 + $0xb4] sm:$0x1] %v304_v50  ;;  %v556_v60 = vrot.slane %v551_v25, 4  ;;  %v360_v8 = vsel %vm6135_vm4, 0, %v359_v52 }
  0x85   : > { %v943_v55 = vsel %vm6244_vm11, %v938_v51, %v942_v38  ;;  %v1276_v3 = vunpack.c.l.b16 %v933_v32  ;;  %v615_v12 = vrot.slane %v611_v53, 4  ;;  %361 = vst [vmem:[#allocation2 + $0xbc] sm:$0x1] %v360_v8  ;;  %v614_v14 = vor.u32 %v612_v54, %v611_v53  ;;  %v220_v37 = vld [vmem:[%s6152_s26 + $0x10] sm:$0xf]  ;;  %v5792_v8 = vld [vmem:[%s7597_s1 + $0x8] sm:$0xff] }
  0x86   : > { %v1277_v57 = vunpack.c.l.b16 %v943_v55  ;;  %v6552_v58 = vld [vmem:[#allocation2 + $0x58] sm:$0xf]  ;;  %v555_v49 = vsel %vm6162_vm7, %v547_v59, %v554_v11  ;;  %v617_v10 = vshrl.u32 %v245_v56, 16  ;;  %v620_v30 = vshll.u32 %v245_v56, 16  ;;  %v267_v38 = vld [vmem:[#allocation2 + $0x24] sm:$0x1]  ;;  %1623 = vmatpush.bf16.msrb.mxu1 %v5792_v8 }
  0x87   : > { %v819_v63 = vld [vmem:[#allocation2 + $0x54] sm:$0xf]  ;;  %v1050_v1 = vshll.u32 %v6552_v58, 16  ;;  %v1054_v61 = vshrl.u32 %v6552_v58, 16  ;;  %766 = vst [vmem:[#allocation2 + $0x88] sm:$0xf] %v555_v49 }
  0x88   : > { %v1306_v5 = vpack.c.b16 %v1277_v57, %v1276_v3  ;;  %v6563_v7 = vld [vmem:[#allocation2 + $0x5c] sm:$0x1]  ;;  %v1041_v15 = vshrl.u32 %v819_v63, 16  ;;  %v1044_v13 = vshll.u32 %v819_v63, 16  ;;  %v619_v35 = vrot.slane %v617_v10, 7  ;;  %v5832_v3 = vld [vmem:[%s7597_s1 + $0xc8] sm:$0xff] }
  0x89   : > { %v1052_v17 = vrot.slane %v1050_v1, 5  ;;  %v1056_v18 = vrot.slane %v1054_v61, 4  ;;  %v1060_v22 = vshll.u32 %v6563_v7, 16  ;;  %v763_v23 = vld [vmem:[#allocation2 + $0x84] sm:$0xf]  ;;  %v268_v47 = vsel %vm6130_vm2, 0, %v267_v38  ;;  %2316 = vmatpush.bf16.msrb.mxu3 %v5832_v3 }
  0x8a   : > { %1402 = vmatmul.bf16.gmra.mxu0 %v1306_v5  ;;  %v1043_v24 = vrot.slane %v1041_v15, 4  ;;  %v1046_v26 = vrot.slane %v1044_v13, 5  ;;  %v764_v28 = vsel %vm6173_vm8, %v546_v48, %v763_v23  ;;  %v767_v29 = vld [vmem:[#allocation2 + $0x8c] sm:$0x1]  ;;  %v622_v16 = vor.u32 %v620_v30, %v619_v35  ;;  %v6574_v42 = vld [vmem:[%s6152_s26 + $0x14] sm:$0xf] }
  0x8b   : > { %v1057_v31 = vor.u32 %v1056_v18, %v1052_v17  ;;  %v1062_v33 = vrot.slane %v1060_v22, 5  ;;  %765 = vst [vmem:[#allocation2 + $0x84] sm:$0xf] %v764_v28  ;;  %v768_v34 = vsel %vm6130_vm2, %v556_v60, %v767_v29  ;;  %v791_v36 = vld [vmem:[#allocation2 + $0xb4] sm:$0xf]  ;;  %v624_v40 = vrot.slane %v619_v35, 4 }
  0x8c   : > { %v1047_v20 = vor.u32 %v1046_v26, %v1043_v24  ;;  %769 = vst [vmem:[#allocation2 + $0x8c] sm:$0x1] %v768_v34  ;;  %v792_v41 = vsel %vm6173_vm8, %v614_v14, %v791_v36  ;;  %v323_v43 = vld [vmem:[#allocation2 + $0x2c] sm:$0x1]  ;;  %v795_v46 = vld [vmem:[#allocation2 + $0xbc] sm:$0x1]  ;;  %v623_v25 = vsel %vm6162_vm7, %v615_v12, %v622_v16 }
  0x8d   : > { %v1058_v39 = vrot.slane %v1057_v31, 4  ;;  %793 = vst [vmem:[#allocation2 + $0xb4] sm:$0xf] %v792_v41  ;;  %v796_v32 = vsel %vm6130_vm2, %v624_v40, %v795_v46  ;;  %v324_v50 = vsel %vm6135_vm4, 0, %v323_v43  ;;  %v5841_v48 = vld [vmem:[%s7597_s1 + $0x110] sm:$0xff]  ;;  %v405_v56 = vshrl.u32 %v220_v37, 16 }
  0x8e   : > { %v1048_v45 = vrot.slane %v1047_v20, 4  ;;  %v828_v59 = vld [vmem:[#allocation2 + $0x88] sm:$0xf]  ;;  %269 = vst [vmem:[#allocation2 + $0x24] sm:$0x1] %v268_v47  ;;  %v408_v57 = vshll.u32 %v220_v37, 16  ;;  %2996 = vmatpush.bf16.msrb.mxu0 %v5841_v48 }
  0x8f   : > { %v1063_v51 = vsel %vm6244_vm11, %v1058_v39, %v1062_v33  ;;  %v1146_v54 = vshll.u32 %v828_v59, 16  ;;  %v1150_v55 = vshrl.u32 %v828_v59, 16  ;;  %794 = vst [vmem:[#allocation2 + $0xb8] sm:$0xf] %v623_v25  ;;  %v413_v60 = vshrl.u32 %v6574_v42, 16  ;;  %v5807_v13 = vld [vmem:[%s7597_s1 + $0x80] sm:$0xff] }
  0x90   : > { %v1053_v52 = vsel %vm6244_vm11, %v1048_v45, %v1052_v17  ;;  %v1287_v53 = vunpack.c.l.b16 %v1063_v51  ;;  %797 = vst [vmem:[#allocation2 + $0xbc] sm:$0x1] %v796_v32  ;;  %v407_v15 = vrot.slane %v405_v56, 7  ;;  %v416_v22 = vshll.u32 %v6574_v42, 16  ;;  %v5831_v23 = vld [vmem:[%s7597_s1 + $0xc0] sm:$0xff]  ;;  %v5840_v10 = vld [vmem:[%s7597_s1 + $0x108] sm:$0xff]  ;;  %2004 = vmatpush.bf16.msrb.mxu2 %v5807_v13 }
  0x91   : > { %v1286_v11 = vunpack.c.l.b16 %v1053_v52  ;;  %v1148_v62 = vrot.slane %v1146_v54, 5  ;;  %v1152_v63 = vrot.slane %v1150_v55, 4  ;;  %325 = vst [vmem:[#allocation2 + $0x2c] sm:$0x1] %v324_v50  ;;  %v415_v18 = vrot.slane %v413_v60, 7  ;;  %v5791_v24 = vld [vmem:[%s7597_s1] sm:$0xff]  ;;  %2317 = vmatpush.bf16.msrb.mxu3 %v5831_v23 }
  0x92   : > { %v827_v12 = vld [vmem:[#allocation2 + $0x84] sm:$0xf]  ;;  %v410_v30 = vor.u32 %v408_v57, %v407_v15  ;;  %v411_v31 = vrot.slane %v407_v15, 4  ;;  %2997 = vmatpush.bf16.msrb.mxu0 %v5840_v10  ;;  %1624 = vmatpush.bf16.msrb.mxu1 %v5791_v24  ;;  %v5878_v32 = vld [vmem:[%s7597_s1 + $0x1b8] sm:$0xff]  ;;  %vm1755_vm13 = vcmask 1046532  }
  0x93   : > { %v1311_v1 = vpack.c.b16 %v1287_v53, %v1286_v11  ;;  %v864_v61 = vld [vmem:[#allocation2 + $0x8c] sm:$0x1]  ;;  %v1137_v49 = vshrl.u32 %v827_v12, 16  ;;  %v1140_v5 = vshll.u32 %v827_v12, 16  ;;  %v1153_v14 = vor.u32 %v1152_v63, %v1148_v62  ;;  %v5839_v33 = vld [vmem:[%s7597_s1 + $0x100] sm:$0xff]  ;;  %v5886_v10 = vld [vmem:[%s7597_s1 + $0x1f8] sm:$0xff] }
  0x94   : > { %v1156_v17 = vshll.u32 %v864_v61, 16  ;;  %v835_v29 = vld [vmem:[#allocation2 + $0xb4] sm:$0xf]  ;;  %v418_v16 = vor.u32 %v416_v22, %v415_v18  ;;  %v420_v40 = vrot.slane %v415_v18, 4  ;;  %3730 = vmatpush.bf16.msra.mxu2 %v5878_v32  ;;  %v1706_v12 = vld [vmem:[#allocation2] sm:$0xe]  ;;  %vm6636_vm14 = vmor %vm1754_vm12, %vm1755_vm13 }
  0x95   : > { %1427 = vmatmul.bf16.gmra.mxu1 %v1311_v1  ;;  %v1139_v26 = vrot.slane %v1137_v49, 4  ;;  %v1142_v28 = vrot.slane %v1140_v5, 5  ;;  %v1154_v34 = vrot.slane %v1153_v14, 4  ;;  %v1233_v20 = vshrl.u32 %v835_v29, 16  ;;  %v707_v37 = vld [vmem:[#allocation2 + $0x24] sm:$0xf]  ;;  %4411 = vmatpush.bf16.msra.mxu3 %v5886_v10 }
  0x96   : > { %v1158_v35 = vrot.slane %v1156_v17, 5  ;;  %v1236_v36 = vshll.u32 %v835_v29, 16  ;;  %v836_v39 = vld [vmem:[#allocation2 + $0xb8] sm:$0xf]  ;;  %v708_v41 = vsel %vm6173_vm8, %v410_v30, %v707_v37  ;;  %v419_v54 = vsel %vm6162_vm7, %v411_v31, %v418_v16  ;;  %2998 = vmatpush.bf16.msrb.mxu0 %v5839_v33  ;;  %v6023_v63 = vld [vmem:[#allocation2 + $0x4] sm:$0xf] }
  0x97   : > { %v1143_v38 = vor.u32 %v1142_v28, %v1139_v26  ;;  %v868_v43 = vld [vmem:[#allocation2 + $0xbc] sm:$0x1]  ;;  %v1235_v45 = vrot.slane %v1233_v20, 4  ;;  %v1242_v47 = vshll.u32 %v836_v39, 16  ;;  %v1246_v59 = vshrl.u32 %v836_v39, 16  ;;  %v5775_v17 = vld [vmem:[#allocation2] sm:$0xff] }
  0x98   : > { %v1159_v42 = vsel %vm6244_vm11, %v1154_v34, %v1158_v35  ;;  %v1238_v46 = vrot.slane %v1236_v36, 5  ;;  %v1252_v25 = vshll.u32 %v868_v43, 16  ;;  %709 = vst [vmem:[#allocation2 + $0x24] sm:$0xf] %v708_v41  ;;  %v711_v55 = vld [vmem:[#allocation2 + $0x2c] sm:$0x1] }
  0x99   : > { %v1144_v51 = vrot.slane %v1143_v38, 4  ;;  %v1295_v50 = vunpack.c.l.b16 %v1159_v42  ;;  %v1244_v53 = vrot.slane %v1242_v47, 5  ;;  %v1248_v48 = vrot.slane %v1246_v59, 4  ;;  %710 = vst [vmem:[#allocation2 + $0x28] sm:$0xf] %v419_v54  ;;  %v5854_v31 = vld [vmem:[%s7597_s1 + $0x178] sm:$0xff] }
  0x9a   : > { %v1239_v52 = vor.u32 %v1238_v46, %v1235_v45  ;;  %v712_v11 = vsel %vm6130_vm2, %v420_v40, %v711_v55  ;;  %v1254_v8 = vrot.slane %v1252_v25, 5  ;;  %v1759_v1 = vrot.slane %v6023_v63, 5  ;;  %v2431_v5 = vld [vmem:[#allocation2 + $0xc] sm:$0xf]  ;;  %v2432_v15 = vld [vmem:[#allocation2 + $0x10] sm:$0xf]  ;;  %3416 = vmatpush.bf16.msra.mxu1 %v5854_v31 }
  0x9b   : > { %v1149_v3 = vsel %vm6244_vm11, %v1144_v51, %v1148_v62  ;;  %713 = vst [vmem:[#allocation2 + $0x2c] sm:$0x1] %v712_v11  ;;  %v1249_v60 = vor.u32 %v1248_v48, %v1244_v53  ;;  %v5371_v18 = vrot.slane %v1706_v12, 9  ;;  %v6024_v22 = vld [vmem:[#allocation2 + $0x8] sm:$0x1]  ;;  %v5894_v33 = vld [vmem:[%s7597_s1 + $0x238] sm:$0xff] }
  0x9c   : > { %v1294_v56 = vunpack.c.l.b16 %v1149_v3  ;;  %v1240_v57 = vrot.slane %v1239_v52, 4  ;;  %v1762_v23 = vrot.slane %v6024_v22, 5  ;;  %v1761_v30 = vrot.slane %v1759_v1, 4  ;;  %4836 = vmatpush.bf16.msra.mxu0 %v5894_v33  ;;  %v2433_v48 = vld [vmem:[#allocation2 + $0x14] sm:$0x1] }
  0x9d   : > { %v1250_v62 = vrot.slane %v1249_v60, 4  ;;  %v2480_v20 = vshrl.u32 %v2431_v5, 16  ;;  %v2483_v36 = vshll.u32 %v2431_v5, 16  ;;  %v2489_v37 = vshll.u32 %v2432_v15, 16  ;;  %v1707_v5 = vld [vmem:[#allocation2 + $0xc] sm:$0xe] }
  0x9e   : > { %v1315_v61 = vpack.c.b16 %v1295_v50, %v1294_v56  ;;  %v1245_v49 = vsel %vm6244_vm11, %v1240_v57, %v1244_v53  ;;  %v1760_v45 = vsel %vm6636_vm14, %v5371_v18, %v1759_v1  ;;  %v2493_v46 = vshrl.u32 %v2432_v15, 16  ;;  %v2434_v18 = vld [vmem:[#allocation2 + $0x18] sm:$0xf] }
  0x9f   : > { %v1302_v13 = vunpack.c.l.b16 %v1245_v49  ;;  %v811_v14 = vld [vmem:[#allocation2 + $0x24] sm:$0xf]  ;;  %v1255_v24 = vsel %vm6244_vm11, %v1250_v62, %v1254_v8  ;;  %v1763_v25 = vsel %vm6636_vm14, %v1761_v30, %v1762_v23  ;;  %v2482_v32 = vrot.slane %v2480_v20, 4  ;;  %v1708_v10 = vld [vmem:[#allocation2 + $0x18] sm:$0xe] }
  0xa0   : > { %1447 = vmatmul.bf16.gmra.mxu2 %v1315_v61  ;;  %v945_v26 = vshrl.u32 %v811_v14, 16  ;;  %v948_v28 = vshll.u32 %v811_v14, 16  ;;  %v1303_v34 = vunpack.c.l.b16 %v1255_v24  ;;  %v6646_v35 = vld [vmem:[#allocation2 + $0x28] sm:$0xf]  ;;  %v2485_v54 = vrot.slane %v2483_v36, 5 }
  0xa1   : > { %v954_v40 = vshll.u32 %v6646_v35, 16  ;;  %v958_v41 = vshrl.u32 %v6646_v35, 16  ;;  %v1885_v55 = vunpack.c.l.b16 %v1760_v45  ;;  %v1886_v3 = vunpack.c.l.b16 %v1763_v25 }
  0xa2   : > { %v6648_v38 = vld [vmem:[#allocation2 + $0x2c] sm:$0x1]  ;;  %v947_v39 = vrot.slane %v945_v26, 4  ;;  %v950_v16 = vrot.slane %v948_v28, 5  ;;  %v1319_v42 = vpack.c.b16 %v1303_v34, %v1302_v13  ;;  %v2491_v11 = vrot.slane %v2489_v37, 5 }
  0xa3   : > { %v964_v43 = vshll.u32 %v6648_v38, 16  ;;  %v956_v51 = vrot.slane %v954_v40, 5  ;;  %v960_v59 = vrot.slane %v958_v41, 4  ;;  %v2495_v56 = vrot.slane %v2493_v46, 4  ;;  %v5776_v28 = vld [vmem:[#allocation2 + $0xc] sm:$0xff] }
  0xa4   : > { %v951_v47 = vor.u32 %v950_v16, %v947_v39  ;;  %1467 = vmatmul.bf16.gmra.mxu3 %v1319_v42  ;;  %v2486_v63 = vor.u32 %v2485_v54, %v2482_v32  ;;  %v2499_v1 = vshll.u32 %v2433_v48, 16  ;;  %v1917_v49 = vpack.c.b16 %v1886_v3, %v1885_v55  ;;  %v5815_v34 = vld [vmem:[#allocation2 + $0xc] sm:$0xff]  ;;  %v2436_v55 = vld [vmem:[#allocation2 + $0x20] sm:$0x1] }
  0xa5   : > { %1625 = vmatmul.bf16.vlgmr.msrb.gmra.mxu1 %v5775_v17  ;;  %v961_v52 = vor.u32 %v960_v59, %v956_v51  ;;  %v966_v53 = vrot.slane %v964_v43, 5  ;;  %v2496_v62 = vor.u32 %v2495_v56, %v2491_v11  ;;  %v1766_v15 = vrot.slane %v6423_v0, 5  ;;  %v2435_v0 = vld [vmem:[#allocation2 + $0x1c] sm:$0xf]  ;;  %v5877_v46 = vld [vmem:[%s7597_s1 + $0x1b0] sm:$0xff] }
  0xa6   : > { %v952_v50 = vrot.slane %v951_v47, 4  ;;  %v2487_v14 = vrot.slane %v2486_v63, 4  ;;  %v2501_v17 = vrot.slane %v2499_v1, 5  ;;  %v5372_v23 = vrot.slane %v1707_v5, 9  ;;  %3731 = vmatpush.bf16.msra.mxu2 %v5877_v46  ;;  %v5853_v63 = vld [vmem:[%s7597_s1 + $0x170] sm:$0xff]  ;;  %v5777_v5 = vld [vmem:[#allocation2 + $0x18] sm:$0xff] }
  0xa7   : > { %v962_v60 = vrot.slane %v961_v52, 4  ;;  %v2497_v22 = vrot.slane %v2496_v62, 4  ;;  %v1773_v24 = vrot.slane %v6526_v9, 5  ;;  %v1776_v26 = vrot.slane %v6529_v19, 5  ;;  %v5893_v1 = vld [vmem:[%s7597_s1 + $0x230] sm:$0xff]  ;;  %3417 = vmatpush.bf16.msra.mxu1 %v5853_v63  ;;  %v5817_v46 = vld [vmem:[#allocation2 + $0x24] sm:$0xff] }
  0xa8   : > { %v957_v57 = vsel %vm6244_vm11, %v952_v50, %v956_v51  ;;  %v1768_v30 = vrot.slane %v1766_v15, 4  ;;  %v1769_v31 = vrot.slane %v6425_v6, 5  ;;  %v5373_v33 = vrot.slane %v1708_v10, 9  ;;  %4837 = vmatpush.bf16.msra.mxu0 %v5893_v1 }
  0xa9   : > { %v1278_v8 = vunpack.c.l.b16 %v957_v57  ;;  %v967_v12 = vsel %vm6244_vm11, %v962_v60, %v966_v53  ;;  %v1775_v20 = vrot.slane %v1773_v24, 4  ;;  %v2492_v36 = vsel %vm6244_vm11, %v2487_v14, %v2491_v11  ;;  %v2437_v60 = vld [vmem:[#allocation2 + $0x24] sm:$0xf] }
  0xaa   : > { %v1279_v61 = vunpack.c.l.b16 %v967_v12  ;;  %v2504_v37 = vshrl.u32 %v2434_v18, 16  ;;  %v2507_v39 = vshll.u32 %v2434_v18, 16  ;;  %v1774_v16 = vsel %vm6636_vm14, %v5373_v33, %v1773_v24  ;;  %v5885_v12 = vld [vmem:[%s7597_s1 + $0x1f0] sm:$0xff]  ;;  %v2439_v33 = vld [vmem:[#allocation2 + $0x2c] sm:$0x1] }
  0xab   : > { %v2502_v9 = vsel %vm6244_vm11, %v2497_v22, %v2501_v17  ;;  %v1767_v19 = vsel %vm6636_vm14, %v5372_v23, %v1766_v15  ;;  %v1777_v6 = vsel %vm6636_vm14, %v1775_v20, %v1776_v26  ;;  %v1889_v40 = vunpack.c.l.b16 %v1774_v16  ;;  %v5816_v15 = vld [vmem:[#allocation2 + $0x18] sm:$0xff]  ;;  %4412 = vmatpush.bf16.msra.mxu3 %v5885_v12 }
  0xac   : > { %v1307_v13 = vpack.c.b16 %v1279_v61, %v1278_v8  ;;  %v1770_v41 = vsel %vm6636_vm14, %v1768_v30, %v1769_v31  ;;  %v2513_v42 = vshll.u32 %v2435_v0, 16  ;;  %v2517_v43 = vshrl.u32 %v2435_v0, 16  ;;  %v2438_v8 = vld [vmem:[#allocation2 + $0x28] sm:$0xf] }
  0xad   : > { %v1890_v45 = vunpack.c.l.b16 %v1777_v6  ;;  %v2879_v51 = vunpack.c.l.b16 %v2492_v36  ;;  %v2880_v59 = vunpack.c.l.b16 %v2502_v9  ;;  %v1887_v25 = vunpack.c.l.b16 %v1767_v19 }
  0xae   : > { %1407 = vmatmul.bf16.gmra.mxu0 %v1307_v13  ;;  %v1888_v32 = vunpack.c.l.b16 %v1770_v41  ;;  %v2506_v50 = vrot.slane %v2504_v37, 4  ;;  %v2509_v52 = vrot.slane %v2507_v39, 5  ;;  %v2515_v53 = vrot.slane %v2513_v42, 5  ;;  %v1709_v39 = vld [vmem:[#allocation2 + $0x24] sm:$0xe] }
  0xaf   : > { %v1919_v47 = vpack.c.b16 %v1890_v45, %v1889_v40  ;;  %v2519_v54 = vrot.slane %v2517_v43, 4  ;;  %v2911_v3 = vpack.c.b16 %v2880_v59, %v2879_v51  ;;  %v2523_v57 = vshll.u32 %v2436_v55, 16  ;;  %v2440_v42 = vld [vmem:[#allocation2 + $0x30] sm:$0xf]  ;;  %v5778_v43 = vld [vmem:[#allocation2 + $0x24] sm:$0xff] }
  0xb0   : > { %2005 = vmatmul.bf16.vlgmr.msrb.gmra.mxu2 %v1917_v49  ;;  %v1918_v48 = vpack.c.b16 %v1888_v32, %v1887_v25  ;;  %v2510_v11 = vor.u32 %v2509_v52, %v2506_v50  ;;  %v2528_v13 = vshrl.u32 %v2437_v60, 16  ;;  %v2531_v14 = vshll.u32 %v2437_v60, 16  ;;  %v2441_v45 = vld [vmem:[#allocation2 + $0x34] sm:$0xf]  ;;  %v5876_v52 = vld [vmem:[%s7597_s1 + $0x1a8] sm:$0xff] }
  0xb1   : > { %v2520_v56 = vor.u32 %v2519_v54, %v2515_v53  ;;  %v2525_v62 = vrot.slane %v2523_v57, 5  ;;  %v2537_v17 = vshll.u32 %v2438_v8, 16  ;;  %v2541_v18 = vshrl.u32 %v2438_v8, 16  ;;  %3732 = vmatpush.bf16.msra.mxu2 %v5876_v52  ;;  %v2442_v8 = vld [vmem:[#allocation2 + $0x38] sm:$0x1] }
  0xb2   : > { %v2511_v61 = vrot.slane %v2510_v11, 4  ;;  %v2530_v10 = vrot.slane %v2528_v13, 4  ;;  %v2533_v24 = vrot.slane %v2531_v14, 5  ;;  %v2547_v20 = vshll.u32 %v2439_v33, 16 }
  0xb3   : > { %v2521_v49 = vrot.slane %v2520_v56, 4  ;;  %v2539_v26 = vrot.slane %v2537_v17, 5  ;;  %v1780_v37 = vrot.slane %v6646_v35, 5  ;;  %v5374_v6 = vrot.slane %v1709_v39, 9 }
  0xb4   : > { %2318 = vmatmul.bf16.vlgmr.msrb.gmra.mxu3 %v5815_v34  ;;  %v2516_v22 = vsel %vm6244_vm11, %v2511_v61, %v2515_v53  ;;  %v2534_v34 = vor.u32 %v2533_v24, %v2530_v10  ;;  %v2549_v19 = vrot.slane %v2547_v20, 5  ;;  %v1783_v41 = vrot.slane %v6648_v38, 5  ;;  %v5779_v10 = vld [vmem:[#allocation2 + $0x30] sm:$0xff] }
  0xb5   : > { %1630 = vmatmul.bf16.gmra.mxu1 %v5776_v28  ;;  %v2526_v23 = vsel %vm6244_vm11, %v2521_v49, %v2525_v62  ;;  %v2543_v28 = vrot.slane %v2541_v18, 4  ;;  %v2881_v30 = vunpack.c.l.b16 %v2516_v22  ;;  %v1782_v40 = vrot.slane %v1780_v37, 4  ;;  %v6025_v62 = vld [vmem:[#allocation2 + $0x34] sm:$0xf]  ;;  %v5884_v18 = vld [vmem:[%s7597_s1 + $0x1e8] sm:$0xff] }
  0xb6   : > { %v2882_v31 = vunpack.c.l.b16 %v2526_v23  ;;  %v2535_v16 = vrot.slane %v2534_v34, 4  ;;  %v2552_v59 = vshrl.u32 %v2440_v42, 16  ;;  %v2555_v25 = vshll.u32 %v2440_v42, 16  ;;  %v5852_v22 = vld [vmem:[%s7597_s1 + $0x168] sm:$0xff]  ;;  %v5818_v34 = vld [vmem:[#allocation2 + $0x30] sm:$0xff]  ;;  %4413 = vmatpush.bf16.msra.mxu3 %v5884_v18  ;;  %v6727_v42 = vpop.f32.mrf.mxu2 }
  0xb7   : > { %v2544_v0 = vor.u32 %v2543_v28, %v2539_v26  ;;  %v1781_v32 = vsel %vm6636_vm14, %v5374_v6, %v1780_v37  ;;  %v2561_v50 = vshll.u32 %v2441_v45, 16  ;;  %v2565_v38 = vshrl.u32 %v2441_v45, 16  ;;  %v5892_v23 = vld [vmem:[%s7597_s1 + $0x228] sm:$0xff]  ;;  %v6026_v28 = vld [vmem:[#allocation2 + $0x38] sm:$0x1]  ;;  %3418 = vmatpush.bf16.msra.mxu1 %v5852_v22 }
  0xb8   : > { %v2912_v36 = vpack.c.b16 %v2882_v31, %v2881_v30  ;;  %v2540_v51 = vsel %vm6244_vm11, %v2535_v16, %v2539_v26  ;;  %v1891_v55 = vunpack.c.l.b16 %v1781_v32  ;;  %v2554_v11 = vrot.slane %v2552_v59, 4  ;;  %v2443_v31 = vld [vmem:[#allocation2 + $0x3c] sm:$0xf]  ;;  %4838 = vmatpush.bf16.msra.mxu0 %v5892_v23 }
  0xb9   : > { %v2545_v9 = vrot.slane %v2544_v0, 4  ;;  %v2883_v53 = vunpack.c.l.b16 %v2540_v51  ;;  %v2557_v56 = vrot.slane %v2555_v25, 5  ;;  %v2563_v57 = vrot.slane %v2561_v50, 5  ;;  %v2444_v0 = vld [vmem:[#allocation2 + $0x40] sm:$0xf] }
  0xba   : > { %v2567_v60 = vrot.slane %v2565_v38, 4  ;;  %v2571_v49 = vshll.u32 %v2442_v8, 16  ;;  %v1790_v30 = vrot.slane %v6026_v28, 5  ;;  %v2576_v37 = vshrl.u32 %v2443_v31, 16  ;;  %v2447_v8 = vld [vmem:[#allocation2 + $0x4c] sm:$0xf] }
  0xbb   : > { %v2550_v35 = vsel %vm6244_vm11, %v2545_v9, %v2549_v19  ;;  %v2558_v1 = vor.u32 %v2557_v56, %v2554_v11  ;;  %v2579_v39 = vshll.u32 %v2443_v31, 16  ;;  %v2585_v19 = vshll.u32 %v2444_v0, 16  ;;  %v1711_v11 = vld [vmem:[#allocation2 + $0x3c] sm:$0xe] }
  0xbc   : > { %v2884_v54 = vunpack.c.l.b16 %v2550_v35  ;;  %v2568_v61 = vor.u32 %v2567_v60, %v2563_v57  ;;  %v2573_v17 = vrot.slane %v2571_v49, 5  ;;  %v2589_v6 = vshrl.u32 %v2444_v0, 16  ;;  %v2445_v35 = vld [vmem:[#allocation2 + $0x44] sm:$0x1]  ;;  %v2446_v60 = vld [vmem:[#allocation2 + $0x48] sm:$0xf] }
  0xbd   : > { %v2559_v13 = vrot.slane %v2558_v1, 4  ;;  %v2581_v51 = vrot.slane %v2579_v39, 5  ;;  %v2587_v59 = vrot.slane %v2585_v19, 5  ;;  %v2595_v52 = vshll.u32 %v2445_v35, 16  ;;  %v2448_v19 = vld [vmem:[#allocation2 + $0x50] sm:$0x1] }
  0xbe   : > { %2999 = vmatmul.bf16.vlgmr.msrb.gmra.mxu0 %v2911_v3  ;;  %v2913_v12 = vpack.c.b16 %v2884_v54, %v2883_v53  ;;  %v2569_v14 = vrot.slane %v2568_v61, 4  ;;  %v2591_v25 = vrot.slane %v2589_v6, 4  ;;  %v6735_v1 = vpop.f32.mrf.mxu2  ;;  %v5780_v61 = vld [vmem:[#allocation2 + $0x3c] sm:$0xff]  ;;  %v5376_v49 = vrot.slane %v1711_v11, 9  ;;  %v1712_v35 = vld [vmem:[#allocation2 + $0x48] sm:$0xe] }
  0xbf   : > { %v2564_v20 = vsel %vm6244_vm11, %v2559_v13, %v2563_v57  ;;  %v6731_v54 = vpop.f32.mrf.mxu3  ;;  %v2597_v57 = vrot.slane %v2595_v52, 5  ;;  %v5819_v13 = vld [vmem:[#allocation2 + $0x3c] sm:$0xff]  ;;  %v2609_v18 = vshll.u32 %v2447_v8, 16  ;;  %v2613_v22 = vshrl.u32 %v2447_v8, 16  ;;  %v6030_v11 = vld [vmem:[#allocation2 + $0x50] sm:$0x1] }
  0xc0   : > { %2010 = vmatmul.bf16.gmra.mxu2 %v1918_v48  ;;  %v6706_v48 = vpop.f32.mrf.mxu1  ;;  %v2592_v53 = vor.u32 %v2591_v25, %v2587_v59  ;;  %v5891_v8 = vld [vmem:[%s7597_s1 + $0x220] sm:$0xff] }
  0xc1   : > { %4839 = vmatpush.bf16.msra.mxu0 %v5891_v8  ;;  %v5821_v8 = vld [vmem:[#allocation2 + $0x54] sm:$0xff] }
  0xc4   : > { %2323 = vmatmul.bf16.gmra.mxu3 %v5816_v15  ;;  %v1710_v15 = vld [vmem:[#allocation2 + $0x30] sm:$0xe] }
  0xc5   : > { %1635 = vmatmul.bf16.gmra.mxu1 %v5777_v5  ;;  %v1787_v5 = vrot.slane %v6025_v62, 5  ;;  %v5375_v24 = vrot.slane %v1710_v15, 9 }
  0xc7   : > { %v1789_v26 = vrot.slane %v1787_v5, 4  ;;  %v1788_v16 = vsel %vm6636_vm14, %v5375_v24, %v1787_v5  ;;  %v6028_v5 = vld [vmem:[#allocation2 + $0x44] sm:$0x1]  ;;  %v6750_v31 = vpop.f32.mrf.mxu3 }
  0xc8   : > { %v6717_v33 = vpop.f32.mrf.mxu1  ;;  %v1797_v15 = vrot.slane %v6028_v5, 5 }
  0xc9   : > { %v1791_v9 = vsel %vm6636_vm14, %v1789_v26, %v1790_v30  ;;  %v5875_v30 = vld [vmem:[%s7597_s1 + $0x1a0] sm:$0xff] }
  0xca   : > { %v1894_v45 = vunpack.c.l.b16 %v1791_v9  ;;  %3733 = vmatpush.bf16.msra.mxu2 %v5875_v30 }
  0xce   : > { %3004 = vmatmul.bf16.gmra.mxu0 %v2912_v36  ;;  %v2574_v36 = vsel %vm6244_vm11, %v2569_v14, %v2573_v17  ;;  %v2600_v14 = vshrl.u32 %v2446_v60, 16  ;;  %v2603_v17 = vshll.u32 %v2446_v60, 16  ;;  %v5851_v60 = vld [vmem:[%s7597_s1 + $0x160] sm:$0xff] }
  0xcf   : > { %3419 = vmatpush.bf16.msra.mxu1 %v5851_v60  ;;  %v2453_v60 = vld [vmem:[#allocation2 + $0x64] sm:$0xf] }
  0xd0   : > { %2015 = vmatmul.bf16.gmra.mxu2 %v1919_v47  ;;  %v1784_v47 = vsel %vm6636_vm14, %v1782_v40, %v1783_v41  ;;  %v2885_v40 = vunpack.c.l.b16 %v2564_v20  ;;  %v2886_v41 = vunpack.c.l.b16 %v2574_v36  ;;  %v6729_v32 = vpop.f32.mrf.mxu1  ;;  %v2605_v0 = vrot.slane %v2603_v17, 5 }
  0xd1   : > { %v1892_v3 = vunpack.c.l.b16 %v1784_v47  ;;  %v2611_v20 = vrot.slane %v2609_v18, 5  ;;  %v2615_v36 = vrot.slane %v2613_v22, 4 }
  0xd2   : > { %v2914_v47 = vpack.c.b16 %v2886_v41, %v2885_v40 }
  0xd3   : > { %v1920_v63 = vpack.c.b16 %v1892_v3, %v1891_v55  ;;  %v6027_v55 = vld [vmem:[#allocation2 + $0x40] sm:$0xf]  ;;  %v2616_v41 = vor.u32 %v2615_v36, %v2611_v20 }
  0xd4   : > { %2328 = vmatmul.bf16.gmra.mxu3 %v5817_v46  ;;  %v2578_v46 = vrot.slane %v2576_v37, 4  ;;  %v1794_v3 = vrot.slane %v6027_v55, 5  ;;  %v2449_v55 = vld [vmem:[#allocation2 + $0x54] sm:$0xf] }
  0xd5   : > { %1640 = vmatmul.bf16.gmra.mxu1 %v5778_v43  ;;  %v1893_v43 = vunpack.c.l.b16 %v1788_v16  ;;  %v2627_v18 = vshll.u32 %v2449_v55, 16 }
  0xd6   : > { %v2582_v38 = vor.u32 %v2581_v51, %v2578_v46  ;;  %v1796_v62 = vrot.slane %v1794_v3, 4  ;;  %v1795_v26 = vsel %vm6636_vm14, %v5376_v49, %v1794_v3  ;;  %v2450_v49 = vld [vmem:[#allocation2 + $0x58] sm:$0xf] }
  0xd7   : > { %v1921_v50 = vpack.c.b16 %v1894_v45, %v1893_v43  ;;  %v1895_v16 = vunpack.c.l.b16 %v1795_v26  ;;  %v2619_v43 = vshll.u32 %v2448_v19, 16  ;;  %v6754_v45 = vpop.f32.mrf.mxu2  ;;  %v2633_v22 = vshll.u32 %v2450_v49, 16 }
  0xd8   : > { %v2583_v56 = vrot.slane %v2582_v38, 4  ;;  %v6737_v23 = vpop.f32.mrf.mxu1  ;;  %v1798_v28 = vsel %vm6636_vm14, %v1796_v62, %v1797_v15  ;;  %v2617_v38 = vrot.slane %v2616_v41, 4  ;;  %v5820_v62 = vld [vmem:[#allocation2 + $0x48] sm:$0xff]  ;;  %v2629_v36 = vrot.slane %v2627_v18, 5 }
  0xd9   : > { %v1896_v9 = vunpack.c.l.b16 %v1798_v28  ;;  %v2621_v52 = vrot.slane %v2619_v43, 5 }
  0xdb   : > { %v1922_v51 = vpack.c.b16 %v1896_v9, %v1895_v16  ;;  %v2622_v15 = vsel %vm6244_vm11, %v2617_v38, %v2621_v52  ;;  %v2451_v9 = vld [vmem:[#allocation2 + $0x5c] sm:$0x1] }
  0xdc   : > { %v2890_v30 = vunpack.c.l.b16 %v2622_v15  ;;  %v2657_v15 = vshll.u32 %v2453_v60, 16 }
  0xde   : > { %3009 = vmatmul.bf16.gmra.mxu0 %v2913_v12  ;;  %v6733_v12 = vpop.f32.mrf.mxu0 }
  0xdf   : > { %v6779_v26 = vpop.f32.mrf.mxu2 }
  0xe0   : > { %2020 = vmatmul.bf16.gmra.mxu2 %v1920_v63  ;;  %v2593_v63 = vrot.slane %v2592_v53, 4  ;;  %v5377_v53 = vrot.slane %v1712_v35, 9  ;;  %v1808_v35 = vrot.slane %v6552_v58, 5 }
  0xe2   : > { %v2598_v24 = vsel %vm6244_vm11, %v2593_v63, %v2597_v57  ;;  %v5883_v57 = vld [vmem:[%s7597_s1 + $0x1e0] sm:$0xff]  ;;  %v6767_v63 = vpop.f32.mrf.mxu3 }
  0xe3   : > { %v2888_v39 = vunpack.c.l.b16 %v2598_v24  ;;  %4414 = vmatpush.bf16.msra.mxu3 %v5883_v57  ;;  %v1811_v57 = vrot.slane %v6563_v7, 5 }
  0xe4   : > { %2333 = vmatmul.bf16.gmra.mxu3 %v5818_v34  ;;  %v2602_v34 = vrot.slane %v2600_v14, 4  ;;  %v2624_v14 = vshrl.u32 %v2449_v55, 16  ;;  %v2452_v55 = vld [vmem:[#allocation2 + $0x60] sm:$0xf] }
  0xe5   : > { %1645 = vmatmul.bf16.gmra.mxu1 %v5779_v10  ;;  %v2588_v10 = vsel %vm6244_vm11, %v2583_v56, %v2587_v59  ;;  %v6029_v59 = vld [vmem:[#allocation2 + $0x4c] sm:$0xf]  ;;  %v1804_v56 = vrot.slane %v6030_v11, 5  ;;  %v2648_v58 = vshrl.u32 %v2452_v55, 16 }
  0xe6   : > { %v2887_v37 = vunpack.c.l.b16 %v2588_v10  ;;  %v6752_v6 = vpop.f32.mrf.mxu0  ;;  %v2606_v40 = vor.u32 %v2605_v0, %v2602_v34  ;;  %v1801_v25 = vrot.slane %v6029_v59, 5  ;;  %v2637_v10 = vshrl.u32 %v2450_v49, 16  ;;  %v1713_v59 = vld [vmem:[#allocation2 + $0x54] sm:$0xe] }
  0xe7   : > { %v5378_v11 = vrot.slane %v1713_v59, 9  ;;  %v2651_v49 = vshll.u32 %v2452_v55, 16 }
  0xe8   : > { %v2915_v46 = vpack.c.b16 %v2888_v39, %v2887_v37  ;;  %v1803_v3 = vrot.slane %v1801_v25, 4  ;;  %v2635_v37 = vrot.slane %v2633_v22, 5  ;;  %v2639_v39 = vrot.slane %v2637_v10, 4 }
  0xe9   : > { %v1809_v7 = vsel %vm6636_vm14, %v5378_v11, %v1808_v35  ;;  %v2650_v10 = vrot.slane %v2648_v58, 4 }
  0xea   : > { %v1805_v17 = vsel %vm6636_vm14, %v1803_v3, %v1804_v56  ;;  %v5782_v3 = vld [vmem:[#allocation2 + $0x54] sm:$0xff]  ;;  %v1810_v56 = vrot.slane %v1808_v35, 4  ;;  %v6031_v35 = vld [vmem:[#allocation2 + $0x64] sm:$0xf] }
  0xeb   : > { %v1898_v0 = vunpack.c.l.b16 %v1805_v17  ;;  %v1815_v59 = vrot.slane %v6031_v35, 5 }
  0xec   : > { %v1812_v17 = vsel %vm6636_vm14, %v1810_v56, %v1811_v57  ;;  %v2455_v56 = vld [vmem:[#allocation2 + $0x6c] sm:$0xf]  ;;  %v5882_v57 = vld [vmem:[%s7597_s1 + $0x1d8] sm:$0xff] }
  0xed   : > { %4415 = vmatpush.bf16.msra.mxu3 %v5882_v57 }
  0xee   : > { %3014 = vmatmul.bf16.gmra.mxu0 %v2914_v47  ;;  %v6756_v47 = vpop.f32.mrf.mxu1  ;;  %v6777_v24 = vpop.f32.mrf.mxu0 }
  0xf0   : > { %2025 = vmatmul.bf16.gmra.mxu2 %v1921_v50  ;;  %v2607_v50 = vrot.slane %v2606_v40, 4  ;;  %v6783_v40 = vpop.f32.mrf.mxu3 }
  0xf2   : > { %v2612_v5 = vsel %vm6244_vm11, %v2607_v50, %v2611_v20  ;;  %v2626_v20 = vrot.slane %v2624_v14, 4 }
  0xf3   : > { %v2889_v28 = vunpack.c.l.b16 %v2612_v5 }
  0xf4   : > { %2338 = vmatmul.bf16.gmra.mxu3 %v5819_v13  ;;  %v1802_v13 = vsel %vm6636_vm14, %v5377_v53, %v1801_v25  ;;  %v2630_v43 = vor.u32 %v2629_v36, %v2626_v20 }
  0xf5   : > { %1650 = vmatmul.bf16.gmra.mxu1 %v5780_v61  ;;  %v5781_v61 = vld [vmem:[#allocation2 + $0x48] sm:$0xff]  ;;  %v1897_v34 = vunpack.c.l.b16 %v1802_v13  ;;  %v2916_v19 = vpack.c.b16 %v2890_v30, %v2889_v28  ;;  %v2661_v13 = vshrl.u32 %v2453_v60, 16  ;;  %v2653_v28 = vrot.slane %v2651_v49, 5  ;;  %v5850_v60 = vld [vmem:[%s7597_s1 + $0x158] sm:$0xff] }
  0xf6   : > { %v6781_v16 = vpop.f32.mrf.mxu1  ;;  %v6786_v25 = vpop.f32.mrf.mxu0  ;;  %v2631_v38 = vrot.slane %v2630_v43, 4  ;;  %v1899_v30 = vunpack.c.l.b16 %v1809_v7  ;;  %v1817_v49 = vrot.slane %v1815_v59, 4  ;;  %3420 = vmatpush.bf16.msra.mxu1 %v5850_v60 }
  0xf7   : > { %v1923_v41 = vpack.c.b16 %v1898_v0, %v1897_v34  ;;  %v1900_v34 = vunpack.c.l.b16 %v1812_v17  ;;  %v2659_v0 = vrot.slane %v2657_v15, 5  ;;  %v2663_v20 = vrot.slane %v2661_v13, 4  ;;  %v2456_v15 = vld [vmem:[#allocation2 + $0x70] sm:$0xf]  ;;  %v5822_v13 = vld [vmem:[#allocation2 + $0x60] sm:$0xff] }
  0xf9   : > { %v1924_v43 = vpack.c.b16 %v1900_v34, %v1899_v30  ;;  %v2681_v34 = vshll.u32 %v2456_v15, 16 }
  0xfd   : > { %v6788_v50 = vpop.f32.mrf.mxu2 }
  0xfe   : > { %3019 = vmatmul.bf16.gmra.mxu0 %v2915_v46  ;;  %v2640_v46 = vor.u32 %v2639_v39, %v2635_v37  ;;  %v2454_v39 = vld [vmem:[#allocation2 + $0x68] sm:$0x1] }
 0x100   : > { %2030 = vmatmul.bf16.gmra.mxu2 %v1922_v51  ;;  %v2643_v51 = vshll.u32 %v2451_v9, 16  ;;  %v2641_v52 = vrot.slane %v2640_v46, 4  ;;  %v2664_v46 = vor.u32 %v2663_v20, %v2659_v0  ;;  %v2685_v20 = vshrl.u32 %v2456_v15, 16 }
 0x102   : > { %v2645_v53 = vrot.slane %v2643_v51, 5  ;;  %v2667_v51 = vshll.u32 %v2454_v39, 16 }
 0x103   : > { %v6797_v14 = vpop.f32.mrf.mxu3 }
 0x104   : > { %2343 = vmatmul.bf16.gmra.mxu3 %v5820_v62  ;;  %v2636_v62 = vsel %vm6244_vm11, %v2631_v38, %v2635_v37  ;;  %v2646_v5 = vsel %vm6244_vm11, %v2641_v52, %v2645_v53  ;;  %v5874_v38 = vld [vmem:[%s7597_s1 + $0x198] sm:$0xff]  ;;  %v1714_v52 = vld [vmem:[#allocation2 + $0x60] sm:$0xe]  ;;  %v2669_v11 = vrot.slane %v2667_v51, 5 }
 0x105   : > { %1655 = vmatmul.bf16.gmra.mxu1 %v5781_v61  ;;  %v2891_v18 = vunpack.c.l.b16 %v2636_v62  ;;  %v2892_v22 = vunpack.c.l.b16 %v2646_v5  ;;  %v6805_v37 = vpop.f32.mrf.mxu2  ;;  %3734 = vmatpush.bf16.msra.mxu2 %v5874_v38  ;;  %v5379_v58 = vrot.slane %v1714_v52, 9  ;;  %v6032_v62 = vld [vmem:[#allocation2 + $0x68] sm:$0x1]  ;;  %v2683_v52 = vrot.slane %v2681_v34, 5 }
 0x106   : > { %v1818_v5 = vrot.slane %v6032_v62, 5 }
 0x107   : > { %v6803_v36 = vpop.f32.mrf.mxu0  ;;  %v1816_v39 = vsel %vm6636_vm14, %v5379_v58, %v1815_v59  ;;  %v2457_v59 = vld [vmem:[#allocation2 + $0x74] sm:$0x1] }
 0x108   : > { %v1901_v35 = vunpack.c.l.b16 %v1816_v39 }
 0x10b   : > { %v6812_v53 = vpop.f32.mrf.mxu3 }
 0x10c   : > { %7613 = vst [vmem:[#allocation3_spill] sm:$0xff] %v6812_v53 }
 0x10e   : > { %3024 = vmatmul.bf16.gmra.mxu0 %v2916_v19  ;;  %v2654_v19 = vor.u32 %v2653_v28, %v2650_v10  ;;  %v2675_v10 = vshll.u32 %v2455_v56, 16 }
 0x10f   : > { %v6820_v17 = vpop.f32.mrf.mxu0 }
 0x110   : > { %2035 = vmatmul.bf16.gmra.mxu2 %v1923_v41  ;;  %v2917_v41 = vpack.c.b16 %v2892_v22, %v2891_v18  ;;  %v2655_v55 = vrot.slane %v2654_v19, 4  ;;  %v2672_v22 = vshrl.u32 %v2455_v56, 16  ;;  %v1819_v19 = vsel %vm6636_vm14, %v1817_v49, %v1818_v5  ;;  %v6033_v5 = vld [vmem:[#allocation2 + $0x70] sm:$0xf] }
 0x111   : > { %v2677_v51 = vrot.slane %v2675_v10, 5  ;;  %v1902_v38 = vunpack.c.l.b16 %v1819_v19  ;;  %v2691_v49 = vshll.u32 %v2457_v59, 16  ;;  %v1822_v15 = vrot.slane %v6033_v5, 5 }
 0x112   : > { %v6791_v61 = vpop.f32.mrf.mxu1  ;;  %v2660_v28 = vsel %vm6244_vm11, %v2655_v55, %v2659_v0  ;;  %v2674_v0 = vrot.slane %v2672_v22, 4  ;;  %v2687_v55 = vrot.slane %v2685_v20, 4  ;;  %v5784_v20 = vld [vmem:[#allocation2 + $0x6c] sm:$0xff] }
 0x113   : > { %v1824_v19 = vrot.slane %v1822_v15, 4 }
 0x114   : > { %2348 = vmatmul.bf16.gmra.mxu3 %v5821_v8  ;;  %v5783_v8 = vld [vmem:[#allocation2 + $0x60] sm:$0xff]  ;;  %v2678_v57 = vor.u32 %v2677_v51, %v2674_v0  ;;  %v2688_v58 = vor.u32 %v2687_v55, %v2683_v52  ;;  %v5823_v51 = vld [vmem:[#allocation2 + $0x6c] sm:$0xff] }
 0x115   : > { %1660 = vmatmul.bf16.gmra.mxu1 %v5782_v3  ;;  %v2665_v3 = vrot.slane %v2664_v46, 4 }
 0x116   : > { %v2679_v22 = vrot.slane %v2678_v57, 4  ;;  %v2689_v10 = vrot.slane %v2688_v58, 4 }
 0x117   : > { %v2670_v30 = vsel %vm6244_vm11, %v2665_v3, %v2669_v11 }
 0x118   : > { %v2894_v46 = vunpack.c.l.b16 %v2670_v30  ;;  %v2458_v30 = vld [vmem:[#allocation2 + $0x78] sm:$0xf] }
 0x119   : > { %v2696_v59 = vshrl.u32 %v2458_v30, 16  ;;  %v2699_v57 = vshll.u32 %v2458_v30, 16 }
 0x11a   : > { %v6807_v9 = vpop.f32.mrf.mxu1 }
 0x11b   : > { %v2701_v30 = vrot.slane %v2699_v57, 5  ;;  %v6035_v57 = vld [vmem:[#allocation2 + $0x7c] sm:$0xf] }
 0x11e   : > { %3029 = vmatmul.bf16.gmra.mxu0 %v2917_v41  ;;  %v5890_v41 = vld [vmem:[%s7597_s1 + $0x218] sm:$0xff] }
 0x11f   : > { %4840 = vmatpush.bf16.msra.mxu0 %v5890_v41  ;;  %v6034_v41 = vld [vmem:[#allocation2 + $0x74] sm:$0x1] }
 0x120   : > { %2040 = vmatmul.bf16.gmra.mxu2 %v1924_v43  ;;  %v2893_v43 = vunpack.c.l.b16 %v2660_v28  ;;  %v2693_v28 = vrot.slane %v2691_v49, 5 }
 0x122   : > { %v1626_v7 = vpop.f32.mrf.mxu1  ;;  %v2918_v60 = vpack.c.b16 %v2894_v46, %v2893_v43  ;;  %v1825_v43 = vrot.slane %v6034_v41, 5  ;;  %v2459_v46 = vld [vmem:[#allocation2 + $0x7c] sm:$0xf] }
 0x123   : > { %v6822_v18 = vpop.f32.mrf.mxu2  ;;  %v1627_v0 = vadd.f32 %v1626_v7, %v6733_v12  ;;  %v2705_v58 = vshll.u32 %v2459_v46, 16  ;;  %v2709_v49 = vshrl.u32 %v2459_v46, 16  ;;  %v2460_v46 = vld [vmem:[#allocation2 + $0x80] sm:$0x1] }
 0x124   : > { %2353 = vmatmul.bf16.gmra.mxu3 %v5822_v13  ;;  %v1715_v13 = vld [vmem:[#allocation2 + $0x6c] sm:$0xe]  ;;  %v1826_v7 = vsel %vm6636_vm14, %v1824_v19, %v1825_v43 }
 0x125   : > { %1665 = vmatmul.bf16.gmra.mxu1 %v5783_v8  ;;  %v1925_v8 = vpack.c.b16 %v1902_v38, %v1901_v35  ;;  %v5380_v39 = vrot.slane %v1715_v13, 9  ;;  %v2684_v38 = vsel %vm6244_vm11, %v2679_v22, %v2683_v52  ;;  %v2698_v22 = vrot.slane %v2696_v59, 4 }
 0x126   : > { %v2895_v52 = vunpack.c.l.b16 %v2684_v38  ;;  %v2715_v38 = vshll.u32 %v2460_v46, 16 }
 0x127   : > { %v6835_v3 = vpop.f32.mrf.mxu3  ;;  %v1823_v12 = vsel %vm6636_vm14, %v5380_v39, %v1822_v15  ;;  %v2702_v53 = vor.u32 %v2701_v30, %v2698_v22  ;;  %v5785_v22 = vld [vmem:[#allocation2 + $0x78] sm:$0xff] }
 0x128   : > { %7614 = vst [vmem:[#allocation4_spill] sm:$0xff] %v6835_v3  ;;  %v1903_v41 = vunpack.c.l.b16 %v1823_v12  ;;  %v2717_v12 = vrot.slane %v2715_v38, 5 }
 0x12a   : > { %v1628_v11 = vpop.f32.mrf.mxu1 }
 0x12b   : > { %v6837_v56 = vpop.f32.mrf.mxu2  ;;  %v6839_v62 = vpop.f32.mrf.mxu0 }
 0x12e   : > { %3034 = vmatmul.bf16.gmra.mxu0 %v2918_v60  ;;  %v2694_v60 = vsel %vm6244_vm11, %v2689_v10, %v2693_v28  ;;  %v2707_v10 = vrot.slane %v2705_v58, 5  ;;  %v2711_v28 = vrot.slane %v2709_v49, 4  ;;  %v5873_v58 = vld [vmem:[%s7597_s1 + $0x190] sm:$0xff]  ;;  %v1716_v49 = vld [vmem:[#allocation2 + $0x78] sm:$0xe] }
 0x12f   : > { %v6841_v34 = vpop.f32.mrf.mxu3  ;;  %v2896_v13 = vunpack.c.l.b16 %v2694_v60  ;;  %v1829_v60 = vrot.slane %v6035_v57, 5  ;;  %3735 = vmatpush.bf16.msra.mxu2 %v5873_v58  ;;  %v5381_v30 = vrot.slane %v1716_v49, 9 }
 0x130   : > { %2045 = vmatmul.bf16.gmra.mxu2 %v1925_v8  ;;  %7615 = vst [vmem:[#allocation5_spill] sm:$0xff] %v6841_v34  ;;  %v1904_v34 = vunpack.c.l.b16 %v1826_v7  ;;  %v2461_v7 = vld [vmem:[#allocation2 + $0x84] sm:$0xf] }
 0x131   : > { %v2919_v15 = vpack.c.b16 %v2896_v13, %v2895_v52  ;;  %v5849_v52 = vld [vmem:[%s7597_s1 + $0x150] sm:$0xff]  ;;  %v2720_v38 = vshrl.u32 %v2461_v7, 16 }
 0x132   : > { %v1631_v35 = vpop.f32.mrf.mxu1  ;;  %v1926_v43 = vpack.c.b16 %v1904_v34, %v1903_v41  ;;  %v5881_v34 = vld [vmem:[%s7597_s1 + $0x1d0] sm:$0xff]  ;;  %v1831_v41 = vrot.slane %v1829_v60, 4  ;;  %3421 = vmatpush.bf16.msra.mxu1 %v5849_v52 }
 0x133   : > { %v2006_v55 = vpop.f32.mrf.mxu2  ;;  %v6848_v5 = vpop.f32.mrf.mxu0  ;;  %4416 = vmatpush.bf16.msra.mxu3 %v5881_v34 }
 0x134   : > { %v2086_v8 = vadd.f32 %v2006_v55, %v1627_v0  ;;  %2358 = vmatmul.bf16.gmra.mxu3 %v5823_v51  ;;  %v2712_v51 = vor.u32 %v2711_v28, %v2707_v10  ;;  %v6036_v28 = vld [vmem:[#allocation2 + $0x80] sm:$0x1] }
 0x135   : > { %1670 = vmatmul.bf16.gmra.mxu1 %v5784_v20  ;;  %v1629_v20 = vadd.f32 %v1628_v11, %v6752_v6  ;;  %v2703_v6 = vrot.slane %v2702_v53, 4  ;;  %v1832_v53 = vrot.slane %v6036_v28, 5 }
 0x136   : > { %v2713_v11 = vrot.slane %v2712_v51, 4 }
 0x137   : > { %v2319_v0 = vpop.f32.mrf.mxu3 }
 0x138   : > { %v2399_v55 = vadd.f32 %v2319_v0, %v2086_v8  ;;  %v2462_v0 = vld [vmem:[#allocation2 + $0x88] sm:$0xf]  ;;  %v2718_v57 = vsel %vm6244_vm11, %v2713_v11, %v2717_v12  ;;  %v2722_v12 = vrot.slane %v2720_v38, 4 }
 0x139   : > { %v2733_v49 = vshrl.u32 %v2462_v0, 16  ;;  %v2898_v11 = vunpack.c.l.b16 %v2718_v57 }
 0x13a   : > { %v6855_v3 = vpop.f32.mrf.mxu1 }
 0x13b   : > { %v2008_v39 = vpop.f32.mrf.mxu2  ;;  %v3000_v59 = vpop.f32.mrf.mxu0  ;;  %v2735_v28 = vrot.slane %v2733_v49, 4  ;;  %v1717_v49 = vld [vmem:[#allocation2 + $0x84] sm:$0xe] }
 0x13c   : > { %v2087_v19 = vadd.f32 %v2008_v39, %v1629_v20  ;;  %v6860_v8 = vadd.f32 %v3000_v59, %v2399_v55  ;;  %v1632_v55 = vadd.f32 %v1631_v35, %v6777_v24  ;;  %v5824_v20 = vld [vmem:[#allocation2 + $0x78] sm:$0xff]  ;;  %v2708_v39 = vsel %vm6244_vm11, %v2703_v6, %v2707_v10 }
 0x13d   : > { %v2723_v59 = vshll.u32 %v2461_v7, 16  ;;  %v1830_v35 = vsel %vm6636_vm14, %v5381_v30, %v1829_v60  ;;  %v1833_v10 = vsel %vm6636_vm14, %v1831_v41, %v1832_v53  ;;  %v2897_v7 = vunpack.c.l.b16 %v2708_v39  ;;  %v2463_v30 = vld [vmem:[#allocation2 + $0x8c] sm:$0x1] }
 0x13e   : > { %3039 = vmatmul.bf16.gmra.mxu0 %v2919_v15  ;;  %v1905_v52 = vunpack.c.l.b16 %v1830_v35  ;;  %v1634_v41 = vadd.f32 %v6855_v3, %v6786_v25 }
 0x13f   : > { %v2321_v13 = vpop.f32.mrf.mxu3  ;;  %v2725_v34 = vrot.slane %v2723_v59, 5  ;;  %v2739_v59 = vshll.u32 %v2463_v30, 16 }
 0x140   : > { %2050 = vmatmul.bf16.gmra.mxu2 %v1926_v43  ;;  %v2400_v46 = vadd.f32 %v2321_v13, %v2087_v19  ;;  %v2729_v19 = vshll.u32 %v2462_v0, 16  ;;  %v1906_v13 = vunpack.c.l.b16 %v1833_v10  ;;  %v2464_v10 = vld [vmem:[#allocation2 + $0x90] sm:$0xf] }
 0x141   : > { %v2741_v3 = vrot.slane %v2739_v59, 5 }
 0x142   : > { %v1636_v15 = vpop.f32.mrf.mxu1 }
 0x143   : > { %v2011_v43 = vpop.f32.mrf.mxu2  ;;  %v6872_v51 = vadd.f32 %v1636_v15, %v6803_v36  ;;  %v3002_v24 = vpop.f32.mrf.mxu0  ;;  %v5889_v36 = vld [vmem:[%s7597_s1 + $0x210] sm:$0xff] }
 0x144   : > { %v2088_v58 = vadd.f32 %v2011_v43, %v1632_v55  ;;  %2363 = vmatmul.bf16.gmra.mxu3 %v5824_v20  ;;  %v6883_v6 = vadd.f32 %v3002_v24, %v2400_v46  ;;  %4841 = vmatpush.bf16.msra.mxu0 %v5889_v36  ;;  %v2920_v55 = vpack.c.b16 %v2898_v11, %v2897_v7  ;;  %v6037_v24 = vld [vmem:[#allocation2 + $0x88] sm:$0xf]  ;;  %v5382_v11 = vrot.slane %v1717_v49, 9 }
 0x145   : > { %1675 = vmatmul.bf16.gmra.mxu1 %v5785_v22  ;;  %v2731_v22 = vrot.slane %v2729_v19, 5  ;;  %v2726_v46 = vor.u32 %v2725_v34, %v2722_v12  ;;  %v1927_v43 = vpack.c.b16 %v1906_v13, %v1905_v52  ;;  %v1836_v19 = vrot.slane %v6037_v24, 5  ;;  %v5786_v7 = vld [vmem:[#allocation2 + $0x84] sm:$0xff]  ;;  %v6038_v12 = vld [vmem:[#allocation2 + $0x8c] sm:$0x1] }
 0x146   : > { %v1839_v34 = vrot.slane %v6038_v12, 5  ;;  %v2465_v52 = vld [vmem:[#allocation2 + $0x94] sm:$0xf] }
 0x147   : > { %v2324_v60 = vpop.f32.mrf.mxu3  ;;  %v2736_v38 = vor.u32 %v2735_v28, %v2731_v22  ;;  %v5825_v28 = vld [vmem:[#allocation2 + $0x84] sm:$0xff] }
 0x148   : > { %v2401_v0 = vadd.f32 %v2324_v60, %v2088_v58  ;;  %v2727_v58 = vrot.slane %v2726_v46, 4 }
 0x149   : > { %v2737_v25 = vrot.slane %v2736_v38, 4  ;;  %v2757_v38 = vshrl.u32 %v2465_v52, 16 }
 0x14a   : > { %v1638_v53 = vpop.f32.mrf.mxu1  ;;  %v2732_v30 = vsel %vm6244_vm11, %v2727_v58, %v2731_v22 }
 0x14b   : > { %v2013_v20 = vpop.f32.mrf.mxu2  ;;  %v1639_v15 = vadd.f32 %v1638_v53, %v6820_v17  ;;  %v3005_v57 = vpop.f32.mrf.mxu0  ;;  %v1838_v17 = vrot.slane %v1836_v19, 4  ;;  %v2744_v53 = vshrl.u32 %v2464_v10, 16 }
 0x14c   : > { %v2089_v39 = vadd.f32 %v2013_v20, %v1634_v41  ;;  %v6888_v35 = vadd.f32 %v3005_v57, %v2401_v0  ;;  %v2742_v20 = vsel %vm6244_vm11, %v2737_v25, %v2741_v3  ;;  %v2899_v57 = vunpack.c.l.b16 %v2732_v30 }
 0x14d   : > { %v1840_v22 = vsel %vm6636_vm14, %v1838_v17, %v1839_v34  ;;  %v2900_v24 = vunpack.c.l.b16 %v2742_v20  ;;  %v2746_v49 = vrot.slane %v2744_v53, 4  ;;  %v6039_v53 = vld [vmem:[#allocation2 + $0x94] sm:$0xf]  ;;  %v5872_v20 = vld [vmem:[%s7597_s1 + $0x188] sm:$0xff] }
 0x14e   : > { %3044 = vmatmul.bf16.gmra.mxu0 %v2920_v55  ;;  %v2747_v55 = vshll.u32 %v2464_v10, 16  ;;  %v1908_v3 = vunpack.c.l.b16 %v1840_v22  ;;  %v2759_v10 = vrot.slane %v2757_v38, 4  ;;  %3736 = vmatpush.bf16.msra.mxu2 %v5872_v20  ;;  %v2467_v38 = vld [vmem:[#allocation2 + $0x9c] sm:$0xf]  ;;  %v5848_v22 = vld [vmem:[%s7597_s1 + $0x148] sm:$0xff] }
 0x14f   : > { %v2326_v36 = vpop.f32.mrf.mxu3  ;;  %3422 = vmatpush.bf16.msra.mxu1 %v5848_v22 }
 0x150   : > { %2055 = vmatmul.bf16.gmra.mxu2 %v1927_v43  ;;  %v2402_v13 = vadd.f32 %v2326_v36, %v2089_v39  ;;  %v2753_v43 = vshll.u32 %v2465_v52, 16  ;;  %v1837_v39 = vsel %vm6636_vm14, %v5382_v11, %v1836_v19  ;;  %v2749_v58 = vrot.slane %v2747_v55, 5 }
 0x151   : > { %v1907_v25 = vunpack.c.l.b16 %v1837_v39  ;;  %v1843_v55 = vrot.slane %v6039_v53, 5  ;;  %v5880_v39 = vld [vmem:[%s7597_s1 + $0x1c8] sm:$0xff] }
 0x152   : > { %v1641_v60 = vpop.f32.mrf.mxu1  ;;  %4417 = vmatpush.bf16.msra.mxu3 %v5880_v39 }
 0x153   : > { %v2016_v0 = vpop.f32.mrf.mxu2  ;;  %v6893_v41 = vadd.f32 %v1641_v60, %v6839_v62  ;;  %v3007_v59 = vpop.f32.mrf.mxu0  ;;  %v2921_v60 = vpack.c.b16 %v2900_v24, %v2899_v57  ;;  %v1928_v34 = vpack.c.b16 %v1908_v3, %v1907_v25  ;;  %v1845_v25 = vrot.slane %v1843_v55, 4  ;;  %v6040_v3 = vld [vmem:[#allocation2 + $0x98] sm:$0x1] }
 0x154   : > { %v2090_v46 = vadd.f32 %v2016_v0, %v6872_v51  ;;  %2368 = vmatmul.bf16.gmra.mxu3 %v5825_v28  ;;  %v6902_v62 = vadd.f32 %v3007_v59, %v2402_v13  ;;  %v2755_v51 = vrot.slane %v2753_v43, 5  ;;  %v2750_v13 = vor.u32 %v2749_v58, %v2746_v49  ;;  %v2468_v59 = vld [vmem:[#allocation2 + $0xa0] sm:$0xf]  ;;  %v5787_v49 = vld [vmem:[#allocation2 + $0x90] sm:$0xff] }
 0x155   : > { %1680 = vmatmul.bf16.gmra.mxu1 %v5786_v7  ;;  %v2466_v7 = vld [vmem:[#allocation2 + $0x98] sm:$0x1] }
 0x156   : > { %v2760_v28 = vor.u32 %v2759_v10, %v2755_v51  ;;  %v2763_v0 = vshll.u32 %v2466_v7, 16  ;;  %v1846_v10 = vrot.slane %v6040_v3, 5 }
 0x157   : > { %v2329_v36 = vpop.f32.mrf.mxu3 }
 0x158   : > { %v2403_v12 = vadd.f32 %v2329_v36, %v2090_v46  ;;  %v1718_v46 = vld [vmem:[#allocation2 + $0x90] sm:$0xe]  ;;  %v2765_v24 = vrot.slane %v2763_v0, 5  ;;  %v1847_v20 = vsel %vm6636_vm14, %v1845_v25, %v1846_v10 }
 0x159   : > { %v5383_v58 = vrot.slane %v1718_v46, 9  ;;  %v5888_v46 = vld [vmem:[%s7597_s1 + $0x208] sm:$0xff] }
 0x15a   : > { %v1643_v52 = vpop.f32.mrf.mxu1  ;;  %4842 = vmatpush.bf16.msra.mxu0 %v5888_v46  ;;  %v2471_v46 = vld [vmem:[#allocation2 + $0xac] sm:$0xf] }
 0x15b   : > { %v2018_v19 = vpop.f32.mrf.mxu2  ;;  %v6905_v11 = vadd.f32 %v1643_v52, %v6848_v5  ;;  %v3010_v30 = vpop.f32.mrf.mxu0  ;;  %v2751_v5 = vrot.slane %v2750_v13, 4  ;;  %v2768_v52 = vshrl.u32 %v2467_v38, 16  ;;  %v2781_v13 = vshrl.u32 %v2468_v59, 16 }
 0x15c   : > { %v2091_v17 = vadd.f32 %v2018_v19, %v1639_v15  ;;  %v6910_v43 = vadd.f32 %v3010_v30, %v2403_v12  ;;  %v2761_v15 = vrot.slane %v2760_v28, 4  ;;  %v5826_v12 = vld [vmem:[#allocation2 + $0x90] sm:$0xff] }
 0x15d   : > { %v2756_v0 = vsel %vm6244_vm11, %v2751_v5, %v2755_v51  ;;  %v2783_v5 = vrot.slane %v2781_v13, 4 }
 0x15e   : > { %7616 = vst [vmem:[#allocation6_spill] sm:$0xff] %v6910_v43  ;;  %3049 = vmatmul.bf16.gmra.mxu0 %v2921_v60  ;;  %v2771_v60 = vshll.u32 %v2467_v38, 16  ;;  %v2766_v53 = vsel %vm6244_vm11, %v2761_v15, %v2765_v24  ;;  %v2901_v15 = vunpack.c.l.b16 %v2756_v0  ;;  %v1719_v0 = vld [vmem:[#allocation2 + $0x9c] sm:$0xe] }
 0x15f   : > { %v2331_v57 = vpop.f32.mrf.mxu3  ;;  %v2902_v39 = vunpack.c.l.b16 %v2766_v53 }
 0x160   : > { %2060 = vmatmul.bf16.gmra.mxu2 %v1928_v34  ;;  %v2404_v36 = vadd.f32 %v2331_v57, %v2091_v17  ;;  %v2777_v34 = vshll.u32 %v2468_v59, 16  ;;  %v1844_v17 = vsel %vm6636_vm14, %v5383_v58, %v1843_v55  ;;  %v2773_v38 = vrot.slane %v2771_v60, 5  ;;  %v2469_v55 = vld [vmem:[#allocation2 + $0xa4] sm:$0x1] }
 0x161   : > { %v1909_v22 = vunpack.c.l.b16 %v1844_v17  ;;  %v1910_v57 = vunpack.c.l.b16 %v1847_v20 }
 0x162   : > { %v1646_v7 = vpop.f32.mrf.mxu1  ;;  %v2779_v51 = vrot.slane %v2777_v34, 5  ;;  %v6041_v34 = vld [vmem:[#allocation2 + $0xa0] sm:$0xf] }
 0x163   : > { %v2021_v19 = vpop.f32.mrf.mxu2  ;;  %v3012_v30 = vpop.f32.mrf.mxu0  ;;  %v1929_v60 = vpack.c.b16 %v1910_v57, %v1909_v22  ;;  %v1850_v13 = vrot.slane %v6041_v34, 5  ;;  %v2805_v34 = vshrl.u32 %v2471_v46, 16 }
 0x164   : > { %v2092_v28 = vadd.f32 %v2021_v19, %v6893_v41  ;;  %2373 = vmatmul.bf16.gmra.mxu3 %v5826_v12  ;;  %v2770_v41 = vrot.slane %v2768_v52, 4  ;;  %v6930_v59 = vadd.f32 %v3012_v30, %v2404_v36  ;;  %v2784_v10 = vor.u32 %v2783_v5, %v2779_v51  ;;  %v5788_v5 = vld [vmem:[#allocation2 + $0x9c] sm:$0xff] }
 0x165   : > { %1685 = vmatmul.bf16.gmra.mxu1 %v5787_v49  ;;  %v2787_v12 = vshll.u32 %v2469_v55, 16  ;;  %v2922_v52 = vpack.c.b16 %v2902_v39, %v2901_v15  ;;  %v5384_v15 = vrot.slane %v1719_v0, 9  ;;  %v1852_v39 = vrot.slane %v1850_v13, 4  ;;  %v246_v0 = vld [vmem:[%s6152_s26 + $0x78] sm:$0xf] }
 0x166   : > { %7617 = vst [vmem:[#allocation7_spill] sm:$0xff] %v6930_v59  ;;  %v2774_v58 = vor.u32 %v2773_v38, %v2770_v41  ;;  %v2785_v17 = vrot.slane %v2784_v10, 4  ;;  %v306_v41 = vld [vmem:[#allocation2 + $0xc0] sm:$0x1]  ;;  %v629_v59 = vshll.u32 %v246_v0, 16 }
 0x167   : > { %v2334_v24 = vpop.f32.mrf.mxu3  ;;  %v2789_v20 = vrot.slane %v2787_v12, 5  ;;  %v307_v57 = vsel %vm6130_vm2, 0, %v306_v41  ;;  %v626_v41 = vshrl.u32 %v246_v0, 16  ;;  %v6043_v0 = vld [vmem:[#allocation2 + $0xac] sm:$0xf] }
 0x168   : > { %v2405_v49 = vadd.f32 %v2334_v24, %v2092_v28  ;;  %v2775_v30 = vrot.slane %v2774_v58, 4  ;;  %v2470_v28 = vld [vmem:[#allocation2 + $0xa8] sm:$0xf]  ;;  %v1647_v24 = vadd.f32 %v1646_v7, %v6706_v48  ;;  %308 = vst [vmem:[#allocation2 + $0xc0] sm:$0x1] %v307_v57  ;;  %v1851_v7 = vsel %vm6636_vm14, %v5384_v15, %v1850_v13 }
 0x169   : > { %v2792_v10 = vshrl.u32 %v2470_v28, 16  ;;  %v2790_v12 = vsel %vm6244_vm11, %v2785_v17, %v2789_v20  ;;  %v247_v20 = vld [vmem:[%s6152_s26 + $0x7c] sm:$0xf]  ;;  %v2807_v57 = vrot.slane %v2805_v34, 4 }
 0x16a   : > { %v6932_v25 = vpop.f32.mrf.mxu1  ;;  %v2780_v58 = vsel %vm6244_vm11, %v2775_v30, %v2779_v51  ;;  %v634_v15 = vshrl.u32 %v247_v20, 16 }
 0x16b   : > { %v2023_v3 = vpop.f32.mrf.mxu2  ;;  %v3015_v19 = vpop.f32.mrf.mxu0  ;;  %v2903_v30 = vunpack.c.l.b16 %v2780_v58  ;;  %v2794_v17 = vrot.slane %v2792_v10, 4  ;;  %v362_v58 = vld [vmem:[#allocation2 + $0xc8] sm:$0x1] }
 0x16c   : > { %v2093_v36 = vadd.f32 %v2023_v3, %v6905_v11  ;;  %v6935_v53 = vadd.f32 %v3015_v19, %v2405_v49  ;;  %v6042_v11 = vld [vmem:[#allocation2 + $0xa4] sm:$0x1]  ;;  %v5827_v49 = vld [vmem:[#allocation2 + $0x9c] sm:$0xff]  ;;  %v2801_v19 = vshll.u32 %v2471_v46, 16 }
 0x16d   : > { %v1853_v22 = vrot.slane %v6042_v11, 5 }
 0x16e   : > { %7618 = vst [vmem:[#allocation8_spill] sm:$0xff] %v6935_v53  ;;  %3054 = vmatmul.bf16.gmra.mxu0 %v2922_v52  ;;  %v6954_v46 = vrot.slane %v2801_v19, 5  ;;  %v2472_v53 = vld [vmem:[#allocation2 + $0xb0] sm:$0x1] }
 0x16f   : > { %v2336_v38 = vpop.f32.mrf.mxu3  ;;  %v1854_v51 = vsel %vm6636_vm14, %v1852_v39, %v1853_v22  ;;  %v1649_v22 = vadd.f32 %v6932_v25, %v6717_v33  ;;  %v2811_v19 = vshll.u32 %v2472_v53, 16  ;;  %v5871_v33 = vld [vmem:[%s7597_s1 + $0x180] sm:$0xff]  ;;  %v2473_v25 = vld [vmem:[#allocation2 + $0xb4] sm:$0xf]  ;;  %v363_v53 = vsel %vm6135_vm4, 0, %v362_v58 }
 0x170   : > { %2065 = vmatmul.bf16.gmra.mxu2 %v1929_v60  ;;  %v2406_v55 = vadd.f32 %v2336_v38, %v2093_v36  ;;  %v2795_v60 = vshll.u32 %v2470_v28, 16  ;;  %v2904_v38 = vunpack.c.l.b16 %v2790_v12  ;;  %364 = vst [vmem:[#allocation2 + $0xc8] sm:$0x1] %v363_v53 }
 0x171   : > { %3737 = vmatpush.bf16.msra.mxu2 %v5871_v33  ;;  %v2813_v27 = vrot.slane %v2811_v19, 5 }
 0x172   : > { %v6942_v3 = vpop.f32.mrf.mxu1  ;;  %v2797_v28 = vrot.slane %v2795_v60, 5  ;;  %v2923_v43 = vpack.c.b16 %v2904_v38, %v2903_v30  ;;  %v2808_v60 = vor.u32 %v2807_v57, %v6954_v46  ;;  %v637_v38 = vshll.u32 %v247_v20, 16 }
 0x173   : > { %v2026_v52 = vpop.f32.mrf.mxu2  ;;  %v3017_v48 = vpop.f32.mrf.mxu0 }
 0x174   : > { %v2094_v36 = vadd.f32 %v2026_v52, %v1647_v24  ;;  %2378 = vmatmul.bf16.gmra.mxu3 %v5827_v49  ;;  %v6952_v11 = vadd.f32 %v3017_v48, %v2406_v55  ;;  %v628_v24 = vrot.slane %v626_v41, 7  ;;  %v1911_v52 = vunpack.c.l.b16 %v1851_v7  ;;  %v798_v55 = vld [vmem:[#allocation2 + $0xc0] sm:$0xf] }
 0x175   : > { %1690 = vmatmul.bf16.gmra.mxu1 %v5788_v5  ;;  %v1912_v5 = vunpack.c.l.b16 %v1854_v51  ;;  %v2798_v12 = vor.u32 %v2797_v28, %v2794_v17  ;;  %v1857_v7 = vrot.slane %v6043_v0, 5  ;;  %v636_v51 = vrot.slane %v634_v15, 7  ;;  %v5879_v15 = vld [vmem:[%s7597_s1 + $0x1c0] sm:$0xff] }
 0x176   : > { %v631_v34 = vor.u32 %v629_v59, %v628_v24  ;;  %v1720_v59 = vld [vmem:[#allocation2 + $0xa8] sm:$0xe]  ;;  %v2809_v20 = vrot.slane %v2808_v60, 4  ;;  %4418 = vmatpush.bf16.msra.mxu3 %v5879_v15  ;;  %v2475_v15 = vld [vmem:[#allocation2 + $0xbc] sm:$0x1] }
 0x177   : > { %v2339_v13 = vpop.f32.mrf.mxu3  ;;  %v1930_v48 = vpack.c.b16 %v1912_v5, %v1911_v52  ;;  %v2799_v57 = vrot.slane %v2798_v12, 4  ;;  %v2474_v52 = vld [vmem:[#allocation2 + $0xb8] sm:$0xf]  ;;  %v639_v5 = vor.u32 %v637_v38, %v636_v51  ;;  %v5385_v58 = vrot.slane %v1720_v59, 9  ;;  %v5828_v60 = vld [vmem:[#allocation2 + $0xa8] sm:$0xff] }
 0x178   : > { %v2407_v39 = vadd.f32 %v2339_v13, %v2094_v36  ;;  %v632_v36 = vrot.slane %v628_v24, 4  ;;  %v799_v17 = vsel %vm6173_vm8, %v631_v34, %v798_v55  ;;  %v1652_v24 = vadd.f32 %v6942_v3, %v6729_v32  ;;  %v5789_v55 = vld [vmem:[#allocation2 + $0xa8] sm:$0xff] }
 0x179   : > { %800 = vst [vmem:[#allocation2 + $0xc0] sm:$0xf] %v799_v17  ;;  %v2816_v13 = vshrl.u32 %v2473_v25, 16  ;;  %v2819_v34 = vshll.u32 %v2473_v25, 16  ;;  %v2829_v0 = vshrl.u32 %v2474_v52, 16  ;;  %v641_v33 = vrot.slane %v636_v51, 4 }
 0x17a   : > { %v6958_v49 = vpop.f32.mrf.mxu1  ;;  %v640_v32 = vsel %vm6162_vm7, %v632_v36, %v639_v5  ;;  %v2804_v38 = vsel %vm6244_vm11, %v2799_v57, %v6954_v46  ;;  %v2814_v21 = vsel %vm6244_vm11, %v2809_v20, %v2813_v27  ;;  %v5887_v51 = vld [vmem:[%s7597_s1 + $0x200] sm:$0xff] }
 0x17b   : > { %v2028_v10 = vpop.f32.mrf.mxu2  ;;  %v3020_v30 = vpop.f32.mrf.mxu0  ;;  %801 = vst [vmem:[#allocation2 + $0xc4] sm:$0xf] %v640_v32  ;;  %v2818_v36 = vrot.slane %v2816_v13, 4  ;;  %v2821_v59 = vrot.slane %v2819_v34, 5  ;;  %v2831_v57 = vrot.slane %v2829_v0, 4  ;;  %4843 = vmatpush.bf16.msra.mxu0 %v5887_v51  ;;  %v2906_v20 = vunpack.c.l.b16 %v2814_v21 }
 0x17c   : > { %v2095_v41 = vadd.f32 %v2028_v10, %v1649_v22  ;;  %v6968_v28 = vadd.f32 %v3020_v30, %v2407_v39  ;;  %v5847_v39 = vld [vmem:[%s7597_s1 + $0x140] sm:$0xff]  ;;  %v1859_v10 = vrot.slane %v1857_v7, 4  ;;  %v2835_v32 = vshll.u32 %v2475_v15, 16  ;;  %v6045_v0 = vld [vmem:[#allocation2 + $0xb8] sm:$0xf] }
 0x17d   : > { %3423 = vmatpush.bf16.msra.mxu1 %v5847_v39 }
 0x17e   : > { %3059 = vmatmul.bf16.gmra.mxu0 %v2923_v43  ;;  %v6044_v43 = vld [vmem:[#allocation2 + $0xb0] sm:$0x1] }
 0x17f   : > { %v2341_v22 = vpop.f32.mrf.mxu3  ;;  %v1860_v12 = vrot.slane %v6044_v43, 5 }
 0x180   : > { %2070 = vmatmul.bf16.gmra.mxu2 %v1930_v48  ;;  %v2408_v3 = vadd.f32 %v2341_v22, %v2095_v41  ;;  %v2825_v48 = vshll.u32 %v2474_v52, 16  ;;  %v1858_v41 = vsel %vm6636_vm14, %v5385_v58, %v1857_v7  ;;  %v802_v52 = vld [vmem:[#allocation2 + $0xc8] sm:$0x1]  ;;  %v2822_v58 = vor.u32 %v2821_v59, %v2818_v36  ;;  %v6046_v59 = vld [vmem:[#allocation2 + $0xbc] sm:$0x1] }
 0x181   : > { %v1861_v25 = vsel %vm6636_vm14, %v1859_v10, %v1860_v12  ;;  %v803_v7 = vsel %vm6130_vm2, %v641_v33, %v802_v52  ;;  %v1913_v27 = vunpack.c.l.b16 %v1858_v41  ;;  %v2476_v33 = vld [vmem:[#allocation2 + $0xc0] sm:$0xf] }
 0x182   : > { %v6980_v19 = vpop.f32.mrf.mxu1  ;;  %v6994_v46 = vrot.slane %v2825_v48, 5  ;;  %v1914_v13 = vunpack.c.l.b16 %v1861_v25  ;;  %804 = vst [vmem:[#allocation2 + $0xc8] sm:$0x1] %v803_v7  ;;  %v1721_v48 = vld [vmem:[#allocation2 + $0xb4] sm:$0xe]  ;;  %v2823_v21 = vrot.slane %v2822_v58, 4 }
 0x183   : > { %v2031_v30 = vpop.f32.mrf.mxu2  ;;  %v3022_v53 = vpop.f32.mrf.mxu0  ;;  %v2840_v25 = vshrl.u32 %v2476_v33, 16  ;;  %v2843_v36 = vshll.u32 %v2476_v33, 16  ;;  %v6048_v33 = vld [vmem:[#allocation2 + $0x14] sm:$0x1] }
 0x184   : > { %v2096_v17 = vadd.f32 %v2031_v30, %v1652_v24  ;;  %2383 = vmatmul.bf16.gmra.mxu3 %v5828_v60  ;;  %v6996_v5 = vadd.f32 %v3022_v53, %v2408_v3  ;;  %v2905_v24 = vunpack.c.l.b16 %v2804_v38  ;;  %v2832_v10 = vor.u32 %v2831_v57, %v6994_v46  ;;  %v2477_v53 = vld [vmem:[#allocation2 + $0xc4] sm:$0xf] }
 0x185   : > { %1695 = vmatmul.bf16.gmra.mxu1 %v5789_v55  ;;  %v1654_v55 = vadd.f32 %v6958_v49, %v6737_v23  ;;  %v1931_v34 = vpack.c.b16 %v1914_v13, %v1913_v27  ;;  %v1864_v30 = vrot.slane %v6045_v0, 5  ;;  %v2837_v23 = vrot.slane %v2835_v32, 5  ;;  %v5790_v13 = vld [vmem:[#allocation2 + $0xb4] sm:$0xff] }
 0x186   : > { %v2924_v3 = vpack.c.b16 %v2906_v20, %v2905_v24  ;;  %v5386_v49 = vrot.slane %v1721_v48, 9  ;;  %v1867_v57 = vrot.slane %v6046_v59, 5  ;;  %v2849_v52 = vshll.u32 %v2477_v53, 16  ;;  %v6047_v24 = vld [vmem:[#allocation2 + $0x10] sm:$0xf] }
 0x187   : > { %v2344_v39 = vpop.f32.mrf.mxu3  ;;  %v1866_v51 = vrot.slane %v1864_v30, 4  ;;  %v2853_v7 = vshrl.u32 %v2477_v53, 16  ;;  %v3178_v20 = vrot.slane %v6047_v24, 5 }
 0x188   : > { %v2409_v22 = vadd.f32 %v2344_v39, %v2096_v17  ;;  %v2833_v17 = vrot.slane %v2832_v10, 4  ;;  %v1657_v39 = vadd.f32 %v6980_v19, %v6756_v47  ;;  %v1865_v32 = vsel %vm6636_vm14, %v5386_v49, %v1864_v30  ;;  %v3112_v30 = vld [vmem:[#allocation2 + $0xc] sm:$0xe]  ;;  %v7018_v49 = vld [vmem:[#allocation2 + $0x1c] sm:$0xf] }
 0x189   : > { %v7016_v47 = vrot.slane %v2849_v52, 5  ;;  %v2855_v19 = vrot.slane %v2853_v7, 4  ;;  %v3180_v0 = vrot.slane %v3178_v20, 4  ;;  %v2478_v53 = vld [vmem:[#allocation2 + $0xc8] sm:$0x1] }
 0x18a   : > { %v1658_v43 = vpop.f32.mrf.mxu1  ;;  %v2838_v10 = vsel %vm6244_vm11, %v2833_v17, %v2837_v23  ;;  %v2859_v24 = vshll.u32 %v2478_v53, 16 }
 0x18b   : > { %v2033_v12 = vpop.f32.mrf.mxu2  ;;  %v3025_v38 = vpop.f32.mrf.mxu0  ;;  %v2908_v23 = vunpack.c.l.b16 %v2838_v10  ;;  %v1659_v52 = vadd.f32 %v1658_v43, %v6781_v16  ;;  %v2856_v7 = vor.u32 %v2855_v19, %v7016_v47  ;;  %v3913_v16 = vshrl.u32 %v7018_v49, 16 }
 0x18c   : > { %v2097_v60 = vadd.f32 %v2033_v12, %v1654_v55  ;;  %v7003_v41 = vadd.f32 %v3025_v38, %v2409_v22  ;;  %v5829_v22 = vld [vmem:[#allocation2 + $0xb4] sm:$0xff]  ;;  %v2828_v55 = vsel %vm6244_vm11, %v2823_v21, %v6994_v46  ;;  %v3181_v46 = vrot.slane %v6048_v33, 5 }
 0x18d   : > { %v3851_v21 = vld [vmem:[#allocation2 + $0x18] sm:$0xf]  ;;  %v2907_v17 = vunpack.c.l.b16 %v2828_v55 }
 0x18e   : > { %3064 = vmatmul.bf16.gmra.mxu0 %v2924_v3  ;;  %v2842_v3 = vrot.slane %v2840_v25, 4  ;;  %v3903_v55 = vshll.u32 %v3851_v21, 16 }
 0x18f   : > { %v2346_v27 = vpop.f32.mrf.mxu3 }
 0x190   : > { %2075 = vmatmul.bf16.gmra.mxu2 %v1931_v34  ;;  %v2410_v15 = vadd.f32 %v2346_v27, %v2097_v60  ;;  %v2845_v34 = vrot.slane %v2843_v36, 5  ;;  %v1868_v60 = vsel %vm6636_vm14, %v1866_v51, %v1867_v57  ;;  %v1915_v36 = vunpack.c.l.b16 %v1865_v32 }
 0x191   : > { %v1916_v51 = vunpack.c.l.b16 %v1868_v60  ;;  %v5547_v57 = vrot.slane %v3112_v30, 9  ;;  %v3900_v27 = vshrl.u32 %v3851_v21, 16  ;;  %v2861_v30 = vrot.slane %v2859_v24, 5 }
 0x192   : > { %v1661_v58 = vpop.f32.mrf.mxu1  ;;  %v2846_v59 = vor.u32 %v2845_v34, %v2842_v3  ;;  %v2925_v34 = vpack.c.b16 %v2908_v23, %v2907_v17  ;;  %v3915_v21 = vrot.slane %v3913_v16, 4 }
 0x193   : > { %v2036_v12 = vpop.f32.mrf.mxu2  ;;  %v3027_v38 = vpop.f32.mrf.mxu0  ;;  %v1932_v19 = vpack.c.b16 %v1916_v51, %v1915_v36  ;;  %v1662_v17 = vadd.f32 %v1661_v58, %v6791_v61 }
 0x194   : > { %v2098_v48 = vadd.f32 %v2036_v12, %v1657_v39  ;;  %2388 = vmatmul.bf16.gmra.mxu3 %v5829_v22  ;;  %v7020_v25 = vadd.f32 %v3027_v38, %v2410_v15  ;;  %v3179_v39 = vsel %vm6636_vm14, %v5547_v57, %v3178_v20  ;;  %v3182_v22 = vsel %vm6636_vm14, %v3180_v0, %v3181_v46 }
 0x195   : > { %1700 = vmatmul.bf16.gmra.mxu1 %v5790_v13  ;;  %v3909_v15 = vshll.u32 %v7018_v49, 16  ;;  %v3304_v32 = vunpack.c.l.b16 %v3179_v39  ;;  %v3305_v3 = vunpack.c.l.b16 %v3182_v22  ;;  %v2847_v53 = vrot.slane %v2846_v59, 4  ;;  %v5830_v59 = vld [vmem:[#allocation2 + $0xc0] sm:$0xff] }
 0x196   : > { %7619 = vst [vmem:[#allocation9_spill] sm:$0xff] %v7020_v25  ;;  %v2857_v20 = vrot.slane %v2856_v7, 4  ;;  %v3902_v57 = vrot.slane %v3900_v27, 4  ;;  %v3905_v0 = vrot.slane %v3903_v55, 5  ;;  %v3854_v55 = vld [vmem:[#allocation2 + $0x24] sm:$0xf] }
 0x197   : > { %v2349_v13 = vpop.f32.mrf.mxu3  ;;  %v3336_v33 = vpack.c.b16 %v3305_v3, %v3304_v32  ;;  %v3911_v46 = vrot.slane %v3909_v15, 5  ;;  %v2852_v23 = vsel %vm6244_vm11, %v2847_v53, %v7016_v47  ;;  %v7043_v32 = vld [vmem:[#allocation2 + $0x28] sm:$0xf]  ;;  %v6050_v53 = vld [vmem:[#allocation2 + $0x20] sm:$0x1] }
 0x198   : > { %v2411_v10 = vadd.f32 %v2349_v13, %v2098_v48  ;;  %v7032_v48 = vld [vmem:[#allocation2 + $0x20] sm:$0x1]  ;;  %v2862_v36 = vsel %vm6244_vm11, %v2857_v20, %v2861_v30  ;;  %v3906_v7 = vor.u32 %v3905_v0, %v3902_v57  ;;  %v2909_v61 = vunpack.c.l.b16 %v2852_v23 }
 0x199   : > { %v3916_v24 = vor.u32 %v3915_v21, %v3911_v46  ;;  %v3919_v27 = vshll.u32 %v7032_v48, 16  ;;  %v2910_v58 = vunpack.c.l.b16 %v2862_v36  ;;  %v3188_v20 = vrot.slane %v6050_v53, 5 }
 0x19a   : > { %v1663_v12 = vpop.f32.mrf.mxu1  ;;  %v3907_v3 = vrot.slane %v3906_v7, 4  ;;  %v3924_v30 = vshrl.u32 %v3854_v55, 16  ;;  %v3927_v57 = vshll.u32 %v3854_v55, 16  ;;  %v3933_v0 = vshll.u32 %v7043_v32, 16 }
 0x19b   : > { %v2038_v43 = vpop.f32.mrf.mxu2  ;;  %v3030_v38 = vpop.f32.mrf.mxu0  ;;  %v3917_v16 = vrot.slane %v3916_v24, 4  ;;  %v2926_v21 = vpack.c.b16 %v2910_v58, %v2909_v61  ;;  %v1664_v23 = vadd.f32 %v1663_v12, %v6807_v9  ;;  %v4532_v9 = vld [vmem:[#allocation2 + $0x18] sm:$0xe] }
 0x19c   : > { %v2099_v60 = vadd.f32 %v2038_v43, %v1659_v52  ;;  %v7030_v25 = vadd.f32 %v3030_v38, %v2411_v10  ;;  %v6049_v10 = vld [vmem:[#allocation2 + $0x1c] sm:$0xf]  ;;  %v3921_v43 = vrot.slane %v3919_v27, 5  ;;  %v3912_v24 = vsel %vm6244_vm11, %v3907_v3, %v3911_v46 }
 0x19d   : > { %v3185_v47 = vrot.slane %v6049_v10, 5  ;;  %v3926_v55 = vrot.slane %v3924_v30, 4  ;;  %v3929_v12 = vrot.slane %v3927_v57, 5  ;;  %v7059_v61 = vrot.slane %v3933_v0, 5 }
 0x19e   : > { %3069 = vmatmul.bf16.gmra.mxu0 %v2925_v34  ;;  %v3113_v34 = vld [vmem:[#allocation2 + $0x18] sm:$0xe]  ;;  %v3922_v27 = vsel %vm6244_vm11, %v3917_v16, %v3921_v43  ;;  %v5723_v16 = vrot.slane %v4532_v9, 9 }
 0x19f   : > { %v2351_v13 = vpop.f32.mrf.mxu3  ;;  %v3187_v38 = vrot.slane %v3185_v47, 4  ;;  %v4300_v46 = vunpack.c.l.b16 %v3922_v27  ;;  %v3930_v53 = vor.u32 %v3929_v12, %v3926_v55  ;;  %v7074_v12 = vld [vmem:[#allocation2 + $0x34] sm:$0xf] }
 0x1a0   : > { %2080 = vmatmul.bf16.gmra.mxu2 %v1932_v19  ;;  %v2412_v51 = vadd.f32 %v2351_v13, %v2099_v60  ;;  %v5548_v19 = vrot.slane %v3113_v34, 9 }
 0x1a2   : > { %v7040_v52 = vpop.f32.mrf.mxu1 }
 0x1a3   : > { %v2041_v39 = vpop.f32.mrf.mxu2  ;;  %v3032_v15 = vpop.f32.mrf.mxu0 }
 0x1a4   : > { %v2100_v22 = vadd.f32 %v2041_v39, %v1662_v17  ;;  %2393 = vmatmul.bf16.gmra.mxu3 %v5830_v59  ;;  %v7045_v60 = vadd.f32 %v3032_v15, %v2412_v51  ;;  %v3186_v51 = vsel %vm6636_vm14, %v5548_v19, %v3185_v47  ;;  %v3189_v59 = vsel %vm6636_vm14, %v3187_v38, %v3188_v20  ;;  %v5855_v15 = vld [vmem:[#allocation2 + $0x18] sm:$0xff]  ;;  %v7061_v19 = vld [vmem:[#allocation2 + $0x2c] sm:$0x1] }
 0x1a5   : > { %3424 = vmatmul.bf16.vlgmr.msra.gmra.mxu1 %v3336_v33  ;;  %v3937_v33 = vshrl.u32 %v7043_v32, 16  ;;  %v4598_v39 = vrot.slane %v7018_v49, 5  ;;  %v3306_v47 = vunpack.c.l.b16 %v3186_v51  ;;  %v3307_v34 = vunpack.c.l.b16 %v3189_v59 }
 0x1a6   : > { %v4299_v38 = vunpack.c.l.b16 %v3912_v24  ;;  %v4601_v49 = vrot.slane %v7032_v48, 5  ;;  %v3943_v30 = vshll.u32 %v7061_v19, 16 }
 0x1a7   : > { %v2354_v13 = vpop.f32.mrf.mxu3  ;;  %v3939_v58 = vrot.slane %v3937_v33, 4  ;;  %v4600_v43 = vrot.slane %v4598_v39, 4  ;;  %v3337_v0 = vpack.c.b16 %v3307_v34, %v3306_v47  ;;  %v4599_v51 = vsel %vm6636_vm14, %v5723_v16, %v4598_v39  ;;  %v6052_v34 = vld [vmem:[#allocation2 + $0x2c] sm:$0x1] }
 0x1a8   : > { %v2413_v17 = vadd.f32 %v2354_v13, %v2100_v22  ;;  %v1667_v13 = vadd.f32 %v7040_v52, %v6727_v42  ;;  %v3945_v27 = vrot.slane %v3943_v30, 5  ;;  %v4724_v9 = vunpack.c.l.b16 %v4599_v51  ;;  %v3114_v42 = vld [vmem:[#allocation2 + $0x24] sm:$0xe]  ;;  %v3857_v52 = vld [vmem:[#allocation2 + $0x30] sm:$0xf] }
 0x1a9   : > { %v3940_v20 = vor.u32 %v3939_v58, %v7059_v61  ;;  %v4602_v48 = vsel %vm6636_vm14, %v4600_v43, %v4601_v49  ;;  %v4533_v43 = vld [vmem:[#allocation2 + $0x24] sm:$0xe]  ;;  %v4605_v49 = vrot.slane %v7043_v32, 5  ;;  %v3948_v30 = vshrl.u32 %v3857_v52, 16 }
 0x1aa   : > { %v1668_v36 = vpop.f32.mrf.mxu1  ;;  %v4725_v39 = vunpack.c.l.b16 %v4602_v48  ;;  %v3961_v51 = vshrl.u32 %v7074_v12, 16  ;;  %v5724_v32 = vrot.slane %v4533_v43, 9 }
 0x1ab   : > { %v2043_v7 = vpop.f32.mrf.mxu2  ;;  %v3035_v10 = vpop.f32.mrf.mxu0  ;;  %v3941_v24 = vrot.slane %v3940_v20, 4  ;;  %v1669_v20 = vadd.f32 %v1668_v36, %v6735_v1 }
 0x1ac   : > { %v2101_v22 = vadd.f32 %v2043_v7, %v1664_v23  ;;  %v7063_v3 = vadd.f32 %v3035_v10, %v2413_v17  ;;  %v4331_v23 = vpack.c.b16 %v4300_v46, %v4299_v38  ;;  %v3931_v7 = vrot.slane %v3930_v53, 4 }
 0x1ad   : > { %v5549_v10 = vrot.slane %v3114_v42, 9  ;;  %v3195_v38 = vrot.slane %v6052_v34, 5  ;;  %v3946_v16 = vsel %vm6244_vm11, %v3941_v24, %v3945_v27  ;;  %v4756_v48 = vpack.c.b16 %v4725_v39, %v4724_v9  ;;  %v5856_v24 = vld [vmem:[#allocation2 + $0x24] sm:$0xff]  ;;  %v7096_v9 = vld [vmem:[#allocation2 + $0x38] sm:$0x1] }
 0x1ae   : > { %3074 = vmatmul.bf16.gmra.mxu0 %v2926_v21  ;;  %v3936_v46 = vsel %vm6244_vm11, %v3931_v7, %v7059_v61  ;;  %v4302_v36 = vunpack.c.l.b16 %v3946_v16  ;;  %v4607_v27 = vrot.slane %v4605_v49, 4  ;;  %v4606_v39 = vsel %vm6636_vm14, %v5724_v32, %v4605_v49 }
 0x1af   : > { %v2356_v57 = vpop.f32.mrf.mxu3  ;;  %v4301_v1 = vunpack.c.l.b16 %v3936_v46 }
 0x1b0   : > { %3738 = vmatmul.bf16.vlgmr.msra.gmra.mxu2 %v5855_v15  ;;  %v2414_v33 = vadd.f32 %v2356_v57, %v2101_v22  ;;  %v6051_v15 = vld [vmem:[#allocation2 + $0x28] sm:$0xf]  ;;  %v3951_v57 = vshll.u32 %v3857_v52, 16  ;;  %v3950_v52 = vrot.slane %v3948_v30, 4 }
 0x1b1   : > { %v3192_v22 = vrot.slane %v6051_v15, 5 }
 0x1b2   : > { %v1671_v17 = vpop.f32.mrf.mxu1 }
 0x1b3   : > { %v2046_v21 = vpop.f32.mrf.mxu2  ;;  %v3037_v55 = vpop.f32.mrf.mxu0  ;;  %v3194_v47 = vrot.slane %v3192_v22, 4  ;;  %v1672_v46 = vadd.f32 %v1671_v17, %v6754_v45  ;;  %v6053_v45 = vld [vmem:[#allocation2 + $0x34] sm:$0xf] }
 0x1b4   : > { %v2102_v59 = vadd.f32 %v2046_v21, %v1667_v13  ;;  %4419 = vmatmul.bf16.vlgmr.msra.gmra.mxu3 %v4331_v23  ;;  %v7076_v58 = vadd.f32 %v3037_v55, %v2414_v33  ;;  %v3193_v23 = vsel %vm6636_vm14, %v5549_v10, %v3192_v22  ;;  %v3953_v22 = vrot.slane %v3951_v57, 5 }
 0x1b5   : > { %3429 = vmatmul.bf16.gmra.mxu1 %v3337_v0  ;;  %v3957_v0 = vshll.u32 %v7074_v12, 16  ;;  %v3196_v61 = vsel %vm6636_vm14, %v3194_v47, %v3195_v38  ;;  %v3308_v15 = vunpack.c.l.b16 %v3193_v23  ;;  %v3963_v47 = vrot.slane %v3961_v51, 4 }
 0x1b6   : > { %v3309_v42 = vunpack.c.l.b16 %v3196_v61  ;;  %v3954_v30 = vor.u32 %v3953_v22, %v3950_v52  ;;  %v3860_v61 = vld [vmem:[#allocation2 + $0x3c] sm:$0xf]  ;;  %v4726_v51 = vunpack.c.l.b16 %v4606_v39  ;;  %v3199_v17 = vrot.slane %v6053_v45, 5 }
 0x1b7   : > { %v2359_v53 = vpop.f32.mrf.mxu3  ;;  %v7092_v10 = vrot.slane %v3957_v0, 5  ;;  %v3967_v0 = vshll.u32 %v7096_v9, 16  ;;  %v3975_v52 = vshll.u32 %v3860_v61, 16 }
 0x1b8   : > { %v2415_v33 = vadd.f32 %v2359_v53, %v2102_v59  ;;  %v4608_v59 = vrot.slane %v7061_v19, 5  ;;  %v4332_v19 = vpack.c.b16 %v4302_v36, %v4301_v1  ;;  %v3338_v43 = vpack.c.b16 %v3309_v42, %v3308_v15  ;;  %v3115_v1 = vld [vmem:[#allocation2 + $0x30] sm:$0xe] }
 0x1b9   : > { %v3964_v57 = vor.u32 %v3963_v47, %v7092_v10  ;;  %v3955_v32 = vrot.slane %v3954_v30, 4  ;;  %v3972_v42 = vshrl.u32 %v3860_v61, 16 }
 0x1ba   : > { %v1673_v13 = vpop.f32.mrf.mxu1  ;;  %v4609_v16 = vsel %vm6636_vm14, %v4607_v27, %v4608_v59  ;;  %v5550_v27 = vrot.slane %v3115_v1, 9  ;;  %v6054_v59 = vld [vmem:[#allocation2 + $0x38] sm:$0x1] }
 0x1bb   : > { %v2048_v21 = vpop.f32.mrf.mxu2  ;;  %v3040_v55 = vpop.f32.mrf.mxu0  ;;  %v3202_v15 = vrot.slane %v6054_v59, 5 }
 0x1bc   : > { %v2103_v7 = vadd.f32 %v2048_v21, %v1669_v20  ;;  %v7094_v34 = vadd.f32 %v3040_v55, %v2415_v33  ;;  %v7107_v21 = vld [vmem:[#allocation2 + $0x40] sm:$0xf]  ;;  %v3201_v55 = vrot.slane %v3199_v17, 4 }
 0x1bd   : > { %v3981_v22 = vshll.u32 %v7107_v21, 16  ;;  %v3985_v47 = vshrl.u32 %v7107_v21, 16 }
 0x1be   : > { %4844 = vmatmul.bf16.vlgmr.msra.gmra.mxu0 %v4756_v48  ;;  %v4727_v48 = vunpack.c.l.b16 %v4609_v16 }
 0x1bf   : > { %v2361_v38 = vpop.f32.mrf.mxu3 }
 0x1c0   : > { %3743 = vmatmul.bf16.gmra.mxu2 %v5856_v24  ;;  %v2416_v53 = vadd.f32 %v2361_v38, %v2103_v7  ;;  %v3965_v7 = vrot.slane %v3964_v57, 4  ;;  %v3969_v24 = vrot.slane %v3967_v0, 5  ;;  %v4757_v39 = vpack.c.b16 %v4727_v48, %v4726_v51 }
 0x1c1   : > { %v3960_v57 = vsel %vm6244_vm11, %v3955_v32, %v7092_v10  ;;  %v7124_v51 = vrot.slane %v3981_v22, 5  ;;  %v3987_v48 = vrot.slane %v3985_v47, 4 }
 0x1c2   : > { %v7103_v20 = vpop.f32.mrf.mxu1  ;;  %v3970_v0 = vsel %vm6244_vm11, %v3965_v7, %v3969_v24 }
 0x1c3   : > { %v2051_v33 = vpop.f32.mrf.mxu2  ;;  %v3042_v49 = vpop.f32.mrf.mxu0  ;;  %v4304_v10 = vunpack.c.l.b16 %v3970_v0 }
 0x1c4   : > { %v2104_v23 = vadd.f32 %v2051_v33, %v1672_v46  ;;  %4424 = vmatmul.bf16.gmra.mxu3 %v4332_v19  ;;  %v7109_v36 = vadd.f32 %v3042_v49, %v2416_v53  ;;  %v1674_v19 = vadd.f32 %v1673_v13, %v6779_v26  ;;  %v3203_v53 = vsel %vm6636_vm14, %v3201_v55, %v3202_v15  ;;  %v5857_v26 = vld [vmem:[#allocation2 + $0x30] sm:$0xff] }
 0x1c5   : > { %3434 = vmatmul.bf16.gmra.mxu1 %v3338_v43  ;;  %v3200_v43 = vsel %vm6636_vm14, %v5550_v27, %v3199_v17  ;;  %v4612_v33 = vrot.slane %v7074_v12, 5  ;;  %v4534_v13 = vld [vmem:[#allocation2 + $0x30] sm:$0xe]  ;;  %v3977_v49 = vrot.slane %v3975_v52, 5  ;;  %v3311_v1 = vunpack.c.l.b16 %v3203_v53  ;;  %v7126_v27 = vld [vmem:[#allocation2 + $0x44] sm:$0x1] }
 0x1c6   : > { %v3310_v17 = vunpack.c.l.b16 %v3200_v43  ;;  %v4303_v55 = vunpack.c.l.b16 %v3960_v57  ;;  %v5725_v7 = vrot.slane %v4534_v13, 9  ;;  %v4615_v12 = vrot.slane %v7096_v9, 5 }
 0x1c7   : > { %v2364_v38 = vpop.f32.mrf.mxu3  ;;  %v4614_v24 = vrot.slane %v4612_v33, 4  ;;  %v3988_v15 = vor.u32 %v3987_v48, %v7124_v51 }
 0x1c8   : > { %v2417_v46 = vadd.f32 %v2364_v38, %v2104_v23  ;;  %v3974_v23 = vrot.slane %v3972_v42, 4  ;;  %v3991_v42 = vshll.u32 %v7126_v27, 16  ;;  %v3339_v22 = vpack.c.b16 %v3311_v1, %v3310_v17  ;;  %v6056_v1 = vld [vmem:[#allocation2 + $0x44] sm:$0x1] }
 0x1c9   : > { %v1677_v38 = vadd.f32 %v7103_v20, %v6788_v50  ;;  %v4613_v43 = vsel %vm6636_vm14, %v5725_v7, %v4612_v33  ;;  %v4616_v9 = vsel %vm6636_vm14, %v4614_v24, %v4615_v12  ;;  %v3989_v57 = vrot.slane %v3988_v15, 4  ;;  %v3116_v50 = vld [vmem:[#allocation2 + $0x3c] sm:$0xe]  ;;  %v3863_v20 = vld [vmem:[#allocation2 + $0x48] sm:$0xf] }
 0x1ca   : > { %v1678_v16 = vpop.f32.mrf.mxu1  ;;  %v3978_v59 = vor.u32 %v3977_v49, %v3974_v23  ;;  %v3993_v0 = vrot.slane %v3991_v42, 5  ;;  %v4728_v13 = vunpack.c.l.b16 %v4613_v43  ;;  %v7139_v49 = vld [vmem:[#allocation2 + $0x4c] sm:$0xf]  ;;  %v4729_v33 = vunpack.c.l.b16 %v4616_v9  ;;  %v4535_v24 = vld [vmem:[#allocation2 + $0x3c] sm:$0xe] }
 0x1cb   : > { %v2053_v30 = vpop.f32.mrf.mxu2  ;;  %v3045_v45 = vpop.f32.mrf.mxu0  ;;  %v4619_v12 = vrot.slane %v7107_v21, 5  ;;  %v1679_v15 = vadd.f32 %v1678_v16, %v6805_v37  ;;  %v3996_v42 = vshrl.u32 %v3863_v20, 16  ;;  %v4009_v43 = vshrl.u32 %v7139_v49, 16 }
 0x1cc   : > { %v2105_v61 = vadd.f32 %v2053_v30, %v1674_v19  ;;  %v7128_v32 = vadd.f32 %v3045_v45, %v2417_v46  ;;  %v4333_v19 = vpack.c.b16 %v4304_v10, %v4303_v55  ;;  %v3979_v30 = vrot.slane %v3978_v59, 4 }
 0x1cd   : > { %v5551_v45 = vrot.slane %v3116_v50, 9  ;;  %v3209_v55 = vrot.slane %v6056_v1, 5  ;;  %v3994_v7 = vsel %vm6244_vm11, %v3989_v57, %v3993_v0  ;;  %v4758_v9 = vpack.c.b16 %v4729_v33, %v4728_v13  ;;  %v5858_v57 = vld [vmem:[#allocation2 + $0x3c] sm:$0xff]  ;;  %v7161_v13 = vld [vmem:[#allocation2 + $0x50] sm:$0x1] }
 0x1ce   : > { %4849 = vmatmul.bf16.gmra.mxu0 %v4757_v39  ;;  %v3984_v10 = vsel %vm6244_vm11, %v3979_v30, %v7124_v51  ;;  %v5726_v21 = vrot.slane %v4535_v24, 9  ;;  %v4306_v16 = vunpack.c.l.b16 %v3994_v7  ;;  %v4621_v0 = vrot.slane %v4619_v12, 4 }
 0x1cf   : > { %v2366_v52 = vpop.f32.mrf.mxu3  ;;  %v4305_v37 = vunpack.c.l.b16 %v3984_v10 }
 0x1d0   : > { %3748 = vmatmul.bf16.gmra.mxu2 %v5857_v26  ;;  %v2418_v47 = vadd.f32 %v2366_v52, %v2105_v61  ;;  %v6055_v26 = vld [vmem:[#allocation2 + $0x40] sm:$0xf]  ;;  %v3999_v52 = vshll.u32 %v3863_v20, 16  ;;  %v3998_v20 = vrot.slane %v3996_v42, 4  ;;  %v4620_v33 = vsel %vm6636_vm14, %v5726_v21, %v4619_v12 }
 0x1d1   : > { %v3206_v61 = vrot.slane %v6055_v26, 5 }
 0x1d2   : > { %v1681_v46 = vpop.f32.mrf.mxu1 }
 0x1d3   : > { %v2056_v39 = vpop.f32.mrf.mxu2  ;;  %v3047_v23 = vpop.f32.mrf.mxu0  ;;  %v3208_v17 = vrot.slane %v3206_v61, 4  ;;  %v1682_v10 = vadd.f32 %v1681_v46, %v6822_v18  ;;  %v6057_v18 = vld [vmem:[#allocation2 + $0x4c] sm:$0xf] }
 0x1d4   : > { %v2106_v53 = vadd.f32 %v2056_v39, %v1677_v38  ;;  %4429 = vmatmul.bf16.gmra.mxu3 %v4333_v19  ;;  %v7141_v48 = vadd.f32 %v3047_v23, %v2418_v47  ;;  %v3207_v19 = vsel %vm6636_vm14, %v5551_v45, %v3206_v61  ;;  %v4001_v61 = vrot.slane %v3999_v52, 5 }
 0x1d5   : > { %3439 = vmatmul.bf16.gmra.mxu1 %v3339_v22  ;;  %v4005_v22 = vshll.u32 %v7139_v49, 16  ;;  %v3210_v51 = vsel %vm6636_vm14, %v3208_v17, %v3209_v55  ;;  %v3312_v26 = vunpack.c.l.b16 %v3207_v19  ;;  %v4011_v17 = vrot.slane %v4009_v43, 4 }
 0x1d6   : > { %v3313_v50 = vunpack.c.l.b16 %v3210_v51  ;;  %v4002_v42 = vor.u32 %v4001_v61, %v3998_v20  ;;  %v3866_v51 = vld [vmem:[#allocation2 + $0x54] sm:$0xf]  ;;  %v4730_v43 = vunpack.c.l.b16 %v4620_v33  ;;  %v3213_v46 = vrot.slane %v6057_v18, 5 }
 0x1d7   : > { %v2369_v59 = vpop.f32.mrf.mxu3  ;;  %v7157_v45 = vrot.slane %v4005_v22, 5  ;;  %v4015_v22 = vshll.u32 %v7161_v13, 16  ;;  %v4023_v20 = vshll.u32 %v3866_v51, 16 }
 0x1d8   : > { %v2419_v47 = vadd.f32 %v2369_v59, %v2106_v53  ;;  %v4622_v53 = vrot.slane %v7126_v27, 5  ;;  %v4334_v27 = vpack.c.b16 %v4306_v16, %v4305_v37  ;;  %v3340_v24 = vpack.c.b16 %v3313_v50, %v3312_v26  ;;  %v3117_v37 = vld [vmem:[#allocation2 + $0x48] sm:$0xe] }
 0x1d9   : > { %v4012_v52 = vor.u32 %v4011_v17, %v7157_v45  ;;  %v4003_v21 = vrot.slane %v4002_v42, 4  ;;  %v4020_v50 = vshrl.u32 %v3866_v51, 16 }
 0x1da   : > { %v1683_v38 = vpop.f32.mrf.mxu1  ;;  %v4623_v7 = vsel %vm6636_vm14, %v4621_v0, %v4622_v53  ;;  %v5552_v0 = vrot.slane %v3117_v37, 9  ;;  %v6058_v53 = vld [vmem:[#allocation2 + $0x50] sm:$0x1] }
 0x1db   : > { %v2058_v39 = vpop.f32.mrf.mxu2  ;;  %v3050_v23 = vpop.f32.mrf.mxu0  ;;  %v3216_v26 = vrot.slane %v6058_v53, 5 }
 0x1dc   : > { %v2107_v30 = vadd.f32 %v2058_v39, %v1679_v15  ;;  %v7159_v1 = vadd.f32 %v3050_v23, %v2419_v47  ;;  %v7172_v39 = vld [vmem:[#allocation2 + $0x58] sm:$0xf]  ;;  %v3215_v23 = vrot.slane %v3213_v46, 4 }
 0x1dd   : > { %v4029_v61 = vshll.u32 %v7172_v39, 16  ;;  %v4033_v17 = vshrl.u32 %v7172_v39, 16 }
 0x1de   : > { %4854 = vmatmul.bf16.gmra.mxu0 %v4758_v9  ;;  %v4731_v9 = vunpack.c.l.b16 %v4623_v7 }
 0x1df   : > { %v2371_v55 = vpop.f32.mrf.mxu3 }
 0x1e0   : > { %3753 = vmatmul.bf16.gmra.mxu2 %v5858_v57  ;;  %v2420_v59 = vadd.f32 %v2371_v55, %v2107_v30  ;;  %v4013_v30 = vrot.slane %v4012_v52, 4  ;;  %v4017_v57 = vrot.slane %v4015_v22, 5  ;;  %v4759_v33 = vpack.c.b16 %v4731_v9, %v4730_v43 }
 0x1e1   : > { %v4008_v52 = vsel %vm6244_vm11, %v4003_v21, %v7157_v45  ;;  %v7189_v43 = vrot.slane %v4029_v61, 5  ;;  %v4035_v9 = vrot.slane %v4033_v17, 4 }
 0x1e2   : > { %v7168_v15 = vpop.f32.mrf.mxu1  ;;  %v4018_v22 = vsel %vm6244_vm11, %v4013_v30, %v4017_v57 }
 0x1e3   : > { %v2061_v47 = vpop.f32.mrf.mxu2  ;;  %v3052_v12 = vpop.f32.mrf.mxu0  ;;  %v4308_v45 = vunpack.c.l.b16 %v4018_v22 }
 0x1e4   : > { %v2108_v19 = vadd.f32 %v2061_v47, %v1682_v10  ;;  %4434 = vmatmul.bf16.gmra.mxu3 %v4334_v27  ;;  %v7174_v16 = vadd.f32 %v3052_v12, %v2420_v59  ;;  %v1684_v27 = vadd.f32 %v1683_v38, %v6837_v56  ;;  %v3217_v59 = vsel %vm6636_vm14, %v3215_v23, %v3216_v26  ;;  %v5859_v56 = vld [vmem:[#allocation2 + $0x48] sm:$0xff] }
 0x1e5   : > { %3444 = vmatmul.bf16.gmra.mxu1 %v3340_v24  ;;  %v3214_v24 = vsel %vm6636_vm14, %v5552_v0, %v3213_v46  ;;  %v4626_v47 = vrot.slane %v7139_v49, 5  ;;  %v4536_v38 = vld [vmem:[#allocation2 + $0x48] sm:$0xe]  ;;  %v4025_v12 = vrot.slane %v4023_v20, 5  ;;  %v3315_v37 = vunpack.c.l.b16 %v3217_v59  ;;  %v7191_v0 = vld [vmem:[#allocation2 + $0x5c] sm:$0x1] }
 0x1e6   : > { %v3314_v46 = vunpack.c.l.b16 %v3214_v24  ;;  %v4307_v23 = vunpack.c.l.b16 %v4008_v52  ;;  %v5727_v30 = vrot.slane %v4536_v38, 9  ;;  %v4629_v49 = vrot.slane %v7161_v13, 5 }
 0x1e7   : > { %v2374_v55 = vpop.f32.mrf.mxu3  ;;  %v4628_v57 = vrot.slane %v4626_v47, 4  ;;  %v4036_v26 = vor.u32 %v4035_v9, %v7189_v43 }
 0x1e8   : > { %v2421_v10 = vadd.f32 %v2374_v55, %v2108_v19  ;;  %v4022_v19 = vrot.slane %v4020_v50, 4  ;;  %v4039_v50 = vshll.u32 %v7191_v0, 16  ;;  %v3341_v61 = vpack.c.b16 %v3315_v37, %v3314_v46  ;;  %v6060_v37 = vld [vmem:[#allocation2 + $0x5c] sm:$0x1] }
 0x1e9   : > { %v1687_v55 = vadd.f32 %v7168_v15, %v6731_v54  ;;  %v4627_v24 = vsel %vm6636_vm14, %v5727_v30, %v4626_v47  ;;  %v4630_v13 = vsel %vm6636_vm14, %v4628_v57, %v4629_v49  ;;  %v4037_v52 = vrot.slane %v4036_v26, 4  ;;  %v3118_v54 = vld [vmem:[#allocation2 + $0x54] sm:$0xe]  ;;  %v3869_v15 = vld [vmem:[#allocation2 + $0x60] sm:$0xf] }
 0x1ea   : > { %v1688_v7 = vpop.f32.mrf.mxu1  ;;  %v4026_v53 = vor.u32 %v4025_v12, %v4022_v19  ;;  %v4041_v22 = vrot.slane %v4039_v50, 5  ;;  %v4732_v38 = vunpack.c.l.b16 %v4627_v24  ;;  %v7204_v12 = vld [vmem:[#allocation2 + $0x64] sm:$0xf]  ;;  %v4733_v47 = vunpack.c.l.b16 %v4630_v13  ;;  %v4537_v57 = vld [vmem:[#allocation2 + $0x54] sm:$0xe] }
 0x1eb   : > { %v2063_v42 = vpop.f32.mrf.mxu2  ;;  %v3055_v18 = vpop.f32.mrf.mxu0  ;;  %v4633_v49 = vrot.slane %v7172_v39, 5  ;;  %v1689_v26 = vadd.f32 %v1688_v7, %v6750_v31  ;;  %v4044_v50 = vshrl.u32 %v3869_v15, 16  ;;  %v4057_v24 = vshrl.u32 %v7204_v12, 16 }
 0x1ec   : > { %v2109_v51 = vadd.f32 %v2063_v42, %v1684_v27  ;;  %v7193_v21 = vadd.f32 %v3055_v18, %v2421_v10  ;;  %v4335_v27 = vpack.c.b16 %v4308_v45, %v4307_v23  ;;  %v4027_v42 = vrot.slane %v4026_v53, 4 }
 0x1ed   : > { %v5553_v18 = vrot.slane %v3118_v54, 9  ;;  %v3223_v23 = vrot.slane %v6060_v37, 5  ;;  %v4042_v30 = vsel %vm6244_vm11, %v4037_v52, %v4041_v22  ;;  %v4760_v13 = vpack.c.b16 %v4733_v47, %v4732_v38  ;;  %v5860_v52 = vld [vmem:[#allocation2 + $0x54] sm:$0xff] }
 0x1ee   : > { %4859 = vmatmul.bf16.gmra.mxu0 %v4759_v33  ;;  %v4032_v45 = vsel %vm6244_vm11, %v4027_v42, %v7189_v43  ;;  %v5728_v39 = vrot.slane %v4537_v57, 9  ;;  %v4310_v7 = vunpack.c.l.b16 %v4042_v30  ;;  %v4635_v22 = vrot.slane %v4633_v49, 4 }
 0x1ef   : > { %v2376_v20 = vpop.f32.mrf.mxu3  ;;  %v4309_v31 = vunpack.c.l.b16 %v4032_v45  ;;  %v4059_v37 = vrot.slane %v4057_v24, 4 }
 0x1f0   : > { %3758 = vmatmul.bf16.gmra.mxu2 %v5859_v56  ;;  %v2422_v17 = vadd.f32 %v2376_v20, %v2109_v51  ;;  %v6059_v56 = vld [vmem:[#allocation2 + $0x58] sm:$0xf]  ;;  %v4047_v20 = vshll.u32 %v3869_v15, 16  ;;  %v4046_v15 = vrot.slane %v4044_v50, 4  ;;  %v4634_v38 = vsel %vm6636_vm14, %v5728_v39, %v4633_v49 }
 0x1f1   : > { %v3220_v51 = vrot.slane %v6059_v56, 5  ;;  %v4336_v30 = vpack.c.b16 %v4310_v7, %v4309_v31  ;;  %v4734_v49 = vunpack.c.l.b16 %v4634_v38  ;;  %v3119_v31 = vld [vmem:[#allocation2 + $0x60] sm:$0xe] }
 0x1f2   : > { %v1691_v10 = vpop.f32.mrf.mxu1 }
 0x1f3   : > { %v2066_v33 = vpop.f32.mrf.mxu2  ;;  %v3057_v19 = vpop.f32.mrf.mxu0  ;;  %v3222_v46 = vrot.slane %v3220_v51, 4  ;;  %v1692_v45 = vadd.f32 %v1691_v10, %v6767_v63  ;;  %v6061_v63 = vld [vmem:[#allocation2 + $0x64] sm:$0xf] }
 0x1f4   : > { %v2110_v59 = vadd.f32 %v2066_v33, %v1687_v55  ;;  %4439 = vmatmul.bf16.gmra.mxu3 %v4335_v27  ;;  %v7206_v9 = vadd.f32 %v3057_v19, %v2422_v17  ;;  %v3221_v27 = vsel %vm6636_vm14, %v5553_v18, %v3220_v51  ;;  %v4049_v51 = vrot.slane %v4047_v20, 5 }
 0x1f5   : > { %3449 = vmatmul.bf16.gmra.mxu1 %v3341_v61  ;;  %v4053_v61 = vshll.u32 %v7204_v12, 16  ;;  %v3224_v43 = vsel %vm6636_vm14, %v3222_v46, %v3223_v23  ;;  %v3316_v56 = vunpack.c.l.b16 %v3221_v27  ;;  %v7224_v23 = vld [vmem:[#allocation2 + $0x68] sm:$0x1]  ;;  %v3227_v10 = vrot.slane %v6061_v63, 5 }
 0x1f6   : > { %v3317_v54 = vunpack.c.l.b16 %v3224_v43  ;;  %v4050_v50 = vor.u32 %v4049_v51, %v4046_v15  ;;  %v3872_v43 = vld [vmem:[#allocation2 + $0x6c] sm:$0xf] }
 0x1f7   : > { %v2379_v53 = vpop.f32.mrf.mxu3  ;;  %v4055_v18 = vrot.slane %v4053_v61, 5  ;;  %v4063_v61 = vshll.u32 %v7224_v23, 16  ;;  %v4071_v15 = vshll.u32 %v3872_v43, 16 }
 0x1f8   : > { %v2423_v17 = vadd.f32 %v2379_v53, %v2110_v59  ;;  %v4636_v59 = vrot.slane %v7191_v0, 5  ;;  %v3342_v57 = vpack.c.b16 %v3317_v54, %v3316_v56  ;;  %v4051_v39 = vrot.slane %v4050_v50, 4 }
 0x1f9   : > { %v4060_v20 = vor.u32 %v4059_v37, %v4055_v18  ;;  %v4068_v54 = vshrl.u32 %v3872_v43, 16 }
 0x1fa   : > { %v1693_v55 = vpop.f32.mrf.mxu1  ;;  %v4637_v0 = vsel %vm6636_vm14, %v4635_v22, %v4636_v59  ;;  %v5554_v22 = vrot.slane %v3119_v31, 9  ;;  %v6062_v59 = vld [vmem:[#allocation2 + $0x68] sm:$0x1] }
 0x1fb   : > { %v2068_v33 = vpop.f32.mrf.mxu2  ;;  %v3060_v19 = vpop.f32.mrf.mxu0  ;;  %v3230_v56 = vrot.slane %v6062_v59, 5 }
 0x1fc   : > { %v2111_v42 = vadd.f32 %v2068_v33, %v1689_v26  ;;  %v7222_v46 = vadd.f32 %v3060_v19, %v2423_v17  ;;  %v7234_v33 = vld [vmem:[#allocation2 + $0x70] sm:$0xf]  ;;  %v3229_v19 = vrot.slane %v3227_v10, 4 }
 0x1fd   : > { %v4077_v51 = vshll.u32 %v7234_v33, 16  ;;  %v4081_v37 = vshrl.u32 %v7234_v33, 16 }
 0x1fe   : > { %4864 = vmatmul.bf16.gmra.mxu0 %v4760_v13  ;;  %v4735_v13 = vunpack.c.l.b16 %v4637_v0  ;;  %v3228_v0 = vsel %vm6636_vm14, %v5554_v22, %v3227_v10  ;;  %v4640_v10 = vrot.slane %v7204_v12, 5  ;;  %v4643_v12 = vrot.slane %v7224_v23, 5  ;;  %v6063_v23 = vld [vmem:[#allocation2 + $0x70] sm:$0xf] }
 0x1ff   : > { %v2381_v47 = vpop.f32.mrf.mxu3  ;;  %v3318_v31 = vunpack.c.l.b16 %v3228_v0 }
 0x200   : > { %3763 = vmatmul.bf16.gmra.mxu2 %v5860_v52  ;;  %v2424_v53 = vadd.f32 %v2381_v47, %v2111_v42  ;;  %v4061_v42 = vrot.slane %v4060_v20, 4  ;;  %v4065_v52 = vrot.slane %v4063_v61, 5  ;;  %v4056_v20 = vsel %vm6244_vm11, %v4051_v39, %v4055_v18  ;;  %v4538_v18 = vld [vmem:[#allocation2 + $0x60] sm:$0xe] }
 0x202   : > { %v7231_v26 = vpop.f32.mrf.mxu1  ;;  %v4066_v61 = vsel %vm6244_vm11, %v4061_v42, %v4065_v52 }
 0x203   : > { %v2071_v17 = vpop.f32.mrf.mxu2  ;;  %v3062_v24 = vpop.f32.mrf.mxu0 }
 0x204   : > { %v2112_v27 = vadd.f32 %v2071_v17, %v1692_v45  ;;  %4444 = vmatmul.bf16.gmra.mxu3 %v4336_v30  ;;  %v7236_v7 = vadd.f32 %v3062_v24, %v2424_v53  ;;  %v1694_v45 = vadd.f32 %v1693_v55, %v6783_v40  ;;  %v4761_v53 = vpack.c.b16 %v4735_v13, %v4734_v49  ;;  %v7252_v49 = vld [vmem:[#allocation2 + $0x74] sm:$0x1] }
 0x205   : > { %3454 = vmatmul.bf16.gmra.mxu1 %v3342_v57  ;;  %v3231_v57 = vsel %vm6636_vm14, %v3229_v19, %v3230_v56  ;;  %v4070_v17 = vrot.slane %v4068_v54, 4  ;;  %v4073_v24 = vrot.slane %v4071_v15, 5  ;;  %v7249_v40 = vrot.slane %v4077_v51, 5 }
 0x206   : > { %v4083_v55 = vrot.slane %v4081_v37, 4  ;;  %v3319_v22 = vunpack.c.l.b16 %v3231_v57  ;;  %v4311_v13 = vunpack.c.l.b16 %v4056_v20  ;;  %v4312_v19 = vunpack.c.l.b16 %v4066_v61 }
 0x207   : > { %v2384_v38 = vpop.f32.mrf.mxu3  ;;  %v4074_v42 = vor.u32 %v4073_v24, %v4070_v17  ;;  %v4087_v59 = vshll.u32 %v7252_v49, 16  ;;  %v5729_v54 = vrot.slane %v4538_v18, 9  ;;  %v4642_v15 = vrot.slane %v4640_v10, 4  ;;  %v3120_v24 = vld [vmem:[#allocation2 + $0x6c] sm:$0xe] }
 0x208   : > { %v2425_v47 = vadd.f32 %v2384_v38, %v2112_v27  ;;  %v5861_v27 = vld [vmem:[#allocation2 + $0x60] sm:$0xff]  ;;  %v4084_v52 = vor.u32 %v4083_v55, %v7249_v40  ;;  %v3343_v51 = vpack.c.b16 %v3319_v22, %v3318_v31  ;;  %v1697_v38 = vadd.f32 %v7231_v26, %v6797_v14  ;;  %v3875_v14 = vld [vmem:[#allocation2 + $0x78] sm:$0xf]  ;;  %v7265_v26 = vld [vmem:[#allocation2 + $0x7c] sm:$0xf] }
 0x209   : > { %v4089_v20 = vrot.slane %v4087_v59, 5  ;;  %v4641_v17 = vsel %vm6636_vm14, %v5729_v54, %v4640_v10  ;;  %v6064_v22 = vld [vmem:[#allocation2 + $0x74] sm:$0x1]  ;;  %v7621_v59 = vld [vmem:[#allocation3_spill] sm:$0xff]  ;;  %v4092_v54 = vshrl.u32 %v3875_v14, 16 }
 0x20a   : > { %v1698_v30 = vpop.f32.mrf.mxu1 }
 0x20b   : > { %v2073_v50 = vpop.f32.mrf.mxu2  ;;  %v3065_v63 = vpop.f32.mrf.mxu0 }
 0x20c   : > { %v2113_v43 = vadd.f32 %v2073_v50, %v1694_v45  ;;  %v7254_v39 = vadd.f32 %v3065_v63, %v2425_v47  ;;  %v4337_v45 = vpack.c.b16 %v4312_v19, %v4311_v13  ;;  %v4085_v50 = vrot.slane %v4084_v52, 4 }
 0x20d   : > { %v5555_v63 = vrot.slane %v3120_v24, 9  ;;  %v3237_v13 = vrot.slane %v6064_v22, 5  ;;  %v4736_v19 = vunpack.c.l.b16 %v4641_v17 }
 0x20e   : > { %4869 = vmatmul.bf16.gmra.mxu0 %v4761_v53  ;;  %v4075_v53 = vrot.slane %v4074_v42, 4  ;;  %v4090_v42 = vsel %vm6244_vm11, %v4085_v50, %v4089_v20  ;;  %v5862_v20 = vld [vmem:[#allocation2 + $0x6c] sm:$0xff] }
 0x20f   : > { %v2386_v56 = vpop.f32.mrf.mxu3 }
 0x210   : > { %3768 = vmatmul.bf16.gmra.mxu2 %v5861_v27  ;;  %v2426_v37 = vadd.f32 %v2386_v56, %v2113_v43  ;;  %v4644_v27 = vsel %vm6636_vm14, %v4642_v15, %v4643_v12  ;;  %v3234_v43 = vrot.slane %v6063_v23, 5  ;;  %v4080_v10 = vsel %vm6244_vm11, %v4075_v53, %v7249_v40 }
 0x211   : > { %v4737_v18 = vunpack.c.l.b16 %v4644_v27  ;;  %v1699_v56 = vadd.f32 %v1698_v30, %v7621_v59  ;;  %v4095_v15 = vshll.u32 %v3875_v14, 16  ;;  %v4101_v12 = vshll.u32 %v7265_v26, 16 }
 0x212   : > { %v1701_v47 = vpop.f32.mrf.mxu1  ;;  %v3236_v31 = vrot.slane %v3234_v43, 4  ;;  %v4105_v40 = vshrl.u32 %v7265_v26, 16  ;;  %v4313_v30 = vunpack.c.l.b16 %v4080_v10  ;;  %v4314_v27 = vunpack.c.l.b16 %v4090_v42 }
 0x213   : > { %v2076_v0 = vpop.f32.mrf.mxu2  ;;  %v3067_v61 = vpop.f32.mrf.mxu0  ;;  %v4762_v53 = vpack.c.b16 %v4737_v18, %v4736_v19  ;;  %v4094_v14 = vrot.slane %v4092_v54, 4  ;;  %v4097_v22 = vrot.slane %v4095_v15, 5  ;;  %v7288_v19 = vld [vmem:[#allocation2 + $0x80] sm:$0x1]  ;;  %v4650_v42 = vrot.slane %v7252_v49, 5 }
 0x214   : > { %v2114_v57 = vadd.f32 %v2076_v0, %v1697_v38  ;;  %4449 = vmatmul.bf16.gmra.mxu3 %v4337_v45  ;;  %v7267_v55 = vadd.f32 %v3067_v61, %v2426_v37  ;;  %v3235_v38 = vsel %vm6636_vm14, %v5555_v63, %v3234_v43  ;;  %v3238_v45 = vsel %vm6636_vm14, %v3236_v31, %v3237_v13 }
 0x215   : > { %3459 = vmatmul.bf16.gmra.mxu1 %v3343_v51  ;;  %v4647_v61 = vrot.slane %v7234_v33, 5  ;;  %v3320_v23 = vunpack.c.l.b16 %v3235_v38  ;;  %v3321_v24 = vunpack.c.l.b16 %v3238_v45  ;;  %v7284_v43 = vrot.slane %v4101_v12, 5 }
 0x216   : > { %7620 = vst [vmem:[#allocation10_spill] sm:$0xff] %v7267_v55  ;;  %v4107_v63 = vrot.slane %v4105_v40, 4  ;;  %v4338_v10 = vpack.c.b16 %v4314_v27, %v4313_v30  ;;  %v4098_v12 = vor.u32 %v4097_v22, %v4094_v14  ;;  %v4111_v45 = vshll.u32 %v7288_v19, 16  ;;  %v3121_v27 = vld [vmem:[#allocation2 + $0x78] sm:$0xe] }
 0x217   : > { %v2389_v52 = vpop.f32.mrf.mxu3  ;;  %v4649_v33 = vrot.slane %v4647_v61, 4  ;;  %v5556_v14 = vrot.slane %v3121_v27, 9  ;;  %v4540_v27 = vld [vmem:[#allocation2 + $0x78] sm:$0xe]  ;;  %v7320_v55 = vld [vmem:[#allocation2 + $0x8c] sm:$0x1] }
 0x218   : > { %v2427_v51 = vadd.f32 %v2389_v52, %v2114_v57  ;;  %v4539_v57 = vld [vmem:[#allocation2 + $0x6c] sm:$0xe]  ;;  %v3344_v52 = vpack.c.b16 %v3321_v24, %v3320_v23  ;;  %v4099_v30 = vrot.slane %v4098_v12, 4  ;;  %v4113_v24 = vrot.slane %v4111_v45, 5 }
 0x219   : > { %v5730_v13 = vrot.slane %v4539_v57, 9  ;;  %v4651_v49 = vsel %vm6636_vm14, %v4649_v33, %v4650_v42  ;;  %v7300_v57 = vld [vmem:[#allocation2 + $0x88] sm:$0xf] }
 0x21a   : > { %v7276_v37 = vpop.f32.mrf.mxu1  ;;  %v7625_v12 = vld [vmem:[#allocation5_spill] sm:$0xff] }
 0x21b   : > { %v2078_v0 = vpop.f32.mrf.mxu2  ;;  %v3070_v17 = vpop.f32.mrf.mxu0 }
 0x21c   : > { %v2115_v50 = vadd.f32 %v2078_v0, %v1699_v56  ;;  %v7286_v31 = vadd.f32 %v3070_v17, %v2427_v51  ;;  %v7623_v56 = vld [vmem:[#allocation4_spill] sm:$0xff]  ;;  %v4108_v51 = vor.u32 %v4107_v63, %v7284_v43 }
 0x21d   : > { %v1702_v54 = vadd.f32 %v1701_v47, %v7623_v56  ;;  %v3878_v47 = vld [vmem:[#allocation2 + $0x84] sm:$0xf]  ;;  %v6066_v63 = vld [vmem:[#allocation2 + $0x80] sm:$0x1]  ;;  %v4125_v56 = vshll.u32 %v7300_v57, 16 }
 0x21e   : > { %7622 = vst [vmem:[#allocation3_spill] sm:$0xff] %v7286_v31  ;;  %4874 = vmatmul.bf16.gmra.mxu0 %v4762_v53  ;;  %v4648_v53 = vsel %vm6636_vm14, %v5730_v13, %v4647_v61  ;;  %v4109_v17 = vrot.slane %v4108_v51, 4  ;;  %v3244_v61 = vrot.slane %v6066_v63, 5  ;;  %v4116_v33 = vshrl.u32 %v3878_v47, 16 }
 0x21f   : > { %v2391_v18 = vpop.f32.mrf.mxu3  ;;  %v4738_v13 = vunpack.c.l.b16 %v4648_v53  ;;  %v4119_v42 = vshll.u32 %v3878_v47, 16  ;;  %v1704_v51 = vadd.f32 %v7276_v37, %v7625_v12  ;;  %v4104_v53 = vsel %vm6244_vm11, %v4099_v30, %v7284_v43  ;;  %v5863_v47 = vld [vmem:[#allocation2 + $0x78] sm:$0xff] }
 0x220   : > { %3773 = vmatmul.bf16.gmra.mxu2 %v5862_v20  ;;  %v2428_v59 = vadd.f32 %v2391_v18, %v2115_v50  ;;  %v6065_v50 = vld [vmem:[#allocation2 + $0x7c] sm:$0xf]  ;;  %v4739_v18 = vunpack.c.l.b16 %v4651_v49  ;;  %v4114_v49 = vsel %vm6244_vm11, %v4109_v17, %v4113_v24  ;;  %v4118_v63 = vrot.slane %v4116_v33, 4 }
 0x221   : > { %v3241_v20 = vrot.slane %v6065_v50, 5  ;;  %v4316_v31 = vunpack.c.l.b16 %v4114_v49  ;;  %v5731_v30 = vrot.slane %v4540_v27, 9 }
 0x222   : > { %v7292_v15 = vpop.f32.mrf.mxu1  ;;  %v4763_v50 = vpack.c.b16 %v4739_v18, %v4738_v13 }
 0x223   : > { %v2081_v38 = vpop.f32.mrf.mxu2  ;;  %v3072_v0 = vpop.f32.mrf.mxu0  ;;  %v3243_v22 = vrot.slane %v3241_v20, 4 }
 0x224   : > { %v2116_v40 = vadd.f32 %v2081_v38, %v1702_v54  ;;  %4454 = vmatmul.bf16.gmra.mxu3 %v4338_v10  ;;  %v7302_v23 = vadd.f32 %v3072_v0, %v2428_v59  ;;  %v4129_v10 = vshrl.u32 %v7300_v57, 16  ;;  %v3242_v38 = vsel %vm6636_vm14, %v5556_v14, %v3241_v20 }
 0x225   : > { %3464 = vmatmul.bf16.gmra.mxu1 %v3344_v52  ;;  %v3245_v45 = vsel %vm6636_vm14, %v3243_v22, %v3244_v61  ;;  %v3322_v14 = vunpack.c.l.b16 %v3242_v38  ;;  %v4127_v22 = vrot.slane %v4125_v56, 5 }
 0x226   : > { %7624 = vst [vmem:[#allocation4_spill] sm:$0xff] %v7302_v23  ;;  %v3323_v12 = vunpack.c.l.b16 %v3245_v45  ;;  %v4131_v61 = vrot.slane %v4129_v10, 4  ;;  %v4315_v23 = vunpack.c.l.b16 %v4104_v53 }
 0x227   : > { %v2394_v52 = vpop.f32.mrf.mxu3 }
 0x228   : > { %v2429_v54 = vadd.f32 %v2394_v52, %v2116_v40  ;;  %v4654_v40 = vrot.slane %v7265_v26, 5  ;;  %v4121_v52 = vrot.slane %v4119_v42, 5  ;;  %v4657_v26 = vrot.slane %v7288_v19, 5  ;;  %v3881_v19 = vld [vmem:[#allocation2 + $0x90] sm:$0xf] }
 0x229   : > { %v3345_v13 = vpack.c.b16 %v3323_v12, %v3322_v14  ;;  %v4132_v33 = vor.u32 %v4131_v61, %v4127_v22  ;;  %v4135_v42 = vshll.u32 %v7320_v55, 16  ;;  %v4339_v10 = vpack.c.b16 %v4316_v31, %v4315_v23  ;;  %v3122_v23 = vld [vmem:[#allocation2 + $0x84] sm:$0xe]  ;;  %v6068_v14 = vld [vmem:[#allocation2 + $0x8c] sm:$0x1] }
 0x22a   : > { %v7308_v59 = vpop.f32.mrf.mxu1  ;;  %v4656_v17 = vrot.slane %v4654_v40, 4  ;;  %v4122_v18 = vor.u32 %v4121_v52, %v4118_v63  ;;  %v4140_v63 = vshrl.u32 %v3881_v19, 16  ;;  %v3251_v12 = vrot.slane %v6068_v14, 5  ;;  %v7334_v61 = vld [vmem:[#allocation2 + $0x94] sm:$0xf] }
 0x22b   : > { %v2083_v0 = vpop.f32.mrf.mxu2  ;;  %v3075_v20 = vpop.f32.mrf.mxu0  ;;  %v4133_v49 = vrot.slane %v4132_v33, 4  ;;  %v4661_v33 = vrot.slane %v7300_v57, 5  ;;  %v3506_v57 = vadd.f32 %v7308_v59, %v6883_v6 }
 0x22c   : > { %v2117_v37 = vadd.f32 %v2083_v0, %v1704_v51  ;;  %v7322_v43 = vadd.f32 %v3075_v20, %v2429_v54  ;;  %v4655_v54 = vsel %vm6636_vm14, %v5731_v30, %v4654_v40  ;;  %v4658_v38 = vsel %vm6636_vm14, %v4656_v17, %v4657_v26 }
 0x22d   : > { %v4123_v53 = vrot.slane %v4122_v18, 4  ;;  %v4741_v31 = vunpack.c.l.b16 %v4658_v38  ;;  %v5557_v40 = vrot.slane %v3122_v23, 9  ;;  %v4143_v30 = vshll.u32 %v3881_v19, 16  ;;  %v4541_v18 = vld [vmem:[#allocation2 + $0x84] sm:$0xe] }
 0x22e   : > { %4879 = vmatmul.bf16.gmra.mxu0 %v4763_v50  ;;  %v4137_v50 = vrot.slane %v4135_v42, 5  ;;  %v3505_v17 = vadd.f32 %v7292_v15, %v6860_v8  ;;  %v4149_v8 = vshll.u32 %v7334_v61, 16  ;;  %v4153_v15 = vshrl.u32 %v7334_v61, 16 }
 0x22f   : > { %v2396_v24 = vpop.f32.mrf.mxu3  ;;  %v4142_v38 = vrot.slane %v4140_v63, 4  ;;  %v4145_v19 = vrot.slane %v4143_v30, 5  ;;  %v4663_v23 = vrot.slane %v4661_v33, 4 }
 0x230   : > { %3778 = vmatmul.bf16.gmra.mxu2 %v5863_v47  ;;  %v2430_v56 = vadd.f32 %v2396_v24, %v2117_v37  ;;  %v6067_v47 = vld [vmem:[#allocation2 + $0x88] sm:$0xf]  ;;  %v4740_v37 = vunpack.c.l.b16 %v4655_v54  ;;  %v4128_v24 = vsel %vm6244_vm11, %v4123_v53, %v4127_v22 }
 0x231   : > { %v3248_v27 = vrot.slane %v6067_v47, 5  ;;  %v5864_v53 = vld [vmem:[#allocation2 + $0x84] sm:$0xff] }
 0x232   : > { %v7326_v51 = vpop.f32.mrf.mxu1  ;;  %v4764_v54 = vpack.c.b16 %v4741_v31, %v4740_v37  ;;  %v4155_v37 = vrot.slane %v4153_v15, 4  ;;  %v7356_v31 = vld [vmem:[#allocation2 + $0x98] sm:$0x1] }
 0x233   : > { %v3739_v45 = vpop.f32.mrf.mxu2  ;;  %v3077_v0 = vpop.f32.mrf.mxu0  ;;  %v3250_v20 = vrot.slane %v3248_v27, 4 }
 0x234   : > { %4459 = vmatmul.bf16.gmra.mxu3 %v4339_v10  ;;  %v7332_v52 = vadd.f32 %v3077_v0, %v2430_v56  ;;  %v3249_v56 = vsel %vm6636_vm14, %v5557_v40, %v3248_v27  ;;  %v3819_v0 = vadd.f32 %v3739_v45, %v3505_v17  ;;  %v4146_v45 = vor.u32 %v4145_v19, %v4142_v38  ;;  %v6069_v19 = vld [vmem:[#allocation2 + $0x94] sm:$0xf] }
 0x235   : > { %3469 = vmatmul.bf16.gmra.mxu1 %v3345_v13  ;;  %v4138_v13 = vsel %vm6244_vm11, %v4133_v49, %v4137_v50  ;;  %v3252_v10 = vsel %vm6636_vm14, %v3250_v20, %v3251_v12  ;;  %v4317_v49 = vunpack.c.l.b16 %v4128_v24  ;;  %v5732_v50 = vrot.slane %v4541_v18, 9 }
 0x236   : > { %7626 = vst [vmem:[#allocation5_spill] sm:$0xff] %v7332_v52  ;;  %v4318_v27 = vunpack.c.l.b16 %v4138_v13  ;;  %v3324_v40 = vunpack.c.l.b16 %v3249_v56  ;;  %v3325_v20 = vunpack.c.l.b16 %v3252_v10  ;;  %v4664_v12 = vrot.slane %v7320_v55, 5  ;;  %v3884_v10 = vld [vmem:[#allocation2 + $0x9c] sm:$0xf] }
 0x237   : > { %v4420_v26 = vpop.f32.mrf.mxu3  ;;  %v7354_v52 = vrot.slane %v4149_v8, 5  ;;  %v4662_v30 = vsel %vm6636_vm14, %v5732_v50, %v4661_v33  ;;  %v4159_v56 = vshll.u32 %v7356_v31, 16 }
 0x238   : > { %v4500_v63 = vadd.f32 %v4420_v26, %v3819_v0  ;;  %v4340_v59 = vpack.c.b16 %v4318_v27, %v4317_v49  ;;  %v3346_v17 = vpack.c.b16 %v3325_v20, %v3324_v40  ;;  %v4665_v13 = vsel %vm6636_vm14, %v4663_v23, %v4664_v12  ;;  %v3123_v40 = vld [vmem:[#allocation2 + $0x90] sm:$0xe]  ;;  %v7368_v20 = vld [vmem:[#allocation2 + $0xa0] sm:$0xf] }
 0x239   : > { %v4156_v18 = vor.u32 %v4155_v37, %v7354_v52  ;;  %v4147_v26 = vrot.slane %v4146_v45, 4  ;;  %v4742_v33 = vunpack.c.l.b16 %v4662_v30  ;;  %v4743_v38 = vunpack.c.l.b16 %v4665_v13  ;;  %v4542_v30 = vld [vmem:[#allocation2 + $0x90] sm:$0xe] }
 0x23a   : > { %v7343_v42 = vpop.f32.mrf.mxu1  ;;  %v3255_v0 = vrot.slane %v6069_v19, 5  ;;  %v4161_v23 = vrot.slane %v4159_v56, 5  ;;  %v4173_v13 = vshll.u32 %v7368_v20, 16 }
 0x23b   : > { %v3741_v22 = vpop.f32.mrf.mxu2  ;;  %v4845_v47 = vpop.f32.mrf.mxu0  ;;  %v4157_v27 = vrot.slane %v4156_v18, 4  ;;  %v4177_v18 = vshrl.u32 %v7368_v20, 16  ;;  %v4765_v19 = vpack.c.b16 %v4743_v38, %v4742_v33  ;;  %v4671_v33 = vrot.slane %v7356_v31, 5 }
 0x23c   : > { %v3820_v14 = vadd.f32 %v3741_v22, %v3506_v57  ;;  %v4925_v15 = vadd.f32 %v4845_v47, %v4500_v63  ;;  %v4164_v57 = vshrl.u32 %v3884_v10, 16  ;;  %v3257_v47 = vrot.slane %v3255_v0, 4 }
 0x23e   : > { %4884 = vmatmul.bf16.gmra.mxu0 %v4764_v54  ;;  %v3507_v54 = vadd.f32 %v7326_v51, %v6888_v35  ;;  %v4152_v35 = vsel %vm6244_vm11, %v4147_v26, %v7354_v52  ;;  %v5558_v51 = vrot.slane %v3123_v40, 9  ;;  %v5059_v37 = vmul.f32 %v4925_v15, %v4925_v15 }
 0x23f   : > { %v4422_v6 = vpop.f32.mrf.mxu3 }
 0x240   : > { %3783 = vmatmul.bf16.gmra.mxu2 %v5864_v53  ;;  %v4501_v24 = vadd.f32 %v4422_v6, %v3820_v14  ;;  %v4167_v53 = vshll.u32 %v3884_v10, 16  ;;  %v6070_v14 = vld [vmem:[#allocation2 + $0x98] sm:$0x1] }
 0x241   : > { %v3258_v12 = vrot.slane %v6070_v14, 5 }
 0x242   : > { %v7362_v55 = vpop.f32.mrf.mxu1 }
 0x243   : > { %v3744_v8 = vpop.f32.mrf.mxu2  ;;  %v4847_v22 = vpop.f32.mrf.mxu0  ;;  %v3259_v26 = vsel %vm6636_vm14, %v3257_v47, %v3258_v12 }
 0x244   : > { %v4926_v49 = vadd.f32 %v4847_v22, %v4501_v24  ;;  %4464 = vmatmul.bf16.gmra.mxu3 %v4340_v59  ;;  %v3821_v50 = vadd.f32 %v3744_v8, %v3507_v54  ;;  %v4169_v24 = vrot.slane %v4167_v53, 5  ;;  %v3256_v8 = vsel %vm6636_vm14, %v5558_v51, %v3255_v0  ;;  %v5865_v53 = vld [vmem:[#allocation2 + $0x90] sm:$0xff] }
 0x245   : > { %3474 = vmatmul.bf16.gmra.mxu1 %v3346_v17  ;;  %v4166_v17 = vrot.slane %v4164_v57, 4  ;;  %v4162_v54 = vsel %vm6244_vm11, %v4157_v27, %v4161_v23  ;;  %v4668_v22 = vrot.slane %v7334_v61, 5  ;;  %v3508_v57 = vadd.f32 %v7343_v42, %v6902_v62 }
 0x246   : > { %v5898_v45 = vpack.c.bf16 %v4926_v49, %v4925_v15  ;;  %v5021_v63 = vadd.f32 %v4926_v49, %v4925_v15  ;;  %v5060_v6 = vmul.f32 %v4926_v49, %v4926_v49  ;;  %v4319_v49 = vunpack.c.l.b16 %v4152_v35 }
 0x247   : > { %v4425_v59 = vpop.f32.mrf.mxu3  ;;  %v3326_v14 = vunpack.c.l.b16 %v3256_v8  ;;  %v7394_v0 = vrot.slane %v4173_v13, 5  ;;  %v4179_v51 = vrot.slane %v4177_v18, 4  ;;  %v4170_v27 = vor.u32 %v4169_v24, %v4166_v17  ;;  %v7627_v8 = vld [vmem:[#allocation6_spill] sm:$0xff] }
 0x248   : > { %5899 = vst [vmem:[%s7375_s8] sm:$0xff] %v5898_v45   ;;  %v5091_v56 = vadd.f32 %v5060_v6, %v5059_v37  ;;  %v4502_v10 = vadd.f32 %v4425_v59, %v3821_v50  ;;  %v5733_v50 = vrot.slane %v4542_v30, 9  ;;  %v3327_v37 = vunpack.c.l.b16 %v3259_v26  ;;  %v7396_v6 = vld [vmem:[#allocation2 + $0xa4] sm:$0x1] }
 0x249   : > { %v4320_v45 = vunpack.c.l.b16 %v4162_v54  ;;  %v4670_v61 = vrot.slane %v4668_v22, 4  ;;  %v4180_v59 = vor.u32 %v4179_v51, %v7394_v0  ;;  %v4183_v30 = vshll.u32 %v7396_v6, 16  ;;  %v7412_v51 = vld [vmem:[#allocation2 + $0xac] sm:$0xf] }
 0x24a   : > { %v7383_v52 = vpop.f32.mrf.mxu1  ;;  %v4669_v23 = vsel %vm6636_vm14, %v5733_v50, %v4668_v22  ;;  %v3347_v35 = vpack.c.b16 %v3327_v37, %v3326_v14  ;;  %v4171_v24 = vrot.slane %v4170_v27, 4  ;;  %v3509_v26 = vadd.f32 %v7362_v55, %v7627_v8  ;;  %v3124_v37 = vld [vmem:[#allocation2 + $0x9c] sm:$0xe] }
 0x24b   : > { %v3746_v15 = vpop.f32.mrf.mxu2  ;;  %v4850_v40 = vpop.f32.mrf.mxu0  ;;  %v4672_v31 = vsel %vm6636_vm14, %v4670_v61, %v4671_v33  ;;  %v4744_v22 = vunpack.c.l.b16 %v4669_v23  ;;  %v5559_v55 = vrot.slane %v3124_v37, 9 }
 0x24c   : > { %v4927_v47 = vadd.f32 %v4850_v40, %v4502_v10  ;;  %v3822_v12 = vadd.f32 %v3746_v15, %v3508_v57  ;;  %v4341_v10 = vpack.c.b16 %v4320_v45, %v4319_v49  ;;  %v3887_v15 = vld [vmem:[#allocation2 + $0xa8] sm:$0xf]  ;;  %v4185_v57 = vrot.slane %v4183_v30, 5  ;;  %v6072_v45 = vld [vmem:[#allocation2 + $0xa4] sm:$0x1] }
 0x24d   : > { %v4745_v49 = vunpack.c.l.b16 %v4672_v31  ;;  %v4176_v14 = vsel %vm6244_vm11, %v4171_v24, %v7394_v0  ;;  %v3265_v27 = vrot.slane %v6072_v45, 5  ;;  %v4188_v61 = vshrl.u32 %v3887_v15, 16  ;;  %v4543_v30 = vld [vmem:[#allocation2 + $0x9c] sm:$0xe] }
 0x24e   : > { %4889 = vmatmul.bf16.gmra.mxu0 %v4765_v19  ;;  %v5022_v62 = vadd.f32 %v5021_v63, %v4927_v47  ;;  %v5061_v42 = vmul.f32 %v4927_v47, %v4927_v47  ;;  %v4181_v19 = vrot.slane %v4180_v59, 4  ;;  %v4191_v23 = vshll.u32 %v3887_v15, 16 }
 0x24f   : > { %v4427_v38 = vpop.f32.mrf.mxu3  ;;  %v4675_v0 = vrot.slane %v7368_v20, 5  ;;  %v4766_v8 = vpack.c.b16 %v4745_v49, %v4744_v22  ;;  %v4678_v22 = vrot.slane %v7396_v6, 5  ;;  %v7431_v49 = vld [vmem:[#allocation2 + $0xb0] sm:$0x1] }
 0x250   : > { %3788 = vmatmul.bf16.gmra.mxu2 %v5865_v53  ;;  %v5092_v13 = vadd.f32 %v5091_v56, %v5061_v42  ;;  %v4503_v18 = vadd.f32 %v4427_v38, %v3822_v12  ;;  %v6071_v53 = vld [vmem:[#allocation2 + $0xa0] sm:$0xf]  ;;  %v4186_v59 = vsel %vm6244_vm11, %v4181_v19, %v4185_v57 }
 0x251   : > { %v3262_v56 = vrot.slane %v6071_v53, 5  ;;  %v5866_v19 = vld [vmem:[#allocation2 + $0x9c] sm:$0xff]  ;;  %v4322_v57 = vunpack.c.l.b16 %v4186_v59  ;;  %v5734_v53 = vrot.slane %v4543_v30, 9 }
 0x252   : > { %v7403_v17 = vpop.f32.mrf.mxu1 }
 0x253   : > { %v3749_v63 = vpop.f32.mrf.mxu2  ;;  %v4852_v54 = vpop.f32.mrf.mxu0  ;;  %v3264_v12 = vrot.slane %v3262_v56, 4 }
 0x254   : > { %v4928_v50 = vadd.f32 %v4852_v54, %v4503_v18  ;;  %4469 = vmatmul.bf16.gmra.mxu3 %v4341_v10  ;;  %v3823_v40 = vadd.f32 %v3749_v63, %v3509_v26  ;;  %v4197_v18 = vshll.u32 %v7412_v51, 16  ;;  %v4201_v10 = vshrl.u32 %v7412_v51, 16  ;;  %v7628_v26 = vld [vmem:[#allocation7_spill] sm:$0xff] }
 0x255   : > { %3479 = vmatmul.bf16.gmra.mxu1 %v3347_v35  ;;  %v3510_v15 = vadd.f32 %v7383_v52, %v7628_v26  ;;  %v4321_v54 = vunpack.c.l.b16 %v4176_v14 }
 0x256   : > { %v5903_v33 = vpack.c.bf16 %v4928_v50, %v4927_v47  ;;  %v5023_v42 = vadd.f32 %v5022_v62, %v4928_v50  ;;  %v5062_v38 = vmul.f32 %v4928_v50, %v4928_v50  ;;  %v3263_v47 = vsel %vm6636_vm14, %v5559_v55, %v3262_v56 }
 0x257   : > { %v4430_v35 = vpop.f32.mrf.mxu3  ;;  %v3266_v62 = vsel %vm6636_vm14, %v3264_v12, %v3265_v27  ;;  %v4190_v50 = vrot.slane %v4188_v61, 4  ;;  %v3328_v37 = vunpack.c.l.b16 %v3263_v47  ;;  %v4203_v56 = vrot.slane %v4201_v10, 4 }
 0x258   : > { %5975 = vst [vmem:[%s7375_s8 + $0x8] sm:$0xff] %v5903_v33   ;;  %v5093_v24 = vadd.f32 %v5092_v13, %v5062_v38  ;;  %v4504_v31 = vadd.f32 %v4430_v35, %v3823_v40  ;;  %v4193_v13 = vrot.slane %v4191_v23, 5  ;;  %v3329_v45 = vunpack.c.l.b16 %v3266_v62  ;;  %v7629_v62 = vld [vmem:[#allocation8_spill] sm:$0xff] }
 0x259   : > { %v7428_v33 = vrot.slane %v4197_v18, 5  ;;  %v4677_v12 = vrot.slane %v4675_v0, 4  ;;  %v4342_v27 = vpack.c.b16 %v4322_v57, %v4321_v54  ;;  %v4676_v23 = vsel %vm6636_vm14, %v5734_v53, %v4675_v0 }
 0x25a   : > { %v7420_v63 = vpop.f32.mrf.mxu1  ;;  %v3348_v35 = vpack.c.b16 %v3329_v45, %v3328_v37  ;;  %v4194_v59 = vor.u32 %v4193_v13, %v4190_v50  ;;  %v4746_v26 = vunpack.c.l.b16 %v4676_v23  ;;  %v3125_v37 = vld [vmem:[#allocation2 + $0xa8] sm:$0xe]  ;;  %v7444_v45 = vld [vmem:[#allocation2 + $0xb8] sm:$0xf] }
 0x25b   : > { %v3751_v20 = vpop.f32.mrf.mxu2  ;;  %v4855_v40 = vpop.f32.mrf.mxu0  ;;  %v4204_v30 = vor.u32 %v4203_v56, %v7428_v33  ;;  %v4679_v6 = vsel %vm6636_vm14, %v4677_v12, %v4678_v22 }
 0x25c   : > { %v4929_v55 = vadd.f32 %v4855_v40, %v4504_v31  ;;  %v3824_v38 = vadd.f32 %v3751_v20, %v3510_v15  ;;  %v3890_v15 = vld [vmem:[#allocation2 + $0xb4] sm:$0xf]  ;;  %v4747_v20 = vunpack.c.l.b16 %v4679_v6  ;;  %v4195_v54 = vrot.slane %v4194_v59, 4 }
 0x25d   : > { %v4682_v40 = vrot.slane %v7412_v51, 5  ;;  %v4212_v22 = vshrl.u32 %v3890_v15, 16  ;;  %v4215_v59 = vshll.u32 %v3890_v15, 16  ;;  %v4225_v51 = vshrl.u32 %v7444_v45, 16 }
 0x25e   : > { %4894 = vmatmul.bf16.gmra.mxu0 %v4766_v8  ;;  %v5024_v52 = vadd.f32 %v5023_v42, %v4929_v55  ;;  %v5063_v14 = vmul.f32 %v4929_v55, %v4929_v55  ;;  %v4207_v42 = vshll.u32 %v7431_v49, 16  ;;  %v3511_v8 = vadd.f32 %v7403_v17, %v7629_v62 }
 0x25f   : > { %v4432_v61 = vpop.f32.mrf.mxu3  ;;  %v5560_v17 = vrot.slane %v3125_v37, 9 }
 0x260   : > { %3793 = vmatmul.bf16.gmra.mxu2 %v5866_v19  ;;  %v5094_v18 = vadd.f32 %v5093_v24, %v5063_v14  ;;  %v4505_v10 = vadd.f32 %v4432_v61, %v3824_v38  ;;  %v4205_v19 = vrot.slane %v4204_v30, 4  ;;  %v6073_v24 = vld [vmem:[#allocation2 + $0xac] sm:$0xf]  ;;  %v4209_v13 = vrot.slane %v4207_v42, 5  ;;  %v6074_v38 = vld [vmem:[#allocation2 + $0xb0] sm:$0x1] }
 0x261   : > { %v3269_v57 = vrot.slane %v6073_v24, 5  ;;  %v3272_v12 = vrot.slane %v6074_v38, 5  ;;  %v4767_v30 = vpack.c.b16 %v4747_v20, %v4746_v26  ;;  %v4200_v26 = vsel %vm6244_vm11, %v4195_v54, %v7428_v33  ;;  %v7465_v54 = vld [vmem:[#allocation2 + $0xbc] sm:$0x1] }
 0x262   : > { %v7438_v31 = vpop.f32.mrf.mxu1  ;;  %v4684_v20 = vrot.slane %v4682_v40, 4  ;;  %v4685_v24 = vrot.slane %v7431_v49, 5  ;;  %v4692_v2 = vrot.slane %v7465_v54, 5 }
 0x263   : > { %v3754_v47 = vpop.f32.mrf.mxu2  ;;  %v4857_v0 = vpop.f32.mrf.mxu0  ;;  %v3271_v56 = vrot.slane %v3269_v57, 4  ;;  %v3270_v62 = vsel %vm6636_vm14, %v5560_v17, %v3269_v57  ;;  %v4214_v57 = vrot.slane %v4212_v22, 4 }
 0x264   : > { %v4930_v53 = vadd.f32 %v4857_v0, %v4505_v10  ;;  %4474 = vmatmul.bf16.gmra.mxu3 %v4342_v27  ;;  %v3825_v50 = vadd.f32 %v3754_v47, %v3511_v8  ;;  %v4221_v10 = vshll.u32 %v7444_v45, 16  ;;  %v5867_v0 = vld [vmem:[#allocation2 + $0xa8] sm:$0xff]  ;;  %v3330_v37 = vunpack.c.l.b16 %v3270_v62 }
 0x265   : > { %3484 = vmatmul.bf16.gmra.mxu1 %v3348_v35  ;;  %v4544_v35 = vld [vmem:[#allocation2 + $0xa8] sm:$0xe]  ;;  %v4686_v22 = vsel %vm6636_vm14, %v4684_v20, %v4685_v24  ;;  %v6075_v20 = vld [vmem:[#allocation2 + $0xb8] sm:$0xf] }
 0x266   : > { %v5908_v14 = vpack.c.bf16 %v4930_v53, %v4929_v55  ;;  %v5025_v61 = vadd.f32 %v5024_v52, %v4930_v53  ;;  %v5064_v23 = vmul.f32 %v4930_v53, %v4930_v53  ;;  %v3273_v55 = vsel %vm6636_vm14, %v3271_v56, %v3272_v12 }
 0x267   : > { %v4435_v27 = vpop.f32.mrf.mxu3  ;;  %v3512_v52 = vadd.f32 %v7420_v63, %v6952_v11  ;;  %v5735_v15 = vrot.slane %v4544_v35, 9  ;;  %v4217_v53 = vrot.slane %v4215_v59, 5  ;;  %v3331_v17 = vunpack.c.l.b16 %v3273_v55 }
 0x268   : > { %5976 = vst [vmem:[%s7375_s8 + $0x10] sm:$0xff] %v5908_v14   ;;  %v5095_v6 = vadd.f32 %v5094_v18, %v5064_v23  ;;  %v4506_v42 = vadd.f32 %v4435_v27, %v3825_v50  ;;  %v4210_v18 = vsel %vm6244_vm11, %v4205_v19, %v4209_v13  ;;  %v7463_v56 = vrot.slane %v4221_v10, 5 }
 0x269   : > { %v4227_v11 = vrot.slane %v4225_v51, 4  ;;  %v4323_v12 = vunpack.c.l.b16 %v4200_v26  ;;  %v4324_v33 = vunpack.c.l.b16 %v4210_v18  ;;  %v4683_v19 = vsel %vm6636_vm14, %v5735_v15, %v4682_v40 }
 0x26a   : > { %v7449_v47 = vpop.f32.mrf.mxu1  ;;  %v3349_v23 = vpack.c.b16 %v3331_v17, %v3330_v37  ;;  %v4218_v35 = vor.u32 %v4217_v53, %v4214_v57  ;;  %v4231_v27 = vshll.u32 %v7465_v54, 16  ;;  %v4748_v55 = vunpack.c.l.b16 %v4683_v19  ;;  %v3126_v53 = vld [vmem:[#allocation2 + $0xb4] sm:$0xe] }
 0x26b   : > { %v3756_v8 = vpop.f32.mrf.mxu2  ;;  %v4860_v50 = vpop.f32.mrf.mxu0  ;;  %v4228_v59 = vor.u32 %v4227_v11, %v7463_v56  ;;  %v5561_v17 = vrot.slane %v3126_v53, 9 }
 0x26c   : > { %v4931_v63 = vadd.f32 %v4860_v50, %v4506_v42  ;;  %v3826_v38 = vadd.f32 %v3756_v8, %v3512_v52  ;;  %v4343_v42 = vpack.c.b16 %v4324_v33, %v4323_v12  ;;  %v4749_v52 = vunpack.c.l.b16 %v4686_v22  ;;  %v7477_v8 = vld [vmem:[#allocation2 + $0xc4] sm:$0xf] }
 0x26d   : > { %v4219_v18 = vrot.slane %v4218_v35, 4  ;;  %v4229_v15 = vrot.slane %v4228_v59, 4 }
 0x26e   : > { %4899 = vmatmul.bf16.gmra.mxu0 %v4767_v30  ;;  %v5026_v13 = vadd.f32 %v5025_v61, %v4931_v63  ;;  %v5065_v49 = vmul.f32 %v4931_v63, %v4931_v63  ;;  %v3893_v30 = vld [vmem:[#allocation2 + $0xc0] sm:$0xf]  ;;  %v3513_v61 = vadd.f32 %v7438_v31, %v6968_v28  ;;  %v6076_v31 = vld [vmem:[#allocation2 + $0xbc] sm:$0x1]  ;;  %v4768_v22 = vpack.c.b16 %v4749_v52, %v4748_v55  ;;  %v365_v55 = vld [vmem:[#allocation2 + $0xd4] sm:$0x1] }
 0x26f   : > { %v4437_v14 = vpop.f32.mrf.mxu3  ;;  %v4236_v50 = vshrl.u32 %v3893_v30, 16  ;;  %v4239_v37 = vshll.u32 %v3893_v30, 16  ;;  %v3279_v11 = vrot.slane %v6076_v31, 5  ;;  %v4545_v30 = vld [vmem:[#allocation2 + $0xb4] sm:$0xe] }
 0x270   : > { %3798 = vmatmul.bf16.gmra.mxu2 %v5867_v0  ;;  %v5096_v10 = vadd.f32 %v5095_v6, %v5065_v49  ;;  %v4507_v51 = vadd.f32 %v4437_v14, %v3826_v38  ;;  %v4233_v0 = vrot.slane %v4231_v27, 5  ;;  %v3276_v6 = vrot.slane %v6075_v20, 5  ;;  %v5868_v52 = vld [vmem:[#allocation2 + $0xb4] sm:$0xff] }
 0x271   : > { %v4245_v38 = vshll.u32 %v7477_v8, 16  ;;  %v4249_v49 = vshrl.u32 %v7477_v8, 16  ;;  %v4241_v20 = vrot.slane %v4239_v37, 5 }
 0x272   : > { %v7473_v62 = vpop.f32.mrf.mxu1  ;;  %v3278_v28 = vrot.slane %v3276_v6, 4  ;;  %v3277_v27 = vsel %vm6636_vm14, %v5561_v17, %v3276_v6  ;;  %v7502_v17 = vld [vmem:[#allocation2 + $0xc8] sm:$0x1] }
 0x273   : > { %v3759_v40 = vpop.f32.mrf.mxu2  ;;  %v4862_v26 = vpop.f32.mrf.mxu0  ;;  %v7496_v6 = vrot.slane %v4245_v38, 5 }
 0x274   : > { %v4932_v24 = vadd.f32 %v4862_v26, %v4507_v51  ;;  %4479 = vmatmul.bf16.gmra.mxu3 %v4343_v42  ;;  %v3827_v57 = vadd.f32 %v3759_v40, %v3513_v61  ;;  %v3280_v51 = vsel %vm6636_vm14, %v3278_v28, %v3279_v11  ;;  %v309_v42 = vld [vmem:[#allocation2 + $0xcc] sm:$0x1]  ;;  %v4224_v40 = vsel %vm6244_vm11, %v4219_v18, %v7463_v56 }
 0x275   : > { %3489 = vmatmul.bf16.gmra.mxu1 %v3349_v23  ;;  %v4689_v61 = vrot.slane %v7444_v45, 5  ;;  %v4238_v26 = vrot.slane %v4236_v50, 4  ;;  %v310_v53 = vsel %vm6130_vm2, 0, %v309_v42  ;;  %v366_v56 = vsel %vm6135_vm4, 0, %v365_v55 }
 0x276   : > { %v5913_v12 = vpack.c.bf16 %v4932_v24, %v4931_v63  ;;  %v5027_v33 = vadd.f32 %v5026_v13, %v4932_v24  ;;  %v5066_v19 = vmul.f32 %v4932_v24, %v4932_v24  ;;  %v3514_v63 = vadd.f32 %v7449_v47, %v6996_v5  ;;  %311 = vst [vmem:[#allocation2 + $0xcc] sm:$0x1] %v310_v53 }
 0x277   : > { %v4440_v14 = vpop.f32.mrf.mxu3  ;;  %v4251_v24 = vrot.slane %v4249_v49, 4  ;;  %v3332_v5 = vunpack.c.l.b16 %v3277_v27  ;;  %v3333_v47 = vunpack.c.l.b16 %v3280_v51  ;;  %v5736_v50 = vrot.slane %v4545_v30, 9  ;;  %367 = vst [vmem:[#allocation2 + $0xd4] sm:$0x1] %v366_v56  ;;  %v7515_v56 = vld [vmem:[#allocation2 + $0xd0] sm:$0xf] }
 0x278   : > { %5977 = vst [vmem:[%s7375_s8 + $0x18] sm:$0xff] %v5913_v12   ;;  %v5097_v23 = vadd.f32 %v5096_v10, %v5066_v19  ;;  %v4508_v35 = vadd.f32 %v4440_v14, %v3827_v57  ;;  %v4234_v10 = vsel %vm6244_vm11, %v4229_v15, %v4233_v0  ;;  %v4325_v0 = vunpack.c.l.b16 %v4224_v40 }
 0x279   : > { %v4326_v45 = vunpack.c.l.b16 %v4234_v10  ;;  %v4691_v31 = vrot.slane %v4689_v61, 4  ;;  %v3350_v38 = vpack.c.b16 %v3333_v47, %v3332_v5  ;;  %v4242_v4 = vor.u32 %v4241_v20, %v4238_v26  ;;  %v6078_v20 = vld [vmem:[#allocation2 + $0xc8] sm:$0x1] }
 0x27a   : > { %v7482_v59 = vpop.f32.mrf.mxu1  ;;  %v4252_v12 = vor.u32 %v4251_v24, %v7496_v6  ;;  %v4255_v19 = vshll.u32 %v7502_v17, 16 }
 0x27b   : > { %v3761_v13 = vpop.f32.mrf.mxu2  ;;  %v4865_v57 = vpop.f32.mrf.mxu0  ;;  %v4693_v54 = vsel %vm6636_vm14, %v4691_v31, %v4692_v2 }
 0x27c   : > { %v4933_v18 = vadd.f32 %v4865_v57, %v4508_v35  ;;  %v3828_v15 = vadd.f32 %v3761_v13, %v3514_v63  ;;  %v4344_v35 = vpack.c.b16 %v4326_v45, %v4325_v0  ;;  %v4243_v63 = vrot.slane %v4242_v4, 4 }
 0x27d   : > { %v4253_v13 = vrot.slane %v4252_v12, 4  ;;  %v4257_v40 = vrot.slane %v4255_v19, 5  ;;  %v4751_v47 = vunpack.c.l.b16 %v4693_v54  ;;  %v3896_v53 = vld [vmem:[#allocation2 + $0xcc] sm:$0xf]  ;;  %v4269_v4 = vshll.u32 %v7515_v56, 16 }
 0x27e   : > { %4904 = vmatmul.bf16.gmra.mxu0 %v4768_v22  ;;  %v5028_v37 = vadd.f32 %v5027_v33, %v4933_v18  ;;  %v5067_v28 = vmul.f32 %v4933_v18, %v4933_v18  ;;  %v3515_v33 = vadd.f32 %v7473_v62, %v7003_v41  ;;  %v4690_v22 = vsel %vm6636_vm14, %v5736_v50, %v4689_v61  ;;  %v7630_v19 = vld [vmem:[#allocation9_spill] sm:$0xff] }
 0x27f   : > { %v4442_v11 = vpop.f32.mrf.mxu3  ;;  %v4750_v26 = vunpack.c.l.b16 %v4690_v22  ;;  %v3286_v61 = vrot.slane %v6078_v20, 5  ;;  %v4248_v0 = vsel %vm6244_vm11, %v4243_v63, %v7496_v6  ;;  %v4258_v45 = vsel %vm6244_vm11, %v4253_v13, %v4257_v40 }
 0x280   : > { %3803 = vmatmul.bf16.gmra.mxu2 %v5868_v52  ;;  %v5098_v49 = vadd.f32 %v5097_v23, %v5067_v28  ;;  %v4509_v14 = vadd.f32 %v4442_v11, %v3828_v15  ;;  %v6077_v23 = vld [vmem:[#allocation2 + $0xc4] sm:$0xf]  ;;  %v3127_v52 = vld [vmem:[#allocation2 + $0xc0] sm:$0xe]  ;;  %v4260_v11 = vshrl.u32 %v3896_v53, 16  ;;  %v4273_v6 = vshrl.u32 %v7515_v56, 16 }
 0x281   : > { %v3283_v10 = vrot.slane %v6077_v23, 5  ;;  %v5562_v41 = vrot.slane %v3127_v52, 9  ;;  %v4769_v12 = vpack.c.b16 %v4751_v47, %v4750_v26  ;;  %v4327_v13 = vunpack.c.l.b16 %v4248_v0 }
 0x282   : > { %v7507_v27 = vpop.f32.mrf.mxu1  ;;  %v4328_v40 = vunpack.c.l.b16 %v4258_v45  ;;  %v4262_v23 = vrot.slane %v4260_v11, 4 }
 0x283   : > { %v3764_v51 = vpop.f32.mrf.mxu2  ;;  %v4867_v42 = vpop.f32.mrf.mxu0  ;;  %v3285_v62 = vrot.slane %v3283_v10, 4 }
 0x284   : > { %v4934_v30 = vadd.f32 %v4867_v42, %v4509_v14  ;;  %4484 = vmatmul.bf16.gmra.mxu3 %v4344_v35  ;;  %v3829_v55 = vadd.f32 %v3764_v51, %v3515_v33  ;;  %v5869_v14 = vld [vmem:[#allocation2 + $0xc0] sm:$0xff]  ;;  %v4696_v33 = vrot.slane %v7477_v8, 5  ;;  %v4699_v8 = vrot.slane %v7502_v17, 5 }
 0x285   : > { %3494 = vmatmul.bf16.gmra.mxu1 %v3350_v38  ;;  %v4263_v38 = vshll.u32 %v3896_v53, 16  ;;  %v4546_v51 = vld [vmem:[#allocation2 + $0xc0] sm:$0xe]  ;;  %v4345_v47 = vpack.c.b16 %v4328_v40, %v4327_v13 }
 0x286   : > { %v5918_v24 = vpack.c.bf16 %v4934_v30, %v4933_v18  ;;  %v5029_v57 = vadd.f32 %v5028_v37, %v4934_v30  ;;  %v5068_v5 = vmul.f32 %v4934_v30, %v4934_v30  ;;  %v3284_v18 = vsel %vm6636_vm14, %v5562_v41, %v3283_v10  ;;  %v7534_v41 = vld [vmem:[#allocation2 + $0xd4] sm:$0x1] }
 0x287   : > { %v4445_v15 = vpop.f32.mrf.mxu3  ;;  %v3287_v37 = vsel %vm6636_vm14, %v3285_v62, %v3286_v61  ;;  %v3334_v22 = vunpack.c.l.b16 %v3284_v18  ;;  %v4265_v10 = vrot.slane %v4263_v38, 5  ;;  %v4271_v30 = vrot.slane %v4269_v4, 5 }
 0x288   : > { %5978 = vst [vmem:[%s7375_s8 + $0x20] sm:$0xff] %v5918_v24   ;;  %v5099_v50 = vadd.f32 %v5098_v49, %v5068_v5  ;;  %v4510_v28 = vadd.f32 %v4445_v15, %v3829_v55  ;;  %v3516_v49 = vadd.f32 %v7482_v59, %v7630_v19  ;;  %v3335_v54 = vunpack.c.l.b16 %v3287_v37 }
 0x289   : > { %v4275_v55 = vrot.slane %v4273_v6, 4  ;;  %v5737_v59 = vrot.slane %v4546_v51, 9  ;;  %v4698_v20 = vrot.slane %v4696_v33, 4  ;;  %v4266_v0 = vor.u32 %v4265_v10, %v4262_v23  ;;  %v4547_v23 = vld [vmem:[#allocation2 + $0xcc] sm:$0xe] }
 0x28a   : > { %v7523_v31 = vpop.f32.mrf.mxu1  ;;  %v3351_v61 = vpack.c.b16 %v3335_v54, %v3334_v22  ;;  %v4703_v10 = vrot.slane %v7515_v56, 5 }
 0x28b   : > { %v3766_v2 = vpop.f32.mrf.mxu2  ;;  %v4870_v35 = vpop.f32.mrf.mxu0  ;;  %v4276_v45 = vor.u32 %v4275_v55, %v4271_v30  ;;  %v4697_v18 = vsel %vm6636_vm14, %v5737_v59, %v4696_v33  ;;  %v4700_v17 = vsel %vm6636_vm14, %v4698_v20, %v4699_v8  ;;  %v4267_v38 = vrot.slane %v4266_v0, 4 }
 0x28c   : > { %v4935_v42 = vadd.f32 %v4870_v35, %v4510_v28  ;;  %v3830_v63 = vadd.f32 %v3766_v2, %v3516_v49  ;;  %v4279_v28 = vshll.u32 %v7534_v41, 16  ;;  %v4752_v11 = vunpack.c.l.b16 %v4697_v18 }
 0x28d   : > { %v4277_v4 = vrot.slane %v4276_v45, 4  ;;  %v4272_v22 = vsel %vm6244_vm11, %v4267_v38, %v4271_v30  ;;  %v3518_v13 = vadd.f32 %v7523_v31, %v7045_v60  ;;  %v5738_v30 = vrot.slane %v4547_v23, 9 }
 0x28e   : > { %4909 = vmatmul.bf16.gmra.mxu0 %v4769_v12  ;;  %v5030_v52 = vadd.f32 %v5029_v57, %v4935_v42  ;;  %v5069_v26 = vmul.f32 %v4935_v42, %v4935_v42  ;;  %v3517_v57 = vadd.f32 %v7507_v27, %v7030_v25  ;;  %v4281_v6 = vrot.slane %v4279_v28, 5 }
 0x28f   : > { %v4447_v62 = vpop.f32.mrf.mxu3  ;;  %v4753_v25 = vunpack.c.l.b16 %v4700_v17  ;;  %v4705_v8 = vrot.slane %v4703_v10, 4 }
 0x290   : > { %3808 = vmatmul.bf16.gmra.mxu2 %v5869_v14  ;;  %v5100_v24 = vadd.f32 %v5099_v50, %v5069_v26  ;;  %v4511_v5 = vadd.f32 %v4447_v62, %v3830_v63  ;;  %v4282_v54 = vsel %vm6244_vm11, %v4277_v4, %v4281_v6  ;;  %v4329_v26 = vunpack.c.l.b16 %v4272_v22 }
 0x291   : > { %v4770_v63 = vpack.c.b16 %v4753_v25, %v4752_v11  ;;  %v4330_v59 = vunpack.c.l.b16 %v4282_v54 }
 0x292   : > { %v3460_v53 = vpop.f32.mrf.mxu1 }
 0x293   : > { %v3769_v15 = vpop.f32.mrf.mxu2  ;;  %v4872_v37 = vpop.f32.mrf.mxu0  ;;  %v4346_v31 = vpack.c.b16 %v4330_v59, %v4329_v26  ;;  %v3519_v56 = vadd.f32 %v3460_v53, %v7063_v3 }
 0x294   : > { %v4936_v50 = vadd.f32 %v4872_v37, %v4511_v5  ;;  %4489 = vmatmul.bf16.gmra.mxu3 %v4345_v47  ;;  %v3831_v2 = vadd.f32 %v3769_v15, %v3517_v57  ;;  %v4704_v15 = vsel %vm6636_vm14, %v5738_v30, %v4703_v10 }
 0x295   : > { %3499 = vmatmul.bf16.gmra.mxu1 %v3351_v61  ;;  %v4706_v61 = vrot.slane %v7534_v41, 5  ;;  %v4754_v18 = vunpack.c.l.b16 %v4704_v15 }
 0x296   : > { %v5923_v12 = vpack.c.bf16 %v4936_v50, %v4935_v42  ;;  %v5031_v19 = vadd.f32 %v5030_v52, %v4936_v50  ;;  %v5070_v49 = vmul.f32 %v4936_v50, %v4936_v50  ;;  %v5870_v42 = vld [vmem:[#allocation2 + $0xcc] sm:$0xff] }
 0x297   : > { %v4450_v27 = vpop.f32.mrf.mxu3  ;;  %v4707_v45 = vsel %vm6636_vm14, %v4705_v8, %v4706_v61 }
 0x298   : > { %5979 = vst [vmem:[%s7375_s8 + $0x28] sm:$0xff] %v5923_v12   ;;  %v5101_v14 = vadd.f32 %v5100_v24, %v5070_v49  ;;  %v4512_v35 = vadd.f32 %v4450_v27, %v3831_v2  ;;  %v4755_v50 = vunpack.c.l.b16 %v4707_v45 }
 0x29a   : > { %v3462_v51 = vpop.f32.mrf.mxu1  ;;  %v4771_v4 = vpack.c.b16 %v4755_v50, %v4754_v18 }
 0x29b   : > { %v3771_v33 = vpop.f32.mrf.mxu2  ;;  %v4875_v40 = vpop.f32.mrf.mxu0  ;;  %v3520_v6 = vadd.f32 %v3462_v51, %v7076_v58 }
 0x29c   : > { %v4937_v55 = vadd.f32 %v4875_v40, %v4512_v35  ;;  %v3832_v52 = vadd.f32 %v3771_v33, %v3518_v13 }
 0x29e   : > { %4914 = vmatmul.bf16.gmra.mxu0 %v4770_v63  ;;  %v5032_v62 = vadd.f32 %v5031_v19, %v4937_v55  ;;  %v5071_v20 = vmul.f32 %v4937_v55, %v4937_v55 }
 0x29f   : > { %v4452_v44 = vpop.f32.mrf.mxu3 }
 0x2a0   : > { %3813 = vmatmul.bf16.gmra.mxu2 %v5870_v42  ;;  %v5102_v24 = vadd.f32 %v5101_v14, %v5071_v20  ;;  %v4513_v60 = vadd.f32 %v4452_v44, %v3832_v52 }
 0x2a2   : > { %v3465_v5 = vpop.f32.mrf.mxu1 }
 0x2a3   : > { %v3774_v47 = vpop.f32.mrf.mxu2  ;;  %v4877_v0 = vpop.f32.mrf.mxu0  ;;  %v3521_v54 = vadd.f32 %v3465_v5, %v7094_v34 }
 0x2a4   : > { %v4938_v28 = vadd.f32 %v4877_v0, %v4513_v60  ;;  %4494 = vmatmul.bf16.gmra.mxu3 %v4346_v31  ;;  %v3833_v57 = vadd.f32 %v3774_v47, %v3519_v56 }
 0x2a6   : > { %v5928_v41 = vpack.c.bf16 %v4938_v28, %v4937_v55  ;;  %v5033_v37 = vadd.f32 %v5032_v62, %v4938_v28  ;;  %v5072_v17 = vmul.f32 %v4938_v28, %v4938_v28 }
 0x2a7   : > { %v4455_v2 = vpop.f32.mrf.mxu3 }
 0x2a8   : > { %5980 = vst [vmem:[%s7375_s8 + $0x30] sm:$0xff] %v5928_v41   ;;  %v5103_v11 = vadd.f32 %v5102_v24, %v5072_v17  ;;  %v4514_v38 = vadd.f32 %v4455_v2, %v3833_v57 }
 0x2aa   : > { %v3467_v3 = vpop.f32.mrf.mxu1 }
 0x2ab   : > { %v3776_v53 = vpop.f32.mrf.mxu2  ;;  %v4880_v12 = vpop.f32.mrf.mxu0  ;;  %v3522_v59 = vadd.f32 %v3467_v3, %v7109_v36 }
 0x2ac   : > { %v4939_v29 = vadd.f32 %v4880_v12, %v4514_v38  ;;  %v3834_v19 = vadd.f32 %v3776_v53, %v3520_v6 }
 0x2ae   : > { %4919 = vmatmul.bf16.gmra.mxu0 %v4771_v4  ;;  %v5034_v49 = vadd.f32 %v5033_v37, %v4939_v29  ;;  %v5073_v25 = vmul.f32 %v4939_v29, %v4939_v29 }
 0x2af   : > { %v4457_v27 = vpop.f32.mrf.mxu3 }
 0x2b0   : > { %v5104_v14 = vadd.f32 %v5103_v11, %v5073_v25  ;;  %v4515_v35 = vadd.f32 %v4457_v27, %v3834_v19 }
 0x2b2   : > { %v3470_v33 = vpop.f32.mrf.mxu1 }
 0x2b3   : > { %v3779_v22 = vpop.f32.mrf.mxu2  ;;  %v4882_v63 = vpop.f32.mrf.mxu0  ;;  %v3523_v5 = vadd.f32 %v3470_v33, %v7128_v32 }
 0x2b4   : > { %v4940_v13 = vadd.f32 %v4882_v63, %v4515_v35  ;;  %v3835_v42 = vadd.f32 %v3779_v22, %v3521_v54 }
 0x2b6   : > { %v5933_v40 = vpack.c.bf16 %v4940_v13, %v4939_v29  ;;  %v5035_v23 = vadd.f32 %v5034_v49, %v4940_v13  ;;  %v5074_v58 = vmul.f32 %v4940_v13, %v4940_v13 }
 0x2b7   : > { %v4460_v51 = vpop.f32.mrf.mxu3 }
 0x2b8   : > { %5981 = vst [vmem:[%s7375_s8 + $0x38] sm:$0xff] %v5933_v40   ;;  %v5105_v10 = vadd.f32 %v5104_v14, %v5074_v58  ;;  %v4516_v55 = vadd.f32 %v4460_v51, %v3835_v42 }
 0x2ba   : > { %v3472_v52 = vpop.f32.mrf.mxu1 }
 0x2bb   : > { %v3781_v26 = vpop.f32.mrf.mxu2  ;;  %v4885_v62 = vpop.f32.mrf.mxu0  ;;  %v3524_v17 = vadd.f32 %v3472_v52, %v7141_v48 }
 0x2bc   : > { %v4941_v20 = vadd.f32 %v4885_v62, %v4516_v55  ;;  %v3836_v30 = vadd.f32 %v3781_v26, %v3522_v59 }
 0x2be   : > { %v5036_v44 = vadd.f32 %v5035_v23, %v4941_v20  ;;  %v5075_v34 = vmul.f32 %v4941_v20, %v4941_v20 }
 0x2bf   : > { %v4462_v8 = vpop.f32.mrf.mxu3 }
 0x2c0   : > { %v5106_v61 = vadd.f32 %v5105_v10, %v5075_v34  ;;  %v4517_v24 = vadd.f32 %v4462_v8, %v3836_v30 }
 0x2c2   : > { %v3475_v60 = vpop.f32.mrf.mxu1 }
 0x2c3   : > { %v3784_v31 = vpop.f32.mrf.mxu2  ;;  %v4887_v47 = vpop.f32.mrf.mxu0  ;;  %v3525_v29 = vadd.f32 %v3475_v60, %v7159_v1 }
 0x2c4   : > { %v4942_v56 = vadd.f32 %v4887_v47, %v4517_v24  ;;  %v3837_v15 = vadd.f32 %v3784_v31, %v3523_v5 }
 0x2c6   : > { %v5938_v0 = vpack.c.bf16 %v4942_v56, %v4941_v20  ;;  %v5037_v45 = vadd.f32 %v5036_v44, %v4942_v56  ;;  %v5076_v28 = vmul.f32 %v4942_v56, %v4942_v56 }
 0x2c7   : > { %v4465_v36 = vpop.f32.mrf.mxu3 }
 0x2c8   : > { %5982 = vst [vmem:[%s7375_s8 + $0x40] sm:$0xff] %v5938_v0   ;;  %v5107_v57 = vadd.f32 %v5106_v61, %v5076_v28  ;;  %v4518_v18 = vadd.f32 %v4465_v36, %v3837_v15 }
 0x2ca   : > { %v3477_v41 = vpop.f32.mrf.mxu1 }
 0x2cb   : > { %v3786_v37 = vpop.f32.mrf.mxu2  ;;  %v4890_v50 = vpop.f32.mrf.mxu0  ;;  %v3526_v13 = vadd.f32 %v3477_v41, %v7174_v16 }
 0x2cc   : > { %v4943_v2 = vadd.f32 %v4890_v50, %v4518_v18  ;;  %v3838_v11 = vadd.f32 %v3786_v37, %v3524_v17 }
 0x2ce   : > { %v5038_v38 = vadd.f32 %v5037_v45, %v4943_v2  ;;  %v5077_v32 = vmul.f32 %v4943_v2, %v4943_v2 }
 0x2cf   : > { %v4467_v3 = vpop.f32.mrf.mxu3 }
 0x2d0   : > { %v5108_v53 = vadd.f32 %v5107_v57, %v5077_v32  ;;  %v4519_v4 = vadd.f32 %v4467_v3, %v3838_v11 }
 0x2d2   : > { %v3480_v6 = vpop.f32.mrf.mxu1 }
 0x2d3   : > { %v3789_v12 = vpop.f32.mrf.mxu2  ;;  %v4892_v19 = vpop.f32.mrf.mxu0  ;;  %v3527_v59 = vadd.f32 %v3480_v6, %v7193_v21 }
 0x2d4   : > { %v4944_v49 = vadd.f32 %v4892_v19, %v4519_v4  ;;  %v3839_v25 = vadd.f32 %v3789_v12, %v3525_v29 }
 0x2d6   : > { %v5943_v27 = vpack.c.bf16 %v4944_v49, %v4943_v2  ;;  %v5039_v14 = vadd.f32 %v5038_v38, %v4944_v49  ;;  %v5078_v35 = vmul.f32 %v4944_v49, %v4944_v49 }
 0x2d7   : > { %v4470_v48 = vpop.f32.mrf.mxu3 }
 0x2d8   : > { %5983 = vst [vmem:[%s7375_s8 + $0x48] sm:$0xff] %v5943_v27   ;;  %v5109_v33 = vadd.f32 %v5108_v53, %v5078_v35  ;;  %v4520_v22 = vadd.f32 %v4470_v48, %v3839_v25 }
 0x2da   : > { %v3482_v54 = vpop.f32.mrf.mxu1 }
 0x2db   : > { %v3791_v63 = vpop.f32.mrf.mxu2  ;;  %v4895_v42 = vpop.f32.mrf.mxu0  ;;  %v3528_v31 = vadd.f32 %v3482_v54, %v7206_v9 }
 0x2dc   : > { %v4945_v40 = vadd.f32 %v4895_v42, %v4520_v22  ;;  %v3840_v23 = vadd.f32 %v3791_v63, %v3526_v13 }
 0x2de   : > { %v5040_v58 = vadd.f32 %v5039_v14, %v4945_v40  ;;  %v5079_v1 = vmul.f32 %v4945_v40, %v4945_v40 }
 0x2df   : > { %v4472_v51 = vpop.f32.mrf.mxu3 }
 0x2e0   : > { %v5110_v10 = vadd.f32 %v5109_v33, %v5079_v1  ;;  %v4521_v55 = vadd.f32 %v4472_v51, %v3840_v23  ;;  %v7631_v51 = vld [vmem:[#allocation10_spill] sm:$0xff] }
 0x2e2   : > { %v3485_v26 = vpop.f32.mrf.mxu1 }
 0x2e3   : > { %v3794_v52 = vpop.f32.mrf.mxu2  ;;  %v4897_v62 = vpop.f32.mrf.mxu0  ;;  %v3529_v18 = vadd.f32 %v3485_v26, %v7222_v46 }
 0x2e4   : > { %v4946_v20 = vadd.f32 %v4897_v62, %v4521_v55  ;;  %v3841_v30 = vadd.f32 %v3794_v52, %v3527_v59 }
 0x2e6   : > { %v5948_v44 = vpack.c.bf16 %v4946_v20, %v4945_v40  ;;  %v5041_v34 = vadd.f32 %v5040_v58, %v4946_v20  ;;  %v5080_v8 = vmul.f32 %v4946_v20, %v4946_v20 }
 0x2e7   : > { %v4475_v16 = vpop.f32.mrf.mxu3 }
 0x2e8   : > { %5984 = vst [vmem:[%s7375_s8 + $0x50] sm:$0xff] %v5948_v44   ;;  %v5111_v61 = vadd.f32 %v5110_v10, %v5080_v8  ;;  %v4522_v24 = vadd.f32 %v4475_v16, %v3841_v30 }
 0x2ea   : > { %v3487_v47 = vpop.f32.mrf.mxu1 }
 0x2eb   : > { %v3796_v60 = vpop.f32.mrf.mxu2  ;;  %v4900_v5 = vpop.f32.mrf.mxu0  ;;  %v3530_v4 = vadd.f32 %v3487_v47, %v7236_v7 }
 0x2ec   : > { %v4947_v56 = vadd.f32 %v4900_v5, %v4522_v24  ;;  %v3842_v15 = vadd.f32 %v3796_v60, %v3528_v31 }
 0x2ee   : > { %v5042_v0 = vadd.f32 %v5041_v34, %v4947_v56  ;;  %v5081_v21 = vmul.f32 %v4947_v56, %v4947_v56  ;;  %v7632_v34 = vld [vmem:[#allocation3_spill] sm:$0xff] }
 0x2ef   : > { %v4477_v45 = vpop.f32.mrf.mxu3 }
 0x2f0   : > { %v5112_v28 = vadd.f32 %v5111_v61, %v5081_v21  ;;  %v4523_v36 = vadd.f32 %v4477_v45, %v3842_v15  ;;  %v7633_v45 = vld [vmem:[#allocation4_spill] sm:$0xff] }
 0x2f2   : > { %v3490_v50 = vpop.f32.mrf.mxu1 }
 0x2f3   : > { %v3799_v57 = vpop.f32.mrf.mxu2  ;;  %v4902_v41 = vpop.f32.mrf.mxu0  ;;  %v3531_v48 = vadd.f32 %v3490_v50, %v7254_v39 }
 0x2f4   : > { %v4948_v37 = vadd.f32 %v4902_v41, %v4523_v36  ;;  %v3843_v17 = vadd.f32 %v3799_v57, %v3529_v18 }
 0x2f6   : > { %v5953_v2 = vpack.c.bf16 %v4948_v37, %v4947_v56  ;;  %v5043_v11 = vadd.f32 %v5042_v0, %v4948_v37  ;;  %v5082_v9 = vmul.f32 %v4948_v37, %v4948_v37 }
 0x2f7   : > { %v4480_v38 = vpop.f32.mrf.mxu3 }
 0x2f8   : > { %5985 = vst [vmem:[%s7375_s8 + $0x58] sm:$0xff] %v5953_v2   ;;  %v5113_v32 = vadd.f32 %v5112_v28, %v5082_v9  ;;  %v4524_v3 = vadd.f32 %v4480_v38, %v3843_v17 }
 0x2fa   : > { %v3492_v25 = vpop.f32.mrf.mxu1 }
 0x2fb   : > { %v3801_v53 = vpop.f32.mrf.mxu2  ;;  %v4905_v6 = vpop.f32.mrf.mxu0  ;;  %v3532_v10 = vadd.f32 %v3492_v25, %v7631_v51 }
 0x2fc   : > { %v4949_v12 = vadd.f32 %v4905_v6, %v4524_v3  ;;  %v3844_v29 = vadd.f32 %v3801_v53, %v3530_v4 }
 0x2fe   : > { %v5044_v19 = vadd.f32 %v5043_v11, %v4949_v12  ;;  %v5083_v46 = vmul.f32 %v4949_v12, %v4949_v12 }
 0x2ff   : > { %v4482_v49 = vpop.f32.mrf.mxu3 }
 0x300   : > { %v5114_v27 = vadd.f32 %v5113_v32, %v5083_v46  ;;  %v4525_v14 = vadd.f32 %v4482_v49, %v3844_v29 }
 0x302   : > { %v3495_v1 = vpop.f32.mrf.mxu1 }
 0x303   : > { %v3804_v35 = vpop.f32.mrf.mxu2  ;;  %v4907_v33 = vpop.f32.mrf.mxu0  ;;  %v3533_v8 = vadd.f32 %v3495_v1, %v7632_v34 }
 0x304   : > { %v4950_v22 = vadd.f32 %v4907_v33, %v4525_v14  ;;  %v3845_v54 = vadd.f32 %v3804_v35, %v3531_v48 }
 0x306   : > { %v5958_v63 = vpack.c.bf16 %v4950_v22, %v4949_v12  ;;  %v5045_v13 = vadd.f32 %v5044_v19, %v4950_v22  ;;  %v5084_v42 = vmul.f32 %v4950_v22, %v4950_v22 }
 0x307   : > { %v4485_v7 = vpop.f32.mrf.mxu3 }
 0x308   : > { %5986 = vst [vmem:[%s7375_s8 + $0x60] sm:$0xff] %v5958_v63   ;;  %v5115_v40 = vadd.f32 %v5114_v27, %v5084_v42  ;;  %v4526_v23 = vadd.f32 %v4485_v7, %v3845_v54  ;;  %v7634_v27 = vld [vmem:[#allocation5_spill] sm:$0xff] }
 0x30a   : > { %v3497_v61 = vpop.f32.mrf.mxu1 }
 0x30b   : > { %v3806_v58 = vpop.f32.mrf.mxu2  ;;  %v4910_v55 = vpop.f32.mrf.mxu0  ;;  %v3534_v28 = vadd.f32 %v3497_v61, %v7633_v45 }
 0x30c   : > { %v4951_v52 = vadd.f32 %v4910_v55, %v4526_v23  ;;  %v3846_v26 = vadd.f32 %v3806_v58, %v3532_v10 }
 0x30e   : > { %v5046_v59 = vadd.f32 %v5045_v13, %v4951_v52  ;;  %v5085_v39 = vmul.f32 %v4951_v52, %v4951_v52 }
 0x30f   : > { %v4487_v62 = vpop.f32.mrf.mxu3 }
 0x310   : > { %v5116_v20 = vadd.f32 %v5115_v40, %v5085_v39  ;;  %v4527_v30 = vadd.f32 %v4487_v62, %v3846_v26 }
 0x312   : > { %v3500_v41 = vpop.f32.mrf.mxu1 }
 0x313   : > { %v3809_v44 = vpop.f32.mrf.mxu2  ;;  %v4912_v16 = vpop.f32.mrf.mxu0  ;;  %v3535_v38 = vadd.f32 %v3500_v41, %v7322_v43 }
 0x314   : > { %v4952_v24 = vadd.f32 %v4912_v16, %v4527_v30  ;;  %v3847_v60 = vadd.f32 %v3809_v44, %v3533_v8 }
 0x316   : > { %v5963_v31 = vpack.c.bf16 %v4952_v24, %v4951_v52  ;;  %v5047_v5 = vadd.f32 %v5046_v59, %v4952_v24  ;;  %v5086_v47 = vmul.f32 %v4952_v24, %v4952_v24 }
 0x317   : > { %v4490_v56 = vpop.f32.mrf.mxu3 }
 0x318   : > { %5987 = vst [vmem:[%s7375_s8 + $0x68] sm:$0xff] %v5963_v31   ;;  %v5117_v15 = vadd.f32 %v5116_v20, %v5086_v47  ;;  %v4528_v0 = vadd.f32 %v4490_v56, %v3847_v60 }
 0x31a   : > { %v3502_v19 = vpop.f32.mrf.mxu1 }
 0x31b   : > { %v3811_v21 = vpop.f32.mrf.mxu2  ;;  %v4915_v36 = vpop.f32.mrf.mxu0  ;;  %v3536_v14 = vadd.f32 %v3502_v19, %v7634_v27 }
 0x31c   : > { %v4953_v57 = vadd.f32 %v4915_v36, %v4528_v0  ;;  %v3848_v18 = vadd.f32 %v3811_v21, %v3534_v28 }
 0x31e   : > { %v5048_v37 = vadd.f32 %v5047_v5, %v4953_v57  ;;  %v5087_v17 = vmul.f32 %v4953_v57, %v4953_v57 }
 0x31f   : > { %v4492_v50 = vpop.f32.mrf.mxu3 }
 0x320   : > { %v5118_v2 = vadd.f32 %v5117_v15, %v5087_v17  ;;  %v4529_v11 = vadd.f32 %v4492_v50, %v3848_v18 }
 0x323   : > { %v3814_v9 = vpop.f32.mrf.mxu2  ;;  %v4917_v32 = vpop.f32.mrf.mxu0 }
 0x324   : > { %v4954_v3 = vadd.f32 %v4917_v32, %v4529_v11  ;;  %v3849_v53 = vadd.f32 %v3814_v9, %v3535_v38 }
 0x326   : > { %v5968_v4 = vpack.c.bf16 %v4954_v3, %v4953_v57  ;;  %v5049_v6 = vadd.f32 %v5048_v37, %v4954_v3  ;;  %v5088_v12 = vmul.f32 %v4954_v3, %v4954_v3 }
 0x327   : > { %v4495_v29 = vpop.f32.mrf.mxu3 }
 0x328   : > { %5988 = vst [vmem:[%s7375_s8 + $0x70] sm:$0xff] %v5968_v4   ;;  %v5119_v46 = vadd.f32 %v5118_v2, %v5088_v12  ;;  %v4530_v49 = vadd.f32 %v4495_v29, %v3849_v53 }
 0x32b   : > { %v3816_v25 = vpop.f32.mrf.mxu2  ;;  %v4920_v35 = vpop.f32.mrf.mxu0 }
 0x32c   : > { %v4955_v48 = vadd.f32 %v4920_v35, %v4530_v49  ;;  %v3850_v33 = vadd.f32 %v3816_v25, %v3536_v14 }
 0x32e   : > { %v5050_v22 = vadd.f32 %v5049_v6, %v4955_v48  ;;  %v5089_v43 = vmul.f32 %v4955_v48, %v4955_v48 }
 0x32f   : > { %v4497_v54 = vpop.f32.mrf.mxu3 }
 0x330   : > { %v5120_v63 = vadd.f32 %v5119_v46, %v5089_v43  ;;  %v4531_v13 = vadd.f32 %v4497_v54, %v3850_v33 }
 0x333   : > { %v4922_v42 = vpop.f32.mrf.mxu0 }
 0x334   : > { %v4956_v7 = vadd.f32 %v4922_v42, %v4531_v13 }
 0x336   : > { %v5973_v40 = vpack.c.bf16 %v4956_v7, %v4955_v48  ;;  %v5051_v23 = vadd.f32 %v5050_v22, %v4956_v7  ;;  %v5090_v58 = vmul.f32 %v4956_v7, %v4956_v7 }
 0x338   : > { %5989 = vst [vmem:[%s7375_s8 + $0x78] sm:$0xff] %v5973_v40   ;;  %v5052_v1 = vrot.slane %v5051_v23, 4  ;;  %v5121_v51 = vadd.f32 %v5120_v63, %v5090_v58 }
 0x33a   : > { %v5053_v10 = vadd.f32 %v5052_v1, %v5051_v23  ;;  %v5122_v55 = vrot.slane %v5121_v51, 4 }
 0x33c   : > { %v5054_v52 = vrot.slane %v5053_v10, 2  ;;  %v5123_v26 = vadd.f32 %v5122_v55, %v5121_v51 }
 0x33e   : > { %v5055_v59 = vadd.f32 %v5054_v52, %v5053_v10  ;;  %v5124_v39 = vrot.slane %v5123_v26, 2 }
 0x340   : > { %v5056_v62 = vrot.slane %v5055_v59, 1  ;;  %v5125_v20 = vadd.f32 %v5124_v39, %v5123_v26 }
 0x342   : > { %v5057_v30 = vadd.f32 %v5056_v62, %v5055_v59  ;;  %v5126_v44 = vrot.slane %v5125_v20, 1 }
 0x344   : > { %5058 = vst [vmem:[%s211_s10] sm:$0x1] %v5057_v30  ;;  %v5127_v34 = vadd.f32 %v5126_v44, %v5125_v20 }
 0x346   : > { %5128 = vst [vmem:[%s214_s13] sm:$0x1] %v5127_v34 }
 0x347 PF: > { %s15_s15 = sadd.s32 1, %s6085_s15  }
 0x348   : > { %p12_p4 = scmp.ge.s32.totalorder %s15_s15, 4  }
 0x34a   :  { %14 = sbr.rel (!%p12_p4) target bundleno = 1 (0x1), region = 85 }

// kernel: basic_block_forward.4
= control target key start
LH: loop header
LB: loop body
LE: loop exit
PB: predicated region body
PF: predicated region fallthrough
CT: control target
= control target key end

     0   :  { %s6432_s21 = smov 0   ;;  %s7984_s0 = inlined_call_operand.vmem [shape: bf16[2,16,16,128], index: 0, kind: input, shape index: {}]   ;;  %s7985_s1 = inlined_call_operand.vmem [shape: f32[1,128], index: 1, kind: input, shape index: {}]   ;;  %s7986_s2 = inlined_call_operand.vmem [shape: f32[1,128], index: 2, kind: input, shape index: {}]   ;;  %s7987_s3 = inlined_call_operand.vmem [shape: bf16[1152,128], index: 3, kind: input, shape index: {}]   ;;  %s7988_s4 = inlined_call_operand.vmem [shape: bf16[2,16,16,128], index: 4, kind: output, shape index: {0}]   ;;  %s7989_s5 = inlined_call_operand.vmem [shape: f32[2,1,128], index: 5, kind: output, shape index: {1}]   ;;  %s7990_s6 = inlined_call_operand.vmem [shape: f32[2,1,128], index: 6, kind: output, shape index: {2}]  }
   0x1 LB: > { %s5456_s22 = sadd.s32 4294967295, %s6394_s21   ;;  %p5460_p0 = scmp.ge.s32.totalorder %s6394_s21, 1  ;;  %s6394_s21 = sphi %s6432_s21, %s17_s21  }
   0x2   : > { %p217_p1 = scmp.lt.s32.totalorder %s6394_s21, 3 }
   0x4   : > { %p218_p2 = pnand %p5460_p0, %p217_p1 }
   0x6   : > { %221 = sbr.rel (%p218_p2) target bundleno = 867 (0x363), region = 36 }
   0xb   : > { %v6028_v0 = vld [vmem:[%s7987_s3 + $0x78] sm:$0xff]  ;;  %p253_p3 = scmp.lt.s32.totalorder %s5456_s22, 1  ;;  %vm477_vm0 = vcmask 1040384   ;;  %vm478_vm1 = vsmask.f32 256  ;;  %v6027_v1 = vld [vmem:[%s7987_s3 + $0x70] sm:$0xff] }
   0xc   : > { %6291 = vmatpush.bf16.msra.mxu1 %v6028_v0  ;;  %6292 = vmatpush.bf16.msra.mxu2 %v6028_v0  ;;  %vm6451_vm2 = vmand %vm477_vm0, %vm478_vm1  ;;  %v492_v3 = vld [vmem:[#allocation2 + $0x30] sm:$0x1]  ;;  %vm534_vm3 = vsmask.f32 7938  ;;  %v6465_v4 = vld [vmem:[%s7985_s1] ss:$0 sm:$0xff] }
   0xd   : > { %s8022_s22 = smov (!%p253_p3, %s5456_s22), 1  ;;  %6293 = vmatpush.bf16.msra.mxu3 %v6028_v0  ;;  %1606 = vmatpush.bf16.msra.mxu0 %v6028_v0  ;;  %v493_v5 = vsel %vm6451_vm2, 0, %v492_v3  ;;  %vm6471_vm4 = vmand %vm477_vm0, %vm534_vm3  ;;  %v548_v7 = vld [vmem:[#allocation2 + $0x38] sm:$0x1]  ;;  %v6026_v8 = vld [vmem:[%s7987_s3 + $0x68] sm:$0xff]  ;;  %v6396_v22 = vmov 0  }
   0xe   : > { %s5995_s27 = sshll.u32 %s8022_s22, 7  ;;  %494 = vst [vmem:[#allocation2 + $0x30] sm:$0x1] %v493_v5  ;;  %v549_v10 = vsel %vm6471_vm4, 0, %v548_v7  ;;  %v6484_v13 = vld [vmem:[%s7986_s2] ss:$0 sm:$0xff]  ;;  %s265_s24 = scalar_lea.vmem %s7989_s5, %s8022_s22 }
   0xf   : > { %s6460_s30 = scalar_lea.vmem %s7984_s0, %s5995_s27  ;;  %550 = vst [vmem:[#allocation2 + $0x38] sm:$0x1] %v549_v10  ;;  %v504_v18 = vld [vmem:[#allocation2 + $0x60] sm:$0x1]  ;;  %v560_v19 = vld [vmem:[#allocation2 + $0x68] sm:$0x1]  ;;  %s7775_s20 = scalar_lea.vmem %s7988_s4, %s5995_s27 }
  0x10   : > { %6294 = vmatpush.bf16.msra.mxu1 %v6027_v1  ;;  %6295 = vmatpush.bf16.msra.mxu2 %v6027_v1  ;;  %v6263_v9 = vld [vmem:[%s6460_s30 + $0x18] sm:$0xff]   ;;  %470 = vst [vmem:[#allocation2] sm:$0xf] %v6396_v22  ;;  %v505_v25 = vsel %vm6451_vm2, 0, %v504_v18  ;;  %v561_v26 = vsel %vm6471_vm4, 0, %v560_v19  ;;  %v6025_v28 = vld [vmem:[%s7987_s3 + $0x60] sm:$0xff]  ;;  %s268_s28 = scalar_lea.vmem %s7990_s6, %s8022_s22 }
  0x11   : > { %6296 = vmatpush.bf16.msra.mxu3 %v6027_v1  ;;  %1607 = vmatpush.bf16.msra.mxu0 %v6027_v1  ;;  %v6131_v11 = vunpack.c.l.bf16 %v6263_v9  ;;  %v6132_v12 = vunpack.c.h.bf16 %v6263_v9  ;;  %v6267_v14 = vld [vmem:[%s6460_s30 + $0x38] sm:$0xff]   ;;  %v516_v27 = vld [vmem:[#allocation2 + $0x90] sm:$0x1]  ;;  %vm913_vm5 = vcmask 1043456   ;;  %506 = vst [vmem:[#allocation2 + $0x60] sm:$0x1] %v505_v25 }
  0x12   : > { %v6271_v15 = vld [vmem:[%s6460_s30 + $0x58] sm:$0xff]   ;;  %v6147_v16 = vunpack.c.l.bf16 %v6267_v14  ;;  %v6148_v17 = vunpack.c.h.bf16 %v6267_v14  ;;  %v6502_v32 = vld [vmem:[%s6460_s30 + $0x20] sm:$0xff]   ;;  %vm590_vm6 = vsmask.f32 4368  ;;  %562 = vst [vmem:[#allocation2 + $0x68] sm:$0x1] %v561_v26  ;;  %vm6537_vm8 = vmand %vm913_vm5, %vm534_vm3 }
  0x13   : > { %v6163_v20 = vunpack.c.l.bf16 %v6271_v15  ;;  %v6164_v21 = vunpack.c.h.bf16 %v6271_v15  ;;  %v344_v23 = vmul.f32 %v6465_v4, %v6131_v11  ;;  %v345_v24 = vmul.f32 %v6465_v4, %v6132_v12  ;;  %v572_v36 = vld [vmem:[#allocation2 + $0x98] sm:$0x1]  ;;  %471 = vst [vmem:[#allocation2 + $0x4] sm:$0xf] %v6396_v22  ;;  %v6023_v59 = vld [vmem:[%s7987_s3 + $0x50] sm:$0xff]  ;;  %vm6529_vm7 = vmor %vm478_vm1, %vm590_vm6 }
  0x14   : > { %6297 = vmatpush.bf16.msra.mxu1 %v6026_v8  ;;  %6298 = vmatpush.bf16.msra.mxu2 %v6026_v8  ;;  %v352_v29 = vmul.f32 %v6465_v4, %v6147_v16  ;;  %v353_v30 = vmul.f32 %v6465_v4, %v6148_v17  ;;  %v517_v40 = vsel %vm6451_vm2, 0, %v516_v27  ;;  %v6135_v44 = vunpack.c.l.bf16 %v6502_v32  ;;  %v6024_v45 = vld [vmem:[%s7987_s3 + $0x58] sm:$0xff]  ;;  %472 = vst [vmem:[#allocation2 + $0x8] sm:$0x1] %v6396_v22  ;;  %v6022_v27 = vld [vmem:[%s7987_s3 + $0x48] sm:$0xff] }
  0x15   : > { %v360_v31 = vmul.f32 %v6465_v4, %v6163_v20  ;;  %6299 = vmatpush.bf16.msra.mxu3 %v6026_v8  ;;  %1608 = vmatpush.bf16.msra.mxu0 %v6026_v8  ;;  %v380_v33 = vadd.f32 %v6484_v13, %v344_v23  ;;  %v381_v34 = vadd.f32 %v6484_v13, %v345_v24  ;;  %v573_v49 = vsel %vm6471_vm4, 0, %v572_v36  ;;  %v936_v0 = vld [vmem:[#allocation2 + $0x30] sm:$0xf] }
  0x16   : > { %v361_v35 = vmul.f32 %v6465_v4, %v6164_v21  ;;  %v388_v37 = vadd.f32 %v6484_v13, %v352_v29  ;;  %v389_v38 = vadd.f32 %v6484_v13, %v353_v30  ;;  %518 = vst [vmem:[#allocation2 + $0x90] sm:$0x1] %v517_v40  ;;  %v6136_v54 = vunpack.c.h.bf16 %v6502_v32  ;;  %v940_v1 = vld [vmem:[#allocation2 + $0x38] sm:$0x1] }
  0x17   : > { %v396_v39 = vadd.f32 %v6484_v13, %v360_v31  ;;  %v412_v41 = vmax.f32 %v380_v33, 0.0  ;;  %v413_v42 = vmax.f32 %v381_v34, 0.0  ;;  %574 = vst [vmem:[#allocation2 + $0x98] sm:$0x1] %v573_v49  ;;  %v480_v53 = vld [vmem:[#allocation2] sm:$0x1]  ;;  %v346_v20 = vmul.f32 %v6465_v4, %v6135_v44 }
  0x18   : > { %v397_v43 = vadd.f32 %v6484_v13, %v361_v35  ;;  %6300 = vmatpush.bf16.msra.mxu1 %v6025_v28  ;;  %6301 = vmatpush.bf16.msra.mxu2 %v6025_v28  ;;  %v420_v46 = vmax.f32 %v388_v37, 0.0  ;;  %v421_v47 = vmax.f32 %v389_v38, 0.0  ;;  %v481_v58 = vsel %vm6451_vm2, 0, %v480_v53  ;;  %v964_v18 = vld [vmem:[#allocation2 + $0x60] sm:$0xf] }
  0x19   : > { %v428_v48 = vmax.f32 %v396_v39, 0.0  ;;  %6302 = vmatpush.bf16.msra.mxu3 %v6025_v28  ;;  %1609 = vmatpush.bf16.msra.mxu0 %v6025_v28  ;;  %v444_v50 = vpack.c.bf16 %v412_v41, %v412_v41  ;;  %v445_v51 = vpack.c.bf16 %v413_v42, %v413_v42  ;;  %482 = vst [vmem:[#allocation2] sm:$0x1] %v481_v58  ;;  %v968_v26 = vld [vmem:[#allocation2 + $0x68] sm:$0x1]  ;;  %v6021_v44 = vld [vmem:[%s7987_s3 + $0x40] sm:$0xff] }
  0x1a   : > { %v429_v52 = vmax.f32 %v397_v43, 0.0  ;;  %v452_v55 = vpack.c.bf16 %v420_v46, %v420_v46  ;;  %v453_v56 = vpack.c.bf16 %v421_v47, %v421_v47  ;;  %474 = vst [vmem:[#allocation2 + $0xcc] sm:$0xf] %v6396_v22  ;;  %v1028_v38 = vld [vmem:[#allocation2 + $0x4] sm:$0xf]  ;;  %vm1976_vm12 = vcmask 1042432  }
  0x1b   : > { %v460_v57 = vpack.c.bf16 %v428_v48, %v428_v48  ;;  %v644_v60 = vshrl.u32 %v444_v50, 16  ;;  %v647_v61 = vshll.u32 %v444_v50, 16  ;;  %v652_v62 = vshrl.u32 %v445_v51, 16  ;;  %475 = vst [vmem:[#allocation2 + $0xd0] sm:$0xf] %v6396_v22 }
  0x1c   : > { %v655_v63 = vshll.u32 %v445_v51, 16  ;;  %6303 = vmatpush.bf16.msra.mxu1 %v6024_v45  ;;  %6304 = vmatpush.bf16.msra.mxu2 %v6024_v45  ;;  %v712_v3 = vshrl.u32 %v452_v55, 16  ;;  %v715_v5 = vshll.u32 %v452_v55, 16  ;;  %v720_v7 = vshrl.u32 %v453_v56, 16  ;;  %v6553_v37 = vld [vmem:[#allocation2 + $0x8] sm:$0x1] }
  0x1d   : > { %v723_v8 = vshll.u32 %v453_v56, 16  ;;  %6305 = vmatpush.bf16.msra.mxu3 %v6024_v45  ;;  %1610 = vmatpush.bf16.msra.mxu0 %v6024_v45  ;;  %v646_v10 = vrot.slane %v644_v60, 7  ;;  %v654_v11 = vrot.slane %v652_v62, 7  ;;  %v6533_v12 = vpack.c.bf16 %v429_v52, %v429_v52  ;;  %v992_v43 = vld [vmem:[#allocation2 + $0x90] sm:$0xf]  ;;  %v6036_v52 = vld [vmem:[%s7987_s3 + $0xb8] sm:$0xff] }
  0x1e   : > { %v780_v14 = vshrl.u32 %v460_v57, 16  ;;  %v714_v16 = vrot.slane %v712_v3, 7  ;;  %v722_v17 = vrot.slane %v720_v7, 7  ;;  %v783_v19 = vshll.u32 %v460_v57, 16  ;;  %v996_v48 = vld [vmem:[#allocation2 + $0x98] sm:$0x1] }
  0x1f   : > { %v649_v21 = vor.u32 %v647_v61, %v646_v10  ;;  %v650_v23 = vrot.slane %v646_v10, 4  ;;  %v657_v24 = vor.u32 %v655_v63, %v654_v11  ;;  %v659_v25 = vrot.slane %v654_v11, 4  ;;  %v6569_v50 = vld [vmem:[#allocation2 + $0x3c] sm:$0x1]  ;;  %v6584_v63 = vld [vmem:[%s6460_s30 + $0x40] sm:$0xff]  }
  0x20   : > { %6306 = vmatpush.bf16.msra.mxu1 %v6023_v59  ;;  %6307 = vmatpush.bf16.msra.mxu2 %v6023_v59  ;;  %v717_v28 = vor.u32 %v715_v5, %v714_v16  ;;  %v718_v29 = vrot.slane %v714_v16, 4  ;;  %v725_v30 = vor.u32 %v723_v8, %v722_v17  ;;  %v727_v31 = vrot.slane %v722_v17, 4  ;;  %v1027_v53 = vld [vmem:[#allocation2] sm:$0xf]  ;;  %v6060_v62 = vld [vmem:[%s7987_s3 + $0xf8] sm:$0xff]  ;;  %v6035_v16 = vld [vmem:[%s7987_s3 + $0xb0] sm:$0xff] }
  0x21   : > { %6308 = vmatpush.bf16.msra.mxu3 %v6023_v59  ;;  %1611 = vmatpush.bf16.msra.mxu0 %v6023_v59  ;;  %v658_v33 = vsel %vm6529_vm7, %v650_v23, %v657_v24  ;;  %v937_v34 = vsel %vm6537_vm8, %v649_v21, %v936_v0  ;;  %v941_v35 = vsel %vm6451_vm2, %v659_v25, %v940_v1  ;;  %v782_v36 = vrot.slane %v780_v14, 7  ;;  %v6020_v1 = vld [vmem:[%s7987_s3 + $0x38] sm:$0xff]  ;;  %v6059_v24 = vld [vmem:[%s7987_s3 + $0xf0] sm:$0xff] }
  0x22   : > { %938 = vst [vmem:[#allocation2 + $0x30] sm:$0xf] %v937_v34  ;;  %v726_v39 = vsel %vm6529_vm7, %v718_v29, %v725_v30  ;;  %v965_v40 = vsel %vm6537_vm8, %v717_v28, %v964_v18  ;;  %v969_v41 = vsel %vm6451_vm2, %v727_v31, %v968_v26  ;;  %v788_v42 = vshrl.u32 %v6533_v12, 16  ;;  %v6068_v3 = vld [vmem:[%s7987_s3 + $0x138] sm:$0xff]  ;;  %v6019_v25 = vld [vmem:[%s7987_s3 + $0x30] sm:$0xff] }
  0x23   : > { %939 = vst [vmem:[#allocation2 + $0x34] sm:$0xf] %v658_v33  ;;  %v785_v45 = vor.u32 %v783_v19, %v782_v36  ;;  %v786_v46 = vrot.slane %v782_v36, 4  ;;  %v791_v47 = vshll.u32 %v6533_v12, 16  ;;  %v537_v49 = vsel %vm6471_vm4, 0, %v6553_v37  ;;  %v6608_v19 = vld [vmem:[%s6460_s30 + $0x60] sm:$0xff]  }
  0x24   : > { %6309 = vmatpush.bf16.msra.mxu1 %v6022_v27  ;;  %6310 = vmatpush.bf16.msra.mxu2 %v6022_v27  ;;  %942 = vst [vmem:[#allocation2 + $0x38] sm:$0x1] %v941_v35  ;;  %vm1091_vm9 = vsmask.f32 3328  ;;  %vm1092_vm10 = vsmask.f32 7440  ;;  %v347_v56 = vmul.f32 %v6465_v4, %v6136_v54  ;;  %v382_v57 = vadd.f32 %v6484_v13, %v346_v20 }
  0x25   : > { %v790_v51 = vrot.slane %v788_v42, 7  ;;  %v1104_v55 = vshll.u32 %v1028_v38, 16  ;;  %6311 = vmatpush.bf16.msra.mxu3 %v6022_v27  ;;  %1612 = vmatpush.bf16.msra.mxu0 %v6022_v27  ;;  %966 = vst [vmem:[#allocation2 + $0x60] sm:$0xf] %v965_v40  ;;  %v993_v58 = vsel %vm6537_vm8, %v785_v45, %v992_v43  ;;  %v1095_v59 = vshrl.u32 %v1027_v53, 16  ;;  %vm6627_vm11 = vmor %vm1091_vm9, %vm1092_vm10 }
  0x26   : > { %v1098_v60 = vshll.u32 %v1027_v53, 16  ;;  %v1108_v61 = vshrl.u32 %v1028_v38, 16  ;;  %967 = vst [vmem:[#allocation2 + $0x64] sm:$0xf] %v726_v39  ;;  %v383_v5 = vadd.f32 %v6484_v13, %v347_v56  ;;  %v414_v11 = vmax.f32 %v382_v57, 0.0 }
  0x27   : > { %v793_v32 = vor.u32 %v791_v47, %v790_v51  ;;  %v795_v54 = vrot.slane %v790_v51, 4  ;;  %v6586_v0 = vrot.slane %v1104_v55, 5  ;;  %970 = vst [vmem:[#allocation2 + $0x68] sm:$0x1] %v969_v41  ;;  %v1097_v7 = vrot.slane %v1095_v59, 4 }
  0x28   : > { %v1100_v8 = vrot.slane %v1098_v60, 5  ;;  %v6595_v10 = vrot.slane %v1108_v61, 4  ;;  %6312 = vmatpush.bf16.msra.mxu1 %v6021_v44  ;;  %6313 = vmatpush.bf16.msra.mxu2 %v6021_v44  ;;  %994 = vst [vmem:[#allocation2 + $0x90] sm:$0xf] %v993_v58  ;;  %v415_v17 = vmax.f32 %v383_v5, 0.0  ;;  %v496_v18 = vsel %vm6451_vm2, 0, %v6569_v50 }
  0x29   : > { %v794_v12 = vsel %vm6529_vm7, %v786_v46, %v793_v32  ;;  %v997_v14 = vsel %vm6451_vm2, %v795_v54, %v996_v48  ;;  %6314 = vmatpush.bf16.msra.mxu3 %v6021_v44  ;;  %1613 = vmatpush.bf16.msra.mxu0 %v6021_v44  ;;  %v1035_v20 = vld [vmem:[#allocation2 + $0x30] sm:$0xf]  ;;  %v6618_v26 = vpack.c.bf16 %v414_v11, %v414_v11  ;;  %v6151_v31 = vunpack.c.l.bf16 %v6584_v63 }
  0x2a   : > { %995 = vst [vmem:[#allocation2 + $0x94] sm:$0xf] %v794_v12  ;;  %v1101_v21 = vor.u32 %v1100_v8, %v1097_v7  ;;  %v1111_v23 = vor.u32 %v6595_v10, %v6586_v0  ;;  %v1036_v27 = vld [vmem:[#allocation2 + $0x34] sm:$0xf]  ;;  %v1191_v28 = vshrl.u32 %v1035_v20, 16  ;;  %v1194_v29 = vshll.u32 %v1035_v20, 16 }
  0x2b   : > { %998 = vst [vmem:[#allocation2 + $0x98] sm:$0x1] %v997_v14  ;;  %v6620_v30 = vpack.c.bf16 %v415_v17, %v415_v17  ;;  %v1079_v33 = vld [vmem:[#allocation2 + $0x38] sm:$0x1]  ;;  %v1200_v34 = vshll.u32 %v1036_v27, 16  ;;  %v1204_v35 = vshrl.u32 %v1036_v27, 16  ;;  %v6152_v36 = vunpack.c.h.bf16 %v6584_v63 }
  0x2c   : > { %2219 = vmatpush.bf16.msrb.mxu2 %v6036_v52  ;;  %538 = vst [vmem:[#allocation2 + $0x8] sm:$0x1] %v537_v49  ;;  %1839 = vmatpush.bf16.msrb.mxu1 %v6020_v1  ;;  %v6167_v37 = vunpack.c.l.bf16 %v6608_v19  ;;  %v1193_v38 = vrot.slane %v1191_v28, 4  ;;  %v1196_v39 = vrot.slane %v1194_v29, 5  ;;  %v1210_v40 = vshll.u32 %v1079_v33, 16 }
  0x2d   : > { %2532 = vmatpush.bf16.msrb.mxu3 %v6060_v62  ;;  %3213 = vmatpush.bf16.msrb.mxu0 %v6068_v3  ;;  %v1043_v41 = vld [vmem:[#allocation2 + $0x60] sm:$0xf]  ;;  %v1102_v42 = vrot.slane %v1101_v21, 4  ;;  %v1202_v43 = vrot.slane %v1200_v34, 5  ;;  %v1206_v44 = vrot.slane %v1204_v35, 4  ;;  %vm1977_vm13 = vcmask 1046532  }
  0x2e   : > { %v1044_v45 = vld [vmem:[#allocation2 + $0x64] sm:$0xf]  ;;  %v1287_v46 = vshrl.u32 %v1043_v41, 16  ;;  %v1290_v47 = vshll.u32 %v1043_v41, 16  ;;  %v1197_v48 = vor.u32 %v1196_v39, %v1193_v38  ;;  %v1212_v51 = vrot.slane %v1210_v40, 5  ;;  %vm7003_vm14 = vmor %vm1976_vm12, %vm1977_vm13 }
  0x2f   : > { %v1083_v52 = vld [vmem:[#allocation2 + $0x68] sm:$0x1]  ;;  %v1296_v49 = vshll.u32 %v1044_v45, 16  ;;  %v1300_v53 = vshrl.u32 %v1044_v45, 16  ;;  %v1207_v56 = vor.u32 %v1206_v44, %v1202_v43  ;;  %v1051_v60 = vld [vmem:[#allocation2 + $0x90] sm:$0xf]  ;;  %v1107_v39 = vsel %vm6627_vm11, %v1102_v42, %v6586_v0 }
  0x30   : > { %2220 = vmatpush.bf16.msrb.mxu2 %v6035_v16  ;;  %v1289_v57 = vrot.slane %v1287_v46, 4  ;;  %v1292_v58 = vrot.slane %v1290_v47, 5  ;;  %v1306_v59 = vshll.u32 %v1083_v52, 16  ;;  %1840 = vmatpush.bf16.msrb.mxu1 %v6019_v25  ;;  %v1198_v61 = vrot.slane %v1197_v48, 4  ;;  %476 = vst [vmem:[#allocation2 + $0xd4] sm:$0x1] %v6396_v22 }
  0x31   : > { %2533 = vmatpush.bf16.msrb.mxu3 %v6059_v24  ;;  %v1298_v62 = vrot.slane %v1296_v49, 5  ;;  %v1302_v32 = vrot.slane %v1300_v53, 4  ;;  %v1052_v54 = vld [vmem:[#allocation2 + $0x94] sm:$0xf]  ;;  %v1383_v1 = vshrl.u32 %v1051_v60, 16  ;;  %v1208_v3 = vrot.slane %v1207_v56, 4 }
  0x32   : > { %v1293_v5 = vor.u32 %v1292_v58, %v1289_v57  ;;  %v1308_v7 = vrot.slane %v1306_v59, 5  ;;  %v1386_v8 = vshll.u32 %v1051_v60, 16  ;;  %v1203_v11 = vsel %vm6627_vm11, %v1198_v61, %v1202_v43  ;;  %v1087_v14 = vld [vmem:[#allocation2 + $0x98] sm:$0x1]  ;;  %497 = vst [vmem:[#allocation2 + $0x3c] sm:$0x1] %v496_v18 }
  0x33   : > { %v1303_v12 = vor.u32 %v1302_v32, %v1298_v62  ;;  %v1385_v16 = vrot.slane %v1383_v1, 4  ;;  %v1392_v17 = vshll.u32 %v1052_v54, 16  ;;  %v1213_v20 = vsel %vm6627_vm11, %v1208_v3, %v1212_v51  ;;  %v1075_v38 = vld [vmem:[#allocation2 + $0x8] sm:$0x1]  ;;  %v551_v40 = vld [vmem:[#allocation2 + $0x44] sm:$0x1] }
  0x34   : > { %v1502_v21 = vunpack.c.l.b16 %v1203_v11  ;;  %v1294_v24 = vrot.slane %v1293_v5, 4  ;;  %v1388_v25 = vrot.slane %v1386_v8, 5  ;;  %v1503_v27 = vunpack.c.l.b16 %v1213_v20  ;;  %v507_v58 = vld [vmem:[#allocation2 + $0x6c] sm:$0x1] }
  0x35   : > { %v1304_v28 = vrot.slane %v1303_v12, 4  ;;  %v1394_v29 = vrot.slane %v1392_v17, 5  ;;  %v1396_v33 = vshrl.u32 %v1052_v54, 16  ;;  %v1402_v22 = vshll.u32 %v1087_v14, 16  ;;  %v575_v17 = vld [vmem:[#allocation2 + $0xa4] sm:$0x1] }
  0x36   : > { %v1299_v34 = vsel %vm6627_vm11, %v1294_v24, %v1298_v62  ;;  %v1389_v35 = vor.u32 %v1388_v25, %v1385_v16  ;;  %v1530_v41 = vpack.c.b16 %v1503_v27, %v1502_v21  ;;  %v1112_v47 = vrot.slane %v1111_v23, 4  ;;  %v519_v16 = vld [vmem:[#allocation2 + $0x9c] sm:$0x1]  ;;  %v6118_v27 = vld [vmem:[%s6460_s30] sm:$0xff]  }
  0x37   : > { %v1309_v50 = vsel %vm6627_vm11, %v1304_v28, %v1308_v7  ;;  %v1510_v18 = vunpack.c.l.b16 %v1299_v34  ;;  %v1398_v43 = vrot.slane %v1396_v33, 4  ;;  %v1404_v46 = vrot.slane %v1402_v22, 5  ;;  %v483_v28 = vld [vmem:[#allocation2 + $0xc] sm:$0x1] }
  0x38   : > { %v1511_v44 = vunpack.c.l.b16 %v1309_v50  ;;  %v1390_v45 = vrot.slane %v1389_v35, 4  ;;  %1634 = vmatmul.bf16.vlgmr.msra.gmra.mxu1 %v1530_v41  ;;  %v1114_v51 = vshll.u32 %v1075_v38, 16  ;;  %v1494_v52 = vunpack.c.l.b16 %v1107_v39 }
  0x39   : > { %v1399_v48 = vor.u32 %v1398_v43, %v1394_v29  ;;  %v552_v42 = vsel %vm6471_vm4, 0, %v551_v40  ;;  %v661_v56 = vshrl.u32 %v6618_v26, 16  ;;  %v664_v57 = vshll.u32 %v6618_v26, 16  ;;  %v943_v3 = vld [vmem:[#allocation2 + $0x3c] sm:$0xf] }
  0x3a   : > { %v1534_v49 = vpack.c.b16 %v1511_v44, %v1510_v18  ;;  %v1395_v53 = vsel %vm6627_vm11, %v1390_v45, %v1394_v29  ;;  %553 = vst [vmem:[#allocation2 + $0x44] sm:$0x1] %v552_v42  ;;  %v1116_v10 = vrot.slane %v1114_v51, 5  ;;  %v669_v23 = vshrl.u32 %v6620_v30, 16  ;;  %v6677_v29 = vld [vmem:[#allocation2 + $0x14] sm:$0x1] }
  0x3b   : > { %v1400_v59 = vrot.slane %v1399_v48, 4  ;;  %v1518_v0 = vunpack.c.l.b16 %v1395_v53  ;;  %v663_v60 = vrot.slane %v661_v56, 7  ;;  %v672_v61 = vshll.u32 %v6620_v30, 16  ;;  %v563_v30 = vld [vmem:[#allocation2 + $0x74] sm:$0x1]  ;;  %v6699_v48 = vld [vmem:[%s6460_s30 + $0x28] sm:$0xff]  }
  0x3c   : > { %1654 = vmatmul.bf16.vlgmr.msra.gmra.mxu2 %v1534_v49  ;;  %v354_v62 = vmul.f32 %v6465_v4, %v6151_v31  ;;  %v355_v32 = vmul.f32 %v6465_v4, %v6152_v36  ;;  %v1117_v54 = vsel %vm6627_vm11, %v1112_v47, %v1116_v10  ;;  %v671_v1 = vrot.slane %v669_v23, 7 }
  0x3d   : > { %v1405_v26 = vsel %vm6627_vm11, %v1400_v59, %v1404_v46  ;;  %v508_v5 = vsel %vm6451_vm2, 0, %v507_v58  ;;  %v1495_v8 = vunpack.c.l.b16 %v1117_v54  ;;  %v666_v31 = vor.u32 %v664_v57, %v663_v60 }
  0x3e   : > { %v1519_v7 = vunpack.c.l.b16 %v1405_v26  ;;  %v667_v11 = vrot.slane %v663_v60, 4  ;;  %509 = vst [vmem:[#allocation2 + $0x6c] sm:$0x1] %v508_v5  ;;  %v674_v63 = vor.u32 %v672_v61, %v671_v1  ;;  %v676_v36 = vrot.slane %v671_v1, 4 }
  0x3f   : > { %v390_v12 = vadd.f32 %v6484_v13, %v354_v62  ;;  %v391_v14 = vadd.f32 %v6484_v13, %v355_v32  ;;  %v1526_v21 = vpack.c.b16 %v1495_v8, %v1494_v52  ;;  %v944_v24 = vsel %vm6537_vm8, %v666_v31, %v943_v3 }
  0x40   : > { %v1538_v20 = vpack.c.b16 %v1519_v7, %v1518_v0  ;;  %v564_v25 = vsel %vm6471_vm4, 0, %v563_v30  ;;  %v675_v33 = vsel %vm6529_vm7, %v667_v11, %v674_v63  ;;  %945 = vst [vmem:[#allocation2 + $0x3c] sm:$0xf] %v944_v24  ;;  %v6168_v38 = vunpack.c.h.bf16 %v6608_v19 }
  0x41   : > { %v947_v34 = vld [vmem:[#allocation2 + $0x44] sm:$0x1]  ;;  %v422_v35 = vmax.f32 %v390_v12, 0.0  ;;  %v423_v22 = vmax.f32 %v391_v14, 0.0  ;;  %1614 = vmatmul.bf16.vlgmr.msra.gmra.mxu0 %v1526_v21  ;;  %946 = vst [vmem:[#allocation2 + $0x40] sm:$0xf] %v675_v33  ;;  %v362_v40 = vmul.f32 %v6465_v4, %v6167_v37  ;;  %v6119_v45 = vunpack.c.l.bf16 %v6118_v27 }
  0x42   : > { %1674 = vmatmul.bf16.vlgmr.msra.gmra.mxu3 %v1538_v20  ;;  %v948_v39 = vsel %vm6451_vm2, %v676_v36, %v947_v34  ;;  %v520_v41 = vsel %vm6451_vm2, 0, %v519_v16  ;;  %v576_v50 = vsel %vm6471_vm4, 0, %v575_v17  ;;  %v363_v44 = vmul.f32 %v6465_v4, %v6168_v38  ;;  %565 = vst [vmem:[#allocation2 + $0x74] sm:$0x1] %v564_v25 }
  0x43   : > { %949 = vst [vmem:[#allocation2 + $0x44] sm:$0x1] %v948_v39  ;;  %v454_v18 = vpack.c.bf16 %v422_v35, %v422_v35  ;;  %v455_v43 = vpack.c.bf16 %v423_v22, %v423_v22  ;;  %v398_v46 = vadd.f32 %v6484_v13, %v362_v40  ;;  %v6120_v47 = vunpack.c.h.bf16 %v6118_v27 }
  0x44   : > { %v484_v19 = vsel %vm6451_vm2, 0, %v483_v28  ;;  %v540_v37 = vsel %vm6471_vm4, 0, %v6677_v29  ;;  %v399_v53 = vadd.f32 %v6484_v13, %v363_v44  ;;  %521 = vst [vmem:[#allocation2 + $0x9c] sm:$0x1] %v520_v41  ;;  %v338_v57 = vmul.f32 %v6465_v4, %v6119_v45  ;;  %v6034_v28 = vld [vmem:[%s7987_s3 + $0xa8] sm:$0xff] }
  0x45   : > { %v729_v51 = vshrl.u32 %v454_v18, 16  ;;  %v732_v52 = vshll.u32 %v454_v18, 16  ;;  %v737_v42 = vshrl.u32 %v455_v43, 16  ;;  %v740_v49 = vshll.u32 %v455_v43, 16  ;;  %v971_v10 = vld [vmem:[#allocation2 + $0x6c] sm:$0xf]  ;;  %2221 = vmatpush.bf16.msrb.mxu2 %v6034_v28 }
  0x46   : > { %v430_v56 = vmax.f32 %v398_v46, 0.0  ;;  %v339_v58 = vmul.f32 %v6465_v4, %v6120_v47  ;;  %577 = vst [vmem:[#allocation2 + $0xa4] sm:$0x1] %v576_v50  ;;  %v6139_v23 = vunpack.c.l.bf16 %v6699_v48  ;;  %v6140_v60 = vunpack.c.h.bf16 %v6699_v48 }
  0x47   : > { %v731_v59 = vrot.slane %v729_v51, 7  ;;  %v739_v0 = vrot.slane %v737_v42, 7  ;;  %v1037_v61 = vld [vmem:[#allocation2 + $0x3c] sm:$0xf]  ;;  %v431_v62 = vmax.f32 %v399_v53, 0.0  ;;  %v374_v26 = vadd.f32 %v6484_v13, %v338_v57 }
  0x48   : > { %v462_v32 = vpack.c.bf16 %v430_v56, %v430_v56  ;;  %v375_v54 = vadd.f32 %v6484_v13, %v339_v58  ;;  %485 = vst [vmem:[#allocation2 + $0xc] sm:$0x1] %v484_v19  ;;  %v1038_v1 = vld [vmem:[#allocation2 + $0x40] sm:$0xf]  ;;  %v1215_v3 = vshrl.u32 %v1037_v61, 16  ;;  %v1218_v5 = vshll.u32 %v1037_v61, 16 }
  0x49   : > { %v734_v30 = vor.u32 %v732_v52, %v731_v59  ;;  %v735_v7 = vrot.slane %v731_v59, 4  ;;  %v1224_v31 = vshll.u32 %v1038_v1, 16  ;;  %v1228_v11 = vshrl.u32 %v1038_v1, 16  ;;  %v975_v20 = vld [vmem:[#allocation2 + $0x74] sm:$0x1] }
  0x4a   : > { %v1080_v8 = vld [vmem:[#allocation2 + $0x44] sm:$0x1]  ;;  %v742_v63 = vor.u32 %v740_v49, %v739_v0  ;;  %v744_v36 = vrot.slane %v739_v0, 4  ;;  %v1217_v12 = vrot.slane %v1215_v3, 4  ;;  %v1220_v14 = vrot.slane %v1218_v5, 5 }
  0x4b   : > { %v1234_v16 = vshll.u32 %v1080_v8, 16  ;;  %v972_v17 = vsel %vm6537_vm8, %v734_v30, %v971_v10  ;;  %v1226_v21 = vrot.slane %v1224_v31, 5  ;;  %v1230_v24 = vrot.slane %v1228_v11, 4  ;;  %541 = vst [vmem:[#allocation2 + $0x14] sm:$0x1] %v540_v37  ;;  %v6058_v30 = vld [vmem:[%s7987_s3 + $0xe8] sm:$0xff] }
  0x4c   : > { %v743_v25 = vsel %vm6529_vm7, %v735_v7, %v742_v63  ;;  %973 = vst [vmem:[#allocation2 + $0x6c] sm:$0xf] %v972_v17  ;;  %v976_v27 = vsel %vm6451_vm2, %v744_v36, %v975_v20  ;;  %v1221_v29 = vor.u32 %v1220_v14, %v1217_v12  ;;  %v463_v34 = vpack.c.bf16 %v431_v62, %v431_v62  ;;  %v999_v45 = vld [vmem:[#allocation2 + $0x9c] sm:$0xf]  ;;  %v6067_v7 = vld [vmem:[%s7987_s3 + $0x130] sm:$0xff]  ;;  %v6018_v36 = vld [vmem:[%s7987_s3 + $0x28] sm:$0xff] }
  0x4d   : > { %v1236_v33 = vrot.slane %v1234_v16, 5  ;;  %974 = vst [vmem:[#allocation2 + $0x70] sm:$0xf] %v743_v25  ;;  %v797_v35 = vshrl.u32 %v462_v32, 16  ;;  %v1231_v22 = vor.u32 %v1230_v24, %v1226_v21  ;;  %v800_v38 = vshll.u32 %v462_v32, 16  ;;  %2534 = vmatpush.bf16.msrb.mxu3 %v6058_v30  ;;  %3214 = vmatpush.bf16.msrb.mxu0 %v6067_v7 }
  0x4e   : > { %977 = vst [vmem:[#allocation2 + $0x74] sm:$0x1] %v976_v27  ;;  %v406_v39 = vmax.f32 %v374_v26, 0.0  ;;  %v348_v40 = vmul.f32 %v6465_v4, %v6139_v23  ;;  %v1222_v41 = vrot.slane %v1221_v29, 4  ;;  %v805_v18 = vshrl.u32 %v463_v34, 16  ;;  %1841 = vmatpush.bf16.msrb.mxu1 %v6018_v36  ;;  %v6033_v29 = vld [vmem:[%s7987_s3 + $0xa0] sm:$0xff] }
  0x4f   : > { %v799_v50 = vrot.slane %v797_v35, 7  ;;  %v808_v43 = vshll.u32 %v463_v34, 16  ;;  %v1232_v44 = vrot.slane %v1231_v22, 4  ;;  %v407_v46 = vmax.f32 %v375_v54, 0.0  ;;  %v1003_v10 = vld [vmem:[#allocation2 + $0xa4] sm:$0x1]  ;;  %2222 = vmatpush.bf16.msrb.mxu2 %v6033_v29 }
  0x50   : > { %v438_v47 = vpack.c.bf16 %v406_v39, %v406_v39  ;;  %v349_v19 = vmul.f32 %v6465_v4, %v6140_v60  ;;  %v1227_v48 = vsel %vm6627_vm11, %v1222_v41, %v1226_v21  ;;  %v807_v42 = vrot.slane %v805_v18, 7  ;;  %v498_v8 = vld [vmem:[#allocation2 + $0x48] sm:$0x1]  ;;  %v554_v12 = vld [vmem:[#allocation2 + $0x50] sm:$0x1]  ;;  %v6057_v22 = vld [vmem:[%s7987_s3 + $0xe0] sm:$0xff] }
  0x51   : > { %v802_v51 = vor.u32 %v800_v38, %v799_v50  ;;  %v803_v52 = vrot.slane %v799_v50, 4  ;;  %v1237_v49 = vsel %vm6627_vm11, %v1232_v44, %v1236_v33  ;;  %v1504_v53 = vunpack.c.l.b16 %v1227_v48  ;;  %v915_v28 = vld [vmem:[#allocation2 + $0xc] sm:$0xf]  ;;  %v6017_v39 = vld [vmem:[%s7987_s3 + $0x20] sm:$0xff]  ;;  %2535 = vmatpush.bf16.msrb.mxu3 %v6057_v22  ;;  %v510_v30 = vld [vmem:[#allocation2 + $0x78] sm:$0x1] }
  0x52   : > { %v6723_v56 = vpack.c.bf16 %v407_v46, %v407_v46  ;;  %v593_v57 = vshrl.u32 %v438_v47, 16  ;;  %v1505_v37 = vunpack.c.l.b16 %v1237_v49  ;;  %v810_v59 = vor.u32 %v808_v43, %v807_v42  ;;  %v6066_v38 = vld [vmem:[%s7987_s3 + $0x128] sm:$0xff]  ;;  %v919_v49 = vld [vmem:[#allocation2 + $0x14] sm:$0x1]  ;;  %1842 = vmatpush.bf16.msrb.mxu1 %v6017_v39 }
  0x53   : > { %v1045_v58 = vld [vmem:[#allocation2 + $0x6c] sm:$0xf]  ;;  %v812_v0 = vrot.slane %v807_v42, 4  ;;  %v1000_v4 = vsel %vm6537_vm8, %v802_v51, %v999_v45  ;;  %v384_v62 = vadd.f32 %v6484_v13, %v348_v40  ;;  %v6729_v32 = vadd.f32 %v6484_v13, %v349_v19  ;;  %3215 = vmatpush.bf16.msrb.mxu0 %v6066_v38 }
  0x54   : > { %v1046_v23 = vld [vmem:[#allocation2 + $0x70] sm:$0xf]  ;;  %v1311_v60 = vshrl.u32 %v1045_v58, 16  ;;  %v1314_v61 = vshll.u32 %v1045_v58, 16  ;;  %1001 = vst [vmem:[#allocation2 + $0x9c] sm:$0xf] %v1000_v4  ;;  %v1531_v26 = vpack.c.b16 %v1505_v37, %v1504_v53  ;;  %v811_v5 = vsel %vm6529_vm7, %v803_v52, %v810_v59 }
  0x55   : > { %v1084_v54 = vld [vmem:[#allocation2 + $0x74] sm:$0x1]  ;;  %v1320_v1 = vshll.u32 %v1046_v23, 16  ;;  %v1324_v3 = vshrl.u32 %v1046_v23, 16  ;;  %1002 = vst [vmem:[#allocation2 + $0xa0] sm:$0xf] %v811_v5  ;;  %v1004_v63 = vsel %vm6451_vm2, %v812_v0, %v1003_v10 }
  0x56   : > { %v1313_v31 = vrot.slane %v1311_v60, 4  ;;  %v1316_v11 = vrot.slane %v1314_v61, 5  ;;  %v1330_v13 = vshll.u32 %v1084_v54, 16  ;;  %1639 = vmatmul.bf16.gmra.mxu1 %v1531_v26  ;;  %1005 = vst [vmem:[#allocation2 + $0xa4] sm:$0x1] %v1004_v63  ;;  %v595_v17 = vrot.slane %v593_v57, 7 }
  0x57   : > { %v1322_v14 = vrot.slane %v1320_v1, 5  ;;  %v1326_v16 = vrot.slane %v1324_v3, 4  ;;  %v596_v20 = vshll.u32 %v438_v47, 16  ;;  %v601_v25 = vshrl.u32 %v6723_v56, 16  ;;  %v6269_v26 = vld [vmem:[%s6460_s30 + $0x48] sm:$0xff]  }
  0x58   : > { %v1317_v21 = vor.u32 %v1316_v11, %v1313_v31  ;;  %v1332_v24 = vrot.slane %v1330_v13, 5  ;;  %v604_v27 = vshll.u32 %v6723_v56, 16  ;;  %v599_v35 = vrot.slane %v595_v17, 4 }
  0x59   : > { %v1327_v33 = vor.u32 %v1326_v16, %v1322_v14  ;;  %v598_v34 = vor.u32 %v596_v20, %v595_v17  ;;  %v416_v40 = vmax.f32 %v384_v62, 0.0  ;;  %v603_v50 = vrot.slane %v601_v25, 7 }
  0x5a   : > { %v1318_v41 = vrot.slane %v1317_v21, 4  ;;  %v417_v18 = vmax.f32 %v6729_v32, 0.0  ;;  %v499_v43 = vsel %vm6451_vm2, 0, %v498_v8  ;;  %v555_v19 = vsel %vm6471_vm4, 0, %v554_v12 }
  0x5b   : > { %v1328_v44 = vrot.slane %v1327_v33, 4  ;;  %v1053_v45 = vld [vmem:[#allocation2 + $0x9c] sm:$0xf]  ;;  %v916_v46 = vsel %vm6537_vm8, %v598_v34, %v915_v28  ;;  %v448_v47 = vpack.c.bf16 %v416_v40, %v416_v40  ;;  %500 = vst [vmem:[#allocation2 + $0x48] sm:$0x1] %v499_v43  ;;  %v606_v42 = vor.u32 %v604_v27, %v603_v50 }
  0x5c   : > { %v1323_v48 = vsel %vm6627_vm11, %v1318_v41, %v1322_v14  ;;  %v1407_v51 = vshrl.u32 %v1053_v45, 16  ;;  %v1410_v52 = vshll.u32 %v1053_v45, 16  ;;  %917 = vst [vmem:[#allocation2 + $0xc] sm:$0xf] %v916_v46  ;;  %v1054_v57 = vld [vmem:[#allocation2 + $0xa0] sm:$0xf]  ;;  %v449_v58 = vpack.c.bf16 %v417_v18, %v417_v18 }
  0x5d   : > { %v1333_v53 = vsel %vm6627_vm11, %v1328_v44, %v1332_v24  ;;  %v1512_v56 = vunpack.c.l.b16 %v1323_v48  ;;  %v608_v37 = vrot.slane %v603_v50, 4  ;;  %556 = vst [vmem:[#allocation2 + $0x50] sm:$0x1] %v555_v19  ;;  %v1088_v0 = vld [vmem:[#allocation2 + $0xa4] sm:$0x1]  ;;  %v1416_v23 = vshll.u32 %v1054_v57, 16 }
  0x5e   : > { %v1513_v59 = vunpack.c.l.b16 %v1333_v53  ;;  %v1409_v4 = vrot.slane %v1407_v51, 4  ;;  %v1412_v10 = vrot.slane %v1410_v52, 5  ;;  %v1420_v60 = vshrl.u32 %v1054_v57, 16  ;;  %v6787_v45 = vld [vmem:[%s7985_s1] ss:$0 sm:$0xff] }
  0x5f   : > { %v1426_v61 = vshll.u32 %v1088_v0, 16  ;;  %v607_v62 = vsel %vm6529_vm7, %v599_v35, %v606_v42  ;;  %v920_v32 = vsel %vm6451_vm2, %v608_v37, %v919_v49  ;;  %v1418_v3 = vrot.slane %v1416_v23, 5  ;;  %v566_v19 = vld [vmem:[#allocation2 + $0x80] sm:$0x1]  ;;  %v522_v0 = vld [vmem:[#allocation2 + $0xa8] sm:$0x1] }
  0x60   : > { %v1535_v54 = vpack.c.b16 %v1513_v59, %v1512_v56  ;;  %v1413_v1 = vor.u32 %v1412_v10, %v1409_v4  ;;  %918 = vst [vmem:[#allocation2 + $0x10] sm:$0xf] %v607_v62  ;;  %v678_v5 = vshrl.u32 %v448_v47, 16  ;;  %v1422_v7 = vrot.slane %v1420_v60, 4  ;;  %v6796_v57 = vld [vmem:[%s7986_s2] ss:$0 sm:$0xff] }
  0x61   : > { %v1428_v8 = vrot.slane %v1426_v61, 5  ;;  %921 = vst [vmem:[#allocation2 + $0x14] sm:$0x1] %v920_v32  ;;  %v681_v31 = vshll.u32 %v448_v47, 16  ;;  %v686_v11 = vshrl.u32 %v449_v58, 16  ;;  %v689_v36 = vshll.u32 %v449_v58, 16 }
  0x62   : > { %1659 = vmatmul.bf16.gmra.mxu2 %v1535_v54  ;;  %v1414_v13 = vrot.slane %v1413_v1, 4  ;;  %v680_v63 = vrot.slane %v678_v5, 7  ;;  %v6155_v12 = vunpack.c.l.bf16 %v6269_v26  ;;  %v1423_v14 = vor.u32 %v1422_v7, %v1418_v3  ;;  %v950_v20 = vld [vmem:[#allocation2 + $0x48] sm:$0xf]  ;;  %v578_v54 = vld [vmem:[#allocation2 + $0xb0] sm:$0x1] }
  0x63   : > { %v1029_v16 = vld [vmem:[#allocation2 + $0xc] sm:$0xf]  ;;  %v688_v17 = vrot.slane %v686_v11, 7  ;;  %v6156_v21 = vunpack.c.h.bf16 %v6269_v26  ;;  %v511_v24 = vsel %vm6451_vm2, 0, %v510_v30  ;;  %v567_v26 = vsel %vm6471_vm4, 0, %v566_v19 }
  0x64   : > { %v1419_v25 = vsel %vm6627_vm11, %v1414_v13, %v1418_v3  ;;  %v1119_v27 = vshrl.u32 %v1029_v16, 16  ;;  %v1122_v28 = vshll.u32 %v1029_v16, 16  ;;  %v683_v29 = vor.u32 %v681_v31, %v680_v63  ;;  %512 = vst [vmem:[#allocation2 + $0x78] sm:$0x1] %v511_v24  ;;  %v954_v50 = vld [vmem:[#allocation2 + $0x50] sm:$0x1] }
  0x65   : > { %v1424_v33 = vrot.slane %v1423_v14, 4  ;;  %v1520_v34 = vunpack.c.l.b16 %v1419_v25  ;;  %v684_v35 = vrot.slane %v680_v63, 4  ;;  %v691_v22 = vor.u32 %v689_v36, %v688_v17  ;;  %v6273_v59 = vld [vmem:[%s6460_s30 + $0x68] sm:$0xff]   ;;  %568 = vst [vmem:[#allocation2 + $0x80] sm:$0x1] %v567_v26 }
  0x66   : > { %v1121_v38 = vrot.slane %v1119_v27, 4  ;;  %v1124_v39 = vrot.slane %v1122_v28, 5  ;;  %v693_v40 = vrot.slane %v688_v17, 4  ;;  %v951_v41 = vsel %vm6537_vm8, %v683_v29, %v950_v20 }
  0x67   : > { %v1429_v18 = vsel %vm6627_vm11, %v1424_v33, %v1428_v8  ;;  %v1030_v43 = vld [vmem:[#allocation2 + $0x10] sm:$0xf]  ;;  %v692_v44 = vsel %vm6529_vm7, %v684_v35, %v691_v22  ;;  %952 = vst [vmem:[#allocation2 + $0x48] sm:$0xf] %v951_v41  ;;  %v356_v46 = vmul.f32 %v6787_v45, %v6155_v12  ;;  %v357_v47 = vmul.f32 %v6787_v45, %v6156_v21 }
  0x68   : > { %v1521_v48 = vunpack.c.l.b16 %v1429_v18  ;;  %v1076_v51 = vld [vmem:[#allocation2 + $0x14] sm:$0x1]  ;;  %v1125_v52 = vor.u32 %v1124_v39, %v1121_v38  ;;  %v1128_v42 = vshll.u32 %v1030_v43, 16  ;;  %v1132_v49 = vshrl.u32 %v1030_v43, 16  ;;  %953 = vst [vmem:[#allocation2 + $0x4c] sm:$0xf] %v692_v44 }
  0x69   : > { %v1138_v53 = vshll.u32 %v1076_v51, 16  ;;  %v955_v56 = vsel %vm6451_vm2, %v693_v40, %v954_v50  ;;  %v392_v37 = vadd.f32 %v6796_v57, %v356_v46  ;;  %v393_v58 = vadd.f32 %v6796_v57, %v357_v47 }
  0x6a   : > { %v1539_v4 = vpack.c.b16 %v1521_v48, %v1520_v34  ;;  %v1126_v10 = vrot.slane %v1125_v52, 4  ;;  %v1130_v23 = vrot.slane %v1128_v42, 5  ;;  %v1134_v60 = vrot.slane %v1132_v49, 4  ;;  %956 = vst [vmem:[#allocation2 + $0x50] sm:$0x1] %v955_v56  ;;  %v6261_v48 = vld [vmem:[%s6460_s30 + $0x8] sm:$0xff]  }
  0x6b   : > { %v1140_v61 = vrot.slane %v1138_v53, 5  ;;  %v424_v62 = vmax.f32 %v392_v37, 0.0  ;;  %v425_v32 = vmax.f32 %v393_v58, 0.0  ;;  %v6171_v5 = vunpack.c.l.bf16 %v6273_v59  ;;  %v978_v18 = vld [vmem:[#allocation2 + $0x78] sm:$0xf] }
  0x6c   : > { %1679 = vmatmul.bf16.gmra.mxu3 %v1539_v4  ;;  %v1131_v1 = vsel %vm6627_vm11, %v1126_v10, %v1130_v23  ;;  %v1135_v3 = vor.u32 %v1134_v60, %v1130_v23  ;;  %v6172_v30 = vunpack.c.h.bf16 %v6273_v59  ;;  %v523_v11 = vsel %vm6451_vm2, 0, %v522_v0  ;;  %v982_v19 = vld [vmem:[#allocation2 + $0x80] sm:$0x1]  ;;  %v486_v59 = vld [vmem:[#allocation2 + $0x18] sm:$0x1] }
  0x6d   : > { %v1496_v7 = vunpack.c.l.b16 %v1131_v1  ;;  %v456_v8 = vpack.c.bf16 %v424_v62, %v424_v62  ;;  %v457_v31 = vpack.c.bf16 %v425_v32, %v425_v32  ;;  %v364_v36 = vmul.f32 %v6787_v45, %v6171_v5  ;;  %524 = vst [vmem:[#allocation2 + $0xa8] sm:$0x1] %v523_v11  ;;  %v542_v60 = vld [vmem:[#allocation2 + $0x20] sm:$0x1] }
  0x6e   : > { %v1136_v13 = vrot.slane %v1135_v3, 4  ;;  %v1039_v63 = vld [vmem:[#allocation2 + $0x48] sm:$0xf]  ;;  %v365_v12 = vmul.f32 %v6787_v45, %v6172_v30  ;;  %v579_v14 = vsel %vm6471_vm4, 0, %v578_v54  ;;  %v6123_v23 = vunpack.c.l.bf16 %v6261_v48  ;;  %v6823_v54 = vld [vmem:[%s6460_s30 + $0x30] sm:$0xff]   ;;  %v6032_v30 = vld [vmem:[%s7987_s3 + $0x98] sm:$0xff] }
  0x6f   : > { %v1040_v16 = vld [vmem:[#allocation2 + $0x4c] sm:$0xf]  ;;  %v1239_v17 = vshrl.u32 %v1039_v63, 16  ;;  %v1242_v20 = vshll.u32 %v1039_v63, 16  ;;  %v746_v21 = vshrl.u32 %v456_v8, 16  ;;  %v749_v24 = vshll.u32 %v456_v8, 16  ;;  %2223 = vmatpush.bf16.msrb.mxu2 %v6032_v30 }
  0x70   : > { %v1141_v25 = vsel %vm6627_vm11, %v1136_v13, %v1140_v61  ;;  %v1248_v27 = vshll.u32 %v1040_v16, 16  ;;  %v1252_v28 = vshrl.u32 %v1040_v16, 16  ;;  %v754_v29 = vshrl.u32 %v457_v31, 16  ;;  %580 = vst [vmem:[#allocation2 + $0xb0] sm:$0x1] %v579_v14 }
  0x71   : > { %v1497_v33 = vunpack.c.l.b16 %v1141_v25  ;;  %v1081_v34 = vld [vmem:[#allocation2 + $0x50] sm:$0x1]  ;;  %v1241_v35 = vrot.slane %v1239_v17, 4  ;;  %v1244_v22 = vrot.slane %v1242_v20, 5  ;;  %v748_v38 = vrot.slane %v746_v21, 7 }
  0x72   : > { %v1250_v39 = vrot.slane %v1248_v27, 5  ;;  %v1254_v40 = vrot.slane %v1252_v28, 4  ;;  %v1258_v41 = vshll.u32 %v1081_v34, 16  ;;  %v756_v50 = vrot.slane %v754_v29, 7  ;;  %v6840_v16 = vld [vmem:[#allocation2 + $0x54] sm:$0x1] }
  0x73   : > { %v1527_v43 = vpack.c.b16 %v1497_v33, %v1496_v7  ;;  %v1245_v44 = vor.u32 %v1244_v22, %v1241_v35  ;;  %v751_v46 = vor.u32 %v749_v24, %v748_v38  ;;  %v752_v47 = vrot.slane %v748_v38, 4 }
  0x74   : > { %v1255_v51 = vor.u32 %v1254_v40, %v1250_v39  ;;  %v1260_v52 = vrot.slane %v1258_v41, 5  ;;  %v757_v42 = vshll.u32 %v457_v31, 16  ;;  %v761_v49 = vrot.slane %v756_v50, 4  ;;  %v1006_v22 = vld [vmem:[#allocation2 + $0xa8] sm:$0xf] }
  0x75   : > { %1619 = vmatmul.bf16.gmra.mxu0 %v1527_v43  ;;  %v1246_v53 = vrot.slane %v1245_v44, 4  ;;  %v979_v56 = vsel %vm6537_vm8, %v751_v46, %v978_v18  ;;  %v400_v37 = vadd.f32 %v6796_v57, %v364_v36  ;;  %v401_v58 = vadd.f32 %v6796_v57, %v365_v12 }
  0x76   : > { %v1256_v0 = vrot.slane %v1255_v51, 4  ;;  %v759_v4 = vor.u32 %v757_v42, %v756_v50  ;;  %980 = vst [vmem:[#allocation2 + $0x78] sm:$0xf] %v979_v56  ;;  %v983_v10 = vsel %vm6451_vm2, %v761_v49, %v982_v19  ;;  %v6124_v26 = vunpack.c.h.bf16 %v6261_v48  ;;  %v6056_v51 = vld [vmem:[%s7987_s3 + $0xd8] sm:$0xff] }
  0x77   : > { %v1251_v61 = vsel %vm6627_vm11, %v1246_v53, %v1250_v39  ;;  %984 = vst [vmem:[#allocation2 + $0x80] sm:$0x1] %v983_v10  ;;  %v432_v62 = vmax.f32 %v400_v37, 0.0  ;;  %v433_v32 = vmax.f32 %v401_v58, 0.0  ;;  %v340_v7 = vmul.f32 %v6787_v45, %v6123_v23  ;;  %v1010_v38 = vld [vmem:[#allocation2 + $0xb0] sm:$0x1]  ;;  %2536 = vmatpush.bf16.msrb.mxu3 %v6056_v51 }
  0x78   : > { %v1261_v1 = vsel %vm6627_vm11, %v1256_v0, %v1260_v52  ;;  %v1506_v3 = vunpack.c.l.b16 %v1251_v61  ;;  %v760_v5 = vsel %vm6529_vm7, %v752_v47, %v759_v4  ;;  %v341_v13 = vmul.f32 %v6787_v45, %v6124_v26  ;;  %v6065_v52 = vld [vmem:[%s7987_s3 + $0x120] sm:$0xff]  ;;  %v6016_v42 = vld [vmem:[%s7987_s3 + $0x18] sm:$0xff] }
  0x79   : > { %v1507_v8 = vunpack.c.l.b16 %v1261_v1  ;;  %981 = vst [vmem:[#allocation2 + $0x7c] sm:$0xf] %v760_v5  ;;  %v464_v31 = vpack.c.bf16 %v432_v62, %v432_v62  ;;  %v465_v11 = vpack.c.bf16 %v433_v32, %v433_v32  ;;  %v376_v63 = vadd.f32 %v6796_v57, %v340_v7  ;;  %3216 = vmatpush.bf16.msrb.mxu0 %v6065_v52  ;;  %v6064_v61 = vld [vmem:[%s7987_s3 + $0x118] sm:$0xff]  ;;  %v6015_v1 = vld [vmem:[%s7987_s3 + $0x10] sm:$0xff] }
  0x7a   : > { %v487_v36 = vsel %vm6451_vm2, 0, %v486_v59  ;;  %v543_v12 = vsel %vm6471_vm4, 0, %v542_v60  ;;  %v6143_v14 = vunpack.c.l.bf16 %v6823_v54  ;;  %v377_v27 = vadd.f32 %v6796_v57, %v341_v13  ;;  %v6031_v59 = vld [vmem:[%s7987_s3 + $0x90] sm:$0xff]  ;;  %1843 = vmatpush.bf16.msrb.mxu1 %v6016_v42 }
  0x7b   : > { %v1532_v17 = vpack.c.b16 %v1507_v8, %v1506_v3  ;;  %v814_v20 = vshrl.u32 %v464_v31, 16  ;;  %v817_v21 = vshll.u32 %v464_v31, 16  ;;  %v822_v24 = vshrl.u32 %v465_v11, 16  ;;  %488 = vst [vmem:[#allocation2 + $0x18] sm:$0x1] %v487_v36  ;;  %v6055_v60 = vld [vmem:[%s7987_s3 + $0xd0] sm:$0xff]  ;;  %2224 = vmatpush.bf16.msrb.mxu2 %v6031_v59 }
  0x7c   : > { %v825_v25 = vshll.u32 %v465_v11, 16  ;;  %v408_v28 = vmax.f32 %v376_v63, 0.0  ;;  %544 = vst [vmem:[#allocation2 + $0x20] sm:$0x1] %v543_v12  ;;  %v6144_v29 = vunpack.c.h.bf16 %v6823_v54  ;;  %v350_v39 = vmul.f32 %v6787_v45, %v6143_v14  ;;  %v557_v3 = vld [vmem:[#allocation2 + $0x5c] sm:$0x1]  ;;  %2537 = vmatpush.bf16.msrb.mxu3 %v6055_v60 }
  0x7d   : > { %1644 = vmatmul.bf16.gmra.mxu1 %v1532_v17  ;;  %v1047_v33 = vld [vmem:[#allocation2 + $0x78] sm:$0xf]  ;;  %v816_v34 = vrot.slane %v814_v20, 7  ;;  %v824_v35 = vrot.slane %v822_v24, 7  ;;  %v502_v40 = vsel %vm6451_vm2, 0, %v6840_v16  ;;  %v409_v43 = vmax.f32 %v377_v27, 0.0  ;;  %3217 = vmatpush.bf16.msrb.mxu0 %v6064_v61 }
  0x7e   : > { %v1085_v41 = vld [vmem:[#allocation2 + $0x80] sm:$0x1]  ;;  %v1335_v50 = vshrl.u32 %v1047_v33, 16  ;;  %v1338_v18 = vshll.u32 %v1047_v33, 16  ;;  %v440_v44 = vpack.c.bf16 %v408_v28, %v408_v28  ;;  %v351_v63 = vmul.f32 %v6787_v45, %v6144_v29  ;;  %v6270_v36 = vld [vmem:[%s6460_s30 + $0x50] sm:$0xff]   ;;  %1844 = vmatpush.bf16.msrb.mxu1 %v6015_v1 }
  0x7f   : > { %v1354_v46 = vshll.u32 %v1085_v41, 16  ;;  %v819_v47 = vor.u32 %v817_v21, %v816_v34  ;;  %v820_v19 = vrot.slane %v816_v34, 4  ;;  %v827_v48 = vor.u32 %v825_v25, %v824_v35  ;;  %503 = vst [vmem:[#allocation2 + $0x54] sm:$0x1] %v502_v40 }
  0x80   : > { %v1048_v49 = vld [vmem:[#allocation2 + $0x7c] sm:$0xf]  ;;  %v1337_v53 = vrot.slane %v1335_v50, 4  ;;  %v1340_v56 = vrot.slane %v1338_v18, 5  ;;  %v829_v37 = vrot.slane %v824_v35, 4  ;;  %v441_v58 = vpack.c.bf16 %v409_v43, %v409_v43 }
  0x81   : > { %v1344_v0 = vshll.u32 %v1048_v49, 16  ;;  %v1348_v4 = vshrl.u32 %v1048_v49, 16  ;;  %v1356_v10 = vrot.slane %v1354_v46, 5  ;;  %v828_v23 = vsel %vm6529_vm7, %v820_v19, %v827_v48 }
  0x82   : > { %v1341_v62 = vor.u32 %v1340_v56, %v1337_v53  ;;  %v1007_v32 = vsel %vm6537_vm8, %v819_v47, %v1006_v22  ;;  %1009 = vst [vmem:[#allocation2 + $0xac] sm:$0xf] %v828_v23  ;;  %v1011_v26 = vsel %vm6451_vm2, %v829_v37, %v1010_v38  ;;  %v610_v54 = vshrl.u32 %v440_v44, 16  ;;  %v922_v16 = vld [vmem:[#allocation2 + $0x18] sm:$0xf] }
  0x83   : > { %v1346_v5 = vrot.slane %v1344_v0, 5  ;;  %v1350_v30 = vrot.slane %v1348_v4, 4  ;;  %1008 = vst [vmem:[#allocation2 + $0xa8] sm:$0xf] %v1007_v32  ;;  %v613_v7 = vshll.u32 %v440_v44, 16  ;;  %v618_v8 = vshrl.u32 %v441_v58, 16 }
  0x84   : > { %v1342_v31 = vrot.slane %v1341_v62, 4  ;;  %1012 = vst [vmem:[#allocation2 + $0xb0] sm:$0x1] %v1011_v26  ;;  %v612_v11 = vrot.slane %v610_v54, 7  ;;  %v621_v13 = vshll.u32 %v441_v58, 16  ;;  %v386_v17 = vadd.f32 %v6796_v57, %v350_v39 }
  0x85   : > { %v1351_v12 = vor.u32 %v1350_v30, %v1346_v5  ;;  %v620_v14 = vrot.slane %v618_v8, 7  ;;  %v558_v20 = vsel %vm6471_vm4, 0, %v557_v3  ;;  %v926_v27 = vld [vmem:[#allocation2 + $0x20] sm:$0x1]  ;;  %v387_v28 = vadd.f32 %v6796_v57, %v351_v63  ;;  %v513_v4 = vld [vmem:[#allocation2 + $0x84] sm:$0x1] }
  0x86   : > { %v1347_v21 = vsel %vm6627_vm11, %v1342_v31, %v1346_v5  ;;  %v615_v24 = vor.u32 %v613_v7, %v612_v11  ;;  %v616_v25 = vrot.slane %v612_v11, 4  ;;  %559 = vst [vmem:[#allocation2 + $0x5c] sm:$0x1] %v558_v20  ;;  %v418_v38 = vmax.f32 %v386_v17, 0.0  ;;  %v569_v62 = vld [vmem:[#allocation2 + $0x8c] sm:$0x1] }
  0x87   : > { %v1352_v29 = vrot.slane %v1351_v12, 4  ;;  %v1514_v33 = vunpack.c.l.b16 %v1347_v21  ;;  %v623_v34 = vor.u32 %v621_v13, %v620_v14  ;;  %v625_v35 = vrot.slane %v620_v14, 4  ;;  %v957_v13 = vld [vmem:[#allocation2 + $0x54] sm:$0xf] }
  0x88   : > { %v923_v22 = vsel %vm6537_vm8, %v615_v24, %v922_v16  ;;  %v419_v39 = vmax.f32 %v387_v28, 0.0  ;;  %v6159_v40 = vunpack.c.l.bf16 %v6270_v36  ;;  %v6160_v44 = vunpack.c.h.bf16 %v6270_v36 }
  0x89   : > { %v1357_v41 = vsel %vm6627_vm11, %v1352_v29, %v1356_v10  ;;  %v1056_v50 = vld [vmem:[#allocation2 + $0xac] sm:$0xf]  ;;  %v624_v18 = vsel %vm6529_vm7, %v616_v25, %v623_v34  ;;  %924 = vst [vmem:[#allocation2 + $0x18] sm:$0xf] %v923_v22  ;;  %v927_v43 = vsel %vm6451_vm2, %v625_v35, %v926_v27  ;;  %v450_v51 = vpack.c.bf16 %v418_v38, %v418_v38 }
  0x8a   : > { %v1515_v46 = vunpack.c.l.b16 %v1357_v41  ;;  %v1055_v47 = vld [vmem:[#allocation2 + $0xa8] sm:$0xf]  ;;  %v1440_v19 = vshll.u32 %v1056_v50, 16  ;;  %v1444_v48 = vshrl.u32 %v1056_v50, 16  ;;  %925 = vst [vmem:[#allocation2 + $0x1c] sm:$0xf] %v624_v18  ;;  %v451_v53 = vpack.c.bf16 %v419_v39, %v419_v39 }
  0x8b   : > { %v1089_v52 = vld [vmem:[#allocation2 + $0xb0] sm:$0x1]  ;;  %v1431_v42 = vshrl.u32 %v1055_v47, 16  ;;  %v1434_v49 = vshll.u32 %v1055_v47, 16  ;;  %928 = vst [vmem:[#allocation2 + $0x20] sm:$0x1] %v927_v43  ;;  %v358_v56 = vmul.f32 %v6787_v45, %v6159_v40  ;;  %v359_v30 = vmul.f32 %v6787_v45, %v6160_v44 }
  0x8c   : > { %v1536_v37 = vpack.c.b16 %v1515_v46, %v1514_v33  ;;  %v1442_v58 = vrot.slane %v1440_v19, 5  ;;  %v1446_v59 = vrot.slane %v1444_v48, 4  ;;  %v1450_v0 = vshll.u32 %v1089_v52, 16  ;;  %v6274_v46 = vld [vmem:[%s6460_s30 + $0x70] sm:$0xff]  }
  0x8d   : > { %v1433_v10 = vrot.slane %v1431_v42, 4  ;;  %v1436_v23 = vrot.slane %v1434_v49, 5  ;;  %v695_v60 = vshrl.u32 %v450_v51, 16  ;;  %v698_v61 = vshll.u32 %v450_v51, 16  ;;  %v961_v22 = vld [vmem:[#allocation2 + $0x5c] sm:$0x1] }
  0x8e   : > { %1664 = vmatmul.bf16.gmra.mxu2 %v1536_v37  ;;  %v1447_v32 = vor.u32 %v1446_v59, %v1442_v58  ;;  %v1452_v26 = vrot.slane %v1450_v0, 5  ;;  %v703_v54 = vshrl.u32 %v451_v53, 16  ;;  %v706_v1 = vshll.u32 %v451_v53, 16  ;;  %v525_v47 = vld [vmem:[#allocation2 + $0xb4] sm:$0x1] }
  0x8f   : > { %v1437_v3 = vor.u32 %v1436_v23, %v1433_v10  ;;  %v697_v5 = vrot.slane %v695_v60, 7  ;;  %v394_v7 = vadd.f32 %v6796_v57, %v358_v56  ;;  %v514_v63 = vsel %vm6451_vm2, 0, %v513_v4  ;;  %v581_v42 = vld [vmem:[#allocation2 + $0xbc] sm:$0x1] }
  0x90   : > { %v1448_v8 = vrot.slane %v1447_v32, 4  ;;  %v1031_v31 = vld [vmem:[#allocation2 + $0x18] sm:$0xf]  ;;  %v705_v11 = vrot.slane %v703_v54, 7  ;;  %v570_v36 = vsel %vm6471_vm4, 0, %v569_v62  ;;  %v395_v52 = vadd.f32 %v6796_v57, %v359_v30  ;;  %v6262_v62 = vld [vmem:[%s6460_s30 + $0x10] sm:$0xff]  }
  0x91   : > { %v1438_v12 = vrot.slane %v1437_v3, 4  ;;  %v6898_v14 = vld [vmem:[#allocation2 + $0x1c] sm:$0xf]  ;;  %v1143_v16 = vshrl.u32 %v1031_v31, 16  ;;  %v1146_v17 = vshll.u32 %v1031_v31, 16  ;;  %v700_v20 = vor.u32 %v698_v61, %v697_v5 }
  0x92   : > { %v1453_v21 = vsel %vm6627_vm11, %v1448_v8, %v1452_v26  ;;  %v6902_v24 = vld [vmem:[#allocation2 + $0x20] sm:$0x1]  ;;  %v1152_v25 = vshll.u32 %v6898_v14, 16  ;;  %v1156_v27 = vshrl.u32 %v6898_v14, 16  ;;  %v701_v28 = vrot.slane %v697_v5, 4 }
  0x93   : > { %v1443_v29 = vsel %vm6627_vm11, %v1438_v12, %v1442_v58  ;;  %v1523_v33 = vunpack.c.l.b16 %v1453_v21  ;;  %v1145_v34 = vrot.slane %v1143_v16, 4  ;;  %v1148_v35 = vrot.slane %v1146_v17, 5  ;;  %515 = vst [vmem:[#allocation2 + $0x84] sm:$0x1] %v514_v63 }
  0x94   : > { %v1522_v38 = vunpack.c.l.b16 %v1443_v29  ;;  %v1154_v39 = vrot.slane %v1152_v25, 5  ;;  %v1158_v40 = vrot.slane %v1156_v27, 4  ;;  %v1162_v41 = vshll.u32 %v6902_v24, 16  ;;  %571 = vst [vmem:[#allocation2 + $0x8c] sm:$0x1] %v570_v36 }
  0x95   : > { %v1149_v50 = vor.u32 %v1148_v35, %v1145_v34  ;;  %v708_v18 = vor.u32 %v706_v1, %v705_v11  ;;  %v710_v43 = vrot.slane %v705_v11, 4  ;;  %v958_v44 = vsel %vm6537_vm8, %v700_v20, %v957_v13 }
  0x96   : > { %v1540_v19 = vpack.c.b16 %v1523_v33, %v1522_v38  ;;  %v1159_v48 = vor.u32 %v1158_v40, %v1154_v39  ;;  %v1164_v51 = vrot.slane %v1162_v41, 5  ;;  %959 = vst [vmem:[#allocation2 + $0x54] sm:$0xf] %v958_v44  ;;  %v426_v37 = vmax.f32 %v394_v7, 0.0 }
  0x97   : > { %v1150_v49 = vrot.slane %v1149_v50, 4  ;;  %v709_v53 = vsel %vm6529_vm7, %v701_v28, %v708_v18  ;;  %v962_v56 = vsel %vm6451_vm2, %v710_v43, %v961_v22  ;;  %v427_v59 = vmax.f32 %v395_v52, 0.0 }
  0x98   : > { %1684 = vmatmul.bf16.gmra.mxu3 %v1540_v19  ;;  %v1160_v58 = vrot.slane %v1159_v48, 4  ;;  %960 = vst [vmem:[#allocation2 + $0x58] sm:$0xf] %v709_v53  ;;  %v6175_v0 = vunpack.c.l.bf16 %v6274_v46  ;;  %v6176_v4 = vunpack.c.h.bf16 %v6274_v46  ;;  %v458_v23 = vpack.c.bf16 %v426_v37, %v426_v37  ;;  %v6030_v37 = vld [vmem:[%s7987_s3 + $0x88] sm:$0xff] }
  0x99   : > { %v1155_v10 = vsel %vm6627_vm11, %v1150_v49, %v1154_v39  ;;  %963 = vst [vmem:[#allocation2 + $0x5c] sm:$0x1] %v962_v56  ;;  %v526_v60 = vsel %vm6451_vm2, 0, %v525_v47  ;;  %v582_v61 = vsel %vm6471_vm4, 0, %v581_v42  ;;  %v459_v54 = vpack.c.bf16 %v427_v59, %v427_v59  ;;  %2225 = vmatpush.bf16.msrb.mxu2 %v6030_v37 }
  0x9a   : > { %v1165_v32 = vsel %vm6627_vm11, %v1160_v58, %v1164_v51  ;;  %v1498_v26 = vunpack.c.l.b16 %v1155_v10  ;;  %v366_v1 = vmul.f32 %v6787_v45, %v6175_v0  ;;  %527 = vst [vmem:[#allocation2 + $0xb4] sm:$0x1] %v526_v60  ;;  %v763_v5 = vshrl.u32 %v458_v23, 16  ;;  %v985_v27 = vld [vmem:[#allocation2 + $0x84] sm:$0xf] }
  0x9b   : > { %v1499_v3 = vunpack.c.l.b16 %v1165_v32  ;;  %v766_v30 = vshll.u32 %v458_v23, 16  ;;  %v367_v7 = vmul.f32 %v6787_v45, %v6176_v4  ;;  %583 = vst [vmem:[#allocation2 + $0xbc] sm:$0x1] %v582_v61  ;;  %v771_v8 = vshrl.u32 %v459_v54, 16  ;;  %v989_v35 = vld [vmem:[#allocation2 + $0x8c] sm:$0x1] }
  0x9c   : > { %v774_v31 = vshll.u32 %v459_v54, 16  ;;  %v402_v11 = vadd.f32 %v6796_v57, %v366_v1  ;;  %v6127_v13 = vunpack.c.l.bf16 %v6262_v62  ;;  %v765_v12 = vrot.slane %v763_v5, 7  ;;  %v489_v58 = vld [vmem:[#allocation2 + $0x24] sm:$0x1]  ;;  %v545_v32 = vld [vmem:[#allocation2 + $0x2c] sm:$0x1] }
  0x9d   : > { %v1528_v63 = vpack.c.b16 %v1499_v3, %v1498_v26  ;;  %v1041_v36 = vld [vmem:[#allocation2 + $0x54] sm:$0xf]  ;;  %v403_v16 = vadd.f32 %v6796_v57, %v367_v7  ;;  %v6128_v17 = vunpack.c.h.bf16 %v6262_v62  ;;  %v773_v25 = vrot.slane %v771_v8, 7 }
  0x9e   : > { %v1263_v20 = vshrl.u32 %v1041_v36, 16  ;;  %v1266_v21 = vshll.u32 %v1041_v36, 16  ;;  %v434_v28 = vmax.f32 %v402_v11, 0.0  ;;  %v768_v33 = vor.u32 %v766_v30, %v765_v12 }
  0x9f   : > { %1624 = vmatmul.bf16.gmra.mxu0 %v1528_v63  ;;  %v6930_v29 = vld [vmem:[#allocation2 + $0x58] sm:$0xf]  ;;  %v769_v34 = vrot.slane %v765_v12, 4  ;;  %v435_v22 = vmax.f32 %v403_v16, 0.0  ;;  %v342_v38 = vmul.f32 %v6787_v45, %v6127_v13  ;;  %v776_v44 = vor.u32 %v774_v31, %v773_v25 }
  0xa0   : > { %v6933_v39 = vld [vmem:[#allocation2 + $0x5c] sm:$0x1]  ;;  %v1265_v40 = vrot.slane %v1263_v20, 4  ;;  %v1268_v41 = vrot.slane %v1266_v21, 5  ;;  %v1272_v50 = vshll.u32 %v6930_v29, 16  ;;  %v1276_v18 = vshrl.u32 %v6930_v29, 16 }
  0xa1   : > { %v1282_v43 = vshll.u32 %v6933_v39, 16  ;;  %v778_v46 = vrot.slane %v773_v25, 4  ;;  %v986_v47 = vsel %vm6537_vm8, %v768_v33, %v985_v27  ;;  %v466_v52 = vpack.c.bf16 %v434_v28, %v434_v28  ;;  %v1013_v7 = vld [vmem:[#allocation2 + $0xb4] sm:$0xf] }
  0xa2   : > { %v1269_v19 = vor.u32 %v1268_v41, %v1265_v40  ;;  %v1274_v48 = vrot.slane %v1272_v50, 5  ;;  %v1278_v51 = vrot.slane %v1276_v18, 4  ;;  %987 = vst [vmem:[#allocation2 + $0x84] sm:$0xf] %v986_v47  ;;  %v777_v49 = vsel %vm6529_vm7, %v769_v34, %v776_v44  ;;  %v1017_v63 = vld [vmem:[#allocation2 + $0xbc] sm:$0x1] }
  0xa3   : > { %v1284_v42 = vrot.slane %v1282_v43, 5  ;;  %v990_v53 = vsel %vm6451_vm2, %v778_v46, %v989_v35  ;;  %v467_v56 = vpack.c.bf16 %v435_v22, %v435_v22  ;;  %988 = vst [vmem:[#allocation2 + $0x88] sm:$0xf] %v777_v49  ;;  %v831_v4 = vshrl.u32 %v466_v52, 16  ;;  %v6054_v40 = vld [vmem:[%s7987_s3 + $0xc8] sm:$0xff]  ;;  %v6063_v41 = vld [vmem:[%s7987_s3 + $0x110] sm:$0xff] }
  0xa4   : > { %v1270_v59 = vrot.slane %v1269_v19, 4  ;;  %v1279_v0 = vor.u32 %v1278_v51, %v1274_v48  ;;  %v834_v10 = vshll.u32 %v466_v52, 16  ;;  %991 = vst [vmem:[#allocation2 + $0x8c] sm:$0x1] %v990_v53  ;;  %v343_v61 = vmul.f32 %v6787_v45, %v6128_v17  ;;  %2538 = vmatpush.bf16.msrb.mxu3 %v6054_v40  ;;  %3218 = vmatpush.bf16.msrb.mxu0 %v6063_v41 }
  0xa5   : > { %v839_v23 = vshrl.u32 %v467_v56, 16  ;;  %v842_v60 = vshll.u32 %v467_v56, 16  ;;  %v378_v62 = vadd.f32 %v6796_v57, %v342_v38  ;;  %v833_v1 = vrot.slane %v831_v4, 7  ;;  %v6014_v56 = vld [vmem:[%s7987_s3 + $0x8] sm:$0xff] }
  0xa6   : > { %v1275_v26 = vsel %vm6627_vm11, %v1270_v59, %v1274_v48  ;;  %v1280_v54 = vrot.slane %v1279_v0, 4  ;;  %v490_v3 = vsel %vm6451_vm2, 0, %v489_v58  ;;  %v379_v8 = vadd.f32 %v6796_v57, %v343_v61  ;;  %v6029_v59 = vld [vmem:[%s7987_s3 + $0x80] sm:$0xff]  ;;  %1845 = vmatpush.bf16.msrb.mxu1 %v6014_v56  ;;  %v6062_v61 = vld [vmem:[%s7987_s3 + $0x108] sm:$0xff] }
  0xa7   : > { %v1508_v5 = vunpack.c.l.b16 %v1275_v26  ;;  %v841_v30 = vrot.slane %v839_v23, 7  ;;  %v410_v31 = vmax.f32 %v378_v62, 0.0  ;;  %491 = vst [vmem:[#allocation2 + $0x24] sm:$0x1] %v490_v3  ;;  %v836_v11 = vor.u32 %v834_v10, %v833_v1  ;;  %2226 = vmatpush.bf16.msrb.mxu2 %v6029_v59  ;;  %v6013_v3 = vld [vmem:[%s7987_s3] sm:$0xff]  ;;  %v6076_v59 = vld [vmem:[%s7987_s3 + $0x178] sm:$0xff] }
  0xa8   : > { %v1285_v45 = vsel %vm6627_vm11, %v1280_v54, %v1284_v42  ;;  %v837_v13 = vrot.slane %v833_v1, 4  ;;  %v546_v36 = vsel %vm6471_vm4, 0, %v545_v32  ;;  %v411_v21 = vmax.f32 %v379_v8, 0.0  ;;  %3219 = vmatpush.bf16.msrb.mxu0 %v6062_v61  ;;  %v6061_v8 = vld [vmem:[%s7987_s3 + $0x100] sm:$0xff] }
  0xa9   : > { %v1509_v12 = vunpack.c.l.b16 %v1285_v45  ;;  %v1049_v16 = vld [vmem:[#allocation2 + $0x84] sm:$0xf]  ;;  %v844_v17 = vor.u32 %v842_v60, %v841_v30  ;;  %v846_v20 = vrot.slane %v841_v30, 4  ;;  %547 = vst [vmem:[#allocation2 + $0x2c] sm:$0x1] %v546_v36  ;;  %v1014_v57 = vsel %vm6537_vm8, %v836_v11, %v1013_v7  ;;  %v6100_v36 = vld [vmem:[%s7987_s3 + $0x1b8] sm:$0xff] }
  0xaa   : > { %v1359_v25 = vshrl.u32 %v1049_v16, 16  ;;  %v1362_v27 = vshll.u32 %v1049_v16, 16  ;;  %v442_v28 = vpack.c.bf16 %v410_v31, %v410_v31  ;;  %v1050_v34 = vld [vmem:[#allocation2 + $0x88] sm:$0xf]  ;;  %1015 = vst [vmem:[#allocation2 + $0xb4] sm:$0xf] %v1014_v57  ;;  %v443_v38 = vpack.c.bf16 %v411_v21, %v411_v21  ;;  %1846 = vmatpush.bf16.msrb.mxu1 %v6013_v3 }
  0xab   : > { %v1533_v33 = vpack.c.b16 %v1509_v12, %v1508_v5  ;;  %v845_v35 = vsel %vm6529_vm7, %v837_v13, %v844_v17  ;;  %v1018_v22 = vsel %vm6451_vm2, %v846_v20, %v1017_v63  ;;  %v1086_v50 = vld [vmem:[#allocation2 + $0x8c] sm:$0x1]  ;;  %v1368_v44 = vshll.u32 %v1050_v34, 16  ;;  %v6053_v60 = vld [vmem:[%s7987_s3 + $0xc0] sm:$0xff]  ;;  %3952 = vmatpush.bf16.msra.mxu2 %v6100_v36 }
  0xac   : > { %v1361_v18 = vrot.slane %v1359_v25, 4  ;;  %v1364_v43 = vrot.slane %v1362_v27, 5  ;;  %v1372_v46 = vshrl.u32 %v1050_v34, 16  ;;  %v1378_v47 = vshll.u32 %v1086_v50, 16  ;;  %1016 = vst [vmem:[#allocation2 + $0xb8] sm:$0xf] %v845_v35  ;;  %2539 = vmatpush.bf16.msrb.mxu3 %v6053_v60  ;;  %3220 = vmatpush.bf16.msrb.mxu0 %v6061_v8 }
  0xad   : > { %1649 = vmatmul.bf16.gmra.mxu1 %v1533_v33  ;;  %v627_v19 = vshrl.u32 %v442_v28, 16  ;;  %v630_v48 = vshll.u32 %v442_v28, 16  ;;  %v635_v51 = vshrl.u32 %v443_v38, 16  ;;  %v1370_v42 = vrot.slane %v1368_v44, 5  ;;  %1019 = vst [vmem:[#allocation2 + $0xbc] sm:$0x1] %v1018_v22 }
  0xae   : > { %v1365_v52 = vor.u32 %v1364_v43, %v1361_v18  ;;  %v1374_v49 = vrot.slane %v1372_v46, 4  ;;  %v638_v53 = vshll.u32 %v443_v38, 16  ;;  %v1380_v10 = vrot.slane %v1378_v47, 5  ;;  %v929_v23 = vld [vmem:[#allocation2 + $0x24] sm:$0xf]  ;;  %v6116_v60 = vld [vmem:[%s7987_s3 + $0x238] sm:$0xff]  ;;  %3638 = vmatpush.bf16.msra.mxu1 %v6076_v59 }
  0xaf   : > { %v629_v37 = vrot.slane %v627_v19, 7  ;;  %v637_v58 = vrot.slane %v635_v51, 7  ;;  %v1928_v63 = vld [vmem:[#allocation2] sm:$0xe]  ;;  %v6328_v35 = vld [vmem:[#allocation2 + $0x4] sm:$0xf] }
  0xb0   : > { %v1366_v0 = vrot.slane %v1365_v52, 4  ;;  %v1375_v4 = vor.u32 %v1374_v49, %v1370_v42  ;;  %v933_v1 = vld [vmem:[#allocation2 + $0x2c] sm:$0x1]  ;;  %v1981_v22 = vrot.slane %v6328_v35, 5  ;;  %v5593_v50 = vrot.slane %v1928_v63, 9  ;;  %v5997_v46 = vld [vmem:[#allocation2] sm:$0xff]  ;;  %5058 = vmatpush.bf16.msra.mxu0 %v6116_v60 }
  0xb1   : > { %v632_v62 = vor.u32 %v630_v48, %v629_v37  ;;  %v633_v32 = vrot.slane %v629_v37, 4  ;;  %v640_v26 = vor.u32 %v638_v53, %v637_v58  ;;  %v642_v54 = vrot.slane %v637_v58, 4  ;;  %v1057_v7 = vld [vmem:[#allocation2 + $0xb4] sm:$0xf]  ;;  %v6329_v19 = vld [vmem:[#allocation2 + $0x8] sm:$0x1] }
  0xb2   : > { %v1371_v5 = vsel %vm6627_vm11, %v1366_v0, %v1370_v42  ;;  %v1376_v30 = vrot.slane %v1375_v4, 4  ;;  %v1455_v45 = vshrl.u32 %v1057_v7, 16  ;;  %v1458_v11 = vshll.u32 %v1057_v7, 16  ;;  %v2653_v51 = vld [vmem:[#allocation2 + $0xc] sm:$0xf]  ;;  %v6108_v58 = vld [vmem:[%s7987_s3 + $0x1f8] sm:$0xff] }
  0xb3   : > { %v1516_v31 = vunpack.c.l.b16 %v1371_v5  ;;  %v641_v13 = vsel %vm6529_vm7, %v633_v32, %v640_v26  ;;  %v1058_v16 = vld [vmem:[#allocation2 + $0xb8] sm:$0xf]  ;;  %v930_v17 = vsel %vm6537_vm8, %v632_v62, %v929_v23  ;;  %v934_v20 = vsel %vm6451_vm2, %v642_v54, %v933_v1  ;;  %v2654_v49 = vld [vmem:[#allocation2 + $0x10] sm:$0xf]  ;;  %4633 = vmatpush.bf16.msra.mxu3 %v6108_v58  ;;  %v2655_v35 = vld [vmem:[#allocation2 + $0x14] sm:$0x1] }
  0xb4   : > { %v1381_v12 = vsel %vm6627_vm11, %v1376_v30, %v1380_v10  ;;  %932 = vst [vmem:[#allocation2 + $0x28] sm:$0xf] %v641_v13  ;;  %v1090_v25 = vld [vmem:[#allocation2 + $0xbc] sm:$0x1]  ;;  %v1457_v27 = vrot.slane %v1455_v45, 4  ;;  %v1460_v57 = vrot.slane %v1458_v11, 5  ;;  %v1982_v37 = vsel %vm7003_vm14, %v5593_v50, %v1981_v22 }
  0xb5   : > { %v1517_v21 = vunpack.c.l.b16 %v1381_v12  ;;  %v1464_v28 = vshll.u32 %v1058_v16, 16  ;;  %v1468_v33 = vshrl.u32 %v1058_v16, 16  ;;  %v1474_v34 = vshll.u32 %v1090_v25, 16  ;;  %931 = vst [vmem:[#allocation2 + $0x24] sm:$0xf] %v930_v17 }
  0xb6   : > { %v1461_v40 = vor.u32 %v1460_v57, %v1457_v27  ;;  %935 = vst [vmem:[#allocation2 + $0x2c] sm:$0x1] %v934_v20  ;;  %v1983_v47 = vrot.slane %v1981_v22, 4  ;;  %v1984_v48 = vrot.slane %v6329_v19, 5  ;;  %v2702_v23 = vshrl.u32 %v2653_v51, 16 }
  0xb7   : > { %v1537_v38 = vpack.c.b16 %v1517_v21, %v1516_v31  ;;  %v1466_v41 = vrot.slane %v1464_v28, 5  ;;  %v1470_v18 = vrot.slane %v1468_v33, 4  ;;  %v1476_v42 = vrot.slane %v1474_v34, 5  ;;  %v2656_v60 = vld [vmem:[#allocation2 + $0x18] sm:$0xf] }
  0xb8   : > { %v1462_v44 = vrot.slane %v1461_v40, 4  ;;  %v1985_v32 = vsel %vm7003_vm14, %v1983_v47, %v1984_v48  ;;  %v2705_v26 = vshll.u32 %v2653_v51, 16  ;;  %v2711_v54 = vshll.u32 %v2654_v49, 16  ;;  %v1929_v48 = vld [vmem:[#allocation2 + $0xc] sm:$0xe] }
  0xb9   : > { %1669 = vmatmul.bf16.gmra.mxu2 %v1537_v38  ;;  %v1471_v52 = vor.u32 %v1470_v18, %v1466_v41  ;;  %v2715_v11 = vshrl.u32 %v2654_v49, 16  ;;  %v2107_v36 = vunpack.c.l.b16 %v1982_v37  ;;  %v2108_v20 = vunpack.c.l.b16 %v1985_v32  ;;  %v6330_v18 = vld [vmem:[#allocation2 + $0x10] sm:$0xf]  ;;  %v6331_v37 = vld [vmem:[#allocation2 + $0x14] sm:$0x1] }
  0xba   : > { %v1467_v53 = vsel %vm6627_vm11, %v1462_v44, %v1466_v41  ;;  %v2704_v25 = vrot.slane %v2702_v23, 4  ;;  %v2707_v27 = vrot.slane %v2705_v26, 5  ;;  %v2713_v28 = vrot.slane %v2711_v54, 5 }
  0xbb   : > { %v7009_v56 = vld [vmem:[#allocation2 + $0x28] sm:$0xf]  ;;  %v1472_v0 = vrot.slane %v1471_v52, 4  ;;  %v1524_v61 = vunpack.c.l.b16 %v1467_v53  ;;  %v2717_v33 = vrot.slane %v2715_v11, 4  ;;  %v2139_v38 = vpack.c.b16 %v2108_v20, %v2107_v36  ;;  %v5998_v52 = vld [vmem:[#allocation2 + $0xc] sm:$0xff] }
  0xbc   : > { %v1176_v4 = vshll.u32 %v7009_v56, 16  ;;  %v1180_v10 = vshrl.u32 %v7009_v56, 16  ;;  %v1033_v62 = vld [vmem:[#allocation2 + $0x24] sm:$0xf]  ;;  %v2708_v50 = vor.u32 %v2707_v27, %v2704_v25  ;;  %v1988_v44 = vrot.slane %v6330_v18, 5  ;;  %v6099_v20 = vld [vmem:[%s7987_s3 + $0x1b0] sm:$0xff] }
  0xbd   : > { %1847 = vmatmul.bf16.vlgmr.msrb.gmra.mxu1 %v5997_v46  ;;  %v1477_v1 = vsel %vm6627_vm11, %v1472_v0, %v1476_v42  ;;  %v7028_v3 = vld [vmem:[#allocation2 + $0x2c] sm:$0x1]  ;;  %v1167_v5 = vshrl.u32 %v1033_v62, 16  ;;  %v1170_v30 = vshll.u32 %v1033_v62, 16  ;;  %v2718_v47 = vor.u32 %v2717_v33, %v2713_v28  ;;  %v2657_v62 = vld [vmem:[#allocation2 + $0x1c] sm:$0xf]  ;;  %3953 = vmatpush.bf16.msra.mxu2 %v6099_v20 }
  0xbe   : > { %v1178_v7 = vrot.slane %v1176_v4, 5  ;;  %v1525_v8 = vunpack.c.l.b16 %v1477_v1  ;;  %v1182_v31 = vrot.slane %v1180_v10, 4  ;;  %v1186_v45 = vshll.u32 %v7028_v3, 16  ;;  %v1930_v4 = vld [vmem:[#allocation2 + $0x18] sm:$0xe]  ;;  %v6107_v18 = vld [vmem:[%s7987_s3 + $0x1f0] sm:$0xff] }
  0xbf   : > { %v1169_v13 = vrot.slane %v1167_v5, 4  ;;  %v1172_v63 = vrot.slane %v1170_v30, 5  ;;  %v2721_v19 = vshll.u32 %v2655_v35, 16  ;;  %v2709_v42 = vrot.slane %v2708_v50, 4  ;;  %v2658_v33 = vld [vmem:[#allocation2 + $0x20] sm:$0x1]  ;;  %4634 = vmatpush.bf16.msra.mxu3 %v6107_v18 }
  0xc0   : > { %v1541_v12 = vpack.c.b16 %v1525_v8, %v1524_v61  ;;  %v1183_v16 = vor.u32 %v1182_v31, %v1178_v7  ;;  %v1188_v17 = vrot.slane %v1186_v45, 5  ;;  %v5594_v49 = vrot.slane %v1929_v48, 9  ;;  %v2660_v50 = vld [vmem:[#allocation2 + $0x28] sm:$0xf]  ;;  %v6332_v18 = vld [vmem:[#allocation2 + $0x34] sm:$0xf] }
  0xc1   : > { %v1173_v21 = vor.u32 %v1172_v63, %v1169_v13  ;;  %v1990_v53 = vrot.slane %v1988_v44, 4  ;;  %v1991_v58 = vrot.slane %v6331_v37, 5  ;;  %v2719_v59 = vrot.slane %v2718_v47, 4 }
  0xc2   : > { %1689 = vmatmul.bf16.gmra.mxu3 %v1541_v12  ;;  %v1184_v57 = vrot.slane %v1183_v16, 4  ;;  %v2723_v0 = vrot.slane %v2721_v19, 5  ;;  %v1995_v10 = vrot.slane %v6898_v14, 5  ;;  %v1998_v23 = vrot.slane %v6902_v24, 5  ;;  %v6037_v14 = vld [vmem:[#allocation2 + $0xc] sm:$0xff] }
  0xc3   : > { %v1174_v34 = vrot.slane %v1173_v21, 4  ;;  %v5595_v61 = vrot.slane %v1930_v4, 9  ;;  %v2714_v26 = vsel %vm6627_vm11, %v2709_v42, %v2713_v28  ;;  %v1989_v54 = vsel %vm7003_vm14, %v5594_v49, %v1988_v44  ;;  %v6075_v44 = vld [vmem:[%s7987_s3 + $0x170] sm:$0xff]  ;;  %v2661_v4 = vld [vmem:[#allocation2 + $0x2c] sm:$0x1] }
  0xc4   : > { %v1189_v22 = vsel %vm6627_vm11, %v1184_v57, %v1188_v17  ;;  %v1997_v32 = vrot.slane %v1995_v10, 4  ;;  %v1992_v1 = vsel %vm7003_vm14, %v1990_v53, %v1991_v58  ;;  %v2724_v24 = vsel %vm6627_vm11, %v2719_v59, %v2723_v0  ;;  %3639 = vmatpush.bf16.msra.mxu1 %v6075_v44  ;;  %v6038_v53 = vld [vmem:[#allocation2 + $0x18] sm:$0xff] }
  0xc5   : > { %v1179_v40 = vsel %vm6627_vm11, %v1174_v34, %v1178_v7  ;;  %v1501_v41 = vunpack.c.l.b16 %v1189_v22  ;;  %v1996_v5 = vsel %vm7003_vm14, %v5595_v61, %v1995_v10  ;;  %v2726_v30 = vshrl.u32 %v2656_v60, 16 }
  0xc6   : > { %v1500_v46 = vunpack.c.l.b16 %v1179_v40  ;;  %v1999_v7 = vsel %vm7003_vm14, %v1997_v32, %v1998_v23  ;;  %v2111_v8 = vunpack.c.l.b16 %v1996_v5  ;;  %v2729_v31 = vshll.u32 %v2656_v60, 16  ;;  %v5999_v40 = vld [vmem:[#allocation2 + $0x18] sm:$0xff]  ;;  %v1931_v5 = vld [vmem:[#allocation2 + $0x24] sm:$0xe] }
  0xc7   : > { %v2735_v45 = vshll.u32 %v2657_v62, 16  ;;  %v2739_v11 = vshrl.u32 %v2657_v62, 16  ;;  %v2112_v13 = vunpack.c.l.b16 %v1999_v7  ;;  %v2109_v63 = vunpack.c.l.b16 %v1989_v54 }
  0xc8   : > { %v1529_v51 = vpack.c.b16 %v1501_v41, %v1500_v46  ;;  %v2110_v36 = vunpack.c.l.b16 %v1992_v1  ;;  %v3101_v16 = vunpack.c.l.b16 %v2714_v26  ;;  %v3102_v17 = vunpack.c.l.b16 %v2724_v24  ;;  %v2659_v41 = vld [vmem:[#allocation2 + $0x24] sm:$0xf]  ;;  %v6115_v46 = vld [vmem:[%s7987_s3 + $0x230] sm:$0xff] }
  0xc9   : > { %2227 = vmatmul.bf16.vlgmr.msrb.gmra.mxu2 %v2139_v38  ;;  %v2141_v12 = vpack.c.b16 %v2112_v13, %v2111_v8  ;;  %v2728_v21 = vrot.slane %v2726_v30, 4  ;;  %v2731_v25 = vrot.slane %v2729_v31, 5  ;;  %v2737_v27 = vrot.slane %v2735_v45, 5  ;;  %5059 = vmatpush.bf16.msra.mxu0 %v6115_v46  ;;  %v6000_v30 = vld [vmem:[#allocation2 + $0x24] sm:$0xff]  ;;  %v2663_v13 = vld [vmem:[#allocation2 + $0x34] sm:$0xf] }
  0xca   : > { %1629 = vmatmul.bf16.gmra.mxu0 %v1529_v51  ;;  %v2741_v57 = vrot.slane %v2739_v11, 4  ;;  %v2140_v28 = vpack.c.b16 %v2110_v36, %v2109_v63  ;;  %v3133_v34 = vpack.c.b16 %v3102_v17, %v3101_v16  ;;  %v2745_v38 = vshll.u32 %v2658_v33, 16  ;;  %v2662_v11 = vld [vmem:[#allocation2 + $0x30] sm:$0xf]  ;;  %v6039_v16 = vld [vmem:[#allocation2 + $0x24] sm:$0xff]  ;;  %v7075_v33 = vpop.f32.mrf.mxu1 }
  0xcb   : > { %v2732_v35 = vor.u32 %v2731_v25, %v2728_v21  ;;  %v2750_v51 = vshrl.u32 %v2659_v41, 16  ;;  %v2759_v42 = vshll.u32 %v2660_v50, 16  ;;  %v2763_v49 = vshrl.u32 %v2660_v50, 16 }
  0xcc   : > { %v2742_v22 = vor.u32 %v2741_v57, %v2737_v27  ;;  %v2747_v48 = vrot.slane %v2745_v38, 5  ;;  %v2769_v32 = vshll.u32 %v2661_v4, 16  ;;  %v2002_v54 = vrot.slane %v7009_v56, 5  ;;  %v6106_v4 = vld [vmem:[%s7987_s3 + $0x1e8] sm:$0xff] }
  0xcd   : > { %1852 = vmatmul.bf16.gmra.mxu1 %v5998_v52  ;;  %v2733_v47 = vrot.slane %v2732_v35, 4  ;;  %v2753_v52 = vshll.u32 %v2659_v41, 16  ;;  %v2752_v59 = vrot.slane %v2750_v51, 4  ;;  %v2761_v10 = vrot.slane %v2759_v42, 5  ;;  %v2664_v41 = vld [vmem:[#allocation2 + $0x38] sm:$0x1]  ;;  %4635 = vmatpush.bf16.msra.mxu3 %v6106_v4 }
  0xce   : > { %v2743_v19 = vrot.slane %v2742_v22, 4  ;;  %v2765_v23 = vrot.slane %v2763_v49, 4  ;;  %v2771_v24 = vrot.slane %v2769_v32, 5  ;;  %v5596_v8 = vrot.slane %v1931_v5, 9  ;;  %v1932_v51 = vld [vmem:[#allocation2 + $0x30] sm:$0xe] }
  0xcf   : > { %v2738_v37 = vsel %vm6627_vm11, %v2733_v47, %v2737_v27  ;;  %v2755_v0 = vrot.slane %v2753_v52, 5  ;;  %v2004_v31 = vrot.slane %v2002_v54, 4  ;;  %v2005_v45 = vrot.slane %v7028_v3, 5  ;;  %v6001_v52 = vld [vmem:[#allocation2 + $0x30] sm:$0xff] }
  0xd0   : > { %v2748_v58 = vsel %vm6627_vm11, %v2743_v19, %v2747_v48  ;;  %v3103_v60 = vunpack.c.l.b16 %v2738_v37  ;;  %v2766_v26 = vor.u32 %v2765_v23, %v2761_v10  ;;  %v2003_v36 = vsel %vm7003_vm14, %v5596_v8, %v2002_v54  ;;  %v6114_v23 = vld [vmem:[%s7987_s3 + $0x228] sm:$0xff]  ;;  %v6040_v54 = vld [vmem:[#allocation2 + $0x30] sm:$0xff]  ;;  %v7099_v8 = vpop.f32.mrf.mxu2 }
  0xd1   : > { %v3104_v61 = vunpack.c.l.b16 %v2748_v58  ;;  %v2756_v62 = vor.u32 %v2755_v0, %v2752_v59  ;;  %v2774_v17 = vshrl.u32 %v2662_v11, 16  ;;  %v2777_v20 = vshll.u32 %v2662_v11, 16  ;;  %5060 = vmatpush.bf16.msra.mxu0 %v6114_v23 }
  0xd2   : > { %2540 = vmatmul.bf16.vlgmr.msrb.gmra.mxu3 %v6037_v14  ;;  %v2767_v7 = vrot.slane %v2766_v26, 4  ;;  %v2783_v3 = vshll.u32 %v2663_v13, 16  ;;  %v2787_v21 = vshrl.u32 %v2663_v13, 16  ;;  %v2113_v25 = vunpack.c.l.b16 %v2003_v36 }
  0xd3   : > { %v3134_v1 = vpack.c.b16 %v3104_v61, %v3103_v60  ;;  %v2757_v14 = vrot.slane %v2756_v62, 4  ;;  %v2779_v35 = vrot.slane %v2777_v20, 5  ;;  %v2009_v44 = vrot.slane %v6332_v18, 5  ;;  %v7089_v60 = vpop.f32.mrf.mxu1  ;;  %v2665_v61 = vld [vmem:[#allocation2 + $0x3c] sm:$0xf] }
  0xd4   : > { %v2772_v56 = vsel %vm6627_vm11, %v2767_v7, %v2771_v24  ;;  %v2785_v22 = vrot.slane %v2783_v3, 5  ;;  %v2789_v38 = vrot.slane %v2787_v21, 4  ;;  %v2793_v48 = vshll.u32 %v2664_v41, 16  ;;  %v2666_v62 = vld [vmem:[#allocation2 + $0x40] sm:$0xf] }
  0xd5   : > { %v2762_v63 = vsel %vm6627_vm11, %v2757_v14, %v2761_v10  ;;  %v5597_v42 = vrot.slane %v1932_v51, 9  ;;  %v2011_v49 = vrot.slane %v2009_v44, 4  ;;  %v6074_v10 = vld [vmem:[%s7987_s3 + $0x168] sm:$0xff]  ;;  %v2798_v14 = vshrl.u32 %v2665_v61, 16  ;;  %v2667_v20 = vld [vmem:[#allocation2 + $0x44] sm:$0x1] }
  0xd6   : > { %v3105_v57 = vunpack.c.l.b16 %v2762_v63  ;;  %v2790_v19 = vor.u32 %v2789_v38, %v2785_v22  ;;  %v2795_v0 = vrot.slane %v2793_v48, 5  ;;  %3640 = vmatpush.bf16.msra.mxu1 %v6074_v10  ;;  %v2801_v24 = vshll.u32 %v2665_v61, 16  ;;  %v6334_v3 = vld [vmem:[#allocation2 + $0x40] sm:$0xf] }
  0xd7   : > { %v2010_v32 = vsel %vm7003_vm14, %v5597_v42, %v2009_v44  ;;  %v2811_v7 = vshrl.u32 %v2666_v62, 16  ;;  %v2800_v63 = vrot.slane %v2798_v14, 4  ;;  %v2016_v21 = vrot.slane %v6334_v3, 5  ;;  %v2668_v44 = vld [vmem:[#allocation2 + $0x48] sm:$0xf] }
  0xd8   : > { %v2791_v59 = vrot.slane %v2790_v19, 4  ;;  %v7105_v38 = vpop.f32.mrf.mxu2  ;;  %v2822_v42 = vshrl.u32 %v2668_v44, 16 }
  0xd9   : > { %2232 = vmatmul.bf16.gmra.mxu2 %v2140_v28  ;;  %v3106_v28 = vunpack.c.l.b16 %v2772_v56  ;;  %v2803_v56 = vrot.slane %v2801_v24, 5  ;;  %v2018_v41 = vrot.slane %v2016_v21, 4 }
  0xda   : > { %3221 = vmatmul.bf16.vlgmr.msrb.gmra.mxu0 %v3133_v34  ;;  %v2776_v34 = vrot.slane %v2774_v17, 4  ;;  %v2796_v5 = vsel %vm6627_vm11, %v2791_v59, %v2795_v0  ;;  %v6041_v0 = vld [vmem:[#allocation2 + $0x3c] sm:$0xff] }
  0xdb   : > { %v3135_v46 = vpack.c.b16 %v3106_v28, %v3105_v57  ;;  %v3108_v13 = vunpack.c.l.b16 %v2796_v5  ;;  %v2804_v57 = vor.u32 %v2803_v56, %v2800_v63 }
  0xdc   : > { %v2780_v47 = vor.u32 %v2779_v35, %v2776_v34  ;;  %v2817_v34 = vshll.u32 %v2667_v20, 16  ;;  %v7103_v35 = vpop.f32.mrf.mxu3  ;;  %v1934_v20 = vld [vmem:[#allocation2 + $0x48] sm:$0xe] }
  0xdd   : > { %1857 = vmatmul.bf16.gmra.mxu1 %v5999_v40  ;;  %v6098_v40 = vld [vmem:[%s7987_s3 + $0x1a8] sm:$0xff]  ;;  %v2805_v19 = vrot.slane %v2804_v57, 4  ;;  %v5599_v57 = vrot.slane %v1934_v20, 9 }
  0xde   : > { %3954 = vmatpush.bf16.msra.mxu2 %v6098_v40  ;;  %v2781_v58 = vrot.slane %v2780_v47, 4  ;;  %v7107_v47 = vpop.f32.mrf.mxu0  ;;  %v2819_v51 = vrot.slane %v2817_v34, 5  ;;  %v6337_v34 = vld [vmem:[#allocation2 + $0x50] sm:$0x1] }
  0xe2   : > { %2545 = vmatmul.bf16.gmra.mxu3 %v6038_v53  ;;  %v6333_v53 = vld [vmem:[#allocation2 + $0x38] sm:$0x1] }
  0xe3   : > { %v2012_v37 = vrot.slane %v6333_v53, 5 }
  0xe4   : > { %v7119_v24 = vpop.f32.mrf.mxu3 }
  0xe5   : > { %v2013_v26 = vsel %vm7003_vm14, %v2011_v49, %v2012_v37  ;;  %v2825_v49 = vshll.u32 %v2668_v44, 16  ;;  %v2672_v44 = vld [vmem:[#allocation2 + $0x58] sm:$0xf] }
  0xe9   : > { %2237 = vmatmul.bf16.gmra.mxu2 %v2141_v12  ;;  %v2006_v12 = vsel %vm7003_vm14, %v2004_v31, %v2005_v45  ;;  %v2115_v31 = vunpack.c.l.b16 %v2010_v32  ;;  %v2116_v45 = vunpack.c.l.b16 %v2013_v26  ;;  %v2827_v32 = vrot.slane %v2825_v49, 5  ;;  %v2670_v26 = vld [vmem:[#allocation2 + $0x50] sm:$0x1] }
  0xea   : > { %3226 = vmatmul.bf16.gmra.mxu0 %v3134_v1  ;;  %v2114_v27 = vunpack.c.l.b16 %v2006_v12  ;;  %v2786_v1 = vsel %vm6627_vm11, %v2781_v58, %v2785_v22  ;;  %v2813_v12 = vrot.slane %v2811_v7, 4  ;;  %v6002_v22 = vld [vmem:[#allocation2 + $0x3c] sm:$0xff]  ;;  %v7124_v7 = vpop.f32.mrf.mxu2 }
  0xeb   : > { %v3107_v11 = vunpack.c.l.b16 %v2786_v1  ;;  %v2143_v17 = vpack.c.b16 %v2116_v45, %v2115_v31 }
  0xec   : > { %v2142_v50 = vpack.c.b16 %v2114_v27, %v2113_v25  ;;  %v1933_v27 = vld [vmem:[#allocation2 + $0x3c] sm:$0xe] }
  0xed   : > { %1862 = vmatmul.bf16.gmra.mxu1 %v6000_v30  ;;  %v2807_v30 = vshll.u32 %v2666_v62, 16  ;;  %v3136_v25 = vpack.c.b16 %v3108_v13, %v3107_v11  ;;  %v5598_v40 = vrot.slane %v1933_v27, 9  ;;  %v2824_v62 = vrot.slane %v2822_v42, 4  ;;  %v7126_v13 = vpop.f32.mrf.mxu0 }
  0xee   : > { %v2841_v11 = vshll.u32 %v2670_v26, 16 }
  0xef   : > { %v2809_v36 = vrot.slane %v2807_v30, 5  ;;  %v2017_v53 = vsel %vm7003_vm14, %v5598_v40, %v2016_v21  ;;  %v6097_v30 = vld [vmem:[%s7987_s3 + $0x1a0] sm:$0xff]  ;;  %v2828_v45 = vor.u32 %v2827_v32, %v2824_v62 }
  0xf0   : > { %v2117_v23 = vunpack.c.l.b16 %v2017_v53  ;;  %3955 = vmatpush.bf16.msra.mxu2 %v6097_v30  ;;  %v2843_v21 = vrot.slane %v2841_v11, 5  ;;  %v6105_v40 = vld [vmem:[%s7987_s3 + $0x1e0] sm:$0xff]  ;;  %v6042_v53 = vld [vmem:[#allocation2 + $0x48] sm:$0xff] }
  0xf1   : > { %v2814_v28 = vor.u32 %v2813_v12, %v2809_v36  ;;  %v2810_v4 = vsel %vm6627_vm11, %v2805_v19, %v2809_v36  ;;  %v6336_v36 = vld [vmem:[#allocation2 + $0x4c] sm:$0xf]  ;;  %v2829_v3 = vrot.slane %v2828_v45, 4  ;;  %v7141_v19 = vpop.f32.mrf.mxu3  ;;  %4636 = vmatpush.bf16.msra.mxu3 %v6105_v40  ;;  %v2674_v40 = vld [vmem:[#allocation2 + $0x60] sm:$0xf] }
  0xf2   : > { %2550 = vmatmul.bf16.gmra.mxu3 %v6039_v16  ;;  %v7101_v16 = vpop.f32.mrf.mxu1  ;;  %v3109_v5 = vunpack.c.l.b16 %v2810_v4  ;;  %v2023_v12 = vrot.slane %v6336_v36, 5 }
  0xf3   : > { %v2815_v48 = vrot.slane %v2814_v28, 4 }
  0xf4   : > { %v2025_v28 = vrot.slane %v2023_v12, 4  ;;  %v2024_v42 = vsel %vm7003_vm14, %v5599_v57, %v2023_v12 }
  0xf5   : > { %v2820_v10 = vsel %vm6627_vm11, %v2815_v48, %v2819_v51  ;;  %v7145_v51 = vpop.f32.mrf.mxu2  ;;  %v7151_v4 = vpop.f32.mrf.mxu0 }
  0xf6   : > { %v3110_v14 = vunpack.c.l.b16 %v2820_v10 }
  0xf9   : > { %2242 = vmatmul.bf16.gmra.mxu2 %v2142_v50  ;;  %v6335_v50 = vld [vmem:[#allocation2 + $0x44] sm:$0x1]  ;;  %v7156_v11 = vpop.f32.mrf.mxu3 }
  0xfa   : > { %3231 = vmatmul.bf16.gmra.mxu0 %v3135_v46  ;;  %v2019_v18 = vrot.slane %v6335_v50, 5  ;;  %v2669_v46 = vld [vmem:[#allocation2 + $0x4c] sm:$0xf]  ;;  %v6113_v50 = vld [vmem:[%s7987_s3 + $0x220] sm:$0xff] }
  0xfb   : > { %v2831_v58 = vshll.u32 %v2669_v46, 16  ;;  %v2835_v59 = vshrl.u32 %v2669_v46, 16  ;;  %5061 = vmatpush.bf16.msra.mxu0 %v6113_v50 }
  0xfc   : > { %v2020_v37 = vsel %vm7003_vm14, %v2018_v41, %v2019_v18  ;;  %v6073_v41 = vld [vmem:[%s7987_s3 + $0x160] sm:$0xff]  ;;  %v2671_v18 = vld [vmem:[#allocation2 + $0x54] sm:$0xf] }
  0xfd   : > { %1867 = vmatmul.bf16.gmra.mxu1 %v6001_v52  ;;  %v7109_v52 = vpop.f32.mrf.mxu1  ;;  %v2118_v61 = vunpack.c.l.b16 %v2020_v37  ;;  %v2837_v1 = vrot.slane %v2835_v59, 4  ;;  %v2846_v37 = vshrl.u32 %v2671_v18, 16  ;;  %v2855_v59 = vshll.u32 %v2672_v44, 16 }
  0xfe   : > { %3641 = vmatpush.bf16.msra.mxu1 %v6073_v41  ;;  %v2675_v41 = vld [vmem:[#allocation2 + $0x64] sm:$0xf] }
  0xff   : > { %v2144_v31 = vpack.c.b16 %v2118_v61, %v2117_v23  ;;  %v2119_v23 = vunpack.c.l.b16 %v2024_v42  ;;  %v2848_v26 = vrot.slane %v2846_v37, 4  ;;  %v2873_v42 = vshll.u32 %v2674_v40, 16 }
 0x102   : > { %2555 = vmatmul.bf16.gmra.mxu3 %v6040_v54  ;;  %v2833_v54 = vrot.slane %v2831_v58, 5  ;;  %v2849_v58 = vshll.u32 %v2671_v18, 16 }
 0x104   : > { %v2838_v63 = vor.u32 %v2837_v1, %v2833_v54  ;;  %v2834_v46 = vsel %vm6627_vm11, %v2829_v3, %v2833_v54  ;;  %v2851_v54 = vrot.slane %v2849_v58, 5  ;;  %v2857_v1 = vrot.slane %v2855_v59, 5  ;;  %v6004_v3 = vld [vmem:[#allocation2 + $0x54] sm:$0xff] }
 0x105   : > { %v7128_v56 = vpop.f32.mrf.mxu1  ;;  %v3111_v62 = vunpack.c.l.b16 %v2834_v46 }
 0x106   : > { %v2839_v27 = vrot.slane %v2838_v63, 4  ;;  %v2852_v63 = vor.u32 %v2851_v54, %v2848_v26  ;;  %v2875_v54 = vrot.slane %v2873_v42, 5 }
 0x108   : > { %v2844_v48 = vsel %vm6627_vm11, %v2839_v27, %v2843_v21  ;;  %v7160_v21 = vpop.f32.mrf.mxu0 }
 0x109   : > { %2247 = vmatmul.bf16.gmra.mxu2 %v2143_v17  ;;  %v3137_v17 = vpack.c.b16 %v3110_v14, %v3109_v5  ;;  %v3112_v32 = vunpack.c.l.b16 %v2844_v48  ;;  %v2673_v14 = vld [vmem:[#allocation2 + $0x5c] sm:$0x1]  ;;  %v2870_v48 = vshrl.u32 %v2674_v40, 16 }
 0x10a   : > { %3236 = vmatmul.bf16.gmra.mxu0 %v3136_v25  ;;  %v6003_v25 = vld [vmem:[#allocation2 + $0x48] sm:$0xff]  ;;  %v2865_v12 = vshll.u32 %v2673_v14, 16 }
 0x10b   : > { %v3138_v45 = vpack.c.b16 %v3112_v32, %v3111_v62  ;;  %v2872_v26 = vrot.slane %v2870_v48, 4 }
 0x10d   : > { %1872 = vmatmul.bf16.gmra.mxu1 %v6002_v22  ;;  %v2026_v22 = vrot.slane %v6337_v34, 5  ;;  %v7153_v10 = vpop.f32.mrf.mxu1 }
 0x10f   : > { %v2027_v49 = vsel %vm7003_vm14, %v2025_v28, %v2026_v22  ;;  %v2033_v28 = vrot.slane %v6933_v39, 5  ;;  %v2867_v22 = vrot.slane %v2865_v12, 5  ;;  %v2876_v12 = vor.u32 %v2875_v54, %v2872_v26  ;;  %v6044_v26 = vld [vmem:[#allocation2 + $0x60] sm:$0xff] }
 0x110   : > { %v2120_v61 = vunpack.c.l.b16 %v2027_v49  ;;  %v2879_v49 = vshll.u32 %v2675_v41, 16 }
 0x111   : > { %v7158_v20 = vpop.f32.mrf.mxu2 }
 0x112   : > { %2560 = vmatmul.bf16.gmra.mxu3 %v6041_v0  ;;  %v2859_v0 = vshrl.u32 %v2672_v44, 16  ;;  %v2145_v30 = vpack.c.b16 %v2120_v61, %v2119_v23  ;;  %v6043_v44 = vld [vmem:[#allocation2 + $0x54] sm:$0xff] }
 0x114   : > { %v2861_v5 = vrot.slane %v2859_v0, 4 }
 0x116   : > { %v2862_v36 = vor.u32 %v2861_v5, %v2857_v1 }
 0x118   : > { %v2863_v34 = vrot.slane %v2862_v36, 4  ;;  %v1936_v36 = vld [vmem:[#allocation2 + $0x60] sm:$0xe] }
 0x119   : > { %2252 = vmatmul.bf16.gmra.mxu2 %v2144_v31  ;;  %v2030_v31 = vrot.slane %v6930_v29, 5  ;;  %v2853_v29 = vrot.slane %v2852_v63, 4  ;;  %v7175_v0 = vpop.f32.mrf.mxu2 }
 0x11a   : > { %3241 = vmatmul.bf16.gmra.mxu0 %v3137_v17  ;;  %v1935_v17 = vld [vmem:[#allocation2 + $0x54] sm:$0xe]  ;;  %v2868_v39 = vsel %vm6627_vm11, %v2863_v34, %v2867_v22  ;;  %v6339_v22 = vld [vmem:[#allocation2 + $0x68] sm:$0x1] }
 0x11b   : > { %v5600_v27 = vrot.slane %v1935_v17, 9  ;;  %v2032_v57 = vrot.slane %v2030_v31, 4  ;;  %v2858_v46 = vsel %vm6627_vm11, %v2853_v29, %v2857_v1  ;;  %v7173_v37 = vpop.f32.mrf.mxu3  ;;  %v3114_v62 = vunpack.c.l.b16 %v2868_v39 }
 0x11c   : > { %v3113_v61 = vunpack.c.l.b16 %v2858_v46  ;;  %v7179_v32 = vpop.f32.mrf.mxu0  ;;  %v2881_v1 = vrot.slane %v2879_v49, 5  ;;  %v5601_v29 = vrot.slane %v1936_v36, 9  ;;  %v2040_v40 = vrot.slane %v6339_v22, 5 }
 0x11d   : > { %1877 = vmatmul.bf16.gmra.mxu1 %v6003_v25  ;;  %v2031_v50 = vsel %vm7003_vm14, %v5600_v27, %v2030_v31  ;;  %v2034_v18 = vsel %vm7003_vm14, %v2032_v57, %v2033_v28  ;;  %v6338_v31 = vld [vmem:[#allocation2 + $0x64] sm:$0xf]  ;;  %v6096_v27 = vld [vmem:[%s7987_s3 + $0x198] sm:$0xff]  ;;  %v2877_v39 = vrot.slane %v2876_v12, 4 }
 0x11e   : > { %v2121_v58 = vunpack.c.l.b16 %v2031_v50  ;;  %v2122_v59 = vunpack.c.l.b16 %v2034_v18  ;;  %v3139_v63 = vpack.c.b16 %v3114_v62, %v3113_v61  ;;  %v6005_v57 = vld [vmem:[#allocation2 + $0x60] sm:$0xff]  ;;  %3956 = vmatpush.bf16.msra.mxu2 %v6096_v27  ;;  %v2677_v50 = vld [vmem:[#allocation2 + $0x6c] sm:$0xf]  ;;  %v6104_v18 = vld [vmem:[%s7987_s3 + $0x1d8] sm:$0xff] }
 0x11f   : > { %4637 = vmatpush.bf16.msra.mxu3 %v6104_v18  ;;  %v2894_v61 = vshrl.u32 %v2677_v50, 16  ;;  %v2897_v62 = vshll.u32 %v2677_v50, 16  ;;  %v6340_v50 = vld [vmem:[#allocation2 + $0x70] sm:$0xf] }
 0x120   : > { %v2146_v14 = vpack.c.b16 %v2122_v59, %v2121_v58  ;;  %v2044_v18 = vrot.slane %v6340_v50, 5 }
 0x121   : > { %v2896_v36 = vrot.slane %v2894_v61, 4  ;;  %v2899_v12 = vrot.slane %v2897_v62, 5 }
 0x122   : > { %2565 = vmatmul.bf16.gmra.mxu3 %v6042_v53  ;;  %v2883_v53 = vshrl.u32 %v2675_v41, 16 }
 0x123   : > { %v7191_v46 = vpop.f32.mrf.mxu3 }
 0x124   : > { %v2885_v5 = vrot.slane %v2883_v53, 4  ;;  %v2678_v53 = vld [vmem:[#allocation2 + $0x70] sm:$0xf] }
 0x125   : > { %v2903_v54 = vshll.u32 %v2678_v53, 16 }
 0x126   : > { %v2886_v17 = vor.u32 %v2885_v5, %v2881_v1  ;;  %v2907_v5 = vshrl.u32 %v2678_v53, 16 }
 0x128   : > { %v2887_v48 = vrot.slane %v2886_v17, 4 }
 0x129   : > { %2257 = vmatmul.bf16.gmra.mxu2 %v2145_v30  ;;  %v2676_v30 = vld [vmem:[#allocation2 + $0x68] sm:$0x1] }
 0x12a   : > { %v7162_v25 = vpop.f32.mrf.mxu1  ;;  %3246 = vmatmul.bf16.gmra.mxu0 %v3138_v45  ;;  %v2037_v45 = vrot.slane %v6338_v31, 5  ;;  %v6112_v31 = vld [vmem:[%s7987_s3 + $0x218] sm:$0xff] }
 0x12b   : > { %5062 = vmatpush.bf16.msra.mxu0 %v6112_v31 }
 0x12c   : > { %v2039_v34 = vrot.slane %v2037_v45, 4  ;;  %v2038_v58 = vsel %vm7003_vm14, %v5601_v29, %v2037_v45 }
 0x12d   : > { %1882 = vmatmul.bf16.gmra.mxu1 %v6004_v3  ;;  %v2889_v3 = vshll.u32 %v2676_v30, 16  ;;  %v2123_v45 = vunpack.c.l.b16 %v2038_v58  ;;  %v6006_v58 = vld [vmem:[#allocation2 + $0x6c] sm:$0xff] }
 0x12e   : > { %v2041_v59 = vsel %vm7003_vm14, %v2039_v34, %v2040_v40  ;;  %v2900_v40 = vor.u32 %v2899_v12, %v2896_v36  ;;  %v2681_v36 = vld [vmem:[#allocation2 + $0x7c] sm:$0xf] }
 0x12f   : > { %v2891_v42 = vrot.slane %v2889_v3, 5 }
 0x131   : > { %v2892_v30 = vsel %vm6627_vm11, %v2887_v48, %v2891_v42  ;;  %v1937_v42 = vld [vmem:[#allocation2 + $0x6c] sm:$0xe] }
 0x132   : > { %v7177_v23 = vpop.f32.mrf.mxu1  ;;  %2570 = vmatmul.bf16.gmra.mxu3 %v6043_v44  ;;  %v6072_v44 = vld [vmem:[%s7987_s3 + $0x158] sm:$0xff]  ;;  %v3116_v27 = vunpack.c.l.b16 %v2892_v30  ;;  %v5602_v62 = vrot.slane %v1937_v42, 9 }
 0x133   : > { %3642 = vmatpush.bf16.msra.mxu1 %v6072_v44 }
 0x139   : > { %2262 = vmatmul.bf16.gmra.mxu2 %v2146_v14  ;;  %v2882_v14 = vsel %vm6627_vm11, %v2877_v39, %v2881_v1  ;;  %v2679_v1 = vld [vmem:[#allocation2 + $0x74] sm:$0x1] }
 0x13a   : > { %v1848_v28 = vpop.f32.mrf.mxu1  ;;  %3251 = vmatmul.bf16.gmra.mxu0 %v3139_v63  ;;  %v2124_v63 = vunpack.c.l.b16 %v2041_v59  ;;  %v3115_v3 = vunpack.c.l.b16 %v2882_v14  ;;  %v2913_v48 = vshll.u32 %v2679_v1, 16  ;;  %v2901_v59 = vrot.slane %v2900_v40, 4  ;;  %v6045_v40 = vld [vmem:[#allocation2 + $0x6c] sm:$0xff] }
 0x13b   : > { %v1849_v41 = vadd.f32 %v1848_v28, %v7107_v47  ;;  %v7195_v47 = vpop.f32.mrf.mxu0  ;;  %v2909_v28 = vrot.slane %v2907_v5, 4 }
 0x13c   : > { %v7193_v49 = vpop.f32.mrf.mxu2  ;;  %v2147_v34 = vpack.c.b16 %v2124_v63, %v2123_v45  ;;  %v3140_v44 = vpack.c.b16 %v3116_v27, %v3115_v3  ;;  %v2915_v30 = vrot.slane %v2913_v48, 5  ;;  %v2680_v45 = vld [vmem:[#allocation2 + $0x78] sm:$0xf] }
 0x13d   : > { %1887 = vmatmul.bf16.gmra.mxu1 %v6005_v57  ;;  %v2905_v57 = vrot.slane %v2903_v54, 5  ;;  %v6341_v54 = vld [vmem:[#allocation2 + $0x74] sm:$0x1]  ;;  %v2921_v50 = vshll.u32 %v2680_v45, 16 }
 0x13e   : > { %v2047_v5 = vrot.slane %v6341_v54, 5 }
 0x13f   : > { %v2910_v39 = vor.u32 %v2909_v28, %v2905_v57  ;;  %v2906_v27 = vsel %vm6627_vm11, %v2901_v59, %v2905_v57  ;;  %v2045_v28 = vsel %vm7003_vm14, %v5602_v62, %v2044_v18  ;;  %v2923_v62 = vrot.slane %v2921_v50, 5  ;;  %v2683_v50 = vld [vmem:[#allocation2 + $0x84] sm:$0xf] }
 0x140   : > { %v2125_v48 = vunpack.c.l.b16 %v2045_v28 }
 0x141   : > { %v2911_v14 = vrot.slane %v2910_v39, 4 }
 0x142   : > { %v1850_v17 = vpop.f32.mrf.mxu1  ;;  %2575 = vmatmul.bf16.gmra.mxu3 %v6044_v26  ;;  %v2046_v26 = vrot.slane %v2044_v18, 4 }
 0x143   : > { %v1851_v18 = vadd.f32 %v1850_v17, %v7126_v13  ;;  %v6095_v13 = vld [vmem:[%s7987_s3 + $0x190] sm:$0xff]  ;;  %v6007_v17 = vld [vmem:[#allocation2 + $0x78] sm:$0xff] }
 0x144   : > { %v7208_v29 = vpop.f32.mrf.mxu2  ;;  %v2048_v1 = vsel %vm7003_vm14, %v2046_v26, %v2047_v5  ;;  %3957 = vmatpush.bf16.msra.mxu2 %v6095_v13  ;;  %v6046_v13 = vld [vmem:[#allocation2 + $0x78] sm:$0xff] }
 0x145   : > { %v7210_v22 = vpop.f32.mrf.mxu3  ;;  %v2126_v42 = vunpack.c.l.b16 %v2048_v1 }
 0x146   : > { %8003 = vst [vmem:[#allocation3_spill] sm:$0xff] %v7210_v22 }
 0x147   : > { %v7212_v53 = vpop.f32.mrf.mxu0 }
 0x149   : > { %2267 = vmatmul.bf16.gmra.mxu2 %v2147_v34  ;;  %v2918_v34 = vshrl.u32 %v2680_v45, 16  ;;  %v2682_v45 = vld [vmem:[#allocation2 + $0x80] sm:$0x1] }
 0x14a   : > { %v1853_v61 = vpop.f32.mrf.mxu1  ;;  %3256 = vmatmul.bf16.gmra.mxu0 %v3140_v44  ;;  %v2927_v44 = vshll.u32 %v2681_v36, 16  ;;  %v2937_v22 = vshll.u32 %v2682_v45, 16  ;;  %v2942_v45 = vshrl.u32 %v2683_v50, 16 }
 0x14b   : > { %v7215_v31 = vadd.f32 %v1853_v61, %v7151_v4  ;;  %v2916_v4 = vsel %vm6627_vm11, %v2911_v14, %v2915_v30  ;;  %v2920_v59 = vrot.slane %v2918_v34, 4  ;;  %v2148_v30 = vpack.c.b16 %v2126_v42, %v2125_v48 }
 0x14c   : > { %v2228_v63 = vpop.f32.mrf.mxu2  ;;  %v3118_v57 = vunpack.c.l.b16 %v2916_v4  ;;  %v7232_v26 = vrot.slane %v2927_v44, 5  ;;  %v2684_v44 = vld [vmem:[#allocation2 + $0x88] sm:$0xf] }
 0x14d   : > { %v2308_v12 = vadd.f32 %v2228_v63, %v1849_v41  ;;  %1892 = vmatmul.bf16.gmra.mxu1 %v6006_v58  ;;  %v7217_v3 = vpop.f32.mrf.mxu3  ;;  %v2931_v41 = vshrl.u32 %v2681_v36, 16  ;;  %v3117_v58 = vunpack.c.l.b16 %v2906_v27  ;;  %v6342_v36 = vld [vmem:[#allocation2 + $0x7c] sm:$0xf]  ;;  %v2924_v4 = vor.u32 %v2923_v62, %v2920_v59 }
 0x14e   : > { %8004 = vst [vmem:[#allocation4_spill] sm:$0xff] %v7217_v3  ;;  %v2051_v28 = vrot.slane %v6342_v36, 5  ;;  %v1938_v3 = vld [vmem:[#allocation2 + $0x78] sm:$0xe]  ;;  %v2951_v36 = vshll.u32 %v2684_v44, 16 }
 0x14f   : > { %v7227_v39 = vpop.f32.mrf.mxu0  ;;  %v2933_v54 = vrot.slane %v2931_v41, 4  ;;  %v3141_v1 = vpack.c.b16 %v3118_v57, %v3117_v58  ;;  %v5603_v42 = vrot.slane %v1938_v3, 9  ;;  %v2925_v59 = vrot.slane %v2924_v4, 4 }
 0x150   : > { %v2053_v58 = vrot.slane %v2051_v28, 4 }
 0x151   : > { %v2934_v34 = vor.u32 %v2933_v54, %v7232_v26  ;;  %v6103_v54 = vld [vmem:[%s7987_s3 + $0x1d0] sm:$0xff]  ;;  %v2052_v4 = vsel %vm7003_vm14, %v5603_v42, %v2051_v28 }
 0x152   : > { %v7229_v61 = vpop.f32.mrf.mxu1  ;;  %2580 = vmatmul.bf16.gmra.mxu3 %v6045_v40  ;;  %v6111_v28 = vld [vmem:[%s7987_s3 + $0x210] sm:$0xff]  ;;  %v2127_v42 = vunpack.c.l.b16 %v2052_v4  ;;  %v6344_v4 = vld [vmem:[#allocation2 + $0x88] sm:$0xf] }
 0x153   : > { %4638 = vmatpush.bf16.msra.mxu3 %v6103_v54  ;;  %5063 = vmatpush.bf16.msra.mxu0 %v6111_v28  ;;  %v2685_v54 = vld [vmem:[#allocation2 + $0x8c] sm:$0x1] }
 0x154   : > { %v2230_v5 = vpop.f32.mrf.mxu2 }
 0x155   : > { %v2309_v14 = vadd.f32 %v2230_v5, %v1851_v18  ;;  %v2541_v63 = vpop.f32.mrf.mxu3  ;;  %v2935_v18 = vrot.slane %v2934_v34, 4  ;;  %v6071_v5 = vld [vmem:[%s7987_s3 + $0x150] sm:$0xff] }
 0x156   : > { %v2621_v27 = vadd.f32 %v2541_v63, %v2308_v12  ;;  %v6343_v12 = vld [vmem:[#allocation2 + $0x80] sm:$0x1]  ;;  %v2945_v63 = vshll.u32 %v2683_v50, 16  ;;  %3643 = vmatpush.bf16.msra.mxu1 %v6071_v5 }
 0x157   : > { %v3222_v40 = vpop.f32.mrf.mxu0  ;;  %v2054_v57 = vrot.slane %v6343_v12, 5 }
 0x158   : > { %v7238_v41 = vadd.f32 %v3222_v40, %v2621_v27  ;;  %v2955_v27 = vshrl.u32 %v2684_v44, 16  ;;  %v2947_v44 = vrot.slane %v2945_v63, 5 }
 0x159   : > { %2272 = vmatmul.bf16.gmra.mxu2 %v2148_v30  ;;  %v2939_v30 = vrot.slane %v2937_v22, 5  ;;  %v2055_v34 = vsel %vm7003_vm14, %v2053_v58, %v2054_v57  ;;  %v2930_v22 = vsel %vm6627_vm11, %v2925_v59, %v7232_v26 }
 0x15a   : > { %v1858_v48 = vpop.f32.mrf.mxu1  ;;  %3261 = vmatmul.bf16.gmra.mxu0 %v3141_v1  ;;  %v2128_v58 = vunpack.c.l.b16 %v2055_v34  ;;  %v2957_v12 = vrot.slane %v2955_v27, 4  ;;  %v3119_v26 = vunpack.c.l.b16 %v2930_v22  ;;  %v2961_v27 = vshll.u32 %v2685_v54, 16 }
 0x15b   : > { %v7241_v62 = vadd.f32 %v1858_v48, %v7179_v32  ;;  %v2953_v48 = vrot.slane %v2951_v36, 5  ;;  %v2058_v34 = vrot.slane %v6344_v4, 5 }
 0x15c   : > { %v2233_v3 = vpop.f32.mrf.mxu2 }
 0x15d   : > { %v2310_v1 = vadd.f32 %v2233_v3, %v7215_v31  ;;  %1897 = vmatmul.bf16.gmra.mxu1 %v6007_v17  ;;  %v2543_v32 = vpop.f32.mrf.mxu3  ;;  %v2940_v31 = vsel %vm6627_vm11, %v2935_v18, %v2939_v30  ;;  %v2944_v17 = vrot.slane %v2942_v45, 4  ;;  %v1856_v18 = vadd.f32 %v7229_v61, %v7160_v21  ;;  %v6008_v21 = vld [vmem:[#allocation2 + $0x84] sm:$0xff] }
 0x15e   : > { %v2622_v40 = vadd.f32 %v2543_v32, %v2309_v14  ;;  %v3120_v59 = vunpack.c.l.b16 %v2940_v31  ;;  %v2149_v45 = vpack.c.b16 %v2128_v58, %v2127_v42  ;;  %v2958_v36 = vor.u32 %v2957_v12, %v2953_v48  ;;  %v2686_v12 = vld [vmem:[#allocation2 + $0x90] sm:$0xf] }
 0x15f   : > { %v3224_v50 = vpop.f32.mrf.mxu0  ;;  %v2948_v63 = vor.u32 %v2947_v44, %v2944_v17  ;;  %v2060_v42 = vrot.slane %v2058_v34, 4  ;;  %v6345_v17 = vld [vmem:[#allocation2 + $0x8c] sm:$0x1]  ;;  %v2969_v4 = vshll.u32 %v2686_v12, 16 }
 0x160   : > { %v7262_v14 = vadd.f32 %v3224_v50, %v2622_v40  ;;  %v3142_v40 = vpack.c.b16 %v3120_v59, %v3119_v26  ;;  %v2959_v28 = vrot.slane %v2958_v36, 4  ;;  %v2061_v44 = vrot.slane %v6345_v17, 5  ;;  %v2687_v26 = vld [vmem:[#allocation2 + $0x94] sm:$0xf] }
 0x161   : > { %v2949_v31 = vrot.slane %v2948_v63, 4  ;;  %v2966_v36 = vshrl.u32 %v2686_v12, 16  ;;  %v2688_v12 = vld [vmem:[#allocation2 + $0x98] sm:$0x1] }
 0x162   : > { %v1860_v57 = vpop.f32.mrf.mxu1  ;;  %2585 = vmatmul.bf16.gmra.mxu3 %v6046_v13  ;;  %v1939_v13 = vld [vmem:[#allocation2 + $0x84] sm:$0xe] }
 0x163   : > { %v1861_v5 = vadd.f32 %v1860_v57, %v7195_v47  ;;  %v2963_v47 = vrot.slane %v2961_v27, 5  ;;  %v2954_v59 = vsel %vm6627_vm11, %v2949_v31, %v2953_v48  ;;  %v6047_v27 = vld [vmem:[#allocation2 + $0x84] sm:$0xff] }
 0x164   : > { %v2235_v30 = vpop.f32.mrf.mxu2  ;;  %v3121_v31 = vunpack.c.l.b16 %v2954_v59 }
 0x165   : > { %v2311_v3 = vadd.f32 %v2235_v30, %v1856_v18  ;;  %v2546_v32 = vpop.f32.mrf.mxu3  ;;  %v5604_v18 = vrot.slane %v1939_v13, 9 }
 0x166   : > { %v2623_v50 = vadd.f32 %v2546_v32, %v2310_v1 }
 0x167   : > { %v3227_v22 = vpop.f32.mrf.mxu0  ;;  %v2059_v63 = vsel %vm7003_vm14, %v5604_v18, %v2058_v34  ;;  %v2971_v34 = vrot.slane %v2969_v4, 5  ;;  %v6009_v4 = vld [vmem:[#allocation2 + $0x90] sm:$0xff] }
 0x168   : > { %v7267_v61 = vadd.f32 %v3227_v22, %v2623_v50  ;;  %v2979_v50 = vshrl.u32 %v2687_v26, 16  ;;  %v2129_v13 = vunpack.c.l.b16 %v2059_v63 }
 0x169   : > { %2277 = vmatmul.bf16.gmra.mxu2 %v2149_v45  ;;  %v2964_v45 = vsel %vm6627_vm11, %v2959_v28, %v2963_v47  ;;  %v2968_v28 = vrot.slane %v2966_v36, 4  ;;  %v1940_v36 = vld [vmem:[#allocation2 + $0x90] sm:$0xe] }
 0x16a   : > { %v1863_v57 = vpop.f32.mrf.mxu1  ;;  %3266 = vmatmul.bf16.gmra.mxu0 %v3142_v40  ;;  %v2975_v40 = vshll.u32 %v2687_v26, 16  ;;  %v2981_v18 = vrot.slane %v2979_v50, 4  ;;  %v6346_v26 = vld [vmem:[#allocation2 + $0x94] sm:$0xf] }
 0x16b   : > { %v7270_v58 = vadd.f32 %v1863_v57, %v7212_v53  ;;  %v2062_v53 = vsel %vm7003_vm14, %v2060_v42, %v2061_v44 }
 0x16c   : > { %v2238_v1 = vpop.f32.mrf.mxu2  ;;  %v7283_v57 = vrot.slane %v2975_v40, 5  ;;  %v2690_v40 = vld [vmem:[#allocation2 + $0xa0] sm:$0xf] }
 0x16d   : > { %v2312_v54 = vadd.f32 %v2238_v1, %v7241_v62  ;;  %1902 = vmatmul.bf16.gmra.mxu1 %v6008_v21  ;;  %v2548_v30 = vpop.f32.mrf.mxu3  ;;  %v2130_v62 = vunpack.c.l.b16 %v2062_v53  ;;  %v3122_v21 = vunpack.c.l.b16 %v2964_v45  ;;  %v2972_v45 = vor.u32 %v2971_v34, %v2968_v28  ;;  %v6070_v34 = vld [vmem:[%s7987_s3 + $0x148] sm:$0xff] }
 0x16e   : > { %v2624_v32 = vadd.f32 %v2548_v30, %v2311_v3  ;;  %v2065_v30 = vrot.slane %v6346_v26, 5  ;;  %v2982_v53 = vor.u32 %v2981_v18, %v7283_v57  ;;  %3644 = vmatpush.bf16.msra.mxu1 %v6070_v34 }
 0x16f   : > { %v3229_v48 = vpop.f32.mrf.mxu0  ;;  %v2150_v44 = vpack.c.b16 %v2130_v62, %v2129_v13  ;;  %v3143_v63 = vpack.c.b16 %v3122_v21, %v3121_v31  ;;  %v5605_v13 = vrot.slane %v1940_v36, 9  ;;  %v6347_v62 = vld [vmem:[#allocation2 + $0x98] sm:$0x1]  ;;  %v2973_v21 = vrot.slane %v2972_v45, 4 }
 0x170   : > { %v7281_v22 = vadd.f32 %v3229_v48, %v2624_v32  ;;  %v2068_v31 = vrot.slane %v6347_v62, 5  ;;  %v2983_v28 = vrot.slane %v2982_v53, 4 }
 0x171   : > { %v2066_v45 = vsel %vm7003_vm14, %v5605_v13, %v2065_v30 }
 0x172   : > { %8005 = vst [vmem:[#allocation5_spill] sm:$0xff] %v7281_v22  ;;  %v1865_v47 = vpop.f32.mrf.mxu1  ;;  %2590 = vmatmul.bf16.gmra.mxu3 %v6047_v27  ;;  %v2985_v27 = vshll.u32 %v2688_v12, 16  ;;  %v2131_v13 = vunpack.c.l.b16 %v2066_v45 }
 0x173   : > { %v7286_v3 = vadd.f32 %v1865_v47, %v7227_v39  ;;  %v6094_v39 = vld [vmem:[%s7987_s3 + $0x188] sm:$0xff] }
 0x174   : > { %v2240_v42 = vpop.f32.mrf.mxu2  ;;  %3958 = vmatpush.bf16.msra.mxu2 %v6094_v39  ;;  %v6102_v47 = vld [vmem:[%s7987_s3 + $0x1c8] sm:$0xff]  ;;  %v2987_v18 = vrot.slane %v2985_v27, 5  ;;  %v2978_v27 = vsel %vm6627_vm11, %v2973_v21, %v7283_v57 }
 0x175   : > { %v2313_v17 = vadd.f32 %v2240_v42, %v1861_v5  ;;  %v2551_v1 = vpop.f32.mrf.mxu3  ;;  %v2689_v5 = vld [vmem:[#allocation2 + $0x9c] sm:$0xf]  ;;  %4639 = vmatpush.bf16.msra.mxu3 %v6102_v47  ;;  %v3123_v21 = vunpack.c.l.b16 %v2978_v27  ;;  %v6349_v27 = vld [vmem:[%s7985_s1] ss:$0 sm:$0xff] }
 0x176   : > { %v2625_v59 = vadd.f32 %v2551_v1, %v2312_v54  ;;  %v2067_v54 = vrot.slane %v2065_v30, 4  ;;  %v2993_v12 = vshll.u32 %v2689_v5, 16  ;;  %v2999_v1 = vshll.u32 %v2690_v40, 16  ;;  %v6110_v30 = vld [vmem:[%s7987_s3 + $0x208] sm:$0xff] }
 0x177   : > { %v3232_v32 = vpop.f32.mrf.mxu0  ;;  %5064 = vmatpush.bf16.msra.mxu0 %v6110_v30  ;;  %v1941_v30 = vld [vmem:[#allocation2 + $0x9c] sm:$0xe] }
 0x178   : > { %v7292_v50 = vadd.f32 %v3232_v32, %v2625_v59  ;;  %v3003_v59 = vshrl.u32 %v2690_v40, 16  ;;  %v2069_v53 = vsel %vm7003_vm14, %v2067_v54, %v2068_v31  ;;  %v6048_v32 = vld [vmem:[#allocation2 + $0x90] sm:$0xff]  ;;  %v7312_v40 = vrot.slane %v2999_v1, 5  ;;  %v2691_v31 = vld [vmem:[#allocation2 + $0xa4] sm:$0x1] }
 0x179   : > { %2282 = vmatmul.bf16.gmra.mxu2 %v2150_v44  ;;  %v2990_v44 = vshrl.u32 %v2689_v5, 16  ;;  %v2995_v5 = vrot.slane %v2993_v12, 5  ;;  %v3009_v1 = vshll.u32 %v2691_v31, 16 }
 0x17a   : > { %8006 = vst [vmem:[#allocation6_spill] sm:$0xff] %v7292_v50  ;;  %v7294_v48 = vpop.f32.mrf.mxu1  ;;  %3271 = vmatmul.bf16.gmra.mxu0 %v3143_v63  ;;  %v3005_v54 = vrot.slane %v3003_v59, 4  ;;  %v6348_v59 = vld [vmem:[#allocation2 + $0xa0] sm:$0xf] }
 0x17b   : > { %v2072_v45 = vrot.slane %v6348_v59, 5 }
 0x17c   : > { %v2243_v42 = vpop.f32.mrf.mxu2  ;;  %v3006_v12 = vor.u32 %v3005_v54, %v7312_v40 }
 0x17d   : > { %v2314_v26 = vadd.f32 %v2243_v42, %v7270_v58  ;;  %1907 = vmatmul.bf16.gmra.mxu1 %v6009_v4  ;;  %v2553_v63 = vpop.f32.mrf.mxu3  ;;  %v2988_v58 = vsel %vm6627_vm11, %v2983_v28, %v2987_v18  ;;  %v2992_v4 = vrot.slane %v2990_v44, 4  ;;  %v6275_v18 = vld [vmem:[%s6460_s30 + $0x78] sm:$0xff]  }
 0x17e   : > { %v2626_v36 = vadd.f32 %v2553_v63, %v2313_v17  ;;  %v2132_v17 = vunpack.c.l.b16 %v2069_v53  ;;  %v3124_v28 = vunpack.c.l.b16 %v2988_v58  ;;  %v6179_v53 = vunpack.c.l.bf16 %v6275_v18 }
 0x17f   : > { %v3234_v39 = vpop.f32.mrf.mxu0  ;;  %v2996_v34 = vor.u32 %v2995_v5, %v2992_v4  ;;  %v3007_v5 = vrot.slane %v3006_v12, 4 }
 0x180   : > { %v7317_v62 = vadd.f32 %v3234_v39, %v2626_v36  ;;  %v2151_v44 = vpack.c.b16 %v2132_v17, %v2131_v13  ;;  %v6180_v36 = vunpack.c.h.bf16 %v6275_v18  ;;  %v3144_v39 = vpack.c.b16 %v3124_v28, %v3123_v21  ;;  %v6010_v17 = vld [vmem:[#allocation2 + $0x9c] sm:$0xff]  ;;  %v2692_v18 = vld [vmem:[#allocation2 + $0xa8] sm:$0xf] }
 0x181   : > { %v368_v58 = vmul.f32 %v6349_v27, %v6179_v53  ;;  %v3011_v13 = vrot.slane %v3009_v1, 5  ;;  %v2074_v21 = vrot.slane %v2072_v45, 4 }
 0x182   : > { %8007 = vst [vmem:[#allocation7_spill] sm:$0xff] %v7317_v62  ;;  %v7319_v57 = vpop.f32.mrf.mxu1  ;;  %2595 = vmatmul.bf16.gmra.mxu3 %v6048_v32  ;;  %v369_v4 = vmul.f32 %v6349_v27, %v6180_v36 }
 0x184   : > { %v2245_v47 = vpop.f32.mrf.mxu2 }
 0x185   : > { %v2315_v42 = vadd.f32 %v2245_v47, %v7286_v3  ;;  %v2556_v63 = vpop.f32.mrf.mxu3  ;;  %v2997_v3 = vrot.slane %v2996_v34, 4  ;;  %v5606_v47 = vrot.slane %v1941_v30, 9  ;;  %v1869_v34 = vadd.f32 %v7294_v48, %v7075_v33 }
 0x186   : > { %v2627_v62 = vadd.f32 %v2556_v63, %v2314_v26  ;;  %v6350_v26 = vld [vmem:[#allocation2 + $0xa4] sm:$0x1]  ;;  %v6351_v63 = vld [vmem:[%s7986_s2] ss:$0 sm:$0xff] }
 0x187   : > { %v3237_v32 = vpop.f32.mrf.mxu0  ;;  %v2075_v28 = vrot.slane %v6350_v26, 5  ;;  %v404_v59 = vadd.f32 %v6351_v63, %v368_v58  ;;  %v405_v12 = vadd.f32 %v6351_v63, %v369_v4  ;;  %v3002_v30 = vsel %vm6627_vm11, %v2997_v3, %v7312_v40 }
 0x188   : > { %v7327_v54 = vadd.f32 %v3237_v32, %v2627_v62  ;;  %v528_v62 = vld [vmem:[#allocation2 + $0xc0] sm:$0x1]  ;;  %v3012_v32 = vsel %vm6627_vm11, %v3007_v5, %v3011_v13  ;;  %v2073_v48 = vsel %vm7003_vm14, %v5606_v47, %v2072_v45  ;;  %v3017_v4 = vshll.u32 %v2692_v18, 16 }
 0x189   : > { %2287 = vmatmul.bf16.gmra.mxu2 %v2151_v44  ;;  %v2693_v44 = vld [vmem:[#allocation2 + $0xac] sm:$0xf]  ;;  %v436_v53 = vmax.f32 %v404_v59, 0.0  ;;  %v529_v36 = vsel %vm6451_vm2, 0, %v528_v62  ;;  %v2076_v58 = vsel %vm7003_vm14, %v2074_v21, %v2075_v28  ;;  %v6049_v59 = vld [vmem:[#allocation2 + $0x9c] sm:$0xff]  ;;  %v437_v40 = vmax.f32 %v405_v12, 0.0 }
 0x18a   : > { %8008 = vst [vmem:[#allocation8_spill] sm:$0xff] %v7327_v54  ;;  %v7329_v31 = vpop.f32.mrf.mxu1  ;;  %3276 = vmatmul.bf16.gmra.mxu0 %v3144_v39  ;;  %v3014_v39 = vshrl.u32 %v2692_v18, 16  ;;  %v3023_v26 = vshll.u32 %v2693_v44, 16  ;;  %v3027_v62 = vshrl.u32 %v2693_v44, 16  ;;  %v3125_v5 = vunpack.c.l.b16 %v3002_v30 }
 0x18b   : > { %530 = vst [vmem:[#allocation2 + $0xc0] sm:$0x1] %v529_v36  ;;  %v468_v3 = vpack.c.bf16 %v436_v53, %v436_v53  ;;  %v2133_v13 = vunpack.c.l.b16 %v2073_v48  ;;  %v3126_v36 = vunpack.c.l.b16 %v3012_v32  ;;  %v3019_v45 = vrot.slane %v3017_v4, 5  ;;  %v584_v32 = vld [vmem:[#allocation2 + $0xc8] sm:$0x1] }
 0x18c   : > { %v2248_v1 = vpop.f32.mrf.mxu2  ;;  %v3016_v50 = vrot.slane %v3014_v39, 4  ;;  %v7349_v47 = vrot.slane %v3023_v26, 5  ;;  %v3029_v28 = vrot.slane %v3027_v62, 4  ;;  %v469_v18 = vpack.c.bf16 %v437_v40, %v437_v40  ;;  %v6352_v4 = vld [vmem:[#allocation2 + $0xac] sm:$0xf] }
 0x18d   : > { %v2316_v27 = vadd.f32 %v2248_v1, %v1869_v34  ;;  %1912 = vmatmul.bf16.gmra.mxu1 %v6010_v17  ;;  %v2558_v33 = vpop.f32.mrf.mxu3  ;;  %v2134_v17 = vunpack.c.l.b16 %v2076_v58  ;;  %v848_v34 = vshrl.u32 %v468_v3, 16  ;;  %v851_v53 = vshll.u32 %v468_v3, 16  ;;  %v6093_v3 = vld [vmem:[%s7987_s3 + $0x180] sm:$0xff] }
 0x18e   : > { %v2628_v63 = vadd.f32 %v2558_v33, %v2315_v42  ;;  %v1871_v42 = vadd.f32 %v7319_v57, %v7089_v60  ;;  %v3145_v39 = vpack.c.b16 %v3126_v36, %v3125_v5  ;;  %v2079_v26 = vrot.slane %v6352_v4, 5  ;;  %v1942_v60 = vld [vmem:[#allocation2 + $0xa8] sm:$0xe]  ;;  %v2695_v57 = vld [vmem:[#allocation2 + $0xb4] sm:$0xf]  ;;  %3959 = vmatpush.bf16.msra.mxu2 %v6093_v3 }
 0x18f   : > { %v3239_v54 = vpop.f32.mrf.mxu0  ;;  %v850_v44 = vrot.slane %v848_v34, 7  ;;  %v2152_v33 = vpack.c.b16 %v2134_v17, %v2133_v13  ;;  %v3030_v22 = vor.u32 %v3029_v28, %v7349_v47  ;;  %v856_v62 = vshrl.u32 %v469_v18, 16  ;;  %v2696_v13 = vld [vmem:[#allocation2 + $0xb8] sm:$0xf] }
 0x190   : > { %v7347_v1 = vadd.f32 %v3239_v54, %v2628_v63  ;;  %v2694_v54 = vld [vmem:[#allocation2 + $0xb0] sm:$0x1]  ;;  %v859_v17 = vshll.u32 %v469_v18, 16  ;;  %v1874_v15 = vadd.f32 %v7329_v31, %v7101_v16 }
 0x191   : > { %v853_v63 = vor.u32 %v851_v53, %v850_v44  ;;  %v3033_v34 = vshll.u32 %v2694_v54, 16  ;;  %v854_v36 = vrot.slane %v850_v44, 4  ;;  %v2081_v53 = vrot.slane %v2079_v26, 4  ;;  %v6353_v54 = vld [vmem:[#allocation2 + $0xb0] sm:$0x1]  ;;  %v6101_v44 = vld [vmem:[%s7987_s3 + $0x1c0] sm:$0xff] }
 0x192   : > { %8009 = vst [vmem:[#allocation9_spill] sm:$0xff] %v7347_v1  ;;  %v7351_v21 = vpop.f32.mrf.mxu1  ;;  %2600 = vmatmul.bf16.gmra.mxu3 %v6049_v59  ;;  %v1020_v48 = vld [vmem:[#allocation2 + $0xc0] sm:$0xf]  ;;  %v3020_v59 = vor.u32 %v3019_v45, %v3016_v50  ;;  %v6011_v50 = vld [vmem:[#allocation2 + $0xa8] sm:$0xff]  ;;  %v858_v45 = vrot.slane %v856_v62, 7  ;;  %v3047_v62 = vshll.u32 %v2696_v13, 16 }
 0x193   : > { %v1021_v5 = vsel %vm6537_vm8, %v853_v63, %v1020_v48  ;;  %v3038_v63 = vshrl.u32 %v2695_v57, 16  ;;  %4640 = vmatpush.bf16.msra.mxu3 %v6101_v44 }
 0x194   : > { %v2250_v12 = vpop.f32.mrf.mxu2  ;;  %1022 = vst [vmem:[#allocation2 + $0xc0] sm:$0xf] %v1021_v5  ;;  %v3021_v18 = vrot.slane %v3020_v59, 4  ;;  %v861_v48 = vor.u32 %v859_v17, %v858_v45 }
 0x195   : > { %v2317_v30 = vadd.f32 %v2250_v12, %v1871_v42  ;;  %v2561_v58 = vpop.f32.mrf.mxu3  ;;  %v5607_v12 = vrot.slane %v1942_v60, 9  ;;  %v3041_v60 = vshll.u32 %v2695_v57, 16  ;;  %v6050_v57 = vld [vmem:[#allocation2 + $0xa8] sm:$0xff]  ;;  %v3040_v5 = vrot.slane %v3038_v63, 4 }
 0x196   : > { %v2629_v1 = vadd.f32 %v2561_v58, %v2316_v27  ;;  %v585_v27 = vsel %vm6471_vm4, 0, %v584_v32  ;;  %v2082_v58 = vrot.slane %v6353_v54, 5  ;;  %v3035_v32 = vrot.slane %v3033_v34, 5  ;;  %v2697_v54 = vld [vmem:[#allocation2 + $0xbc] sm:$0x1] }
 0x197   : > { %v3242_v40 = vpop.f32.mrf.mxu0  ;;  %586 = vst [vmem:[#allocation2 + $0xc8] sm:$0x1] %v585_v27  ;;  %v862_v16 = vsel %vm6529_vm7, %v854_v36, %v861_v48  ;;  %v2080_v31 = vsel %vm7003_vm14, %v5607_v12, %v2079_v26  ;;  %v863_v34 = vrot.slane %v858_v45, 4  ;;  %v3043_v27 = vrot.slane %v3041_v60, 5  ;;  %v6109_v26 = vld [vmem:[%s7987_s3 + $0x200] sm:$0xff] }
 0x198   : > { %v7363_v42 = vadd.f32 %v3242_v40, %v2629_v1  ;;  %v6069_v1 = vld [vmem:[%s7987_s3 + $0x140] sm:$0xff]  ;;  %v3051_v40 = vshrl.u32 %v2696_v13, 16  ;;  %v2083_v59 = vsel %vm7003_vm14, %v2081_v53, %v2082_v58  ;;  %1023 = vst [vmem:[#allocation2 + $0xc4] sm:$0xf] %v862_v16  ;;  %v3026_v13 = vsel %vm6627_vm11, %v3021_v18, %v7349_v47  ;;  %5065 = vmatpush.bf16.msra.mxu0 %v6109_v26 }
 0x199   : > { %2292 = vmatmul.bf16.gmra.mxu2 %v2152_v33  ;;  %v3031_v33 = vrot.slane %v3030_v22, 4  ;;  %3645 = vmatpush.bf16.msra.mxu1 %v6069_v1  ;;  %v2135_v36 = vunpack.c.l.b16 %v2080_v31  ;;  %v2136_v45 = vunpack.c.l.b16 %v2083_v59  ;;  %v3044_v1 = vor.u32 %v3043_v27, %v3040_v5  ;;  %v1943_v31 = vld [vmem:[#allocation2 + $0xb4] sm:$0xe]  ;;  %v6355_v5 = vld [vmem:[#allocation2 + $0xbc] sm:$0x1] }
 0x19a   : > { %v7365_v28 = vpop.f32.mrf.mxu1  ;;  %3281 = vmatmul.bf16.gmra.mxu0 %v3145_v39  ;;  %v3057_v63 = vshll.u32 %v2697_v54, 16  ;;  %v2089_v27 = vrot.slane %v6355_v5, 5 }
 0x19b   : > { %v3036_v9 = vsel %vm6627_vm11, %v3031_v33, %v3035_v32  ;;  %v1876_v33 = vadd.f32 %v7351_v21, %v7109_v52  ;;  %v2153_v32 = vpack.c.b16 %v2136_v45, %v2135_v36  ;;  %v6012_v52 = vld [vmem:[#allocation2 + $0xb4] sm:$0xff]  ;;  %v2698_v26 = vld [vmem:[#allocation2 + $0xc0] sm:$0xf]  ;;  %v6356_v45 = vld [vmem:[#allocation2 + $0x10] sm:$0xf] }
 0x19c   : > { %v2253_v4 = vpop.f32.mrf.mxu2  ;;  %v3128_v18 = vunpack.c.l.b16 %v3036_v9 }
 0x19d   : > { %v2318_v39 = vadd.f32 %v2253_v4, %v1874_v15  ;;  %1917 = vmatmul.bf16.gmra.mxu1 %v6011_v50  ;;  %v2563_v22 = vpop.f32.mrf.mxu3  ;;  %v7386_v50 = vrot.slane %v3047_v62, 5  ;;  %v3127_v15 = vunpack.c.l.b16 %v3026_v13  ;;  %v6354_v62 = vld [vmem:[#allocation2 + $0xb8] sm:$0xf] }
 0x19e   : > { %v2630_v3 = vadd.f32 %v2563_v22, %v2317_v30  ;;  %v3053_v30 = vrot.slane %v3051_v40, 4  ;;  %v1024_v12 = vld [vmem:[#allocation2 + $0xc8] sm:$0x1]  ;;  %v2086_v40 = vrot.slane %v6354_v62, 5 }
 0x19f   : > { %v3244_v17 = vpop.f32.mrf.mxu0  ;;  %v1025_v58 = vsel %vm6451_vm2, %v863_v34, %v1024_v12  ;;  %v3146_v16 = vpack.c.b16 %v3128_v18, %v3127_v15  ;;  %v3045_v34 = vrot.slane %v3044_v1, 4  ;;  %v2699_v36 = vld [vmem:[#allocation2 + $0xc4] sm:$0xf]  ;;  %v3062_v18 = vshrl.u32 %v2698_v26, 16 }
 0x1a0   : > { %v7391_v53 = vadd.f32 %v3244_v17, %v2630_v3  ;;  %1026 = vst [vmem:[#allocation2 + $0xc8] sm:$0x1] %v1025_v58  ;;  %v3054_v4 = vor.u32 %v3053_v30, %v7386_v50  ;;  %v5608_v17 = vrot.slane %v1943_v31, 9  ;;  %v2088_v9 = vrot.slane %v2086_v40, 4 }
 0x1a1   : > { %v3400_v30 = vrot.slane %v6356_v45, 5  ;;  %v3050_v12 = vsel %vm6627_vm11, %v3045_v34, %v7386_v50 }
 0x1a2   : > { %v7393_v47 = vpop.f32.mrf.mxu1  ;;  %2605 = vmatmul.bf16.gmra.mxu3 %v6050_v57  ;;  %v3055_v3 = vrot.slane %v3054_v4, 4  ;;  %v3059_v57 = vrot.slane %v3057_v63, 5  ;;  %v2087_v1 = vsel %vm7003_vm14, %v5608_v17, %v2086_v40  ;;  %v6051_v63 = vld [vmem:[#allocation2 + $0xb4] sm:$0xff] }
 0x1a3   : > { %v3402_v50 = vrot.slane %v3400_v30, 4 }
 0x1a4   : > { %v2255_v44 = vpop.f32.mrf.mxu2  ;;  %v3060_v58 = vsel %vm6627_vm11, %v3055_v3, %v3059_v57  ;;  %v3064_v3 = vrot.slane %v3062_v18, 4  ;;  %v3334_v57 = vld [vmem:[#allocation2 + $0xc] sm:$0xe] }
 0x1a5   : > { %v2319_v48 = vadd.f32 %v2255_v44, %v1876_v33  ;;  %v2566_v60 = vpop.f32.mrf.mxu3  ;;  %v3065_v33 = vshll.u32 %v2698_v26, 16  ;;  %v3130_v31 = vunpack.c.l.b16 %v3060_v58 }
 0x1a6   : > { %v2631_v22 = vadd.f32 %v2566_v60, %v2318_v39  ;;  %v1879_v39 = vadd.f32 %v7365_v28, %v7128_v56  ;;  %v2090_v56 = vsel %vm7003_vm14, %v2088_v9, %v2089_v27  ;;  %v3071_v28 = vshll.u32 %v2699_v36, 16  ;;  %v6357_v60 = vld [vmem:[#allocation2 + $0x14] sm:$0x1] }
 0x1a7   : > { %v3247_v59 = vpop.f32.mrf.mxu0  ;;  %v3403_v62 = vrot.slane %v6357_v60, 5  ;;  %v2138_v34 = vunpack.c.l.b16 %v2090_v56  ;;  %v3067_v40 = vrot.slane %v3065_v33, 5  ;;  %v5769_v27 = vrot.slane %v3334_v57, 9  ;;  %v2700_v26 = vld [vmem:[#allocation2 + $0xc8] sm:$0x1] }
 0x1a8   : > { %v7400_v21 = vadd.f32 %v3247_v59, %v2631_v22  ;;  %v3129_v22 = vunpack.c.l.b16 %v3050_v12  ;;  %v2137_v59 = vunpack.c.l.b16 %v2087_v1  ;;  %v3073_v17 = vrot.slane %v3071_v28, 5  ;;  %v4073_v12 = vld [vmem:[#allocation2 + $0x18] sm:$0xf] }
 0x1a9   : > { %2297 = vmatmul.bf16.gmra.mxu2 %v2153_v32  ;;  %v3075_v32 = vshrl.u32 %v2699_v36, 16  ;;  %v3401_v36 = vsel %vm7003_vm14, %v5769_v27, %v3400_v30  ;;  %v3404_v45 = vsel %vm7003_vm14, %v3402_v50, %v3403_v62  ;;  %v3068_v28 = vor.u32 %v3067_v40, %v3064_v3 }
 0x1aa   : > { %v7402_v13 = vpop.f32.mrf.mxu1  ;;  %3286 = vmatmul.bf16.gmra.mxu0 %v3146_v16  ;;  %v2154_v58 = vpack.c.b16 %v2138_v34, %v2137_v59  ;;  %v3526_v18 = vunpack.c.l.b16 %v3401_v36  ;;  %v3527_v33 = vunpack.c.l.b16 %v3404_v45  ;;  %v3147_v1 = vpack.c.b16 %v3130_v31, %v3129_v22 }
 0x1ab   : > { %v3077_v5 = vrot.slane %v3075_v32, 4  ;;  %v4125_v60 = vshll.u32 %v4073_v12, 16  ;;  %v1884_v59 = vadd.f32 %v7402_v13, %v7162_v25  ;;  %v3069_v22 = vrot.slane %v3068_v28, 4  ;;  %v6052_v13 = vld [vmem:[#allocation2 + $0xc0] sm:$0xff] }
 0x1ac   : > { %v2258_v54 = vpop.f32.mrf.mxu2 }
 0x1ad   : > { %v2320_v15 = vadd.f32 %v2258_v54, %v1879_v39  ;;  %1922 = vmatmul.bf16.gmra.mxu1 %v6012_v52  ;;  %v2568_v44 = vpop.f32.mrf.mxu3  ;;  %v3078_v32 = vor.u32 %v3077_v5, %v3073_v17  ;;  %v4127_v57 = vrot.slane %v4125_v60, 5  ;;  %v3074_v36 = vsel %vm6627_vm11, %v3069_v22, %v3073_v17 }
 0x1ae   : > { %v2632_v4 = vadd.f32 %v2568_v44, %v2319_v48  ;;  %v1881_v48 = vadd.f32 %v7393_v47, %v7153_v10  ;;  %v7425_v44 = vld [vmem:[#allocation2 + $0x1c] sm:$0xf]  ;;  %v3081_v10 = vshll.u32 %v2700_v26, 16  ;;  %v7435_v26 = vld [vmem:[#allocation2 + $0x20] sm:$0x1]  ;;  %v3131_v28 = vunpack.c.l.b16 %v3074_v36 }
 0x1af   : > { %v3249_v16 = vpop.f32.mrf.mxu0  ;;  %v4135_v50 = vshrl.u32 %v7425_v44, 16  ;;  %v3079_v34 = vrot.slane %v3078_v32, 4  ;;  %v3335_v32 = vld [vmem:[#allocation2 + $0x18] sm:$0xe]  ;;  %v7452_v36 = vld [vmem:[#allocation2 + $0x28] sm:$0xf] }
 0x1b0   : > { %v7415_v52 = vadd.f32 %v3249_v16, %v2632_v4  ;;  %v3558_v4 = vpack.c.b16 %v3527_v33, %v3526_v18  ;;  %v4131_v16 = vshll.u32 %v7425_v44, 16  ;;  %v4141_v33 = vshll.u32 %v7435_v26, 16 }
 0x1b1   : > { %v4137_v27 = vrot.slane %v4135_v50, 4  ;;  %v5770_v17 = vrot.slane %v3335_v32, 9  ;;  %v4159_v32 = vshrl.u32 %v7452_v36, 16 }
 0x1b2   : > { %v7417_v9 = vpop.f32.mrf.mxu1  ;;  %2610 = vmatmul.bf16.gmra.mxu3 %v6051_v63  ;;  %v4122_v63 = vshrl.u32 %v4073_v12, 16  ;;  %v4133_v5 = vrot.slane %v4131_v16, 5  ;;  %v4143_v22 = vrot.slane %v4141_v33, 5 }
 0x1b4   : > { %v2260_v39 = vpop.f32.mrf.mxu2  ;;  %v4124_v3 = vrot.slane %v4122_v63, 4  ;;  %v4138_v18 = vor.u32 %v4137_v27, %v4133_v5  ;;  %v6359_v63 = vld [vmem:[#allocation2 + $0x20] sm:$0x1] }
 0x1b5   : > { %v2321_v54 = vadd.f32 %v2260_v39, %v1881_v48  ;;  %v2571_v56 = vpop.f32.mrf.mxu3  ;;  %v3410_v60 = vrot.slane %v6359_v63, 5 }
 0x1b6   : > { %v2633_v47 = vadd.f32 %v2571_v56, %v2320_v15  ;;  %v3083_v15 = vrot.slane %v3081_v10, 5  ;;  %v4128_v12 = vor.u32 %v4127_v57, %v4124_v3  ;;  %v4076_v3 = vld [vmem:[#allocation2 + $0x24] sm:$0xf] }
 0x1b7   : > { %v3252_v30 = vpop.f32.mrf.mxu0 }
 0x1b8   : > { %v7429_v62 = vadd.f32 %v3252_v30, %v2633_v47  ;;  %v3084_v45 = vsel %vm6627_vm11, %v3079_v34, %v3083_v15  ;;  %v1886_v30 = vadd.f32 %v7417_v9, %v7177_v23  ;;  %v4129_v16 = vrot.slane %v4128_v12, 4 }
 0x1b9   : > { %2302 = vmatmul.bf16.gmra.mxu2 %v2154_v58  ;;  %v3132_v47 = vunpack.c.l.b16 %v3084_v45  ;;  %v4754_v45 = vld [vmem:[#allocation2 + $0x18] sm:$0xe]  ;;  %v4146_v12 = vshrl.u32 %v4076_v3, 16 }
 0x1ba   : > { %v7433_v31 = vpop.f32.mrf.mxu1  ;;  %3291 = vmatmul.bf16.gmra.mxu0 %v3147_v1  ;;  %v6358_v1 = vld [vmem:[#allocation2 + $0x1c] sm:$0xf]  ;;  %v4134_v9 = vsel %vm6627_vm11, %v4129_v16, %v4133_v5  ;;  %v4823_v16 = vrot.slane %v7435_v26, 5 }
 0x1bb   : > { %v3407_v56 = vrot.slane %v6358_v1, 5  ;;  %v4820_v1 = vrot.slane %v7425_v44, 5 }
 0x1bc   : > { %v2263_v40 = vpop.f32.mrf.mxu2 }
 0x1bd   : > { %v2322_v48 = vadd.f32 %v2263_v40, %v1884_v59  ;;  %3646 = vmatmul.bf16.vlgmr.msra.gmra.mxu1 %v3558_v4  ;;  %v2573_v39 = vpop.f32.mrf.mxu3  ;;  %v4139_v59 = vrot.slane %v4138_v18, 4  ;;  %v3408_v34 = vsel %vm7003_vm14, %v5770_v17, %v3407_v56  ;;  %v6077_v40 = vld [vmem:[#allocation2 + $0x18] sm:$0xff]  ;;  %v5945_v17 = vrot.slane %v4754_v45, 9  ;;  %v3336_v45 = vld [vmem:[#allocation2 + $0x24] sm:$0xe] }
 0x1be   : > { %v2634_v25 = vadd.f32 %v2573_v39, %v2321_v54  ;;  %v3409_v54 = vrot.slane %v3407_v56, 4  ;;  %v3528_v27 = vunpack.c.l.b16 %v3408_v34  ;;  %v4155_v56 = vshll.u32 %v7452_v36, 16 }
 0x1bf   : > { %v3254_v58 = vpop.f32.mrf.mxu0  ;;  %v4144_v33 = vsel %vm6627_vm11, %v4139_v59, %v4143_v22  ;;  %v4822_v44 = vrot.slane %v4820_v1, 4  ;;  %v4161_v22 = vrot.slane %v4159_v32, 4 }
 0x1c0   : > { %v7442_v10 = vadd.f32 %v3254_v58, %v2634_v25  ;;  %v3411_v15 = vsel %vm7003_vm14, %v3409_v54, %v3410_v60  ;;  %v3148_v25 = vpack.c.b16 %v3132_v47, %v3131_v28  ;;  %v4149_v58 = vshll.u32 %v4076_v3, 16 }
 0x1c1   : > { %v3529_v39 = vunpack.c.l.b16 %v3411_v15  ;;  %v1889_v54 = vadd.f32 %v7433_v31, %v7099_v8  ;;  %v4522_v63 = vunpack.c.l.b16 %v4144_v33  ;;  %v4148_v60 = vrot.slane %v4146_v12, 4  ;;  %v7468_v15 = vld [vmem:[#allocation2 + $0x2c] sm:$0x1] }
 0x1c2   : > { %v7444_v4 = vpop.f32.mrf.mxu1  ;;  %2615 = vmatmul.bf16.gmra.mxu3 %v6052_v13  ;;  %v4157_v59 = vrot.slane %v4155_v56, 5  ;;  %v4165_v26 = vshll.u32 %v7468_v15, 16  ;;  %v6361_v33 = vld [vmem:[#allocation2 + $0x2c] sm:$0x1] }
 0x1c3   : > { %v3559_v28 = vpack.c.b16 %v3529_v39, %v3528_v27  ;;  %v4821_v39 = vsel %vm7003_vm14, %v5945_v17, %v4820_v1  ;;  %v3417_v56 = vrot.slane %v6361_v33, 5  ;;  %v4079_v17 = vld [vmem:[#allocation2 + $0x30] sm:$0xf] }
 0x1c4   : > { %v2265_v50 = vpop.f32.mrf.mxu2  ;;  %v4946_v1 = vunpack.c.l.b16 %v4821_v39  ;;  %v4170_v39 = vshrl.u32 %v4079_v17, 16 }
 0x1c5   : > { %v2323_v57 = vadd.f32 %v2265_v50, %v1886_v30  ;;  %v2576_v13 = vpop.f32.mrf.mxu3  ;;  %v4151_v30 = vrot.slane %v4149_v58, 5 }
 0x1c6   : > { %v2635_v23 = vadd.f32 %v2576_v13, %v2322_v48  ;;  %v4521_v48 = vunpack.c.l.b16 %v4134_v9  ;;  %v4162_v13 = vor.u32 %v4161_v22, %v4157_v59 }
 0x1c7   : > { %v3257_v18 = vpop.f32.mrf.mxu0  ;;  %v4152_v8 = vor.u32 %v4151_v30, %v4148_v60  ;;  %v4167_v60 = vrot.slane %v4165_v26, 5 }
 0x1c8   : > { %v7461_v47 = vadd.f32 %v3257_v18, %v2635_v23  ;;  %v4553_v27 = vpack.c.b16 %v4522_v63, %v4521_v48  ;;  %v6360_v23 = vld [vmem:[#allocation2 + $0x28] sm:$0xf]  ;;  %v4163_v63 = vrot.slane %v4162_v13, 4 }
 0x1c9   : > { %3960 = vmatmul.bf16.vlgmr.msra.gmra.mxu2 %v6077_v40  ;;  %v3414_v9 = vrot.slane %v6360_v23, 5  ;;  %v4153_v48 = vrot.slane %v4152_v8, 4  ;;  %v4755_v23 = vld [vmem:[#allocation2 + $0x24] sm:$0xe] }
 0x1ca   : > { %v7463_v5 = vpop.f32.mrf.mxu1  ;;  %3296 = vmatmul.bf16.gmra.mxu0 %v3148_v25  ;;  %v4824_v25 = vsel %vm7003_vm14, %v4822_v44, %v4823_v16  ;;  %v4168_v26 = vsel %vm6627_vm11, %v4163_v63, %v4167_v60 }
 0x1cb   : > { %v3416_v18 = vrot.slane %v3414_v9, 4  ;;  %v4947_v32 = vunpack.c.l.b16 %v4824_v25  ;;  %v4158_v13 = vsel %vm6627_vm11, %v4153_v48, %v4157_v59  ;;  %v1894_v59 = vadd.f32 %v7463_v5, %v7124_v7 }
 0x1cc   : > { %v2268_v50 = vpop.f32.mrf.mxu2  ;;  %v4830_v48 = vrot.slane %v7468_v15, 5 }
 0x1cd   : > { %v2324_v34 = vadd.f32 %v2268_v50, %v1889_v54  ;;  %3651 = vmatmul.bf16.gmra.mxu1 %v3559_v28  ;;  %v2578_v3 = vpop.f32.mrf.mxu3  ;;  %v1891_v28 = vadd.f32 %v7444_v4, %v7105_v38  ;;  %v3418_v44 = vsel %vm7003_vm14, %v3416_v18, %v3417_v56  ;;  %v6078_v50 = vld [vmem:[#allocation2 + $0x24] sm:$0xff]  ;;  %v4173_v38 = vshll.u32 %v4079_v17, 16 }
 0x1ce   : > { %v2636_v40 = vadd.f32 %v2578_v3, %v2323_v57  ;;  %v5771_v57 = vrot.slane %v3336_v45, 9  ;;  %v3531_v3 = vunpack.c.l.b16 %v3418_v44  ;;  %v4978_v4 = vpack.c.b16 %v4947_v32, %v4946_v1 }
 0x1cf   : > { %v3259_v31 = vpop.f32.mrf.mxu0  ;;  %v4523_v56 = vunpack.c.l.b16 %v4158_v13  ;;  %v4524_v1 = vunpack.c.l.b16 %v4168_v26  ;;  %v5946_v32 = vrot.slane %v4755_v23, 9 }
 0x1d0   : > { %v7475_v12 = vadd.f32 %v3259_v31, %v2636_v40  ;;  %v3415_v30 = vsel %vm7003_vm14, %v5771_v57, %v3414_v9  ;;  %v7485_v40 = vld [vmem:[#allocation2 + $0x34] sm:$0xf]  ;;  %v4827_v31 = vrot.slane %v7452_v36, 5  ;;  %v4175_v36 = vrot.slane %v4173_v38, 5 }
 0x1d1   : > { %v3530_v22 = vunpack.c.l.b16 %v3415_v30  ;;  %v4179_v9 = vshll.u32 %v7485_v40, 16  ;;  %v4183_v45 = vshrl.u32 %v7485_v40, 16  ;;  %v7501_v30 = vld [vmem:[#allocation2 + $0x38] sm:$0x1]  ;;  %v6362_v38 = vld [vmem:[#allocation2 + $0x34] sm:$0xf] }
 0x1d2   : > { %v7477_v58 = vpop.f32.mrf.mxu1  ;;  %4641 = vmatmul.bf16.vlgmr.msra.gmra.mxu3 %v4553_v27  ;;  %v4828_v7 = vsel %vm7003_vm14, %v5946_v32, %v4827_v31  ;;  %v4189_v15 = vshll.u32 %v7501_v30, 16 }
 0x1d3   : > { %v3560_v57 = vpack.c.b16 %v3531_v3, %v3530_v22  ;;  %v4185_v63 = vrot.slane %v4183_v45, 4  ;;  %v4554_v3 = vpack.c.b16 %v4524_v1, %v4523_v56 }
 0x1d4   : > { %v2270_v54 = vpop.f32.mrf.mxu2  ;;  %v4191_v1 = vrot.slane %v4189_v15, 5 }
 0x1d5   : > { %v2325_v16 = vadd.f32 %v2270_v54, %v1891_v28  ;;  %v2581_v27 = vpop.f32.mrf.mxu3  ;;  %v4829_v28 = vrot.slane %v4827_v31, 4  ;;  %v4181_v54 = vrot.slane %v4179_v9, 5  ;;  %v6363_v9 = vld [vmem:[#allocation2 + $0x38] sm:$0x1]  ;;  %v4948_v31 = vunpack.c.l.b16 %v4828_v7 }
 0x1d6   : > { %v2637_v8 = vadd.f32 %v2581_v27, %v2324_v34  ;;  %v4172_v34 = vrot.slane %v4170_v39, 4  ;;  %v3424_v45 = vrot.slane %v6363_v9, 5 }
 0x1d7   : > { %v3262_v25 = vpop.f32.mrf.mxu0  ;;  %v4831_v27 = vsel %vm7003_vm14, %v4829_v28, %v4830_v48  ;;  %v4186_v39 = vor.u32 %v4185_v63, %v4181_v54  ;;  %v7518_v48 = vld [vmem:[#allocation2 + $0x40] sm:$0xf]  ;;  %v6079_v63 = vld [vmem:[#allocation2 + $0x30] sm:$0xff] }
 0x1d8   : > { %v7494_v18 = vadd.f32 %v3262_v25, %v2637_v8  ;;  %v3337_v8 = vld [vmem:[#allocation2 + $0x30] sm:$0xe]  ;;  %v4203_v15 = vshll.u32 %v7518_v48, 16 }
 0x1d9   : > { %3965 = vmatmul.bf16.gmra.mxu2 %v6078_v50  ;;  %v4176_v50 = vor.u32 %v4175_v36, %v4172_v34  ;;  %v1896_v34 = vadd.f32 %v7477_v58, %v7145_v51  ;;  %v4082_v36 = vld [vmem:[#allocation2 + $0x3c] sm:$0xf]  ;;  %v4187_v56 = vrot.slane %v4186_v39, 4  ;;  %v4756_v58 = vld [vmem:[#allocation2 + $0x30] sm:$0xe] }
 0x1da   : > { %v7496_v33 = vpop.f32.mrf.mxu1  ;;  %5066 = vmatmul.bf16.vlgmr.msra.gmra.mxu0 %v4978_v4  ;;  %v3421_v4 = vrot.slane %v6362_v38, 5  ;;  %v4194_v7 = vshrl.u32 %v4082_v36, 16  ;;  %v4207_v38 = vshrl.u32 %v7518_v48, 16 }
 0x1db   : > { %v4177_v13 = vrot.slane %v4176_v50, 4 }
 0x1dc   : > { %v2273_v17 = vpop.f32.mrf.mxu2  ;;  %v3423_v23 = vrot.slane %v3421_v4, 4 }
 0x1dd   : > { %v2326_v60 = vadd.f32 %v2273_v17, %v1894_v59  ;;  %3656 = vmatmul.bf16.gmra.mxu1 %v3560_v57  ;;  %v2583_v44 = vpop.f32.mrf.mxu3  ;;  %v4949_v57 = vunpack.c.l.b16 %v4831_v27  ;;  %v4182_v51 = vsel %vm6627_vm11, %v4177_v13, %v4181_v54 }
 0x1de   : > { %v2638_v22 = vadd.f32 %v2583_v44, %v2325_v16  ;;  %v5772_v16 = vrot.slane %v3337_v8, 9  ;;  %v3425_v28 = vsel %vm7003_vm14, %v3423_v23, %v3424_v45  ;;  %v4192_v8 = vsel %vm6627_vm11, %v4187_v56, %v4191_v1  ;;  %v7534_v1 = vld [vmem:[#allocation2 + $0x44] sm:$0x1] }
 0x1df   : > { %v3264_v5 = vpop.f32.mrf.mxu0  ;;  %v3533_v50 = vunpack.c.l.b16 %v3425_v28  ;;  %v4979_v27 = vpack.c.b16 %v4949_v57, %v4948_v31  ;;  %v5947_v23 = vrot.slane %v4756_v58, 9  ;;  %v1899_v57 = vadd.f32 %v7496_v33, %v7158_v20  ;;  %v6364_v58 = vld [vmem:[#allocation2 + $0x40] sm:$0xf] }
 0x1e0   : > { %v7508_v25 = vadd.f32 %v3264_v5, %v2638_v22  ;;  %v3422_v32 = vsel %vm7003_vm14, %v5772_v16, %v3421_v4  ;;  %v4197_v5 = vshll.u32 %v4082_v36, 16  ;;  %v4525_v16 = vunpack.c.l.b16 %v4182_v51 }
 0x1e1   : > { %v3532_v44 = vunpack.c.l.b16 %v3422_v32  ;;  %v4205_v36 = vrot.slane %v4203_v15, 5  ;;  %v4213_v20 = vshll.u32 %v7534_v1, 16 }
 0x1e2   : > { %v7510_v26 = vpop.f32.mrf.mxu1  ;;  %4646 = vmatmul.bf16.gmra.mxu3 %v4554_v3  ;;  %v4834_v3 = vrot.slane %v7485_v40, 5  ;;  %v4837_v40 = vrot.slane %v7501_v30, 5  ;;  %v4199_v31 = vrot.slane %v4197_v5, 5 }
 0x1e3   : > { %v3561_v9 = vpack.c.b16 %v3533_v50, %v3532_v44 }
 0x1e4   : > { %v2275_v59 = vpop.f32.mrf.mxu2  ;;  %v4836_v13 = vrot.slane %v4834_v3, 4  ;;  %v4835_v30 = vsel %vm7003_vm14, %v5947_v23, %v4834_v3  ;;  %v6365_v23 = vld [vmem:[#allocation2 + $0x44] sm:$0x1] }
 0x1e5   : > { %v2327_v17 = vadd.f32 %v2275_v59, %v1896_v34  ;;  %v2586_v22 = vpop.f32.mrf.mxu3  ;;  %v4526_v34 = vunpack.c.l.b16 %v4192_v8  ;;  %v4209_v59 = vrot.slane %v4207_v38, 4  ;;  %v4950_v5 = vunpack.c.l.b16 %v4835_v30  ;;  %v7551_v30 = vld [vmem:[#allocation2 + $0x4c] sm:$0xf] }
 0x1e6   : > { %v2639_v39 = vadd.f32 %v2586_v22, %v2326_v60  ;;  %v4196_v60 = vrot.slane %v4194_v7, 4  ;;  %v3428_v7 = vrot.slane %v6364_v58, 5 }
 0x1e7   : > { %v3267_v4 = vpop.f32.mrf.mxu0  ;;  %v4555_v22 = vpack.c.b16 %v4526_v34, %v4525_v16  ;;  %v4210_v51 = vor.u32 %v4209_v59, %v4205_v36  ;;  %v6080_v59 = vld [vmem:[#allocation2 + $0x3c] sm:$0xff] }
 0x1e8   : > { %v7527_v54 = vadd.f32 %v3267_v4, %v2639_v39  ;;  %v4200_v44 = vor.u32 %v4199_v31, %v4196_v60  ;;  %v3338_v39 = vld [vmem:[#allocation2 + $0x3c] sm:$0xe]  ;;  %v3430_v8 = vrot.slane %v3428_v7, 4 }
 0x1e9   : > { %3970 = vmatmul.bf16.gmra.mxu2 %v6079_v63  ;;  %v4838_v63 = vsel %vm7003_vm14, %v4836_v13, %v4837_v40  ;;  %v5773_v3 = vrot.slane %v3338_v39, 9  ;;  %v4211_v16 = vrot.slane %v4210_v51, 4  ;;  %v4215_v13 = vrot.slane %v4213_v20, 5  ;;  %v4757_v51 = vld [vmem:[#allocation2 + $0x3c] sm:$0xe] }
 0x1ea   : > { %v7530_v45 = vpop.f32.mrf.mxu1  ;;  %5071 = vmatmul.bf16.gmra.mxu0 %v4979_v27  ;;  %v4951_v27 = vunpack.c.l.b16 %v4838_v63  ;;  %v4201_v38 = vrot.slane %v4200_v44, 4  ;;  %v4231_v39 = vshrl.u32 %v7551_v30, 16 }
 0x1eb   : > { %v3429_v60 = vsel %vm7003_vm14, %v5773_v3, %v3428_v7  ;;  %v4227_v7 = vshll.u32 %v7551_v30, 16 }
 0x1ec   : > { %v2278_v56 = vpop.f32.mrf.mxu2  ;;  %v4980_v63 = vpack.c.b16 %v4951_v27, %v4950_v5 }
 0x1ed   : > { %v2328_v32 = vadd.f32 %v2278_v56, %v1899_v57  ;;  %3661 = vmatmul.bf16.gmra.mxu1 %v3561_v9  ;;  %v2588_v28 = vpop.f32.mrf.mxu3  ;;  %v3431_v9 = vrot.slane %v6365_v23, 5  ;;  %v4085_v57 = vld [vmem:[#allocation2 + $0x48] sm:$0xf]  ;;  %v3534_v56 = vunpack.c.l.b16 %v3429_v60  ;;  %v4844_v23 = vrot.slane %v7534_v1, 5 }
 0x1ee   : > { %v2640_v50 = vadd.f32 %v2588_v28, %v2327_v17  ;;  %v1901_v17 = vadd.f32 %v7510_v26, %v7175_v0  ;;  %v4206_v0 = vsel %vm6627_vm11, %v4201_v38, %v4205_v36  ;;  %v4841_v26 = vrot.slane %v7518_v48, 5 }
 0x1ef   : > { %v3269_v33 = vpop.f32.mrf.mxu0  ;;  %v3432_v31 = vsel %vm7003_vm14, %v3430_v8, %v3431_v9  ;;  %v4218_v20 = vshrl.u32 %v4085_v57, 16  ;;  %v4527_v3 = vunpack.c.l.b16 %v4206_v0  ;;  %v5948_v38 = vrot.slane %v4757_v51, 9  ;;  %v6366_v0 = vld [vmem:[#allocation2 + $0x4c] sm:$0xf]  ;;  %v3339_v51 = vld [vmem:[#allocation2 + $0x48] sm:$0xe] }
 0x1f0   : > { %v7541_v15 = vadd.f32 %v3269_v33, %v2640_v50  ;;  %v3535_v28 = vunpack.c.l.b16 %v3432_v31  ;;  %v4221_v33 = vshll.u32 %v4085_v57, 16  ;;  %v4843_v48 = vrot.slane %v4841_v26, 4  ;;  %v7567_v31 = vld [vmem:[#allocation2 + $0x50] sm:$0x1] }
 0x1f1   : > { %v1904_v8 = vadd.f32 %v7530_v45, %v7193_v49  ;;  %v4220_v9 = vrot.slane %v4218_v20, 4 }
 0x1f2   : > { %v7543_v4 = vpop.f32.mrf.mxu1  ;;  %4651 = vmatmul.bf16.gmra.mxu3 %v4555_v22  ;;  %v4216_v22 = vsel %vm6627_vm11, %v4211_v16, %v4215_v13  ;;  %v3562_v5 = vpack.c.b16 %v3535_v28, %v3534_v56  ;;  %v4229_v13 = vrot.slane %v4227_v7, 5  ;;  %v4845_v49 = vsel %vm7003_vm14, %v4843_v48, %v4844_v23  ;;  %v6367_v7 = vld [vmem:[#allocation2 + $0x50] sm:$0x1] }
 0x1f3   : > { %v4528_v36 = vunpack.c.l.b16 %v4216_v22 }
 0x1f4   : > { %v2280_v40 = vpop.f32.mrf.mxu2 }
 0x1f5   : > { %v2329_v34 = vadd.f32 %v2280_v40, %v1901_v17  ;;  %v2591_v44 = vpop.f32.mrf.mxu3  ;;  %v4223_v17 = vrot.slane %v4221_v33, 5  ;;  %v4233_v40 = vrot.slane %v4231_v39, 4  ;;  %v4556_v28 = vpack.c.b16 %v4528_v36, %v4527_v3 }
 0x1f6   : > { %v2641_v50 = vadd.f32 %v2591_v44, %v2328_v32  ;;  %v4237_v44 = vshll.u32 %v7567_v31, 16  ;;  %v4953_v33 = vunpack.c.l.b16 %v4845_v49  ;;  %v3438_v39 = vrot.slane %v6367_v7, 5  ;;  %v4758_v49 = vld [vmem:[#allocation2 + $0x48] sm:$0xe] }
 0x1f7   : > { %v3272_v58 = vpop.f32.mrf.mxu0  ;;  %v4224_v45 = vor.u32 %v4223_v17, %v4220_v9  ;;  %v4088_v9 = vld [vmem:[#allocation2 + $0x54] sm:$0xf] }
 0x1f8   : > { %v7560_v27 = vadd.f32 %v3272_v58, %v2641_v50  ;;  %v3435_v50 = vrot.slane %v6366_v0, 5  ;;  %v4239_v48 = vrot.slane %v4237_v44, 5  ;;  %v4848_v0 = vrot.slane %v7551_v30, 5 }
 0x1f9   : > { %3975 = vmatmul.bf16.gmra.mxu2 %v6080_v59  ;;  %v4842_v59 = vsel %vm7003_vm14, %v5948_v38, %v4841_v26  ;;  %v5774_v26 = vrot.slane %v3339_v51, 9  ;;  %v4225_v3 = vrot.slane %v4224_v45, 4  ;;  %v4242_v45 = vshrl.u32 %v4088_v9, 16 }
 0x1fa   : > { %v7562_v32 = vpop.f32.mrf.mxu1  ;;  %5076 = vmatmul.bf16.gmra.mxu0 %v4980_v63  ;;  %v4234_v63 = vor.u32 %v4233_v40, %v4229_v13  ;;  %v4952_v22 = vunpack.c.l.b16 %v4842_v59  ;;  %v7584_v59 = vld [vmem:[#allocation2 + $0x58] sm:$0xf]  ;;  %v4850_v30 = vrot.slane %v4848_v0, 4 }
 0x1fb   : > { %v4255_v51 = vshrl.u32 %v7584_v59, 16 }
 0x1fc   : > { %v2283_v16 = vpop.f32.mrf.mxu2  ;;  %v4235_v38 = vrot.slane %v4234_v63, 4 }
 0x1fd   : > { %v2330_v60 = vadd.f32 %v2283_v16, %v1904_v8  ;;  %3666 = vmatmul.bf16.gmra.mxu1 %v3562_v5  ;;  %v2593_v57 = vpop.f32.mrf.mxu3  ;;  %v1906_v5 = vadd.f32 %v7543_v4, %v7208_v29  ;;  %v3436_v8 = vsel %vm7003_vm14, %v5774_v26, %v3435_v50  ;;  %v6081_v16 = vld [vmem:[#allocation2 + $0x48] sm:$0xff]  ;;  %v4230_v4 = vsel %vm6627_vm11, %v4225_v3, %v4229_v13 }
 0x1fe   : > { %v2642_v56 = vadd.f32 %v2593_v57, %v2329_v34  ;;  %v3437_v34 = vrot.slane %v3435_v50, 4  ;;  %v3536_v40 = vunpack.c.l.b16 %v3436_v8  ;;  %v4240_v44 = vsel %vm6627_vm11, %v4235_v38, %v4239_v48 }
 0x1ff   : > { %v3274_v1 = vpop.f32.mrf.mxu0  ;;  %v4251_v50 = vshll.u32 %v7584_v59, 16  ;;  %v5949_v26 = vrot.slane %v4758_v49, 9  ;;  %v4530_v7 = vunpack.c.l.b16 %v4240_v44  ;;  %v4851_v3 = vrot.slane %v7567_v31, 5  ;;  %v3340_v49 = vld [vmem:[#allocation2 + $0x54] sm:$0xe] }
 0x200   : > { %v7574_v20 = vadd.f32 %v3274_v1, %v2642_v56  ;;  %v3439_v23 = vsel %vm7003_vm14, %v3437_v34, %v3438_v39  ;;  %v4981_v56 = vpack.c.b16 %v4953_v33, %v4952_v22  ;;  %v4245_v1 = vshll.u32 %v4088_v9, 16  ;;  %v6369_v44 = vld [vmem:[#allocation2 + $0x5c] sm:$0x1] }
 0x201   : > { %v3537_v57 = vunpack.c.l.b16 %v3439_v23  ;;  %v1909_v34 = vadd.f32 %v7562_v32, %v7103_v35  ;;  %v4244_v39 = vrot.slane %v4242_v45, 4  ;;  %v4253_v38 = vrot.slane %v4251_v50, 5  ;;  %v7600_v23 = vld [vmem:[#allocation2 + $0x5c] sm:$0x1] }
 0x202   : > { %v7576_v58 = vpop.f32.mrf.mxu1  ;;  %4656 = vmatmul.bf16.gmra.mxu3 %v4556_v28  ;;  %v4257_v48 = vrot.slane %v4255_v51, 4  ;;  %v4261_v31 = vshll.u32 %v7600_v23, 16  ;;  %v3445_v50 = vrot.slane %v6369_v44, 5 }
 0x203   : > { %v3563_v22 = vpack.c.b16 %v3537_v57, %v3536_v40  ;;  %v4849_v57 = vsel %vm7003_vm14, %v5949_v26, %v4848_v0  ;;  %v4091_v26 = vld [vmem:[#allocation2 + $0x60] sm:$0xf] }
 0x204   : > { %v2285_v36 = vpop.f32.mrf.mxu2  ;;  %v4954_v0 = vunpack.c.l.b16 %v4849_v57  ;;  %v4266_v57 = vshrl.u32 %v4091_v26, 16 }
 0x205   : > { %v2331_v17 = vadd.f32 %v2285_v36, %v1906_v5  ;;  %v2596_v28 = vpop.f32.mrf.mxu3  ;;  %v4247_v5 = vrot.slane %v4245_v1, 5 }
 0x206   : > { %v2643_v29 = vadd.f32 %v2596_v28, %v2330_v60  ;;  %v4529_v60 = vunpack.c.l.b16 %v4230_v4  ;;  %v4258_v28 = vor.u32 %v4257_v48, %v4253_v38 }
 0x207   : > { %v3277_v63 = vpop.f32.mrf.mxu0  ;;  %v4248_v35 = vor.u32 %v4247_v5, %v4244_v39  ;;  %v4263_v39 = vrot.slane %v4261_v31, 5 }
 0x208   : > { %v7593_v33 = vadd.f32 %v3277_v63, %v2643_v29  ;;  %v4557_v40 = vpack.c.b16 %v4530_v7, %v4529_v60  ;;  %v6368_v29 = vld [vmem:[#allocation2 + $0x58] sm:$0xf]  ;;  %v4259_v7 = vrot.slane %v4258_v28, 4 }
 0x209   : > { %3980 = vmatmul.bf16.gmra.mxu2 %v6081_v16  ;;  %v3442_v4 = vrot.slane %v6368_v29, 5  ;;  %v4249_v60 = vrot.slane %v4248_v35, 4  ;;  %v4759_v29 = vld [vmem:[#allocation2 + $0x54] sm:$0xe] }
 0x20a   : > { %v7595_v13 = vpop.f32.mrf.mxu1  ;;  %5081 = vmatmul.bf16.gmra.mxu0 %v4981_v56  ;;  %v4852_v56 = vsel %vm7003_vm14, %v4850_v30, %v4851_v3  ;;  %v4264_v31 = vsel %vm6627_vm11, %v4259_v7, %v4263_v39 }
 0x20b   : > { %v3444_v63 = vrot.slane %v3442_v4, 4  ;;  %v4955_v51 = vunpack.c.l.b16 %v4852_v56  ;;  %v4254_v28 = vsel %vm6627_vm11, %v4249_v60, %v4253_v38  ;;  %v1914_v38 = vadd.f32 %v7595_v13, %v7141_v19 }
 0x20c   : > { %v2288_v36 = vpop.f32.mrf.mxu2  ;;  %v4858_v60 = vrot.slane %v7600_v23, 5 }
 0x20d   : > { %v2332_v8 = vadd.f32 %v2288_v36, %v1909_v34  ;;  %3671 = vmatmul.bf16.gmra.mxu1 %v3563_v22  ;;  %v2598_v9 = vpop.f32.mrf.mxu3  ;;  %v1911_v22 = vadd.f32 %v7576_v58, %v7119_v24  ;;  %v3446_v30 = vsel %vm7003_vm14, %v3444_v63, %v3445_v50  ;;  %v6082_v36 = vld [vmem:[#allocation2 + $0x54] sm:$0xff]  ;;  %v4269_v24 = vshll.u32 %v4091_v26, 16 }
 0x20e   : > { %v2644_v16 = vadd.f32 %v2598_v9, %v2331_v17  ;;  %v5775_v17 = vrot.slane %v3340_v49, 9  ;;  %v3539_v9 = vunpack.c.l.b16 %v3446_v30  ;;  %v4982_v58 = vpack.c.b16 %v4955_v51, %v4954_v0 }
 0x20f   : > { %v3279_v32 = vpop.f32.mrf.mxu0  ;;  %v4531_v50 = vunpack.c.l.b16 %v4254_v28  ;;  %v4532_v0 = vunpack.c.l.b16 %v4264_v31  ;;  %v5950_v51 = vrot.slane %v4759_v29, 9 }
 0x210   : > { %v7607_v45 = vadd.f32 %v3279_v32, %v2644_v16  ;;  %v3443_v5 = vsel %vm7003_vm14, %v5775_v17, %v3442_v4  ;;  %v7617_v16 = vld [vmem:[#allocation2 + $0x64] sm:$0xf]  ;;  %v4855_v32 = vrot.slane %v7584_v59, 5  ;;  %v4271_v59 = vrot.slane %v4269_v24, 5 }
 0x211   : > { %v3538_v48 = vunpack.c.l.b16 %v3443_v5  ;;  %v4275_v4 = vshll.u32 %v7617_v16, 16  ;;  %v4279_v49 = vshrl.u32 %v7617_v16, 16  ;;  %v7633_v5 = vld [vmem:[#allocation2 + $0x68] sm:$0x1]  ;;  %v6370_v24 = vld [vmem:[#allocation2 + $0x64] sm:$0xf] }
 0x212   : > { %v7609_v1 = vpop.f32.mrf.mxu1  ;;  %4661 = vmatmul.bf16.gmra.mxu3 %v4557_v40  ;;  %v4856_v19 = vsel %vm7003_vm14, %v5950_v51, %v4855_v32  ;;  %v4285_v23 = vshll.u32 %v7633_v5, 16 }
 0x213   : > { %v3564_v17 = vpack.c.b16 %v3539_v9, %v3538_v48  ;;  %v4281_v7 = vrot.slane %v4279_v49, 4  ;;  %v4558_v9 = vpack.c.b16 %v4532_v0, %v4531_v50 }
 0x214   : > { %v2290_v34 = vpop.f32.mrf.mxu2  ;;  %v4287_v0 = vrot.slane %v4285_v23, 5 }
 0x215   : > { %v2333_v3 = vadd.f32 %v2290_v34, %v1911_v22  ;;  %v2601_v40 = vpop.f32.mrf.mxu3  ;;  %v4857_v22 = vrot.slane %v4855_v32, 4  ;;  %v4277_v34 = vrot.slane %v4275_v4, 5  ;;  %v6371_v4 = vld [vmem:[#allocation2 + $0x68] sm:$0x1]  ;;  %v4956_v32 = vunpack.c.l.b16 %v4856_v19 }
 0x216   : > { %v2645_v35 = vadd.f32 %v2601_v40, %v2332_v8  ;;  %v4268_v8 = vrot.slane %v4266_v57, 4  ;;  %v3452_v49 = vrot.slane %v6371_v4, 5 }
 0x217   : > { %v3282_v56 = vpop.f32.mrf.mxu0  ;;  %v4859_v40 = vsel %vm7003_vm14, %v4857_v22, %v4858_v60  ;;  %v4282_v57 = vor.u32 %v4281_v7, %v4277_v34  ;;  %v7650_v60 = vld [vmem:[#allocation2 + $0x70] sm:$0xf]  ;;  %v6083_v7 = vld [vmem:[#allocation2 + $0x60] sm:$0xff] }
 0x218   : > { %v7626_v63 = vadd.f32 %v3282_v56, %v2645_v35  ;;  %v3341_v35 = vld [vmem:[#allocation2 + $0x60] sm:$0xe]  ;;  %v4299_v23 = vshll.u32 %v7650_v60, 16 }
 0x219   : > { %3985 = vmatmul.bf16.gmra.mxu2 %v6082_v36  ;;  %v4272_v36 = vor.u32 %v4271_v59, %v4268_v8  ;;  %v1916_v8 = vadd.f32 %v7609_v1, %v7156_v11  ;;  %v4094_v59 = vld [vmem:[#allocation2 + $0x6c] sm:$0xf]  ;;  %v4283_v50 = vrot.slane %v4282_v57, 4  ;;  %v4760_v1 = vld [vmem:[#allocation2 + $0x60] sm:$0xe] }
 0x21a   : > { %v7628_v44 = vpop.f32.mrf.mxu1  ;;  %5086 = vmatmul.bf16.gmra.mxu0 %v4982_v58  ;;  %v3449_v58 = vrot.slane %v6370_v24, 5  ;;  %v4290_v19 = vshrl.u32 %v4094_v59, 16  ;;  %v4303_v24 = vshrl.u32 %v7650_v60, 16 }
 0x21b   : > { %v4273_v28 = vrot.slane %v4272_v36, 4 }
 0x21c   : > { %v2293_v26 = vpop.f32.mrf.mxu2  ;;  %v3451_v29 = vrot.slane %v3449_v58, 4 }
 0x21d   : > { %v2334_v39 = vadd.f32 %v2293_v26, %v1914_v38  ;;  %3676 = vmatmul.bf16.gmra.mxu1 %v3564_v17  ;;  %v2603_v30 = vpop.f32.mrf.mxu3  ;;  %v4957_v17 = vunpack.c.l.b16 %v4859_v40  ;;  %v4278_v11 = vsel %vm6627_vm11, %v4273_v28, %v4277_v34 }
 0x21e   : > { %v2646_v48 = vadd.f32 %v2603_v30, %v2333_v3  ;;  %v5776_v3 = vrot.slane %v3341_v35, 9  ;;  %v3453_v22 = vsel %vm7003_vm14, %v3451_v29, %v3452_v49  ;;  %v4288_v35 = vsel %vm6627_vm11, %v4283_v50, %v4287_v0  ;;  %v7666_v0 = vld [vmem:[#allocation2 + $0x74] sm:$0x1] }
 0x21f   : > { %v3284_v13 = vpop.f32.mrf.mxu0  ;;  %v3541_v36 = vunpack.c.l.b16 %v3453_v22  ;;  %v4983_v40 = vpack.c.b16 %v4957_v17, %v4956_v32  ;;  %v5951_v29 = vrot.slane %v4760_v1, 9  ;;  %v1919_v17 = vadd.f32 %v7628_v44, %v7173_v37  ;;  %v6372_v1 = vld [vmem:[#allocation2 + $0x70] sm:$0xf] }
 0x220   : > { %v7640_v56 = vadd.f32 %v3284_v13, %v2646_v48  ;;  %v3450_v51 = vsel %vm7003_vm14, %v5776_v3, %v3449_v58  ;;  %v4293_v13 = vshll.u32 %v4094_v59, 16  ;;  %v4533_v3 = vunpack.c.l.b16 %v4278_v11 }
 0x221   : > { %v3540_v30 = vunpack.c.l.b16 %v3450_v51  ;;  %v4301_v59 = vrot.slane %v4299_v23, 5  ;;  %v4309_v37 = vshll.u32 %v7666_v0, 16 }
 0x222   : > { %v7642_v31 = vpop.f32.mrf.mxu1  ;;  %4666 = vmatmul.bf16.gmra.mxu3 %v4558_v9  ;;  %v4862_v9 = vrot.slane %v7617_v16, 5  ;;  %v4865_v16 = vrot.slane %v7633_v5, 5  ;;  %v4295_v32 = vrot.slane %v4293_v13, 5 }
 0x223   : > { %v3565_v4 = vpack.c.b16 %v3541_v36, %v3540_v30 }
 0x224   : > { %v2295_v38 = vpop.f32.mrf.mxu2  ;;  %v4864_v28 = vrot.slane %v4862_v9, 4  ;;  %v4863_v5 = vsel %vm7003_vm14, %v5951_v29, %v4862_v9  ;;  %v6373_v29 = vld [vmem:[#allocation2 + $0x74] sm:$0x1] }
 0x225   : > { %v2335_v26 = vadd.f32 %v2295_v38, %v1916_v8  ;;  %v2606_v48 = vpop.f32.mrf.mxu3  ;;  %v4534_v8 = vunpack.c.l.b16 %v4288_v35  ;;  %v4305_v38 = vrot.slane %v4303_v24, 4  ;;  %v4958_v13 = vunpack.c.l.b16 %v4863_v5  ;;  %v7683_v5 = vld [vmem:[#allocation2 + $0x7c] sm:$0xf] }
 0x226   : > { %v2647_v57 = vadd.f32 %v2606_v48, %v2334_v39  ;;  %v4292_v39 = vrot.slane %v4290_v19, 4  ;;  %v3456_v19 = vrot.slane %v6372_v1, 5 }
 0x227   : > { %v3287_v58 = vpop.f32.mrf.mxu0  ;;  %v4559_v48 = vpack.c.b16 %v4534_v8, %v4533_v3  ;;  %v4306_v11 = vor.u32 %v4305_v38, %v4301_v59  ;;  %v6084_v38 = vld [vmem:[#allocation2 + $0x6c] sm:$0xff] }
 0x228   : > { %v7659_v34 = vadd.f32 %v3287_v58, %v2647_v57  ;;  %v4296_v30 = vor.u32 %v4295_v32, %v4292_v39  ;;  %v3342_v57 = vld [vmem:[#allocation2 + $0x6c] sm:$0xe]  ;;  %v3458_v35 = vrot.slane %v3456_v19, 4 }
 0x229   : > { %3990 = vmatmul.bf16.gmra.mxu2 %v6083_v7  ;;  %v4866_v7 = vsel %vm7003_vm14, %v4864_v28, %v4865_v16  ;;  %v5777_v9 = vrot.slane %v3342_v57, 9  ;;  %v4307_v3 = vrot.slane %v4306_v11, 4  ;;  %v4311_v28 = vrot.slane %v4309_v37, 5  ;;  %v4761_v11 = vld [vmem:[#allocation2 + $0x6c] sm:$0xe] }
 0x22a   : > { %v7662_v49 = vpop.f32.mrf.mxu1  ;;  %5091 = vmatmul.bf16.gmra.mxu0 %v4983_v40  ;;  %v4959_v40 = vunpack.c.l.b16 %v4866_v7  ;;  %v4297_v24 = vrot.slane %v4296_v30, 4  ;;  %v4327_v57 = vshrl.u32 %v7683_v5, 16 }
 0x22b   : > { %v3457_v39 = vsel %vm7003_vm14, %v5777_v9, %v3456_v19  ;;  %v4323_v19 = vshll.u32 %v7683_v5, 16 }
 0x22c   : > { %v2298_v50 = vpop.f32.mrf.mxu2  ;;  %v4984_v7 = vpack.c.b16 %v4959_v40, %v4958_v13 }
 0x22d   : > { %v2336_v51 = vadd.f32 %v2298_v50, %v1919_v17  ;;  %3681 = vmatmul.bf16.gmra.mxu1 %v3565_v4  ;;  %v2608_v22 = vpop.f32.mrf.mxu3  ;;  %v3459_v4 = vrot.slane %v6373_v29, 5  ;;  %v4097_v17 = vld [vmem:[#allocation2 + $0x78] sm:$0xf]  ;;  %v3542_v50 = vunpack.c.l.b16 %v3457_v39  ;;  %v4329_v39 = vrot.slane %v4327_v57, 4 }
 0x22e   : > { %v2648_v36 = vadd.f32 %v2608_v22, %v2335_v26  ;;  %v1921_v26 = vadd.f32 %v7642_v31, %v7191_v46  ;;  %v4302_v46 = vsel %vm6627_vm11, %v4297_v24, %v4301_v59  ;;  %v4869_v31 = vrot.slane %v7650_v60, 5 }
 0x22f   : > { %v3289_v44 = vpop.f32.mrf.mxu0  ;;  %v3460_v32 = vsel %vm7003_vm14, %v3458_v35, %v3459_v4  ;;  %v4314_v37 = vshrl.u32 %v4097_v17, 16  ;;  %v4535_v9 = vunpack.c.l.b16 %v4302_v46  ;;  %v5952_v24 = vrot.slane %v4761_v11, 9  ;;  %v8010_v35 = vld [vmem:[#allocation3_spill] sm:$0xff] }
 0x230   : > { %v7673_v23 = vadd.f32 %v3289_v44, %v2648_v36  ;;  %v3543_v22 = vunpack.c.l.b16 %v3460_v32  ;;  %v4317_v44 = vshll.u32 %v4097_v17, 16  ;;  %v4871_v60 = vrot.slane %v4869_v31, 4  ;;  %v7699_v17 = vld [vmem:[#allocation2 + $0x80] sm:$0x1] }
 0x231   : > { %v1924_v29 = vadd.f32 %v7662_v49, %v8010_v35  ;;  %v4872_v4 = vrot.slane %v7666_v0, 5 }
 0x232   : > { %v7675_v58 = vpop.f32.mrf.mxu1  ;;  %4671 = vmatmul.bf16.gmra.mxu3 %v4559_v48  ;;  %v4312_v48 = vsel %vm6627_vm11, %v4307_v3, %v4311_v28  ;;  %v3566_v13 = vpack.c.b16 %v3543_v22, %v3542_v50  ;;  %v4319_v3 = vrot.slane %v4317_v44, 5  ;;  %v4870_v50 = vsel %vm7003_vm14, %v5952_v24, %v4869_v31  ;;  %v3343_v44 = vld [vmem:[#allocation2 + $0x78] sm:$0xe] }
 0x233   : > { %v4536_v59 = vunpack.c.l.b16 %v4312_v48  ;;  %v4873_v49 = vsel %vm7003_vm14, %v4871_v60, %v4872_v4  ;;  %v6374_v48 = vld [vmem:[#allocation2 + $0x7c] sm:$0xf]  ;;  %v5778_v31 = vrot.slane %v3343_v44, 9 }
 0x234   : > { %v2300_v16 = vpop.f32.mrf.mxu2  ;;  %v3463_v11 = vrot.slane %v6374_v48, 5 }
 0x235   : > { %v2337_v8 = vadd.f32 %v2300_v16, %v1921_v26  ;;  %v2611_v30 = vpop.f32.mrf.mxu3  ;;  %v4316_v26 = vrot.slane %v4314_v37, 4  ;;  %v4325_v16 = vrot.slane %v4323_v19, 5  ;;  %v4960_v37 = vunpack.c.l.b16 %v4870_v50 }
 0x236   : > { %v2649_v36 = vadd.f32 %v2611_v30, %v2336_v51  ;;  %v4961_v19 = vunpack.c.l.b16 %v4873_v49  ;;  %v7716_v49 = vld [vmem:[#allocation2 + $0x88] sm:$0xf] }
 0x237   : > { %v3292_v1 = vpop.f32.mrf.mxu0  ;;  %v4320_v30 = vor.u32 %v4319_v3, %v4316_v26  ;;  %v4330_v46 = vor.u32 %v4329_v39, %v4325_v16  ;;  %v3464_v26 = vsel %vm7003_vm14, %v5778_v31, %v3463_v11 }
 0x238   : > { %v7692_v40 = vadd.f32 %v3292_v1, %v2649_v36  ;;  %v4333_v36 = vshll.u32 %v7699_v17, 16  ;;  %v3544_v50 = vunpack.c.l.b16 %v3464_v26 }
 0x239   : > { %3995 = vmatmul.bf16.gmra.mxu2 %v6084_v38  ;;  %v4321_v60 = vrot.slane %v4320_v30, 4  ;;  %v4762_v30 = vld [vmem:[#allocation2 + $0x78] sm:$0xe] }
 0x23a   : > { %v7694_v51 = vpop.f32.mrf.mxu1  ;;  %5096 = vmatmul.bf16.gmra.mxu0 %v4984_v7  ;;  %v4560_v7 = vpack.c.b16 %v4536_v59, %v4535_v9  ;;  %v8011_v59 = vld [vmem:[#allocation4_spill] sm:$0xff]  ;;  %v4335_v4 = vrot.slane %v4333_v36, 5 }
 0x23b   : > { %v1926_v24 = vadd.f32 %v7675_v58, %v8011_v59 }
 0x23c   : > { %v2303_v28 = vpop.f32.mrf.mxu2 }
 0x23d   : > { %v2338_v32 = vadd.f32 %v2303_v28, %v1924_v29  ;;  %3686 = vmatmul.bf16.gmra.mxu1 %v3566_v13  ;;  %v2613_v38 = vpop.f32.mrf.mxu3  ;;  %v6375_v13 = vld [vmem:[#allocation2 + $0x80] sm:$0x1]  ;;  %v4331_v29 = vrot.slane %v4330_v46, 4  ;;  %v4100_v28 = vld [vmem:[#allocation2 + $0x84] sm:$0xf]  ;;  %v4876_v46 = vrot.slane %v7683_v5, 5 }
 0x23e   : > { %v2650_v22 = vadd.f32 %v2613_v38, %v2337_v8  ;;  %v3465_v8 = vrot.slane %v3463_v11, 4  ;;  %v3466_v9 = vrot.slane %v6375_v13, 5  ;;  %v6085_v38 = vld [vmem:[#allocation2 + $0x78] sm:$0xff]  ;;  %v4338_v36 = vshrl.u32 %v4100_v28, 16 }
 0x23f   : > { %v3294_v0 = vpop.f32.mrf.mxu0  ;;  %v4341_v48 = vshll.u32 %v4100_v28, 16  ;;  %v4326_v11 = vsel %vm6627_vm11, %v4321_v60, %v4325_v16  ;;  %v4336_v31 = vsel %vm6627_vm11, %v4331_v29, %v4335_v4  ;;  %v4351_v13 = vshrl.u32 %v7716_v49, 16 }
 0x240   : > { %v7706_v1 = vadd.f32 %v3294_v0, %v2650_v22  ;;  %v3467_v3 = vsel %vm7003_vm14, %v3465_v8, %v3466_v9  ;;  %v4347_v8 = vshll.u32 %v7716_v49, 16  ;;  %v4537_v5 = vunpack.c.l.b16 %v4326_v11 }
 0x241   : > { %v3545_v22 = vunpack.c.l.b16 %v3467_v3  ;;  %v4538_v59 = vunpack.c.l.b16 %v4336_v31  ;;  %v4878_v16 = vrot.slane %v4876_v46, 4  ;;  %v4879_v60 = vrot.slane %v7699_v17, 5  ;;  %v7730_v3 = vld [vmem:[#allocation2 + $0x8c] sm:$0x1] }
 0x242   : > { %v7708_v57 = vpop.f32.mrf.mxu1  ;;  %4676 = vmatmul.bf16.gmra.mxu3 %v4560_v7  ;;  %v4985_v7 = vpack.c.b16 %v4961_v19, %v4960_v37  ;;  %v4349_v4 = vrot.slane %v4347_v8, 5  ;;  %v4353_v26 = vrot.slane %v4351_v13, 4  ;;  %v4357_v17 = vshll.u32 %v7730_v3, 16  ;;  %v6377_v13 = vld [vmem:[#allocation2 + $0x8c] sm:$0x1] }
 0x243   : > { %v3567_v37 = vpack.c.b16 %v3545_v22, %v3544_v50  ;;  %v4561_v50 = vpack.c.b16 %v4538_v59, %v4537_v5 }
 0x244   : > { %v2305_v35 = vpop.f32.mrf.mxu2 }
 0x245   : > { %v2339_v39 = vadd.f32 %v2305_v35, %v1926_v24  ;;  %v2616_v0 = vpop.f32.mrf.mxu3  ;;  %v4340_v24 = vrot.slane %v4338_v36, 4  ;;  %v4343_v35 = vrot.slane %v4341_v48, 5  ;;  %v6376_v36 = vld [vmem:[#allocation2 + $0x88] sm:$0xf] }
 0x246   : > { %v2651_v58 = vadd.f32 %v2616_v0, %v2338_v32  ;;  %v5953_v32 = vrot.slane %v4762_v30, 9  ;;  %v4354_v30 = vor.u32 %v4353_v26, %v4349_v4  ;;  %v3470_v48 = vrot.slane %v6376_v36, 5 }
 0x247   : > { %v3297_v44 = vpop.f32.mrf.mxu0 }
 0x248   : > { %v7725_v19 = vadd.f32 %v3297_v44, %v2651_v58  ;;  %v4877_v22 = vsel %vm7003_vm14, %v5953_v32, %v4876_v46  ;;  %v4880_v58 = vsel %vm7003_vm14, %v4878_v16, %v4879_v60  ;;  %v3344_v44 = vld [vmem:[#allocation2 + $0x84] sm:$0xe]  ;;  %v3472_v8 = vrot.slane %v3470_v48, 4  ;;  %v4103_v46 = vld [vmem:[#allocation2 + $0x90] sm:$0xf] }
 0x249   : > { %4000 = vmatmul.bf16.gmra.mxu2 %v6085_v38  ;;  %v3727_v32 = vadd.f32 %v7694_v51, %v7238_v41  ;;  %v4962_v5 = vunpack.c.l.b16 %v4877_v22  ;;  %v4963_v59 = vunpack.c.l.b16 %v4880_v58  ;;  %v4355_v16 = vrot.slane %v4354_v30, 4  ;;  %v4763_v22 = vld [vmem:[#allocation2 + $0x84] sm:$0xe] }
 0x24a   : > { %8012 = vst [vmem:[#allocation3_spill] sm:$0xff] %v7725_v19  ;;  %v7727_v9 = vpop.f32.mrf.mxu1  ;;  %5101 = vmatmul.bf16.gmra.mxu0 %v4985_v7  ;;  %v4344_v7 = vor.u32 %v4343_v35, %v4340_v24  ;;  %v4359_v60 = vrot.slane %v4357_v17, 5  ;;  %v4365_v41 = vshll.u32 %v4103_v46, 16  ;;  %v3728_v30 = vadd.f32 %v7708_v57, %v7262_v14 }
 0x24b   : > { %v4986_v58 = vpack.c.b16 %v4963_v59, %v4962_v5  ;;  %v4886_v14 = vrot.slane %v7730_v3, 5 }
 0x24c   : > { %v3961_v29 = vpop.f32.mrf.mxu2  ;;  %v4345_v24 = vrot.slane %v4344_v7, 4  ;;  %v4883_v7 = vrot.slane %v7716_v49, 5  ;;  %v4367_v49 = vrot.slane %v4365_v41, 5 }
 0x24d   : > { %3691 = vmatmul.bf16.gmra.mxu1 %v3567_v37  ;;  %v2618_v28 = vpop.f32.mrf.mxu3  ;;  %v3473_v37 = vrot.slane %v6377_v13, 5  ;;  %v4362_v13 = vshrl.u32 %v4103_v46, 16  ;;  %v4041_v51 = vadd.f32 %v3961_v29, %v3727_v32  ;;  %v5954_v29 = vrot.slane %v4763_v22, 9 }
 0x24e   : > { %v2652_v38 = vadd.f32 %v2618_v28, %v2339_v39  ;;  %v5779_v39 = vrot.slane %v3344_v44, 9  ;;  %v7747_v44 = vld [vmem:[#allocation2 + $0x94] sm:$0xf]  ;;  %v4885_v59 = vrot.slane %v4883_v7, 4 }
 0x24f   : > { %v3299_v0 = vpop.f32.mrf.mxu0  ;;  %v3474_v28 = vsel %vm7003_vm14, %v3472_v8, %v3473_v37  ;;  %v4371_v8 = vshll.u32 %v7747_v44, 16  ;;  %v4375_v37 = vshrl.u32 %v7747_v44, 16  ;;  %v4364_v32 = vrot.slane %v4362_v13, 4 }
 0x250   : > { %v7737_v11 = vadd.f32 %v3299_v0, %v2652_v38  ;;  %v3471_v26 = vsel %vm7003_vm14, %v5779_v39, %v3470_v48  ;;  %v6086_v38 = vld [vmem:[#allocation2 + $0x84] sm:$0xff]  ;;  %v3547_v36 = vunpack.c.l.b16 %v3474_v28  ;;  %v4350_v48 = vsel %vm6627_vm11, %v4345_v24, %v4349_v4 }
 0x251   : > { %v3546_v0 = vunpack.c.l.b16 %v3471_v26  ;;  %v4360_v39 = vsel %vm6627_vm11, %v4355_v16, %v4359_v60  ;;  %v4539_v24 = vunpack.c.l.b16 %v4350_v48  ;;  %v4373_v60 = vrot.slane %v4371_v8, 5  ;;  %v6378_v48 = vld [vmem:[#allocation2 + $0x94] sm:$0xf] }
 0x252   : > { %8013 = vst [vmem:[#allocation4_spill] sm:$0xff] %v7737_v11  ;;  %v7739_v31 = vpop.f32.mrf.mxu1  ;;  %4681 = vmatmul.bf16.gmra.mxu3 %v4561_v50  ;;  %v4540_v26 = vunpack.c.l.b16 %v4360_v39  ;;  %v4377_v28 = vrot.slane %v4375_v37, 4  ;;  %v4887_v3 = vsel %vm7003_vm14, %v4885_v59, %v4886_v14  ;;  %v3477_v39 = vrot.slane %v6378_v48, 5  ;;  %v6379_v59 = vld [vmem:[#allocation2 + $0x98] sm:$0x1] }
 0x253   : > { %v3568_v46 = vpack.c.b16 %v3547_v36, %v3546_v0  ;;  %v7763_v0 = vld [vmem:[#allocation2 + $0x98] sm:$0x1]  ;;  %v4368_v36 = vor.u32 %v4367_v49, %v4364_v32  ;;  %v3729_v8 = vadd.f32 %v7727_v9, %v7267_v61  ;;  %v4965_v37 = vunpack.c.l.b16 %v4887_v3 }
 0x254   : > { %v3963_v35 = vpop.f32.mrf.mxu2  ;;  %v3480_v14 = vrot.slane %v6379_v59, 5  ;;  %v7784_v59 = vld [vmem:[#allocation2 + $0xa0] sm:$0xf] }
 0x255   : > { %v4642_v50 = vpop.f32.mrf.mxu3  ;;  %v4042_v4 = vadd.f32 %v3963_v35, %v3728_v30  ;;  %v4562_v35 = vpack.c.b16 %v4540_v26, %v4539_v24  ;;  %v4381_v30 = vshll.u32 %v7763_v0, 16  ;;  %v4106_v26 = vld [vmem:[#allocation2 + $0x9c] sm:$0xf] }
 0x256   : > { %v4722_v5 = vadd.f32 %v4642_v50, %v4041_v51 }
 0x257   : > { %v5067_v17 = vpop.f32.mrf.mxu0 }
 0x258   : > { %v5147_v13 = vadd.f32 %v5067_v17, %v4722_v5  ;;  %v4369_v17 = vrot.slane %v4368_v36, 4  ;;  %v3479_v5 = vrot.slane %v3477_v39, 4  ;;  %v4383_v36 = vrot.slane %v4381_v30, 5 }
 0x259   : > { %4005 = vmatmul.bf16.gmra.mxu2 %v6086_v38  ;;  %v4884_v38 = vsel %vm7003_vm14, %v5954_v29, %v4883_v7  ;;  %v3345_v29 = vld [vmem:[#allocation2 + $0x90] sm:$0xe]  ;;  %v4386_v30 = vshrl.u32 %v4106_v26, 16 }
 0x25a   : > { %v7759_v57 = vpop.f32.mrf.mxu1  ;;  %5106 = vmatmul.bf16.gmra.mxu0 %v4986_v58  ;;  %v4964_v22 = vunpack.c.l.b16 %v4884_v38  ;;  %v4378_v58 = vor.u32 %v4377_v28, %v4373_v60  ;;  %v5780_v49 = vrot.slane %v3345_v29, 9  ;;  %v3481_v3 = vsel %vm7003_vm14, %v3479_v5, %v3480_v14  ;;  %v8014_v5 = vld [vmem:[#allocation5_spill] sm:$0xff] }
 0x25b   : > { %v3549_v29 = vunpack.c.l.b16 %v3481_v3 }
 0x25c   : > { %v3966_v16 = vpop.f32.mrf.mxu2  ;;  %v4379_v38 = vrot.slane %v4378_v58, 4  ;;  %v4890_v58 = vrot.slane %v7747_v44, 5 }
 0x25d   : > { %3696 = vmatmul.bf16.gmra.mxu1 %v3568_v46  ;;  %v4644_v41 = vpop.f32.mrf.mxu3  ;;  %v5281_v46 = vmul.f32 %v5147_v13, %v5147_v13  ;;  %v4043_v9 = vadd.f32 %v3966_v16, %v3729_v8  ;;  %v4374_v16 = vsel %vm6627_vm11, %v4369_v17, %v4373_v60 }
 0x25e   : > { %v4723_v51 = vadd.f32 %v4644_v41, %v4042_v4  ;;  %v3478_v41 = vsel %vm7003_vm14, %v5780_v49, %v3477_v39  ;;  %v4987_v39 = vpack.c.b16 %v4965_v37, %v4964_v22  ;;  %v4384_v14 = vsel %vm6627_vm11, %v4379_v38, %v4383_v36 }
 0x25f   : > { %v5069_v50 = vpop.f32.mrf.mxu0  ;;  %v3548_v48 = vunpack.c.l.b16 %v3478_v41  ;;  %v4541_v60 = vunpack.c.l.b16 %v4374_v16  ;;  %v4892_v3 = vrot.slane %v4890_v58, 4  ;;  %v4893_v22 = vrot.slane %v7763_v0, 5 }
 0x260   : > { %v5148_v7 = vadd.f32 %v5069_v50, %v4723_v51  ;;  %v6087_v50 = vld [vmem:[#allocation2 + $0x90] sm:$0xff]  ;;  %v4542_v36 = vunpack.c.l.b16 %v4384_v14 }
 0x261   : > { %v3569_v44 = vpack.c.b16 %v3549_v29, %v3548_v48  ;;  %v4894_v29 = vsel %vm7003_vm14, %v4892_v3, %v4893_v22 }
 0x262   : > { %v7777_v32 = vpop.f32.mrf.mxu1  ;;  %v6184_v4 = vpack.c.bf16 %v5148_v7, %v5147_v13  ;;  %v5243_v24 = vadd.f32 %v5148_v7, %v5147_v13  ;;  %v5282_v61 = vmul.f32 %v5148_v7, %v5148_v7  ;;  %4686 = vmatmul.bf16.gmra.mxu3 %v4562_v35  ;;  %v4764_v35 = vld [vmem:[#allocation2 + $0x90] sm:$0xe]  ;;  %v4389_v7 = vshll.u32 %v4106_v26, 16 }
 0x263   : > { %v5955_v17 = vrot.slane %v4764_v35, 9 }
 0x264   : > { %v3968_v28 = vpop.f32.mrf.mxu2  ;;  %6185 = vst [vmem:[%s7775_s20] sm:$0xff] %v6184_v4   ;;  %v5313_v51 = vadd.f32 %v5282_v61, %v5281_v46  ;;  %v3730_v46 = vadd.f32 %v7739_v31, %v8014_v5  ;;  %v4395_v4 = vshll.u32 %v7784_v59, 16  ;;  %v4399_v61 = vshrl.u32 %v7784_v59, 16 }
 0x265   : > { %v4647_v13 = vpop.f32.mrf.mxu3  ;;  %v4391_v26 = vrot.slane %v4389_v7, 5  ;;  %v4891_v0 = vsel %vm7003_vm14, %v5955_v17, %v4890_v58 }
 0x266   : > { %v4724_v8 = vadd.f32 %v4647_v13, %v4043_v9  ;;  %v4388_v9 = vrot.slane %v4386_v30, 4  ;;  %v4044_v38 = vadd.f32 %v3968_v28, %v3730_v46  ;;  %v4397_v11 = vrot.slane %v4395_v4, 5  ;;  %v8015_v46 = vld [vmem:[#allocation6_spill] sm:$0xff] }
 0x267   : > { %v5072_v49 = vpop.f32.mrf.mxu0  ;;  %v4401_v19 = vrot.slane %v4399_v61, 4  ;;  %v3731_v14 = vadd.f32 %v7759_v57, %v8015_v46  ;;  %v4966_v4 = vunpack.c.l.b16 %v4891_v0  ;;  %v4967_v61 = vunpack.c.l.b16 %v4894_v29 }
 0x268   : > { %v5149_v41 = vadd.f32 %v5072_v49, %v4724_v8  ;;  %v4392_v16 = vor.u32 %v4391_v26, %v4388_v9 }
 0x269   : > { %4010 = vmatmul.bf16.gmra.mxu2 %v6087_v50  ;;  %v7798_v50 = vld [vmem:[#allocation2 + $0xa4] sm:$0x1]  ;;  %v4402_v28 = vor.u32 %v4401_v19, %v4397_v11 }
 0x26a   : > { %v7796_v37 = vpop.f32.mrf.mxu1  ;;  %5111 = vmatmul.bf16.gmra.mxu0 %v4987_v39  ;;  %v5244_v31 = vadd.f32 %v5243_v24, %v5149_v41  ;;  %v5283_v13 = vmul.f32 %v5149_v41, %v5149_v41  ;;  %v4563_v24 = vpack.c.b16 %v4542_v36, %v4541_v60  ;;  %v4405_v7 = vshll.u32 %v7798_v50, 16  ;;  %v6380_v39 = vld [vmem:[#allocation2 + $0xa0] sm:$0xf]  ;;  %v6381_v60 = vld [vmem:[#allocation2 + $0xa4] sm:$0x1] }
 0x26b   : > { %v3484_v49 = vrot.slane %v6380_v39, 5  ;;  %v4393_v58 = vrot.slane %v4392_v16, 4  ;;  %v3487_v9 = vrot.slane %v6381_v60, 5  ;;  %v4109_v36 = vld [vmem:[#allocation2 + $0xa8] sm:$0xf] }
 0x26c   : > { %v3971_v5 = vpop.f32.mrf.mxu2  ;;  %v5314_v8 = vadd.f32 %v5313_v51, %v5283_v13  ;;  %v4407_v57 = vrot.slane %v4405_v7, 5  ;;  %v4410_v7 = vshrl.u32 %v4109_v36, 16 }
 0x26d   : > { %3701 = vmatmul.bf16.gmra.mxu1 %v3569_v44  ;;  %v4649_v48 = vpop.f32.mrf.mxu3  ;;  %v3346_v44 = vld [vmem:[#allocation2 + $0x9c] sm:$0xe]  ;;  %v3486_v22 = vrot.slane %v3484_v49, 4 }
 0x26e   : > { %v4725_v35 = vadd.f32 %v4649_v48, %v4044_v38  ;;  %v5781_v3 = vrot.slane %v3346_v44, 9  ;;  %v4045_v38 = vadd.f32 %v3971_v5, %v3731_v14  ;;  %v4398_v5 = vsel %vm6627_vm11, %v4393_v58, %v4397_v11 }
 0x26f   : > { %v5074_v30 = vpop.f32.mrf.mxu0  ;;  %v3488_v29 = vsel %vm7003_vm14, %v3486_v22, %v3487_v9  ;;  %v4543_v11 = vunpack.c.l.b16 %v4398_v5 }
 0x270   : > { %v5150_v51 = vadd.f32 %v5074_v30, %v4725_v35  ;;  %v4403_v35 = vrot.slane %v4402_v28, 4  ;;  %v3485_v0 = vsel %vm7003_vm14, %v5781_v3, %v3484_v49  ;;  %v6088_v30 = vld [vmem:[#allocation2 + $0x9c] sm:$0xff]  ;;  %v3551_v46 = vunpack.c.l.b16 %v3488_v29 }
 0x271   : > { %v3550_v39 = vunpack.c.l.b16 %v3485_v0  ;;  %v4897_v28 = vrot.slane %v7784_v59, 5  ;;  %v4988_v49 = vpack.c.b16 %v4967_v61, %v4966_v4  ;;  %v8016_v3 = vld [vmem:[#allocation7_spill] sm:$0xff]  ;;  %v4900_v4 = vrot.slane %v7798_v50, 5 }
 0x272   : > { %v7807_v17 = vpop.f32.mrf.mxu1  ;;  %v6189_v19 = vpack.c.bf16 %v5150_v51, %v5149_v41  ;;  %v5245_v26 = vadd.f32 %v5244_v31, %v5150_v51  ;;  %v5284_v13 = vmul.f32 %v5150_v51, %v5150_v51  ;;  %4691 = vmatmul.bf16.gmra.mxu3 %v4563_v24  ;;  %v7814_v41 = vld [vmem:[#allocation2 + $0xac] sm:$0xf]  ;;  %v4765_v24 = vld [vmem:[#allocation2 + $0x9c] sm:$0xe]  ;;  %v4413_v51 = vshll.u32 %v4109_v36, 16 }
 0x273   : > { %v4408_v22 = vsel %vm6627_vm11, %v4403_v35, %v4407_v57  ;;  %v4419_v60 = vshll.u32 %v7814_v41, 16  ;;  %v4423_v9 = vshrl.u32 %v7814_v41, 16  ;;  %v5956_v58 = vrot.slane %v4765_v24, 9 }
 0x274   : > { %v3973_v48 = vpop.f32.mrf.mxu2  ;;  %6276 = vst [vmem:[%s7775_s20 + $0x8] sm:$0xff] %v6189_v19   ;;  %v5315_v16 = vadd.f32 %v5314_v8, %v5284_v13  ;;  %v3732_v8 = vadd.f32 %v7777_v32, %v8016_v3  ;;  %v3570_v59 = vpack.c.b16 %v3551_v46, %v3550_v39  ;;  %v4899_v13 = vrot.slane %v4897_v28, 4 }
 0x275   : > { %v4652_v31 = vpop.f32.mrf.mxu3  ;;  %v4415_v36 = vrot.slane %v4413_v51, 5  ;;  %v4544_v57 = vunpack.c.l.b16 %v4408_v22  ;;  %v4425_v3 = vrot.slane %v4423_v9, 4  ;;  %v4898_v50 = vsel %vm7003_vm14, %v5956_v58, %v4897_v28 }
 0x276   : > { %v4726_v14 = vadd.f32 %v4652_v31, %v4045_v38  ;;  %v4412_v38 = vrot.slane %v4410_v7, 4  ;;  %v4046_v35 = vadd.f32 %v3973_v48, %v3732_v8  ;;  %v4421_v31 = vrot.slane %v4419_v60, 5  ;;  %v8017_v8 = vld [vmem:[#allocation8_spill] sm:$0xff] }
 0x277   : > { %v5077_v44 = vpop.f32.mrf.mxu0  ;;  %v4901_v46 = vsel %vm7003_vm14, %v4899_v13, %v4900_v4  ;;  %v3733_v22 = vadd.f32 %v7796_v37, %v8017_v8  ;;  %v4968_v60 = vunpack.c.l.b16 %v4898_v50 }
 0x278   : > { %v5151_v19 = vadd.f32 %v5077_v44, %v4726_v14  ;;  %v4416_v5 = vor.u32 %v4415_v36, %v4412_v38  ;;  %v4426_v48 = vor.u32 %v4425_v3, %v4421_v31  ;;  %v4969_v9 = vunpack.c.l.b16 %v4901_v46  ;;  %v4112_v3 = vld [vmem:[#allocation2 + $0xb4] sm:$0xf] }
 0x279   : > { %4015 = vmatmul.bf16.gmra.mxu2 %v6088_v30  ;;  %v7828_v30 = vld [vmem:[#allocation2 + $0xb0] sm:$0x1] }
 0x27a   : > { %v7826_v61 = vpop.f32.mrf.mxu1  ;;  %5116 = vmatmul.bf16.gmra.mxu0 %v4988_v49  ;;  %v5246_v32 = vadd.f32 %v5245_v26, %v5151_v19  ;;  %v5285_v0 = vmul.f32 %v5151_v19, %v5151_v19  ;;  %v4564_v26 = vpack.c.b16 %v4544_v57, %v4543_v11  ;;  %v4429_v51 = vshll.u32 %v7828_v30, 16  ;;  %v6382_v49 = vld [vmem:[#allocation2 + $0xac] sm:$0xf]  ;;  %v6383_v11 = vld [vmem:[#allocation2 + $0xb0] sm:$0x1] }
 0x27b   : > { %v3491_v44 = vrot.slane %v6382_v49, 5  ;;  %v4417_v28 = vrot.slane %v4416_v5, 4  ;;  %v3494_v38 = vrot.slane %v6383_v11, 5 }
 0x27c   : > { %v3976_v29 = vpop.f32.mrf.mxu2  ;;  %v5316_v14 = vadd.f32 %v5315_v16, %v5285_v0  ;;  %v4431_v37 = vrot.slane %v4429_v51, 5  ;;  %v4434_v51 = vshrl.u32 %v4112_v3, 16 }
 0x27d   : > { %3706 = vmatmul.bf16.gmra.mxu1 %v3570_v59  ;;  %v4654_v39 = vpop.f32.mrf.mxu3  ;;  %v3347_v59 = vld [vmem:[#allocation2 + $0xa8] sm:$0xe]  ;;  %v3493_v4 = vrot.slane %v3491_v44, 4  ;;  %v4047_v57 = vadd.f32 %v3976_v29, %v3733_v22  ;;  %v4422_v29 = vsel %vm6627_vm11, %v4417_v28, %v4421_v31 }
 0x27e   : > { %v4727_v24 = vadd.f32 %v4654_v39, %v4046_v35  ;;  %v5782_v13 = vrot.slane %v3347_v59, 9  ;;  %v4545_v31 = vunpack.c.l.b16 %v4422_v29  ;;  %v7860_v29 = vld [vmem:[#allocation2 + $0xbc] sm:$0x1] }
 0x27f   : > { %v5079_v7 = vpop.f32.mrf.mxu0  ;;  %v3495_v46 = vsel %vm7003_vm14, %v3493_v4, %v3494_v38 }
 0x280   : > { %v5152_v16 = vadd.f32 %v5079_v7, %v4727_v24  ;;  %v4427_v24 = vrot.slane %v4426_v48, 4  ;;  %v3492_v50 = vsel %vm7003_vm14, %v5782_v13, %v3491_v44  ;;  %v6089_v7 = vld [vmem:[#allocation2 + $0xa8] sm:$0xff]  ;;  %v3553_v8 = vunpack.c.l.b16 %v3495_v46 }
 0x281   : > { %v3552_v49 = vunpack.c.l.b16 %v3492_v50  ;;  %v4904_v48 = vrot.slane %v7814_v41, 5  ;;  %v4989_v44 = vpack.c.b16 %v4969_v9, %v4968_v60  ;;  %v8018_v13 = vld [vmem:[#allocation9_spill] sm:$0xff]  ;;  %v4907_v60 = vrot.slane %v7828_v30, 5 }
 0x282   : > { %v7837_v58 = vpop.f32.mrf.mxu1  ;;  %v6194_v36 = vpack.c.bf16 %v5152_v16, %v5151_v19  ;;  %v5247_v0 = vadd.f32 %v5246_v32, %v5152_v16  ;;  %v5286_v35 = vmul.f32 %v5152_v16, %v5152_v16  ;;  %4696 = vmatmul.bf16.gmra.mxu3 %v4564_v26  ;;  %v7844_v19 = vld [vmem:[#allocation2 + $0xb8] sm:$0xf]  ;;  %v4766_v26 = vld [vmem:[#allocation2 + $0xa8] sm:$0xe]  ;;  %v4437_v16 = vshll.u32 %v4112_v3, 16 }
 0x283   : > { %v4432_v4 = vsel %vm6627_vm11, %v4427_v24, %v4431_v37  ;;  %v4443_v11 = vshll.u32 %v7844_v19, 16  ;;  %v4447_v38 = vshrl.u32 %v7844_v19, 16  ;;  %v5957_v28 = vrot.slane %v4766_v26, 9 }
 0x284   : > { %v3978_v39 = vpop.f32.mrf.mxu2  ;;  %6277 = vst [vmem:[%s7775_s20 + $0x10] sm:$0xff] %v6194_v36   ;;  %v5317_v5 = vadd.f32 %v5316_v14, %v5286_v35  ;;  %v3734_v14 = vadd.f32 %v7807_v17, %v8018_v13  ;;  %v3571_v41 = vpack.c.b16 %v3553_v8, %v3552_v49  ;;  %v4906_v35 = vrot.slane %v4904_v48, 4 }
 0x285   : > { %v4657_v32 = vpop.f32.mrf.mxu3  ;;  %v4439_v3 = vrot.slane %v4437_v16, 5  ;;  %v4546_v37 = vunpack.c.l.b16 %v4432_v4  ;;  %v4905_v30 = vsel %vm7003_vm14, %v5957_v28, %v4904_v48  ;;  %v3348_v48 = vld [vmem:[#allocation2 + $0xb4] sm:$0xe] }
 0x286   : > { %v4728_v22 = vadd.f32 %v4657_v32, %v4047_v57  ;;  %v4436_v57 = vrot.slane %v4434_v51, 4  ;;  %v4048_v24 = vadd.f32 %v3978_v39, %v3734_v14  ;;  %v7858_v32 = vrot.slane %v4443_v11, 5 }
 0x287   : > { %v5082_v59 = vpop.f32.mrf.mxu0  ;;  %v4908_v8 = vsel %vm7003_vm14, %v4906_v35, %v4907_v60  ;;  %v4565_v51 = vpack.c.b16 %v4546_v37, %v4545_v31  ;;  %v3735_v14 = vadd.f32 %v7826_v61, %v7363_v42  ;;  %v4970_v4 = vunpack.c.l.b16 %v4905_v30  ;;  %v6385_v35 = vld [vmem:[#allocation2 + $0xbc] sm:$0x1]  ;;  %v4115_v37 = vld [vmem:[#allocation2 + $0xc0] sm:$0xf] }
 0x288   : > { %v5153_v36 = vadd.f32 %v5082_v59, %v4728_v22  ;;  %v4449_v22 = vrot.slane %v4447_v38, 4  ;;  %v4440_v26 = vor.u32 %v4439_v3, %v4436_v57  ;;  %v6384_v59 = vld [vmem:[#allocation2 + $0xb8] sm:$0xf]  ;;  %v4971_v11 = vunpack.c.l.b16 %v4908_v8  ;;  %v531_v8 = vld [vmem:[#allocation2 + $0xcc] sm:$0x1] }
 0x289   : > { %4020 = vmatmul.bf16.gmra.mxu2 %v6089_v7  ;;  %v3501_v60 = vrot.slane %v6385_v35, 5 }
 0x28a   : > { %v7856_v9 = vpop.f32.mrf.mxu1  ;;  %5121 = vmatmul.bf16.gmra.mxu0 %v4989_v44  ;;  %v5248_v17 = vadd.f32 %v5247_v0, %v5153_v36  ;;  %v5287_v50 = vmul.f32 %v5153_v36, %v5153_v36  ;;  %v4450_v16 = vor.u32 %v4449_v22, %v7858_v32  ;;  %v4453_v44 = vshll.u32 %v7860_v29, 16 }
 0x28b   : > { %v4441_v38 = vrot.slane %v4440_v26, 4 }
 0x28c   : > { %v3981_v46 = vpop.f32.mrf.mxu2  ;;  %v5318_v7 = vadd.f32 %v5317_v5, %v5287_v50  ;;  %v3498_v5 = vrot.slane %v6384_v59, 5  ;;  %v4455_v42 = vrot.slane %v4453_v44, 5  ;;  %v7877_v59 = vld [vmem:[#allocation2 + $0xc4] sm:$0xf]  ;;  %v4458_v44 = vshrl.u32 %v4115_v37, 16 }
 0x28d   : > { %3711 = vmatmul.bf16.gmra.mxu1 %v3571_v41  ;;  %v4659_v49 = vpop.f32.mrf.mxu3  ;;  %v5783_v41 = vrot.slane %v3348_v48, 9 }
 0x28e   : > { %v4729_v0 = vadd.f32 %v4659_v49, %v4048_v24  ;;  %v3500_v31 = vrot.slane %v3498_v5, 4  ;;  %v4049_v24 = vadd.f32 %v3981_v46, %v3735_v14  ;;  %v4451_v49 = vrot.slane %v4450_v16, 4 }
 0x28f   : > { %v5084_v39 = vpop.f32.mrf.mxu0  ;;  %v3499_v61 = vsel %vm7003_vm14, %v5783_v41, %v3498_v5  ;;  %v4911_v16 = vrot.slane %v7844_v19, 5  ;;  %v4461_v5 = vshll.u32 %v4115_v37, 16  ;;  %v4990_v14 = vpack.c.b16 %v4971_v11, %v4970_v4 }
 0x290   : > { %v5154_v13 = vadd.f32 %v5084_v39, %v4729_v0  ;;  %v3502_v30 = vsel %vm7003_vm14, %v3500_v31, %v3501_v60  ;;  %v6090_v0 = vld [vmem:[#allocation2 + $0xb4] sm:$0xff]  ;;  %v532_v41 = vsel %vm6451_vm2, 0, %v531_v8  ;;  %v4456_v35 = vsel %vm6627_vm11, %v4451_v49, %v4455_v42 }
 0x291   : > { %v4767_v39 = vld [vmem:[#allocation2 + $0xb4] sm:$0xe]  ;;  %v4467_v60 = vshll.u32 %v7877_v59, 16  ;;  %533 = vst [vmem:[#allocation2 + $0xcc] sm:$0x1] %v532_v41  ;;  %v4913_v2 = vrot.slane %v4911_v16, 4 }
 0x292   : > { %v7870_v28 = vpop.f32.mrf.mxu1  ;;  %v6199_v57 = vpack.c.bf16 %v5154_v13, %v5153_v36  ;;  %v5249_v3 = vadd.f32 %v5248_v17, %v5154_v13  ;;  %v5288_v50 = vmul.f32 %v5154_v13, %v5154_v13  ;;  %4701 = vmatmul.bf16.gmra.mxu3 %v4565_v51  ;;  %v3554_v36 = vunpack.c.l.b16 %v3499_v61  ;;  %v587_v13 = vld [vmem:[#allocation2 + $0xd4] sm:$0x1] }
 0x293   : > { %v3555_v17 = vunpack.c.l.b16 %v3502_v30  ;;  %v4446_v51 = vsel %vm6627_vm11, %v4441_v38, %v7858_v32  ;;  %v4471_v32 = vshrl.u32 %v7877_v59, 16  ;;  %v588_v19 = vsel %vm6471_vm4, 0, %v587_v13  ;;  %v6386_v13 = vld [vmem:[#allocation2 + $0xc4] sm:$0xf] }
 0x294   : > { %v3983_v22 = vpop.f32.mrf.mxu2  ;;  %6278 = vst [vmem:[%s7775_s20 + $0x18] sm:$0xff] %v6199_v57   ;;  %v5319_v26 = vadd.f32 %v5318_v7, %v5288_v50  ;;  %v3736_v7 = vadd.f32 %v7837_v58, %v7391_v53  ;;  %v4547_v11 = vunpack.c.l.b16 %v4446_v51  ;;  %v5958_v38 = vrot.slane %v4767_v39, 9  ;;  %v7896_v39 = vld [vmem:[#allocation2 + $0xc8] sm:$0x1] }
 0x295   : > { %v4662_v46 = vpop.f32.mrf.mxu3  ;;  %v3572_v53 = vpack.c.b16 %v3555_v17, %v3554_v36  ;;  %589 = vst [vmem:[#allocation2 + $0xd4] sm:$0x1] %v588_v19  ;;  %v4914_v58 = vrot.slane %v7860_v29, 5  ;;  %v4460_v50 = vrot.slane %v4458_v44, 4  ;;  %v4548_v61 = vunpack.c.l.b16 %v4456_v35  ;;  %v6387_v19 = vld [vmem:[#allocation2 + $0xc8] sm:$0x1] }
 0x296   : > { %v4730_v48 = vadd.f32 %v4662_v46, %v4049_v24  ;;  %v4463_v24 = vrot.slane %v4461_v5, 5  ;;  %v4050_v42 = vadd.f32 %v3983_v22, %v3736_v7  ;;  %v4469_v30 = vrot.slane %v4467_v60, 5 }
 0x297   : > { %v5087_v31 = vpop.f32.mrf.mxu0  ;;  %v4473_v8 = vrot.slane %v4471_v32, 4  ;;  %v4912_v29 = vsel %vm7003_vm14, %v5958_v38, %v4911_v16  ;;  %v4915_v17 = vsel %vm7003_vm14, %v4913_v2, %v4914_v58  ;;  %v4477_v5 = vshll.u32 %v7896_v39, 16 }
 0x298   : > { %v5155_v4 = vadd.f32 %v5087_v31, %v4730_v48  ;;  %v4464_v46 = vor.u32 %v4463_v24, %v4460_v50  ;;  %v3737_v48 = vadd.f32 %v7856_v9, %v7400_v21  ;;  %v4972_v7 = vunpack.c.l.b16 %v4912_v29  ;;  %v3349_v31 = vld [vmem:[#allocation2 + $0xc0] sm:$0xe]  ;;  %v7907_v50 = vld [vmem:[#allocation2 + $0xd0] sm:$0xf] }
 0x299   : > { %4025 = vmatmul.bf16.gmra.mxu2 %v6090_v0  ;;  %v4474_v22 = vor.u32 %v4473_v8, %v4469_v30  ;;  %v4973_v41 = vunpack.c.l.b16 %v4915_v17  ;;  %v5784_v60 = vrot.slane %v3349_v31, 9  ;;  %v4479_v9 = vrot.slane %v4477_v5, 5  ;;  %v6091_v8 = vld [vmem:[#allocation2 + $0xc0] sm:$0xff] }
 0x29a   : > { %v7894_v57 = vpop.f32.mrf.mxu1  ;;  %5126 = vmatmul.bf16.gmra.mxu0 %v4990_v14  ;;  %v5250_v37 = vadd.f32 %v5249_v3, %v5155_v4  ;;  %v5289_v49 = vmul.f32 %v5155_v4, %v5155_v4  ;;  %v4566_v3 = vpack.c.b16 %v4548_v61, %v4547_v11  ;;  %v3505_v14 = vrot.slane %v6386_v13, 5  ;;  %v4768_v17 = vld [vmem:[#allocation2 + $0xc0] sm:$0xe] }
 0x29b   : > { %v4465_v16 = vrot.slane %v4464_v46, 4  ;;  %v3508_v11 = vrot.slane %v6387_v19, 5  ;;  %v4475_v21 = vrot.slane %v4474_v22, 4  ;;  %v4918_v46 = vrot.slane %v7877_v59, 5 }
 0x29c   : > { %v3986_v6 = vpop.f32.mrf.mxu2  ;;  %v5320_v0 = vadd.f32 %v5319_v26, %v5289_v49  ;;  %v3507_v32 = vrot.slane %v3505_v14, 4  ;;  %v3506_v49 = vsel %vm7003_vm14, %v5784_v60, %v3505_v14  ;;  %v5959_v31 = vrot.slane %v4768_v17, 9 }
 0x29d   : > { %3716 = vmatmul.bf16.gmra.mxu1 %v3572_v53  ;;  %v4664_v36 = vpop.f32.mrf.mxu3  ;;  %v4051_v58 = vadd.f32 %v3986_v6, %v3737_v48  ;;  %v4470_v6 = vsel %vm6627_vm11, %v4465_v16, %v4469_v30  ;;  %v4480_v13 = vsel %vm6627_vm11, %v4475_v21, %v4479_v9  ;;  %v4920_v16 = vrot.slane %v4918_v46, 4 }
 0x29e   : > { %v4731_v51 = vadd.f32 %v4664_v36, %v4050_v42  ;;  %v3509_v42 = vsel %vm7003_vm14, %v3507_v32, %v3508_v11  ;;  %v3556_v36 = vunpack.c.l.b16 %v3506_v49  ;;  %v4549_v30 = vunpack.c.l.b16 %v4470_v6 }
 0x29f   : > { %v5089_v44 = vpop.f32.mrf.mxu0  ;;  %v4921_v60 = vrot.slane %v7896_v39, 5  ;;  %v4550_v11 = vunpack.c.l.b16 %v4480_v13  ;;  %v3739_v6 = vadd.f32 %v7894_v57, %v7429_v62 }
 0x2a0   : > { %v5156_v26 = vadd.f32 %v5089_v44, %v4731_v51  ;;  %v4491_v51 = vshll.u32 %v7907_v50, 16  ;;  %v4991_v44 = vpack.c.b16 %v4973_v41, %v4972_v7 }
 0x2a1   : > { %v4567_v39 = vpack.c.b16 %v4550_v11, %v4549_v30  ;;  %v6092_v30 = vld [vmem:[#allocation2 + $0xcc] sm:$0xff] }
 0x2a2   : > { %v7905_v35 = vpop.f32.mrf.mxu1  ;;  %v6204_v38 = vpack.c.bf16 %v5156_v26, %v5155_v4  ;;  %v5251_v53 = vadd.f32 %v5250_v37, %v5156_v26  ;;  %v5290_v2 = vmul.f32 %v5156_v26, %v5156_v26  ;;  %4706 = vmatmul.bf16.gmra.mxu3 %v4566_v3  ;;  %v3557_v4 = vunpack.c.l.b16 %v3509_v42  ;;  %v4118_v37 = vld [vmem:[#allocation2 + $0xcc] sm:$0xf] }
 0x2a3   : > { %v4495_v3 = vshrl.u32 %v7907_v50, 16  ;;  %v4482_v14 = vshrl.u32 %v4118_v37, 16  ;;  %v4485_v26 = vshll.u32 %v4118_v37, 16  ;;  %v4493_v7 = vrot.slane %v4491_v51, 5 }
 0x2a4   : > { %v3988_v24 = vpop.f32.mrf.mxu2  ;;  %6279 = vst [vmem:[%s7775_s20 + $0x20] sm:$0xff] %v6204_v38   ;;  %v5321_v61 = vadd.f32 %v5320_v0, %v5290_v2  ;;  %v3738_v0 = vadd.f32 %v7870_v28, %v7415_v52  ;;  %v3573_v59 = vpack.c.b16 %v3557_v4, %v3556_v36  ;;  %v4120_v38 = vld [vmem:[#allocation2 + $0xd4] sm:$0x1]  ;;  %v4919_v4 = vsel %vm7003_vm14, %v5959_v31, %v4918_v46 }
 0x2a5   : > { %v4667_v29 = vpop.f32.mrf.mxu3  ;;  %v4497_v41 = vrot.slane %v4495_v3, 4  ;;  %v4487_v21 = vrot.slane %v4485_v26, 5 }
 0x2a6   : > { %v4732_v22 = vadd.f32 %v4667_v29, %v4051_v58  ;;  %v4052_v28 = vadd.f32 %v3988_v24, %v3738_v0  ;;  %v4484_v58 = vrot.slane %v4482_v14, 4 }
 0x2a7   : > { %v5092_v5 = vpop.f32.mrf.mxu0  ;;  %v4498_v42 = vor.u32 %v4497_v41, %v4493_v7 }
 0x2a8   : > { %v5157_v48 = vadd.f32 %v5092_v5, %v4732_v22  ;;  %v4488_v24 = vor.u32 %v4487_v21, %v4484_v58  ;;  %v4928_v58 = vrot.slane %v4120_v38, 5 }
 0x2a9   : > { %4030 = vmatmul.bf16.gmra.mxu2 %v6091_v8  ;;  %v4501_v8 = vshll.u32 %v4120_v38, 16  ;;  %v4499_v51 = vrot.slane %v4498_v42, 4 }
 0x2aa   : > { %v7924_v32 = vpop.f32.mrf.mxu1  ;;  %5131 = vmatmul.bf16.gmra.mxu0 %v4991_v44  ;;  %v5252_v19 = vadd.f32 %v5251_v53, %v5157_v48  ;;  %v5291_v52 = vmul.f32 %v5157_v48, %v5157_v48  ;;  %v4922_v53 = vsel %vm7003_vm14, %v4920_v16, %v4921_v60  ;;  %v4489_v14 = vrot.slane %v4488_v24, 4  ;;  %v4769_v60 = vld [vmem:[#allocation2 + $0xcc] sm:$0xe] }
 0x2ab   : > { %v4975_v17 = vunpack.c.l.b16 %v4922_v53  ;;  %v4503_v3 = vrot.slane %v4501_v8, 5  ;;  %v5960_v11 = vrot.slane %v4769_v60, 9  ;;  %v3741_v53 = vadd.f32 %v7924_v32, %v7461_v47 }
 0x2ac   : > { %v3991_v2 = vpop.f32.mrf.mxu2  ;;  %v5322_v9 = vadd.f32 %v5321_v61, %v5291_v52  ;;  %v4974_v61 = vunpack.c.l.b16 %v4919_v4  ;;  %v3740_v52 = vadd.f32 %v7905_v35, %v7442_v10 }
 0x2ad   : > { %3721 = vmatmul.bf16.gmra.mxu1 %v3573_v59  ;;  %v4669_v49 = vpop.f32.mrf.mxu3  ;;  %v4053_v46 = vadd.f32 %v3991_v2, %v3739_v6  ;;  %v4925_v59 = vrot.slane %v7907_v50, 5  ;;  %v4504_v57 = vsel %vm6627_vm11, %v4499_v51, %v4503_v3 }
 0x2ae   : > { %v4733_v36 = vadd.f32 %v4669_v49, %v4052_v28  ;;  %v4992_v16 = vpack.c.b16 %v4975_v17, %v4974_v61  ;;  %v4552_v28 = vunpack.c.l.b16 %v4504_v57 }
 0x2af   : > { %v5094_v37 = vpop.f32.mrf.mxu0  ;;  %v4927_v2 = vrot.slane %v4925_v59, 4  ;;  %v4926_v10 = vsel %vm7003_vm14, %v5960_v11, %v4925_v59 }
 0x2b0   : > { %v5158_v29 = vadd.f32 %v5094_v37, %v4733_v36  ;;  %v4976_v37 = vunpack.c.l.b16 %v4926_v10 }
 0x2b1   : > { %v4929_v35 = vsel %vm7003_vm14, %v4927_v2, %v4928_v58 }
 0x2b2   : > { %v3684_v44 = vpop.f32.mrf.mxu1  ;;  %v6209_v22 = vpack.c.bf16 %v5158_v29, %v5157_v48  ;;  %v5253_v5 = vadd.f32 %v5252_v19, %v5158_v29  ;;  %v5292_v0 = vmul.f32 %v5158_v29, %v5158_v29  ;;  %4711 = vmatmul.bf16.gmra.mxu3 %v4567_v39  ;;  %v4494_v48 = vsel %vm6627_vm11, %v4489_v14, %v4493_v7 }
 0x2b3   : > { %v4551_v42 = vunpack.c.l.b16 %v4494_v48  ;;  %v4977_v24 = vunpack.c.l.b16 %v4929_v35  ;;  %v3742_v14 = vadd.f32 %v3684_v44, %v7475_v12 }
 0x2b4   : > { %v3993_v13 = vpop.f32.mrf.mxu2  ;;  %6280 = vst [vmem:[%s7775_s20 + $0x28] sm:$0xff] %v6209_v22   ;;  %v5323_v26 = vadd.f32 %v5322_v9, %v5292_v0 }
 0x2b5   : > { %v4672_v31 = vpop.f32.mrf.mxu3  ;;  %v4054_v49 = vadd.f32 %v3993_v13, %v3740_v52  ;;  %v4568_v7 = vpack.c.b16 %v4552_v28, %v4551_v42  ;;  %v4993_v0 = vpack.c.b16 %v4977_v24, %v4976_v37 }
 0x2b6   : > { %v4734_v62 = vadd.f32 %v4672_v31, %v4053_v46 }
 0x2b7   : > { %v5097_v41 = vpop.f32.mrf.mxu0 }
 0x2b8   : > { %v5159_v19 = vadd.f32 %v5097_v41, %v4734_v62 }
 0x2b9   : > { %4035 = vmatmul.bf16.gmra.mxu2 %v6092_v30 }
 0x2ba   : > { %v3687_v50 = vpop.f32.mrf.mxu1  ;;  %5136 = vmatmul.bf16.gmra.mxu0 %v4992_v16  ;;  %v5254_v21 = vadd.f32 %v5253_v5, %v5159_v19  ;;  %v5293_v9 = vmul.f32 %v5159_v19, %v5159_v19 }
 0x2bb   : > { %v3743_v41 = vadd.f32 %v3687_v50, %v7494_v18 }
 0x2bc   : > { %v3996_v8 = vpop.f32.mrf.mxu2  ;;  %v5324_v36 = vadd.f32 %v5323_v26, %v5293_v9 }
 0x2bd   : > { %v4674_v39 = vpop.f32.mrf.mxu3  ;;  %v4055_v51 = vadd.f32 %v3996_v8, %v3741_v53 }
 0x2be   : > { %v4735_v55 = vadd.f32 %v4674_v39, %v4054_v49 }
 0x2bf   : > { %v5099_v4 = vpop.f32.mrf.mxu0 }
 0x2c0   : > { %v5160_v38 = vadd.f32 %v5099_v4, %v4735_v55 }
 0x2c2   : > { %v3689_v29 = vpop.f32.mrf.mxu1  ;;  %v6214_v6 = vpack.c.bf16 %v5160_v38, %v5159_v19  ;;  %v5255_v61 = vadd.f32 %v5254_v21, %v5160_v38  ;;  %v5294_v17 = vmul.f32 %v5160_v38, %v5160_v38  ;;  %4716 = vmatmul.bf16.gmra.mxu3 %v4568_v7 }
 0x2c3   : > { %v3744_v49 = vadd.f32 %v3689_v29, %v7508_v25 }
 0x2c4   : > { %v3998_v3 = vpop.f32.mrf.mxu2  ;;  %6281 = vst [vmem:[%s7775_s20 + $0x30] sm:$0xff] %v6214_v6   ;;  %v5325_v22 = vadd.f32 %v5324_v36, %v5294_v17 }
 0x2c5   : > { %v4677_v5 = vpop.f32.mrf.mxu3  ;;  %v4056_v30 = vadd.f32 %v3998_v3, %v3742_v14 }
 0x2c6   : > { %v4736_v43 = vadd.f32 %v4677_v5, %v4055_v51 }
 0x2c7   : > { %v5102_v46 = vpop.f32.mrf.mxu0 }
 0x2c8   : > { %v5161_v13 = vadd.f32 %v5102_v46, %v4736_v43 }
 0x2ca   : > { %v3692_v26 = vpop.f32.mrf.mxu1  ;;  %5141 = vmatmul.bf16.gmra.mxu0 %v4993_v0  ;;  %v5256_v47 = vadd.f32 %v5255_v61, %v5161_v13  ;;  %v5295_v32 = vmul.f32 %v5161_v13, %v5161_v13 }
 0x2cb   : > { %v3745_v4 = vadd.f32 %v3692_v26, %v7527_v54 }
 0x2cc   : > { %v4001_v31 = vpop.f32.mrf.mxu2  ;;  %v5326_v59 = vadd.f32 %v5325_v22, %v5295_v32 }
 0x2cd   : > { %v4679_v16 = vpop.f32.mrf.mxu3  ;;  %v4057_v11 = vadd.f32 %v4001_v31, %v3743_v41 }
 0x2ce   : > { %v4737_v62 = vadd.f32 %v4679_v16, %v4056_v30 }
 0x2cf   : > { %v5104_v57 = vpop.f32.mrf.mxu0 }
 0x2d0   : > { %v5162_v60 = vadd.f32 %v5104_v57, %v4737_v62 }
 0x2d2   : > { %v3694_v48 = vpop.f32.mrf.mxu1  ;;  %v6219_v19 = vpack.c.bf16 %v5162_v60, %v5161_v13  ;;  %v5257_v52 = vadd.f32 %v5256_v47, %v5162_v60  ;;  %v5296_v28 = vmul.f32 %v5162_v60, %v5162_v60 }
 0x2d3   : > { %v3746_v22 = vadd.f32 %v3694_v48, %v7541_v15 }
 0x2d4   : > { %v4003_v12 = vpop.f32.mrf.mxu2  ;;  %6282 = vst [vmem:[%s7775_s20 + $0x38] sm:$0xff] %v6219_v19   ;;  %v5327_v44 = vadd.f32 %v5326_v59, %v5296_v28 }
 0x2d5   : > { %v4682_v2 = vpop.f32.mrf.mxu3  ;;  %v4058_v39 = vadd.f32 %v4003_v12, %v3744_v49 }
 0x2d6   : > { %v4738_v58 = vadd.f32 %v4682_v2, %v4057_v11 }
 0x2d7   : > { %v5107_v21 = vpop.f32.mrf.mxu0 }
 0x2d8   : > { %v5163_v9 = vadd.f32 %v5107_v21, %v4738_v58 }
 0x2da   : > { %v3697_v42 = vpop.f32.mrf.mxu1  ;;  %v5258_v8 = vadd.f32 %v5257_v52, %v5163_v9  ;;  %v5297_v36 = vmul.f32 %v5163_v9, %v5163_v9 }
 0x2db   : > { %v3747_v30 = vadd.f32 %v3697_v42, %v7560_v27 }
 0x2dc   : > { %v4006_v18 = vpop.f32.mrf.mxu2  ;;  %v5328_v50 = vadd.f32 %v5327_v44, %v5297_v36 }
 0x2dd   : > { %v4684_v55 = vpop.f32.mrf.mxu3  ;;  %v4059_v6 = vadd.f32 %v4006_v18, %v3745_v4 }
 0x2de   : > { %v4739_v7 = vadd.f32 %v4684_v55, %v4058_v39 }
 0x2df   : > { %v5109_v10 = vpop.f32.mrf.mxu0 }
 0x2e0   : > { %v5164_v35 = vadd.f32 %v5109_v10, %v4739_v7 }
 0x2e2   : > { %v3699_v38 = vpop.f32.mrf.mxu1  ;;  %v6224_v53 = vpack.c.bf16 %v5164_v35, %v5163_v9  ;;  %v5259_v37 = vadd.f32 %v5258_v8, %v5164_v35  ;;  %v5298_v24 = vmul.f32 %v5164_v35, %v5164_v35 }
 0x2e3   : > { %v3748_v28 = vadd.f32 %v3699_v38, %v7574_v20 }
 0x2e4   : > { %v4008_v61 = vpop.f32.mrf.mxu2  ;;  %6283 = vst [vmem:[%s7775_s20 + $0x40] sm:$0xff] %v6224_v53   ;;  %v5329_v25 = vadd.f32 %v5328_v50, %v5298_v24 }
 0x2e5   : > { %v4687_v29 = vpop.f32.mrf.mxu3  ;;  %v4060_v43 = vadd.f32 %v4008_v61, %v3746_v22 }
 0x2e6   : > { %v4740_v17 = vadd.f32 %v4687_v29, %v4059_v6 }
 0x2e7   : > { %v5112_v51 = vpop.f32.mrf.mxu0 }
 0x2e8   : > { %v5165_v3 = vadd.f32 %v5112_v51, %v4740_v17 }
 0x2ea   : > { %v5260_v5 = vadd.f32 %v5259_v37, %v5165_v3  ;;  %v5299_v0 = vmul.f32 %v5165_v3, %v5165_v3  ;;  %v3702_v54 = vpop.f32.mrf.mxu1 }
 0x2eb   : > { %v3749_v8 = vadd.f32 %v3702_v54, %v7593_v33 }
 0x2ec   : > { %v4011_v46 = vpop.f32.mrf.mxu2  ;;  %v5330_v13 = vadd.f32 %v5329_v25, %v5299_v0 }
 0x2ed   : > { %v4689_v14 = vpop.f32.mrf.mxu3  ;;  %v4061_v62 = vadd.f32 %v4011_v46, %v3747_v30 }
 0x2ee   : > { %v4741_v26 = vadd.f32 %v4689_v14, %v4060_v43 }
 0x2ef   : > { %v5114_v47 = vpop.f32.mrf.mxu0 }
 0x2f0   : > { %v5166_v32 = vadd.f32 %v5114_v47, %v4741_v26 }
 0x2f2   : > { %v6229_v31 = vpack.c.bf16 %v5166_v32, %v5165_v3  ;;  %v5261_v59 = vadd.f32 %v5260_v5, %v5166_v32  ;;  %v5300_v16 = vmul.f32 %v5166_v32, %v5166_v32  ;;  %v3704_v41 = vpop.f32.mrf.mxu1 }
 0x2f3   : > { %v3750_v38 = vadd.f32 %v3704_v41, %v7607_v45 }
 0x2f4   : > { %v4013_v57 = vpop.f32.mrf.mxu2  ;;  %6284 = vst [vmem:[%s7775_s20 + $0x48] sm:$0xff] %v6229_v31   ;;  %v5331_v15 = vadd.f32 %v5330_v13, %v5300_v16 }
 0x2f5   : > { %v4692_v60 = vpop.f32.mrf.mxu3  ;;  %v4062_v44 = vadd.f32 %v4013_v57, %v3748_v28 }
 0x2f6   : > { %v4742_v48 = vadd.f32 %v4692_v60, %v4061_v62 }
 0x2f7   : > { %v5117_v19 = vpop.f32.mrf.mxu0 }
 0x2f8   : > { %v5167_v52 = vadd.f32 %v5117_v19, %v4742_v48 }
 0x2fa   : > { %v5262_v11 = vadd.f32 %v5261_v59, %v5167_v52  ;;  %v5301_v12 = vmul.f32 %v5167_v52, %v5167_v52  ;;  %v3707_v49 = vpop.f32.mrf.mxu1 }
 0x2fb   : > { %v3751_v3 = vadd.f32 %v3707_v49, %v7626_v63 }
 0x2fc   : > { %v4016_v2 = vpop.f32.mrf.mxu2  ;;  %v5332_v27 = vadd.f32 %v5331_v15, %v5301_v12 }
 0x2fd   : > { %v4694_v58 = vpop.f32.mrf.mxu3  ;;  %v4063_v50 = vadd.f32 %v4016_v2, %v3749_v8 }
 0x2fe   : > { %v4743_v21 = vadd.f32 %v4694_v58, %v4062_v44 }
 0x2ff   : > { %v5119_v9 = vpop.f32.mrf.mxu0 }
 0x300   : > { %v5168_v42 = vadd.f32 %v5119_v9, %v4743_v21 }
 0x302   : > { %v6234_v36 = vpack.c.bf16 %v5168_v42, %v5167_v52  ;;  %v5263_v39 = vadd.f32 %v5262_v11, %v5168_v42  ;;  %v5302_v18 = vmul.f32 %v5168_v42, %v5168_v42  ;;  %v3709_v53 = vpop.f32.mrf.mxu1 }
 0x303   : > { %v3752_v32 = vadd.f32 %v3709_v53, %v7640_v56 }
 0x304   : > { %v4018_v55 = vpop.f32.mrf.mxu2  ;;  %6285 = vst [vmem:[%s7775_s20 + $0x50] sm:$0xff] %v6234_v36   ;;  %v5333_v20 = vadd.f32 %v5332_v27, %v5302_v18 }
 0x305   : > { %v4697_v7 = vpop.f32.mrf.mxu3  ;;  %v4064_v6 = vadd.f32 %v4018_v55, %v3750_v38 }
 0x306   : > { %v4744_v10 = vadd.f32 %v4697_v7, %v4063_v50 }
 0x307   : > { %v5122_v35 = vpop.f32.mrf.mxu0 }
 0x308   : > { %v5169_v4 = vadd.f32 %v5122_v35, %v4744_v10 }
 0x30a   : > { %v5264_v37 = vadd.f32 %v5263_v39, %v5169_v4  ;;  %v5303_v24 = vmul.f32 %v5169_v4, %v5169_v4  ;;  %v3712_v54 = vpop.f32.mrf.mxu1 }
 0x30b   : > { %v3753_v48 = vadd.f32 %v3712_v54, %v7659_v34 }
 0x30c   : > { %v4021_v61 = vpop.f32.mrf.mxu2  ;;  %v5334_v33 = vadd.f32 %v5333_v20, %v5303_v24 }
 0x30d   : > { %v4699_v25 = vpop.f32.mrf.mxu3  ;;  %v4065_v43 = vadd.f32 %v4021_v61, %v3751_v3 }
 0x30e   : > { %v4745_v29 = vadd.f32 %v4699_v25, %v4064_v6 }
 0x30f   : > { %v5124_v17 = vpop.f32.mrf.mxu0 }
 0x310   : > { %v5170_v51 = vadd.f32 %v5124_v17, %v4745_v29 }
 0x312   : > { %v6239_v22 = vpack.c.bf16 %v5170_v51, %v5169_v4  ;;  %v5265_v5 = vadd.f32 %v5264_v37, %v5170_v51  ;;  %v5304_v0 = vmul.f32 %v5170_v51, %v5170_v51  ;;  %v3714_v57 = vpop.f32.mrf.mxu1 }
 0x313   : > { %v3754_v9 = vadd.f32 %v3714_v57, %v7673_v23 }
 0x314   : > { %v4023_v46 = vpop.f32.mrf.mxu2  ;;  %6286 = vst [vmem:[%s7775_s20 + $0x58] sm:$0xff] %v6239_v22   ;;  %v5335_v45 = vadd.f32 %v5334_v33, %v5304_v0 }
 0x315   : > { %v4702_v13 = vpop.f32.mrf.mxu3  ;;  %v4066_v59 = vadd.f32 %v4023_v46, %v3752_v32  ;;  %v8019_v46 = vld [vmem:[#allocation3_spill] sm:$0xff] }
 0x316   : > { %v4746_v14 = vadd.f32 %v4702_v13, %v4065_v43 }
 0x317   : > { %v5127_v26 = vpop.f32.mrf.mxu0 }
 0x318   : > { %v5171_v47 = vadd.f32 %v5127_v26, %v4746_v14 }
 0x31a   : > { %v5266_v30 = vadd.f32 %v5265_v5, %v5171_v47  ;;  %v5305_v31 = vmul.f32 %v5171_v47, %v5171_v47  ;;  %v3717_v58 = vpop.f32.mrf.mxu1 }
 0x31b   : > { %v3755_v20 = vadd.f32 %v3717_v58, %v7692_v40 }
 0x31c   : > { %v4026_v16 = vpop.f32.mrf.mxu2  ;;  %v5336_v63 = vadd.f32 %v5335_v45, %v5305_v31 }
 0x31d   : > { %v4704_v62 = vpop.f32.mrf.mxu3  ;;  %v4067_v11 = vadd.f32 %v4026_v16, %v3753_v48 }
 0x31e   : > { %v4747_v15 = vadd.f32 %v4704_v62, %v4066_v59 }
 0x31f   : > { %v5129_v60 = vpop.f32.mrf.mxu0 }
 0x320   : > { %v5172_v41 = vadd.f32 %v5129_v60, %v4747_v15 }
 0x322   : > { %v6244_v19 = vpack.c.bf16 %v5172_v41, %v5171_v47  ;;  %v5267_v52 = vadd.f32 %v5266_v30, %v5172_v41  ;;  %v5306_v28 = vmul.f32 %v5172_v41, %v5172_v41  ;;  %v3719_v7 = vpop.f32.mrf.mxu1 }
 0x323   : > { %v3756_v33 = vadd.f32 %v3719_v7, %v7706_v1 }
 0x324   : > { %v4028_v12 = vpop.f32.mrf.mxu2  ;;  %6287 = vst [vmem:[%s7775_s20 + $0x60] sm:$0xff] %v6244_v19   ;;  %v5337_v56 = vadd.f32 %v5336_v63, %v5306_v28  ;;  %v8020_v63 = vld [vmem:[#allocation4_spill] sm:$0xff] }
 0x325   : > { %v4707_v44 = vpop.f32.mrf.mxu3  ;;  %v4068_v8 = vadd.f32 %v4028_v12, %v3754_v9 }
 0x326   : > { %v4748_v2 = vadd.f32 %v4707_v44, %v4067_v11 }
 0x327   : > { %v5132_v27 = vpop.f32.mrf.mxu0 }
 0x328   : > { %v5173_v21 = vadd.f32 %v5132_v27, %v4748_v2 }
 0x32a   : > { %v5268_v49 = vadd.f32 %v5267_v52, %v5173_v21  ;;  %v5307_v42 = vmul.f32 %v5173_v21, %v5173_v21  ;;  %v3722_v51 = vpop.f32.mrf.mxu1 }
 0x32b   : > { %v3757_v54 = vadd.f32 %v3722_v51, %v8019_v46 }
 0x32c   : > { %v4031_v36 = vpop.f32.mrf.mxu2  ;;  %v5338_v34 = vadd.f32 %v5337_v56, %v5307_v42 }
 0x32d   : > { %v4709_v39 = vpop.f32.mrf.mxu3  ;;  %v4069_v38 = vadd.f32 %v4031_v36, %v3755_v20 }
 0x32e   : > { %v4749_v18 = vadd.f32 %v4709_v39, %v4068_v8 }
 0x32f   : > { %v5134_v50 = vpop.f32.mrf.mxu0 }
 0x330   : > { %v5174_v55 = vadd.f32 %v5134_v50, %v4749_v18 }
 0x332   : > { %v6249_v10 = vpack.c.bf16 %v5174_v55, %v5173_v21  ;;  %v5269_v35 = vadd.f32 %v5268_v49, %v5174_v55  ;;  %v5308_v4 = vmul.f32 %v5174_v55, %v5174_v55  ;;  %v3724_v32 = vpop.f32.mrf.mxu1 }
 0x333   : > { %v3758_v62 = vadd.f32 %v3724_v32, %v8020_v63 }
 0x334   : > { %v4033_v53 = vpop.f32.mrf.mxu2  ;;  %6288 = vst [vmem:[%s7775_s20 + $0x68] sm:$0xff] %v6249_v10   ;;  %v5339_v23 = vadd.f32 %v5338_v34, %v5308_v4 }
 0x335   : > { %v4712_v37 = vpop.f32.mrf.mxu3  ;;  %v4070_v17 = vadd.f32 %v4033_v53, %v3756_v33 }
 0x336   : > { %v4750_v24 = vadd.f32 %v4712_v37, %v4069_v38 }
 0x337   : > { %v5137_v6 = vpop.f32.mrf.mxu0 }
 0x338   : > { %v5175_v61 = vadd.f32 %v5137_v6, %v4750_v24 }
 0x33a   : > { %v5270_v25 = vadd.f32 %v5269_v35, %v5175_v61  ;;  %v5309_v29 = vmul.f32 %v5175_v61, %v5175_v61 }
 0x33c   : > { %v5340_v40 = vadd.f32 %v5339_v23, %v5309_v29  ;;  %v4036_v22 = vpop.f32.mrf.mxu2 }
 0x33d   : > { %v4714_v3 = vpop.f32.mrf.mxu3  ;;  %v4071_v26 = vadd.f32 %v4036_v22, %v3757_v54 }
 0x33e   : > { %v4751_v5 = vadd.f32 %v4714_v3, %v4070_v17 }
 0x33f   : > { %v5139_v0 = vpop.f32.mrf.mxu0 }
 0x340   : > { %v5176_v43 = vadd.f32 %v5139_v0, %v4751_v5 }
 0x342   : > { %v6254_v45 = vpack.c.bf16 %v5176_v43, %v5175_v61  ;;  %v5271_v13 = vadd.f32 %v5270_v25, %v5176_v43  ;;  %v5310_v14 = vmul.f32 %v5176_v43, %v5176_v43 }
 0x344   : > { %6289 = vst [vmem:[%s7775_s20 + $0x70] sm:$0xff] %v6254_v45   ;;  %v5341_v47 = vadd.f32 %v5340_v40, %v5310_v14  ;;  %v4038_v59 = vpop.f32.mrf.mxu2 }
 0x345   : > { %v4717_v1 = vpop.f32.mrf.mxu3  ;;  %v4072_v60 = vadd.f32 %v4038_v59, %v3758_v62 }
 0x346   : > { %v4752_v30 = vadd.f32 %v4717_v1, %v4071_v26 }
 0x347   : > { %v5142_v31 = vpop.f32.mrf.mxu0 }
 0x348   : > { %v5177_v16 = vadd.f32 %v5142_v31, %v4752_v30 }
 0x34a   : > { %v5272_v57 = vadd.f32 %v5271_v13, %v5177_v16  ;;  %v5311_v15 = vmul.f32 %v5177_v16, %v5177_v16 }
 0x34c   : > { %v5342_v41 = vadd.f32 %v5341_v47, %v5311_v15 }
 0x34d   : > { %v4719_v48 = vpop.f32.mrf.mxu3 }
 0x34e   : > { %v4753_v19 = vadd.f32 %v4719_v48, %v4072_v60 }
 0x34f   : > { %v5144_v52 = vpop.f32.mrf.mxu0 }
 0x350   : > { %v5178_v28 = vadd.f32 %v5144_v52, %v4753_v19 }
 0x352   : > { %v6259_v11 = vpack.c.bf16 %v5178_v28, %v5177_v16  ;;  %v5273_v12 = vadd.f32 %v5272_v57, %v5178_v28  ;;  %v5312_v56 = vmul.f32 %v5178_v28, %v5178_v28 }
 0x354   : > { %6290 = vst [vmem:[%s7775_s20 + $0x78] sm:$0xff] %v6259_v11   ;;  %v5274_v44 = vrot.slane %v5273_v12, 4  ;;  %v5343_v2 = vadd.f32 %v5342_v41, %v5312_v56 }
 0x356   : > { %v5275_v27 = vadd.f32 %v5274_v44, %v5273_v12  ;;  %v5344_v58 = vrot.slane %v5343_v2, 4 }
 0x358   : > { %v5276_v21 = vrot.slane %v5275_v27, 2  ;;  %v5345_v9 = vadd.f32 %v5344_v58, %v5343_v2 }
 0x35a   : > { %v5277_v49 = vadd.f32 %v5276_v21, %v5275_v27  ;;  %v5346_v42 = vrot.slane %v5345_v9, 2 }
 0x35c   : > { %v5278_v8 = vrot.slane %v5277_v49, 1  ;;  %v5347_v36 = vadd.f32 %v5346_v42, %v5345_v9 }
 0x35e   : > { %v5279_v34 = vadd.f32 %v5278_v8, %v5277_v49  ;;  %v5348_v39 = vrot.slane %v5347_v36, 1 }
 0x360   : > { %5280 = vst [vmem:[%s265_s24] sm:$0x1] %v5279_v34  ;;  %v5349_v18 = vadd.f32 %v5348_v39, %v5347_v36 }
 0x362   : > { %5350 = vst [vmem:[%s268_s28] sm:$0x1] %v5349_v18 }
 0x363 PF: > { %s17_s21 = sadd.s32 1, %s6394_s21  }
 0x364   : > { %p14_p4 = scmp.ge.s32.totalorder %s17_s21, 4  }
 0x366   :  { %16 = sbr.rel (!%p14_p4) target bundleno = 1 (0x1), region = 93 }

</bundles_post_ra>
